<compile_context>
chip_gen: v7x
topology: tpu7x:2x2x1
jax: 0.10.0
libtpu: 0.0.40
codegen_flags: <defaults>
</compile_context>

<pallas_src>
import functools

import jax
import jax.numpy as jnp
from jax.experimental import pallas as pl
from jax.experimental.pallas import tpu as pltpu


# ----------------------------------------------------------------------------
# Pallas kernel: fused (matmul + bias [+ residual] + act [+ channel gate])
# ----------------------------------------------------------------------------
def _fused_mm_kernel(*refs, act, has_res, has_gate):
    a_ref, b_ref, bias_ref = refs[0], refs[1], refs[2]
    idx = 3
    res_ref = None
    gate_ref = None
    if has_res:
        res_ref = refs[idx]
        idx += 1
    if has_gate:
        gate_ref = refs[idx]
        idx += 1
    o_ref = refs[idx]

    # a_ref block: (1, M, K) bf16; b_ref: (K, N) bf16; f32 accumulation on the MXU.
    out = jnp.dot(a_ref[0], b_ref[...], preferred_element_type=jnp.float32)
    out = out + bias_ref[...]                       # (M,N) + (1,N), f32 epilogue
    if has_res:
        out = out + res_ref[0].astype(jnp.float32)  # fused residual add
    if act == "relu":
        out = jnp.maximum(out, 0.0)
    if has_gate:
        out = out * gate_ref[0]                     # (M,N) * (1,N) per-channel gate
    o_ref[0] = out.astype(o_ref.dtype)


def fused_matmul(a, b, bias, act="none", residual=None, gate=None,
                 out_dtype=jnp.bfloat16):
    """out[b] = act(a[b] @ b + bias [+ residual[b]]) [* gate[b]]

    a:        (B, M, K)   bf16
    b:        (K, N)      bf16   (weight, already in matmul layout)
    bias:     (1, N)      f32
    residual: (B, M, N)   bf16   (optional)
    gate:     (B, 1, N)   f32    (optional, per-batch per-channel)
    """
    B, M, K = a.shape
    N = b.shape[1]

    in_specs = [
        pl.BlockSpec((1, M, K), lambda i: (i, 0, 0)),
        pl.BlockSpec((K, N), lambda i: (0, 0)),
        pl.BlockSpec((1, N), lambda i: (0, 0)),
    ]
    args = [a, b, bias]
    if residual is not None:
        in_specs.append(pl.BlockSpec((1, M, N), lambda i: (i, 0, 0)))
        args.append(residual)
    if gate is not None:
        in_specs.append(pl.BlockSpec((1, 1, N), lambda i: (i, 0, 0)))
        args.append(gate)

    kernel = functools.partial(_fused_mm_kernel, act=act,
                               has_res=residual is not None,
                               has_gate=gate is not None)

    return pl.pallas_call(
        kernel,
        out_shape=jax.ShapeDtypeStruct((B, M, N), out_dtype),
        grid_spec=pltpu.PrefetchScalarGridSpec(
            num_scalar_prefetch=0,
            grid=(B,),
            in_specs=in_specs,
            out_specs=pl.BlockSpec((1, M, N), lambda i: (i, 0, 0)),
        ),
        compiler_params=pltpu.CompilerParams(
            dimension_semantics=("parallel",)),
    )(*args)


# ----------------------------------------------------------------------------
# Conv / block forward functions (thin JAX glue around the Pallas kernel)
# ----------------------------------------------------------------------------
def _im2col(x_nhwc, kh, kw, stride, padding):
    B, H, W, C = x_nhwc.shape
    if padding:
        x_nhwc = jnp.pad(
            x_nhwc, ((0, 0), (padding, padding), (padding, padding), (0, 0)))
    Ho = (H + 2 * padding - kh) // stride + 1
    Wo = (W + 2 * padding - kw) // stride + 1
    cols = []
    for i in range(kh):
        for j in range(kw):
            cols.append(
                x_nhwc[:, i:i + stride * Ho:stride, j:j + stride * Wo:stride, :])
    patches = jnp.concatenate(cols, axis=-1) if len(cols) > 1 else cols[0]
    return patches.reshape(B, Ho * Wo, kh * kw * C), (B, Ho, Wo)


def conv2d(x_nhwc, wmat, bias, kh, kw, stride, padding,
           act="none", residual=None, gate=None):
    """wmat: (kh*kw*cin, cout) bf16 (pre-laid-out at init); bias: (1, cout) f32."""
    patches, (B, Ho, Wo) = _im2col(x_nhwc, kh, kw, stride, padding)
    N = wmat.shape[1]
    res = None if residual is None else residual.reshape(B, Ho * Wo, N)
    out = fused_matmul(patches, wmat, bias, act=act, residual=res, gate=gate)
    return out.reshape(B, Ho, Wo, N)


def csi_gate(csi, p):
    """sigmoid(relu(csi @ W1 + b1) @ W2 + b2) -> (B, 1, C) f32. Plain XLA: tiny."""
    h = jnp.maximum(csi @ p["w_fc1"] + p["b_fc1"], 0.0)
    g = jax.nn.sigmoid(h @ p["w_fc2"] + p["b_fc2"])
    return g[:, None, :].astype(jnp.float32)


def rcb_forward(x, p, stride, gate=None):
    """Residual conv block: relu(conv3x3_s) -> conv3x3 + 1x1_s shortcut -> relu.

    The optional per-channel CSI gate (the AFB that follows the block) is fused
    into the second conv's epilogue.
    """
    shortcut = conv2d(x, p["w_sc"], p["b_sc"], 1, 1, stride, 0, act="none")
    h = conv2d(x, p["w1"], p["b1"], 3, 3, stride, 1, act="relu")
    y = conv2d(h, p["w2"], p["b2"], 3, 3, 1, 1, act="relu",
               residual=shortcut, gate=gate)
    return y


def encoder_forward(params, r_nchw, sub_csi):
    x = jnp.transpose(r_nchw, (0, 2, 3, 1)).astype(jnp.bfloat16)  # NCHW -> NHWC bf16
    x = rcb_forward(x, params["cb1"], stride=2, gate=csi_gate(sub_csi, params["at1"]))
    x = rcb_forward(x, params["cb2"], stride=2, gate=csi_gate(sub_csi, params["at2"]))
    x = rcb_forward(x, params["cb3"], stride=2, gate=csi_gate(sub_csi, params["at3"]))
    x = rcb_forward(x, params["cb4"], stride=1)
    return jnp.transpose(x, (0, 3, 1, 2)).astype(jnp.float32)     # NHWC -> NCHW f32


# ----------------------------------------------------------------------------
# Deterministic parameter init (PyTorch-like uniform fan-in init),
# stored directly in matmul layout: conv weights (kh*kw*cin, cout) bf16,
# biases (1, cout) f32, linear weights (cin, cout) f32.
# ----------------------------------------------------------------------------
def _conv_params(key, cout, cin, kh, kw):
    kw_, kb = jax.random.split(key)
    scale = 1.0 / (cin * kh * kw) ** 0.5
    w = jax.random.uniform(kw_, (cout, cin, kh, kw), jnp.float32, -scale, scale)
    b = jax.random.uniform(kb, (cout,), jnp.float32, -scale, scale)
    wmat = jnp.transpose(w, (2, 3, 1, 0)).reshape(kh * kw * cin, cout)
    return wmat.astype(jnp.bfloat16), b.reshape(1, cout)


def _linear_params(key, cout, cin):
    kw_, kb = jax.random.split(key)
    scale = 1.0 / cin ** 0.5
    w = jax.random.uniform(kw_, (cout, cin), jnp.float32, -scale, scale)
    b = jax.random.uniform(kb, (cout,), jnp.float32, -scale, scale)
    return w.T, b          # stored as (cin, cout) so forward is csi @ W


def _rcb_params(key, cin, cout):
    k1, k2, k3 = jax.random.split(key, 3)
    w1, b1 = _conv_params(k1, cout, cin, 3, 3)
    w2, b2 = _conv_params(k2, cout, cout, 3, 3)
    wsc, bsc = _conv_params(k3, cout, cin, 1, 1)
    return {"w1": w1, "b1": b1, "w2": w2, "b2": b2, "w_sc": wsc, "b_sc": bsc}


def _afb_params(key, csi_shape, c):
    hidden = max(c // 16, 4)
    k1, k2 = jax.random.split(key)
    w1, b1 = _linear_params(k1, hidden, csi_shape)
    w2, b2 = _linear_params(k2, c, hidden)
    return {"w_fc1": w1, "b_fc1": b1, "w_fc2": w2, "b_fc2": b2}


def init_encoder_params(key, csi_shape=1, compressed_channel=128):
    ks = jax.random.split(key, 7)
    return {
        "cb1": _rcb_params(ks[0], 3, 128),
        "at1": _afb_params(ks[1], csi_shape, 128),
        "cb2": _rcb_params(ks[2], 128, 256),
        "at2": _afb_params(ks[3], csi_shape, 256),
        "cb3": _rcb_params(ks[4], 256, 256),
        "at3": _afb_params(ks[5], csi_shape, 256),
        "cb4": _rcb_params(ks[6], 256, compressed_channel),
    }


# ----------------------------------------------------------------------------
if __name__ == "__main__":
    key = jax.random.PRNGKey(0)
    kp, kr, kc = jax.random.split(key, 3)

    params = init_encoder_params(kp, csi_shape=1, compressed_channel=128)
    r = jax.random.normal(kr, (2, 3, 16, 16), jnp.float32)       # NCHW, like PyTorch
    sub_csi = jax.random.normal(kc, (2, 1), jnp.float32)         # (B, CSI_shape)

    out = jax.jit(encoder_forward)(params, r, sub_csi)
    out = jax.block_until_ready(out)
    assert out.shape == (2, 128, 2, 2), out.shape
    assert out.dtype == jnp.float32
    print("KERNEL_OK")
</pallas_src>

<mosaic_0001>
module attributes {stable_mosaic.version = 11 : i64} {
  func.func @_fused_mm_kernel(%arg0: i32, %arg1: memref<1x64x27xbf16, #tpu.memory_space<vmem>>, %arg2: memref<27x128xbf16, #tpu.memory_space<vmem>>, %arg3: memref<1x128xf32, #tpu.memory_space<vmem>>, %arg4: memref<1x64x128xbf16, #tpu.memory_space<vmem>>) attributes {dimension_semantics = [#tpu.dimension_semantics<parallel>], iteration_bounds = array<i64: 2>, scalar_prefetch = 0 : i64, scratch_operands = 0 : i64, tpu.core_type = #tpu.core_type<tc>, window_params = [{transform_indices = @transform_0, window_bounds = array<i64: 1, 64, 27>}, {pipeline_mode = #tpu.pipeline_mode<synchronous>, transform_indices = @transform_1, window_bounds = array<i64: 27, 128>}, {pipeline_mode = #tpu.pipeline_mode<synchronous>, transform_indices = @transform_2, window_bounds = array<i64: 1, 128>}, {transform_indices = @transform_3, window_bounds = array<i64: 1, 64, 128>}]} {
    %c0 = arith.constant 0 : index
    %c0_0 = arith.constant 0 : index
    %c0_1 = arith.constant 0 : index
    %0 = vector.load %arg1[%c0, %c0_0, %c0_1] : memref<1x64x27xbf16, #tpu.memory_space<vmem>>, vector<1x64x27xbf16>
    %1 = vector.shape_cast %0 : vector<1x64x27xbf16> to vector<64x27xbf16>
    %c0_2 = arith.constant 0 : index
    %c0_3 = arith.constant 0 : index
    %2 = vector.load %arg2[%c0_2, %c0_3] : memref<27x128xbf16, #tpu.memory_space<vmem>>, vector<27x128xbf16>
    %cst = arith.constant dense<0.000000e+00> : vector<64x128xf32>
    %3 = tpu.matmul %1, %2, %cst {dimension_numbers = #tpu.dot_dimension_numbers<[1], [0], [0], [1], [0, 0, 1, 1], [], []>} : vector<64x27xbf16>, vector<27x128xbf16>, vector<64x128xf32> -> vector<64x128xf32>
    %c0_4 = arith.constant 0 : index
    %c0_5 = arith.constant 0 : index
    %4 = vector.load %arg3[%c0_4, %c0_5] : memref<1x128xf32, #tpu.memory_space<vmem>>, vector<1x128xf32>
    %5 = vector.broadcast %4 : vector<1x128xf32> to vector<64x128xf32>
    %6 = arith.addf %3, %5 : vector<64x128xf32>
    %cst_6 = arith.constant 0.000000e+00 : f32
    %7 = vector.broadcast %cst_6 : f32 to vector<64x128xf32>
    %8 = arith.maximumf %6, %7 : vector<64x128xf32>
    %9 = arith.truncf %8 : vector<64x128xf32> to vector<64x128xbf16>
    %c0_7 = arith.constant 0 : index
    %c0_8 = arith.constant 0 : index
    %c0_9 = arith.constant 0 : index
    %10 = vector.load %arg4[%c0_7, %c0_8, %c0_9] : memref<1x64x128xbf16, #tpu.memory_space<vmem>>, vector<1x64x128xbf16>
    %11 = vector.shape_cast %10 : vector<1x64x128xbf16> to vector<64x128xbf16>
    %12 = vector.shape_cast %9 : vector<64x128xbf16> to vector<1x64x128xbf16>
    tpu.vector_store %arg4[%c0_7, %c0_8, %c0_9], %12 {strides = array<i32>} : memref<1x64x128xbf16, #tpu.memory_space<vmem>>, vector<1x64x128xbf16>,
    return
  }
  func.func @transform_0(%arg0: i32) -> (i32, i32, i32) {
    %c0_i32 = arith.constant 0 : i32
    %c0_i32_0 = arith.constant 0 : i32
    %c0_i32_1 = arith.constant 0 : i32
    return %arg0, %c0_i32, %c0_i32_0 : i32, i32, i32
  }
  func.func @transform_1(%arg0: i32) -> (i32, i32) {
    %c0_i32 = arith.constant 0 : i32
    %c0_i32_0 = arith.constant 0 : i32
    %c0_i32_1 = arith.constant 0 : i32
    return %c0_i32, %c0_i32_0 : i32, i32
  }
  func.func @transform_2(%arg0: i32) -> (i32, i32) {
    %c0_i32 = arith.constant 0 : i32
    %c0_i32_0 = arith.constant 0 : i32
    %c0_i32_1 = arith.constant 0 : i32
    return %c0_i32, %c0_i32_0 : i32, i32
  }
  func.func @transform_3(%arg0: i32) -> (i32, i32, i32) {
    %c0_i32 = arith.constant 0 : i32
    %c0_i32_0 = arith.constant 0 : i32
    %c0_i32_1 = arith.constant 0 : i32
    return %arg0, %c0_i32, %c0_i32_0 : i32, i32, i32
  }
}

module attributes {stable_mosaic.version = 11 : i64} {
  func.func @_fused_mm_kernel(%arg0: i32, %arg1: memref<1x64x1152xbf16, #tpu.memory_space<vmem>>, %arg2: memref<1152x128xbf16, #tpu.memory_space<vmem>>, %arg3: memref<1x128xf32, #tpu.memory_space<vmem>>, %arg4: memref<1x64x128xbf16, #tpu.memory_space<vmem>>, %arg5: memref<1x1x128xf32, #tpu.memory_space<vmem>>, %arg6: memref<1x64x128xbf16, #tpu.memory_space<vmem>>) attributes {dimension_semantics = [#tpu.dimension_semantics<parallel>], iteration_bounds = array<i64: 2>, scalar_prefetch = 0 : i64, scratch_operands = 0 : i64, tpu.core_type = #tpu.core_type<tc>, window_params = [{transform_indices = @transform_0, window_bounds = array<i64: 1, 64, 1152>}, {pipeline_mode = #tpu.pipeline_mode<synchronous>, transform_indices = @transform_1, window_bounds = array<i64: 1152, 128>}, {pipeline_mode = #tpu.pipeline_mode<synchronous>, transform_indices = @transform_2, window_bounds = array<i64: 1, 128>}, {transform_indices = @transform_3, window_bounds = array<i64: 1, 64, 128>}, {transform_indices = @transform_4, window_bounds = array<i64: 1, 1, 128>}, {transform_indices = @transform_5, window_bounds = array<i64: 1, 64, 128>}]} {
    %c0 = arith.constant 0 : index
    %c0_0 = arith.constant 0 : index
    %c0_1 = arith.constant 0 : index
    %0 = vector.load %arg1[%c0, %c0_0, %c0_1] : memref<1x64x1152xbf16, #tpu.memory_space<vmem>>, vector<1x64x1152xbf16>
    %1 = vector.shape_cast %0 : vector<1x64x1152xbf16> to vector<64x1152xbf16>
    %c0_2 = arith.constant 0 : index
    %c0_3 = arith.constant 0 : index
    %2 = vector.load %arg2[%c0_2, %c0_3] : memref<1152x128xbf16, #tpu.memory_space<vmem>>, vector<1152x128xbf16>
    %cst = arith.constant dense<0.000000e+00> : vector<64x128xf32>
    %3 = tpu.matmul %1, %2, %cst {dimension_numbers = #tpu.dot_dimension_numbers<[1], [0], [0], [1], [0, 0, 1, 1], [], []>} : vector<64x1152xbf16>, vector<1152x128xbf16>, vector<64x128xf32> -> vector<64x128xf32>
    %c0_4 = arith.constant 0 : index
    %c0_5 = arith.constant 0 : index
    %4 = vector.load %arg3[%c0_4, %c0_5] : memref<1x128xf32, #tpu.memory_space<vmem>>, vector<1x128xf32>
    %5 = vector.broadcast %4 : vector<1x128xf32> to vector<64x128xf32>
    %6 = arith.addf %3, %5 : vector<64x128xf32>
    %c0_6 = arith.constant 0 : index
    %c0_7 = arith.constant 0 : index
    %c0_8 = arith.constant 0 : index
    %7 = vector.load %arg4[%c0_6, %c0_7, %c0_8] : memref<1x64x128xbf16, #tpu.memory_space<vmem>>, vector<1x64x128xbf16>
    %8 = vector.shape_cast %7 : vector<1x64x128xbf16> to vector<64x128xbf16>
    %9 = arith.extf %8 : vector<64x128xbf16> to vector<64x128xf32>
    %10 = arith.addf %6, %9 : vector<64x128xf32>
    %cst_9 = arith.constant 0.000000e+00 : f32
    %11 = vector.broadcast %cst_9 : f32 to vector<64x128xf32>
    %12 = arith.maximumf %10, %11 : vector<64x128xf32>
    %c0_10 = arith.constant 0 : index
    %c0_11 = arith.constant 0 : index
    %c0_12 = arith.constant 0 : index
    %13 = vector.load %arg5[%c0_10, %c0_11, %c0_12] : memref<1x1x128xf32, #tpu.memory_space<vmem>>, vector<1x1x128xf32>
    %14 = vector.shape_cast %13 : vector<1x1x128xf32> to vector<1x128xf32>
    %15 = vector.broadcast %14 : vector<1x128xf32> to vector<64x128xf32>
    %16 = arith.mulf %12, %15 : vector<64x128xf32>
    %17 = arith.truncf %16 : vector<64x128xf32> to vector<64x128xbf16>
    %c0_13 = arith.constant 0 : index
    %c0_14 = arith.constant 0 : index
    %c0_15 = arith.constant 0 : index
    %18 = vector.load %arg6[%c0_13, %c0_14, %c0_15] : memref<1x64x128xbf16, #tpu.memory_space<vmem>>, vector<1x64x128xbf16>
    %19 = vector.shape_cast %18 : vector<1x64x128xbf16> to vector<64x128xbf16>
    %20 = vector.shape_cast %17 : vector<64x128xbf16> to vector<1x64x128xbf16>
    tpu.vector_store %arg6[%c0_13, %c0_14, %c0_15], %20 {strides = array<i32>} : memref<1x64x128xbf16, #tpu.memory_space<vmem>>, vector<1x64x128xbf16>,
    return
  }
  func.func @transform_0(%arg0: i32) -> (i32, i32, i32) {
    %c0_i32 = arith.constant 0 : i32
    %c0_i32_0 = arith.constant 0 : i32
    %c0_i32_1 = arith.constant 0 : i32
    return %arg0, %c0_i32, %c0_i32_0 : i32, i32, i32
  }
  func.func @transform_1(%arg0: i32) -> (i32, i32) {
    %c0_i32 = arith.constant 0 : i32
    %c0_i32_0 = arith.constant 0 : i32
    %c0_i32_1 = arith.constant 0 : i32
    return %c0_i32, %c0_i32_0 : i32, i32
  }
  func.func @transform_2(%arg0: i32) -> (i32, i32) {
    %c0_i32 = arith.constant 0 : i32
    %c0_i32_0 = arith.constant 0 : i32
    %c0_i32_1 = arith.constant 0 : i32
    return %c0_i32, %c0_i32_0 : i32, i32
  }
  func.func @transform_3(%arg0: i32) -> (i32, i32, i32) {
    %c0_i32 = arith.constant 0 : i32
    %c0_i32_0 = arith.constant 0 : i32
    %c0_i32_1 = arith.constant 0 : i32
    return %arg0, %c0_i32, %c0_i32_0 : i32, i32, i32
  }
  func.func @transform_4(%arg0: i32) -> (i32, i32, i32) {
    %c0_i32 = arith.constant 0 : i32
    %c0_i32_0 = arith.constant 0 : i32
    %c0_i32_1 = arith.constant 0 : i32
    return %arg0, %c0_i32, %c0_i32_0 : i32, i32, i32
  }
  func.func @transform_5(%arg0: i32) -> (i32, i32, i32) {
    %c0_i32 = arith.constant 0 : i32
    %c0_i32_0 = arith.constant 0 : i32
    %c0_i32_1 = arith.constant 0 : i32
    return %arg0, %c0_i32, %c0_i32_0 : i32, i32, i32
  }
}

module attributes {stable_mosaic.version = 11 : i64} {
  func.func @_fused_mm_kernel(%arg0: i32, %arg1: memref<1x64x3xbf16, #tpu.memory_space<vmem>>, %arg2: memref<3x128xbf16, #tpu.memory_space<vmem>>, %arg3: memref<1x128xf32, #tpu.memory_space<vmem>>, %arg4: memref<1x64x128xbf16, #tpu.memory_space<vmem>>) attributes {dimension_semantics = [#tpu.dimension_semantics<parallel>], iteration_bounds = array<i64: 2>, scalar_prefetch = 0 : i64, scratch_operands = 0 : i64, tpu.core_type = #tpu.core_type<tc>, window_params = [{transform_indices = @transform_0, window_bounds = array<i64: 1, 64, 3>}, {pipeline_mode = #tpu.pipeline_mode<synchronous>, transform_indices = @transform_1, window_bounds = array<i64: 3, 128>}, {pipeline_mode = #tpu.pipeline_mode<synchronous>, transform_indices = @transform_2, window_bounds = array<i64: 1, 128>}, {transform_indices = @transform_3, window_bounds = array<i64: 1, 64, 128>}]} {
    %c0 = arith.constant 0 : index
    %c0_0 = arith.constant 0 : index
    %c0_1 = arith.constant 0 : index
    %0 = vector.load %arg1[%c0, %c0_0, %c0_1] : memref<1x64x3xbf16, #tpu.memory_space<vmem>>, vector<1x64x3xbf16>
    %1 = vector.shape_cast %0 : vector<1x64x3xbf16> to vector<64x3xbf16>
    %c0_2 = arith.constant 0 : index
    %c0_3 = arith.constant 0 : index
    %2 = vector.load %arg2[%c0_2, %c0_3] : memref<3x128xbf16, #tpu.memory_space<vmem>>, vector<3x128xbf16>
    %cst = arith.constant dense<0.000000e+00> : vector<64x128xf32>
    %3 = tpu.matmul %1, %2, %cst {dimension_numbers = #tpu.dot_dimension_numbers<[1], [0], [0], [1], [0, 0, 1, 1], [], []>} : vector<64x3xbf16>, vector<3x128xbf16>, vector<64x128xf32> -> vector<64x128xf32>
    %c0_4 = arith.constant 0 : index
    %c0_5 = arith.constant 0 : index
    %4 = vector.load %arg3[%c0_4, %c0_5] : memref<1x128xf32, #tpu.memory_space<vmem>>, vector<1x128xf32>
    %5 = vector.broadcast %4 : vector<1x128xf32> to vector<64x128xf32>
    %6 = arith.addf %3, %5 : vector<64x128xf32>
    %7 = arith.truncf %6 : vector<64x128xf32> to vector<64x128xbf16>
    %c0_6 = arith.constant 0 : index
    %c0_7 = arith.constant 0 : index
    %c0_8 = arith.constant 0 : index
    %8 = vector.load %arg4[%c0_6, %c0_7, %c0_8] : memref<1x64x128xbf16, #tpu.memory_space<vmem>>, vector<1x64x128xbf16>
    %9 = vector.shape_cast %8 : vector<1x64x128xbf16> to vector<64x128xbf16>
    %10 = vector.shape_cast %7 : vector<64x128xbf16> to vector<1x64x128xbf16>
    tpu.vector_store %arg4[%c0_6, %c0_7, %c0_8], %10 {strides = array<i32>} : memref<1x64x128xbf16, #tpu.memory_space<vmem>>, vector<1x64x128xbf16>,
    return
  }
  func.func @transform_0(%arg0: i32) -> (i32, i32, i32) {
    %c0_i32 = arith.constant 0 : i32
    %c0_i32_0 = arith.constant 0 : i32
    %c0_i32_1 = arith.constant 0 : i32
    return %arg0, %c0_i32, %c0_i32_0 : i32, i32, i32
  }
  func.func @transform_1(%arg0: i32) -> (i32, i32) {
    %c0_i32 = arith.constant 0 : i32
    %c0_i32_0 = arith.constant 0 : i32
    %c0_i32_1 = arith.constant 0 : i32
    return %c0_i32, %c0_i32_0 : i32, i32
  }
  func.func @transform_2(%arg0: i32) -> (i32, i32) {
    %c0_i32 = arith.constant 0 : i32
    %c0_i32_0 = arith.constant 0 : i32
    %c0_i32_1 = arith.constant 0 : i32
    return %c0_i32, %c0_i32_0 : i32, i32
  }
  func.func @transform_3(%arg0: i32) -> (i32, i32, i32) {
    %c0_i32 = arith.constant 0 : i32
    %c0_i32_0 = arith.constant 0 : i32
    %c0_i32_1 = arith.constant 0 : i32
    return %arg0, %c0_i32, %c0_i32_0 : i32, i32, i32
  }
}

module attributes {stable_mosaic.version = 11 : i64} {
  func.func @_fused_mm_kernel(%arg0: i32, %arg1: memref<1x16x1152xbf16, #tpu.memory_space<vmem>>, %arg2: memref<1152x256xbf16, #tpu.memory_space<vmem>>, %arg3: memref<1x256xf32, #tpu.memory_space<vmem>>, %arg4: memref<1x16x256xbf16, #tpu.memory_space<vmem>>) attributes {dimension_semantics = [#tpu.dimension_semantics<parallel>], iteration_bounds = array<i64: 2>, scalar_prefetch = 0 : i64, scratch_operands = 0 : i64, tpu.core_type = #tpu.core_type<tc>, window_params = [{transform_indices = @transform_0, window_bounds = array<i64: 1, 16, 1152>}, {pipeline_mode = #tpu.pipeline_mode<synchronous>, transform_indices = @transform_1, window_bounds = array<i64: 1152, 256>}, {pipeline_mode = #tpu.pipeline_mode<synchronous>, transform_indices = @transform_2, window_bounds = array<i64: 1, 256>}, {transform_indices = @transform_3, window_bounds = array<i64: 1, 16, 256>}]} {
    %c0 = arith.constant 0 : index
    %c0_0 = arith.constant 0 : index
    %c0_1 = arith.constant 0 : index
    %0 = vector.load %arg1[%c0, %c0_0, %c0_1] : memref<1x16x1152xbf16, #tpu.memory_space<vmem>>, vector<1x16x1152xbf16>
    %1 = vector.shape_cast %0 : vector<1x16x1152xbf16> to vector<16x1152xbf16>
    %c0_2 = arith.constant 0 : index
    %c0_3 = arith.constant 0 : index
    %2 = vector.load %arg2[%c0_2, %c0_3] : memref<1152x256xbf16, #tpu.memory_space<vmem>>, vector<1152x256xbf16>
    %cst = arith.constant dense<0.000000e+00> : vector<16x256xf32>
    %3 = tpu.matmul %1, %2, %cst {dimension_numbers = #tpu.dot_dimension_numbers<[1], [0], [0], [1], [0, 0, 1, 1], [], []>} : vector<16x1152xbf16>, vector<1152x256xbf16>, vector<16x256xf32> -> vector<16x256xf32>
    %c0_4 = arith.constant 0 : index
    %c0_5 = arith.constant 0 : index
    %4 = vector.load %arg3[%c0_4, %c0_5] : memref<1x256xf32, #tpu.memory_space<vmem>>, vector<1x256xf32>
    %5 = vector.broadcast %4 : vector<1x256xf32> to vector<16x256xf32>
    %6 = arith.addf %3, %5 : vector<16x256xf32>
    %cst_6 = arith.constant 0.000000e+00 : f32
    %7 = vector.broadcast %cst_6 : f32 to vector<16x256xf32>
    %8 = arith.maximumf %6, %7 : vector<16x256xf32>
    %9 = arith.truncf %8 : vector<16x256xf32> to vector<16x256xbf16>
    %c0_7 = arith.constant 0 : index
    %c0_8 = arith.constant 0 : index
    %c0_9 = arith.constant 0 : index
    %10 = vector.load %arg4[%c0_7, %c0_8, %c0_9] : memref<1x16x256xbf16, #tpu.memory_space<vmem>>, vector<1x16x256xbf16>
    %11 = vector.shape_cast %10 : vector<1x16x256xbf16> to vector<16x256xbf16>
    %12 = vector.shape_cast %9 : vector<16x256xbf16> to vector<1x16x256xbf16>
    tpu.vector_store %arg4[%c0_7, %c0_8, %c0_9], %12 {strides = array<i32>} : memref<1x16x256xbf16, #tpu.memory_space<vmem>>, vector<1x16x256xbf16>,
    return
  }
  func.func @transform_0(%arg0: i32) -> (i32, i32, i32) {
    %c0_i32 = arith.constant 0 : i32
    %c0_i32_0 = arith.constant 0 : i32
    %c0_i32_1 = arith.constant 0 : i32
    return %arg0, %c0_i32, %c0_i32_0 : i32, i32, i32
  }
  func.func @transform_1(%arg0: i32) -> (i32, i32) {
    %c0_i32 = arith.constant 0 : i32
    %c0_i32_0 = arith.constant 0 : i32
    %c0_i32_1 = arith.constant 0 : i32
    return %c0_i32, %c0_i32_0 : i32, i32
  }
  func.func @transform_2(%arg0: i32) -> (i32, i32) {
    %c0_i32 = arith.constant 0 : i32
    %c0_i32_0 = arith.constant 0 : i32
    %c0_i32_1 = arith.constant 0 : i32
    return %c0_i32, %c0_i32_0 : i32, i32
  }
  func.func @transform_3(%arg0: i32) -> (i32, i32, i32) {
    %c0_i32 = arith.constant 0 : i32
    %c0_i32_0 = arith.constant 0 : i32
    %c0_i32_1 = arith.constant 0 : i32
    return %arg0, %c0_i32, %c0_i32_0 : i32, i32, i32
  }
}

module attributes {stable_mosaic.version = 11 : i64} {
  func.func @_fused_mm_kernel(%arg0: i32, %arg1: memref<1x16x2304xbf16, #tpu.memory_space<vmem>>, %arg2: memref<2304x256xbf16, #tpu.memory_space<vmem>>, %arg3: memref<1x256xf32, #tpu.memory_space<vmem>>, %arg4: memref<1x16x256xbf16, #tpu.memory_space<vmem>>, %arg5: memref<1x1x256xf32, #tpu.memory_space<vmem>>, %arg6: memref<1x16x256xbf16, #tpu.memory_space<vmem>>) attributes {dimension_semantics = [#tpu.dimension_semantics<parallel>], iteration_bounds = array<i64: 2>, scalar_prefetch = 0 : i64, scratch_operands = 0 : i64, tpu.core_type = #tpu.core_type<tc>, window_params = [{transform_indices = @transform_0, window_bounds = array<i64: 1, 16, 2304>}, {pipeline_mode = #tpu.pipeline_mode<synchronous>, transform_indices = @transform_1, window_bounds = array<i64: 2304, 256>}, {pipeline_mode = #tpu.pipeline_mode<synchronous>, transform_indices = @transform_2, window_bounds = array<i64: 1, 256>}, {transform_indices = @transform_3, window_bounds = array<i64: 1, 16, 256>}, {transform_indices = @transform_4, window_bounds = array<i64: 1, 1, 256>}, {transform_indices = @transform_5, window_bounds = array<i64: 1, 16, 256>}]} {
    %c0 = arith.constant 0 : index
    %c0_0 = arith.constant 0 : index
    %c0_1 = arith.constant 0 : index
    %0 = vector.load %arg1[%c0, %c0_0, %c0_1] : memref<1x16x2304xbf16, #tpu.memory_space<vmem>>, vector<1x16x2304xbf16>
    %1 = vector.shape_cast %0 : vector<1x16x2304xbf16> to vector<16x2304xbf16>
    %c0_2 = arith.constant 0 : index
    %c0_3 = arith.constant 0 : index
    %2 = vector.load %arg2[%c0_2, %c0_3] : memref<2304x256xbf16, #tpu.memory_space<vmem>>, vector<2304x256xbf16>
    %cst = arith.constant dense<0.000000e+00> : vector<16x256xf32>
    %3 = tpu.matmul %1, %2, %cst {dimension_numbers = #tpu.dot_dimension_numbers<[1], [0], [0], [1], [0, 0, 1, 1], [], []>} : vector<16x2304xbf16>, vector<2304x256xbf16>, vector<16x256xf32> -> vector<16x256xf32>
    %c0_4 = arith.constant 0 : index
    %c0_5 = arith.constant 0 : index
    %4 = vector.load %arg3[%c0_4, %c0_5] : memref<1x256xf32, #tpu.memory_space<vmem>>, vector<1x256xf32>
    %5 = vector.broadcast %4 : vector<1x256xf32> to vector<16x256xf32>
    %6 = arith.addf %3, %5 : vector<16x256xf32>
    %c0_6 = arith.constant 0 : index
    %c0_7 = arith.constant 0 : index
    %c0_8 = arith.constant 0 : index
    %7 = vector.load %arg4[%c0_6, %c0_7, %c0_8] : memref<1x16x256xbf16, #tpu.memory_space<vmem>>, vector<1x16x256xbf16>
    %8 = vector.shape_cast %7 : vector<1x16x256xbf16> to vector<16x256xbf16>
    %9 = arith.extf %8 : vector<16x256xbf16> to vector<16x256xf32>
    %10 = arith.addf %6, %9 : vector<16x256xf32>
    %cst_9 = arith.constant 0.000000e+00 : f32
    %11 = vector.broadcast %cst_9 : f32 to vector<16x256xf32>
    %12 = arith.maximumf %10, %11 : vector<16x256xf32>
    %c0_10 = arith.constant 0 : index
    %c0_11 = arith.constant 0 : index
    %c0_12 = arith.constant 0 : index
    %13 = vector.load %arg5[%c0_10, %c0_11, %c0_12] : memref<1x1x256xf32, #tpu.memory_space<vmem>>, vector<1x1x256xf32>
    %14 = vector.shape_cast %13 : vector<1x1x256xf32> to vector<1x256xf32>
    %15 = vector.broadcast %14 : vector<1x256xf32> to vector<16x256xf32>
    %16 = arith.mulf %12, %15 : vector<16x256xf32>
    %17 = arith.truncf %16 : vector<16x256xf32> to vector<16x256xbf16>
    %c0_13 = arith.constant 0 : index
    %c0_14 = arith.constant 0 : index
    %c0_15 = arith.constant 0 : index
    %18 = vector.load %arg6[%c0_13, %c0_14, %c0_15] : memref<1x16x256xbf16, #tpu.memory_space<vmem>>, vector<1x16x256xbf16>
    %19 = vector.shape_cast %18 : vector<1x16x256xbf16> to vector<16x256xbf16>
    %20 = vector.shape_cast %17 : vector<16x256xbf16> to vector<1x16x256xbf16>
    tpu.vector_store %arg6[%c0_13, %c0_14, %c0_15], %20 {strides = array<i32>} : memref<1x16x256xbf16, #tpu.memory_space<vmem>>, vector<1x16x256xbf16>,
    return
  }
  func.func @transform_0(%arg0: i32) -> (i32, i32, i32) {
    %c0_i32 = arith.constant 0 : i32
    %c0_i32_0 = arith.constant 0 : i32
    %c0_i32_1 = arith.constant 0 : i32
    return %arg0, %c0_i32, %c0_i32_0 : i32, i32, i32
  }
  func.func @transform_1(%arg0: i32) -> (i32, i32) {
    %c0_i32 = arith.constant 0 : i32
    %c0_i32_0 = arith.constant 0 : i32
    %c0_i32_1 = arith.constant 0 : i32
    return %c0_i32, %c0_i32_0 : i32, i32
  }
  func.func @transform_2(%arg0: i32) -> (i32, i32) {
    %c0_i32 = arith.constant 0 : i32
    %c0_i32_0 = arith.constant 0 : i32
    %c0_i32_1 = arith.constant 0 : i32
    return %c0_i32, %c0_i32_0 : i32, i32
  }
  func.func @transform_3(%arg0: i32) -> (i32, i32, i32) {
    %c0_i32 = arith.constant 0 : i32
    %c0_i32_0 = arith.constant 0 : i32
    %c0_i32_1 = arith.constant 0 : i32
    return %arg0, %c0_i32, %c0_i32_0 : i32, i32, i32
  }
  func.func @transform_4(%arg0: i32) -> (i32, i32, i32) {
    %c0_i32 = arith.constant 0 : i32
    %c0_i32_0 = arith.constant 0 : i32
    %c0_i32_1 = arith.constant 0 : i32
    return %arg0, %c0_i32, %c0_i32_0 : i32, i32, i32
  }
  func.func @transform_5(%arg0: i32) -> (i32, i32, i32) {
    %c0_i32 = arith.constant 0 : i32
    %c0_i32_0 = arith.constant 0 : i32
    %c0_i32_1 = arith.constant 0 : i32
    return %arg0, %c0_i32, %c0_i32_0 : i32, i32, i32
  }
}

module attributes {stable_mosaic.version = 11 : i64} {
  func.func @_fused_mm_kernel(%arg0: i32, %arg1: memref<1x16x128xbf16, #tpu.memory_space<vmem>>, %arg2: memref<128x256xbf16, #tpu.memory_space<vmem>>, %arg3: memref<1x256xf32, #tpu.memory_space<vmem>>, %arg4: memref<1x16x256xbf16, #tpu.memory_space<vmem>>) attributes {dimension_semantics = [#tpu.dimension_semantics<parallel>], iteration_bounds = array<i64: 2>, scalar_prefetch = 0 : i64, scratch_operands = 0 : i64, tpu.core_type = #tpu.core_type<tc>, window_params = [{transform_indices = @transform_0, window_bounds = array<i64: 1, 16, 128>}, {pipeline_mode = #tpu.pipeline_mode<synchronous>, transform_indices = @transform_1, window_bounds = array<i64: 128, 256>}, {pipeline_mode = #tpu.pipeline_mode<synchronous>, transform_indices = @transform_2, window_bounds = array<i64: 1, 256>}, {transform_indices = @transform_3, window_bounds = array<i64: 1, 16, 256>}]} {
    %c0 = arith.constant 0 : index
    %c0_0 = arith.constant 0 : index
    %c0_1 = arith.constant 0 : index
    %0 = vector.load %arg1[%c0, %c0_0, %c0_1] : memref<1x16x128xbf16, #tpu.memory_space<vmem>>, vector<1x16x128xbf16>
    %1 = vector.shape_cast %0 : vector<1x16x128xbf16> to vector<16x128xbf16>
    %c0_2 = arith.constant 0 : index
    %c0_3 = arith.constant 0 : index
    %2 = vector.load %arg2[%c0_2, %c0_3] : memref<128x256xbf16, #tpu.memory_space<vmem>>, vector<128x256xbf16>
    %cst = arith.constant dense<0.000000e+00> : vector<16x256xf32>
    %3 = tpu.matmul %1, %2, %cst {dimension_numbers = #tpu.dot_dimension_numbers<[1], [0], [0], [1], [0, 0, 1, 1], [], []>} : vector<16x128xbf16>, vector<128x256xbf16>, vector<16x256xf32> -> vector<16x256xf32>
    %c0_4 = arith.constant 0 : index
    %c0_5 = arith.constant 0 : index
    %4 = vector.load %arg3[%c0_4, %c0_5] : memref<1x256xf32, #tpu.memory_space<vmem>>, vector<1x256xf32>
    %5 = vector.broadcast %4 : vector<1x256xf32> to vector<16x256xf32>
    %6 = arith.addf %3, %5 : vector<16x256xf32>
    %7 = arith.truncf %6 : vector<16x256xf32> to vector<16x256xbf16>
    %c0_6 = arith.constant 0 : index
    %c0_7 = arith.constant 0 : index
    %c0_8 = arith.constant 0 : index
    %8 = vector.load %arg4[%c0_6, %c0_7, %c0_8] : memref<1x16x256xbf16, #tpu.memory_space<vmem>>, vector<1x16x256xbf16>
    %9 = vector.shape_cast %8 : vector<1x16x256xbf16> to vector<16x256xbf16>
    %10 = vector.shape_cast %7 : vector<16x256xbf16> to vector<1x16x256xbf16>
    tpu.vector_store %arg4[%c0_6, %c0_7, %c0_8], %10 {strides = array<i32>} : memref<1x16x256xbf16, #tpu.memory_space<vmem>>, vector<1x16x256xbf16>,
    return
  }
  func.func @transform_0(%arg0: i32) -> (i32, i32, i32) {
    %c0_i32 = arith.constant 0 : i32
    %c0_i32_0 = arith.constant 0 : i32
    %c0_i32_1 = arith.constant 0 : i32
    return %arg0, %c0_i32, %c0_i32_0 : i32, i32, i32
  }
  func.func @transform_1(%arg0: i32) -> (i32, i32) {
    %c0_i32 = arith.constant 0 : i32
    %c0_i32_0 = arith.constant 0 : i32
    %c0_i32_1 = arith.constant 0 : i32
    return %c0_i32, %c0_i32_0 : i32, i32
  }
  func.func @transform_2(%arg0: i32) -> (i32, i32) {
    %c0_i32 = arith.constant 0 : i32
    %c0_i32_0 = arith.constant 0 : i32
    %c0_i32_1 = arith.constant 0 : i32
    return %c0_i32, %c0_i32_0 : i32, i32
  }
  func.func @transform_3(%arg0: i32) -> (i32, i32, i32) {
    %c0_i32 = arith.constant 0 : i32
    %c0_i32_0 = arith.constant 0 : i32
    %c0_i32_1 = arith.constant 0 : i32
    return %arg0, %c0_i32, %c0_i32_0 : i32, i32, i32
  }
}

module attributes {stable_mosaic.version = 11 : i64} {
  func.func @_fused_mm_kernel(%arg0: i32, %arg1: memref<1x4x2304xbf16, #tpu.memory_space<vmem>>, %arg2: memref<2304x256xbf16, #tpu.memory_space<vmem>>, %arg3: memref<1x256xf32, #tpu.memory_space<vmem>>, %arg4: memref<1x4x256xbf16, #tpu.memory_space<vmem>>) attributes {dimension_semantics = [#tpu.dimension_semantics<parallel>], iteration_bounds = array<i64: 2>, scalar_prefetch = 0 : i64, scratch_operands = 0 : i64, tpu.core_type = #tpu.core_type<tc>, window_params = [{transform_indices = @transform_0, window_bounds = array<i64: 1, 4, 2304>}, {pipeline_mode = #tpu.pipeline_mode<synchronous>, transform_indices = @transform_1, window_bounds = array<i64: 2304, 256>}, {pipeline_mode = #tpu.pipeline_mode<synchronous>, transform_indices = @transform_2, window_bounds = array<i64: 1, 256>}, {transform_indices = @transform_3, window_bounds = array<i64: 1, 4, 256>}]} {
    %c0 = arith.constant 0 : index
    %c0_0 = arith.constant 0 : index
    %c0_1 = arith.constant 0 : index
    %0 = vector.load %arg1[%c0, %c0_0, %c0_1] : memref<1x4x2304xbf16, #tpu.memory_space<vmem>>, vector<1x4x2304xbf16>
    %1 = vector.shape_cast %0 : vector<1x4x2304xbf16> to vector<4x2304xbf16>
    %c0_2 = arith.constant 0 : index
    %c0_3 = arith.constant 0 : index
    %2 = vector.load %arg2[%c0_2, %c0_3] : memref<2304x256xbf16, #tpu.memory_space<vmem>>, vector<2304x256xbf16>
    %cst = arith.constant dense<0.000000e+00> : vector<4x256xf32>
    %3 = tpu.matmul %1, %2, %cst {dimension_numbers = #tpu.dot_dimension_numbers<[1], [0], [0], [1], [0, 0, 1, 1], [], []>} : vector<4x2304xbf16>, vector<2304x256xbf16>, vector<4x256xf32> -> vector<4x256xf32>
    %c0_4 = arith.constant 0 : index
    %c0_5 = arith.constant 0 : index
    %4 = vector.load %arg3[%c0_4, %c0_5] : memref<1x256xf32, #tpu.memory_space<vmem>>, vector<1x256xf32>
    %5 = vector.broadcast %4 : vector<1x256xf32> to vector<4x256xf32>
    %6 = arith.addf %3, %5 : vector<4x256xf32>
    %cst_6 = arith.constant 0.000000e+00 : f32
    %7 = vector.broadcast %cst_6 : f32 to vector<4x256xf32>
    %8 = arith.maximumf %6, %7 : vector<4x256xf32>
    %9 = arith.truncf %8 : vector<4x256xf32> to vector<4x256xbf16>
    %c0_7 = arith.constant 0 : index
    %c0_8 = arith.constant 0 : index
    %c0_9 = arith.constant 0 : index
    %10 = vector.load %arg4[%c0_7, %c0_8, %c0_9] : memref<1x4x256xbf16, #tpu.memory_space<vmem>>, vector<1x4x256xbf16>
    %11 = vector.shape_cast %10 : vector<1x4x256xbf16> to vector<4x256xbf16>
    %12 = vector.shape_cast %9 : vector<4x256xbf16> to vector<1x4x256xbf16>
    tpu.vector_store %arg4[%c0_7, %c0_8, %c0_9], %12 {strides = array<i32>} : memref<1x4x256xbf16, #tpu.memory_space<vmem>>, vector<1x4x256xbf16>,
    return
  }
  func.func @transform_0(%arg0: i32) -> (i32, i32, i32) {
    %c0_i32 = arith.constant 0 : i32
    %c0_i32_0 = arith.constant 0 : i32
    %c0_i32_1 = arith.constant 0 : i32
    return %arg0, %c0_i32, %c0_i32_0 : i32, i32, i32
  }
  func.func @transform_1(%arg0: i32) -> (i32, i32) {
    %c0_i32 = arith.constant 0 : i32
    %c0_i32_0 = arith.constant 0 : i32
    %c0_i32_1 = arith.constant 0 : i32
    return %c0_i32, %c0_i32_0 : i32, i32
  }
  func.func @transform_2(%arg0: i32) -> (i32, i32) {
    %c0_i32 = arith.constant 0 : i32
    %c0_i32_0 = arith.constant 0 : i32
    %c0_i32_1 = arith.constant 0 : i32
    return %c0_i32, %c0_i32_0 : i32, i32
  }
  func.func @transform_3(%arg0: i32) -> (i32, i32, i32) {
    %c0_i32 = arith.constant 0 : i32
    %c0_i32_0 = arith.constant 0 : i32
    %c0_i32_1 = arith.constant 0 : i32
    return %arg0, %c0_i32, %c0_i32_0 : i32, i32, i32
  }
}

module attributes {stable_mosaic.version = 11 : i64} {
  func.func @_fused_mm_kernel(%arg0: i32, %arg1: memref<1x4x2304xbf16, #tpu.memory_space<vmem>>, %arg2: memref<2304x128xbf16, #tpu.memory_space<vmem>>, %arg3: memref<1x128xf32, #tpu.memory_space<vmem>>, %arg4: memref<1x4x128xbf16, #tpu.memory_space<vmem>>) attributes {dimension_semantics = [#tpu.dimension_semantics<parallel>], iteration_bounds = array<i64: 2>, scalar_prefetch = 0 : i64, scratch_operands = 0 : i64, tpu.core_type = #tpu.core_type<tc>, window_params = [{transform_indices = @transform_0, window_bounds = array<i64: 1, 4, 2304>}, {pipeline_mode = #tpu.pipeline_mode<synchronous>, transform_indices = @transform_1, window_bounds = array<i64: 2304, 128>}, {pipeline_mode = #tpu.pipeline_mode<synchronous>, transform_indices = @transform_2, window_bounds = array<i64: 1, 128>}, {transform_indices = @transform_3, window_bounds = array<i64: 1, 4, 128>}]} {
    %c0 = arith.constant 0 : index
    %c0_0 = arith.constant 0 : index
    %c0_1 = arith.constant 0 : index
    %0 = vector.load %arg1[%c0, %c0_0, %c0_1] : memref<1x4x2304xbf16, #tpu.memory_space<vmem>>, vector<1x4x2304xbf16>
    %1 = vector.shape_cast %0 : vector<1x4x2304xbf16> to vector<4x2304xbf16>
    %c0_2 = arith.constant 0 : index
    %c0_3 = arith.constant 0 : index
    %2 = vector.load %arg2[%c0_2, %c0_3] : memref<2304x128xbf16, #tpu.memory_space<vmem>>, vector<2304x128xbf16>
    %cst = arith.constant dense<0.000000e+00> : vector<4x128xf32>
    %3 = tpu.matmul %1, %2, %cst {dimension_numbers = #tpu.dot_dimension_numbers<[1], [0], [0], [1], [0, 0, 1, 1], [], []>} : vector<4x2304xbf16>, vector<2304x128xbf16>, vector<4x128xf32> -> vector<4x128xf32>
    %c0_4 = arith.constant 0 : index
    %c0_5 = arith.constant 0 : index
    %4 = vector.load %arg3[%c0_4, %c0_5] : memref<1x128xf32, #tpu.memory_space<vmem>>, vector<1x128xf32>
    %5 = vector.broadcast %4 : vector<1x128xf32> to vector<4x128xf32>
    %6 = arith.addf %3, %5 : vector<4x128xf32>
    %cst_6 = arith.constant 0.000000e+00 : f32
    %7 = vector.broadcast %cst_6 : f32 to vector<4x128xf32>
    %8 = arith.maximumf %6, %7 : vector<4x128xf32>
    %9 = arith.truncf %8 : vector<4x128xf32> to vector<4x128xbf16>
    %c0_7 = arith.constant 0 : index
    %c0_8 = arith.constant 0 : index
    %c0_9 = arith.constant 0 : index
    %10 = vector.load %arg4[%c0_7, %c0_8, %c0_9] : memref<1x4x128xbf16, #tpu.memory_space<vmem>>, vector<1x4x128xbf16>
    %11 = vector.shape_cast %10 : vector<1x4x128xbf16> to vector<4x128xbf16>
    %12 = vector.shape_cast %9 : vector<4x128xbf16> to vector<1x4x128xbf16>
    tpu.vector_store %arg4[%c0_7, %c0_8, %c0_9], %12 {strides = array<i32>} : memref<1x4x128xbf16, #tpu.memory_space<vmem>>, vector<1x4x128xbf16>,
    return
  }
  func.func @transform_0(%arg0: i32) -> (i32, i32, i32) {
    %c0_i32 = arith.constant 0 : i32
    %c0_i32_0 = arith.constant 0 : i32
    %c0_i32_1 = arith.constant 0 : i32
    return %arg0, %c0_i32, %c0_i32_0 : i32, i32, i32
  }
  func.func @transform_1(%arg0: i32) -> (i32, i32) {
    %c0_i32 = arith.constant 0 : i32
    %c0_i32_0 = arith.constant 0 : i32
    %c0_i32_1 = arith.constant 0 : i32
    return %c0_i32, %c0_i32_0 : i32, i32
  }
  func.func @transform_2(%arg0: i32) -> (i32, i32) {
    %c0_i32 = arith.constant 0 : i32
    %c0_i32_0 = arith.constant 0 : i32
    %c0_i32_1 = arith.constant 0 : i32
    return %c0_i32, %c0_i32_0 : i32, i32
  }
  func.func @transform_3(%arg0: i32) -> (i32, i32, i32) {
    %c0_i32 = arith.constant 0 : i32
    %c0_i32_0 = arith.constant 0 : i32
    %c0_i32_1 = arith.constant 0 : i32
    return %arg0, %c0_i32, %c0_i32_0 : i32, i32, i32
  }
}

module attributes {stable_mosaic.version = 11 : i64} {
  func.func @_fused_mm_kernel(%arg0: i32, %arg1: memref<1x4x256xbf16, #tpu.memory_space<vmem>>, %arg2: memref<256x256xbf16, #tpu.memory_space<vmem>>, %arg3: memref<1x256xf32, #tpu.memory_space<vmem>>, %arg4: memref<1x4x256xbf16, #tpu.memory_space<vmem>>) attributes {dimension_semantics = [#tpu.dimension_semantics<parallel>], iteration_bounds = array<i64: 2>, scalar_prefetch = 0 : i64, scratch_operands = 0 : i64, tpu.core_type = #tpu.core_type<tc>, window_params = [{transform_indices = @transform_0, window_bounds = array<i64: 1, 4, 256>}, {pipeline_mode = #tpu.pipeline_mode<synchronous>, transform_indices = @transform_1, window_bounds = array<i64: 256, 256>}, {pipeline_mode = #tpu.pipeline_mode<synchronous>, transform_indices = @transform_2, window_bounds = array<i64: 1, 256>}, {transform_indices = @transform_3, window_bounds = array<i64: 1, 4, 256>}]} {
    %c0 = arith.constant 0 : index
    %c0_0 = arith.constant 0 : index
    %c0_1 = arith.constant 0 : index
    %0 = vector.load %arg1[%c0, %c0_0, %c0_1] : memref<1x4x256xbf16, #tpu.memory_space<vmem>>, vector<1x4x256xbf16>
    %1 = vector.shape_cast %0 : vector<1x4x256xbf16> to vector<4x256xbf16>
    %c0_2 = arith.constant 0 : index
    %c0_3 = arith.constant 0 : index
    %2 = vector.load %arg2[%c0_2, %c0_3] : memref<256x256xbf16, #tpu.memory_space<vmem>>, vector<256x256xbf16>
    %cst = arith.constant dense<0.000000e+00> : vector<4x256xf32>
    %3 = tpu.matmul %1, %2, %cst {dimension_numbers = #tpu.dot_dimension_numbers<[1], [0], [0], [1], [0, 0, 1, 1], [], []>} : vector<4x256xbf16>, vector<256x256xbf16>, vector<4x256xf32> -> vector<4x256xf32>
    %c0_4 = arith.constant 0 : index
    %c0_5 = arith.constant 0 : index
    %4 = vector.load %arg3[%c0_4, %c0_5] : memref<1x256xf32, #tpu.memory_space<vmem>>, vector<1x256xf32>
    %5 = vector.broadcast %4 : vector<1x256xf32> to vector<4x256xf32>
    %6 = arith.addf %3, %5 : vector<4x256xf32>
    %7 = arith.truncf %6 : vector<4x256xf32> to vector<4x256xbf16>
    %c0_6 = arith.constant 0 : index
    %c0_7 = arith.constant 0 : index
    %c0_8 = arith.constant 0 : index
    %8 = vector.load %arg4[%c0_6, %c0_7, %c0_8] : memref<1x4x256xbf16, #tpu.memory_space<vmem>>, vector<1x4x256xbf16>
    %9 = vector.shape_cast %8 : vector<1x4x256xbf16> to vector<4x256xbf16>
    %10 = vector.shape_cast %7 : vector<4x256xbf16> to vector<1x4x256xbf16>
    tpu.vector_store %arg4[%c0_6, %c0_7, %c0_8], %10 {strides = array<i32>} : memref<1x4x256xbf16, #tpu.memory_space<vmem>>, vector<1x4x256xbf16>,
    return
  }
  func.func @transform_0(%arg0: i32) -> (i32, i32, i32) {
    %c0_i32 = arith.constant 0 : i32
    %c0_i32_0 = arith.constant 0 : i32
    %c0_i32_1 = arith.constant 0 : i32
    return %arg0, %c0_i32, %c0_i32_0 : i32, i32, i32
  }
  func.func @transform_1(%arg0: i32) -> (i32, i32) {
    %c0_i32 = arith.constant 0 : i32
    %c0_i32_0 = arith.constant 0 : i32
    %c0_i32_1 = arith.constant 0 : i32
    return %c0_i32, %c0_i32_0 : i32, i32
  }
  func.func @transform_2(%arg0: i32) -> (i32, i32) {
    %c0_i32 = arith.constant 0 : i32
    %c0_i32_0 = arith.constant 0 : i32
    %c0_i32_1 = arith.constant 0 : i32
    return %c0_i32, %c0_i32_0 : i32, i32
  }
  func.func @transform_3(%arg0: i32) -> (i32, i32, i32) {
    %c0_i32 = arith.constant 0 : i32
    %c0_i32_0 = arith.constant 0 : i32
    %c0_i32_1 = arith.constant 0 : i32
    return %arg0, %c0_i32, %c0_i32_0 : i32, i32, i32
  }
}

module attributes {stable_mosaic.version = 11 : i64} {
  func.func @_fused_mm_kernel(%arg0: i32, %arg1: memref<1x4x2304xbf16, #tpu.memory_space<vmem>>, %arg2: memref<2304x256xbf16, #tpu.memory_space<vmem>>, %arg3: memref<1x256xf32, #tpu.memory_space<vmem>>, %arg4: memref<1x4x256xbf16, #tpu.memory_space<vmem>>, %arg5: memref<1x1x256xf32, #tpu.memory_space<vmem>>, %arg6: memref<1x4x256xbf16, #tpu.memory_space<vmem>>) attributes {dimension_semantics = [#tpu.dimension_semantics<parallel>], iteration_bounds = array<i64: 2>, scalar_prefetch = 0 : i64, scratch_operands = 0 : i64, tpu.core_type = #tpu.core_type<tc>, window_params = [{transform_indices = @transform_0, window_bounds = array<i64: 1, 4, 2304>}, {pipeline_mode = #tpu.pipeline_mode<synchronous>, transform_indices = @transform_1, window_bounds = array<i64: 2304, 256>}, {pipeline_mode = #tpu.pipeline_mode<synchronous>, transform_indices = @transform_2, window_bounds = array<i64: 1, 256>}, {transform_indices = @transform_3, window_bounds = array<i64: 1, 4, 256>}, {transform_indices = @transform_4, window_bounds = array<i64: 1, 1, 256>}, {transform_indices = @transform_5, window_bounds = array<i64: 1, 4, 256>}]} {
    %c0 = arith.constant 0 : index
    %c0_0 = arith.constant 0 : index
    %c0_1 = arith.constant 0 : index
    %0 = vector.load %arg1[%c0, %c0_0, %c0_1] : memref<1x4x2304xbf16, #tpu.memory_space<vmem>>, vector<1x4x2304xbf16>
    %1 = vector.shape_cast %0 : vector<1x4x2304xbf16> to vector<4x2304xbf16>
    %c0_2 = arith.constant 0 : index
    %c0_3 = arith.constant 0 : index
    %2 = vector.load %arg2[%c0_2, %c0_3] : memref<2304x256xbf16, #tpu.memory_space<vmem>>, vector<2304x256xbf16>
    %cst = arith.constant dense<0.000000e+00> : vector<4x256xf32>
    %3 = tpu.matmul %1, %2, %cst {dimension_numbers = #tpu.dot_dimension_numbers<[1], [0], [0], [1], [0, 0, 1, 1], [], []>} : vector<4x2304xbf16>, vector<2304x256xbf16>, vector<4x256xf32> -> vector<4x256xf32>
    %c0_4 = arith.constant 0 : index
    %c0_5 = arith.constant 0 : index
    %4 = vector.load %arg3[%c0_4, %c0_5] : memref<1x256xf32, #tpu.memory_space<vmem>>, vector<1x256xf32>
    %5 = vector.broadcast %4 : vector<1x256xf32> to vector<4x256xf32>
    %6 = arith.addf %3, %5 : vector<4x256xf32>
    %c0_6 = arith.constant 0 : index
    %c0_7 = arith.constant 0 : index
    %c0_8 = arith.constant 0 : index
    %7 = vector.load %arg4[%c0_6, %c0_7, %c0_8] : memref<1x4x256xbf16, #tpu.memory_space<vmem>>, vector<1x4x256xbf16>
    %8 = vector.shape_cast %7 : vector<1x4x256xbf16> to vector<4x256xbf16>
    %9 = arith.extf %8 : vector<4x256xbf16> to vector<4x256xf32>
    %10 = arith.addf %6, %9 : vector<4x256xf32>
    %cst_9 = arith.constant 0.000000e+00 : f32
    %11 = vector.broadcast %cst_9 : f32 to vector<4x256xf32>
    %12 = arith.maximumf %10, %11 : vector<4x256xf32>
    %c0_10 = arith.constant 0 : index
    %c0_11 = arith.constant 0 : index
    %c0_12 = arith.constant 0 : index
    %13 = vector.load %arg5[%c0_10, %c0_11, %c0_12] : memref<1x1x256xf32, #tpu.memory_space<vmem>>, vector<1x1x256xf32>
    %14 = vector.shape_cast %13 : vector<1x1x256xf32> to vector<1x256xf32>
    %15 = vector.broadcast %14 : vector<1x256xf32> to vector<4x256xf32>
    %16 = arith.mulf %12, %15 : vector<4x256xf32>
    %17 = arith.truncf %16 : vector<4x256xf32> to vector<4x256xbf16>
    %c0_13 = arith.constant 0 : index
    %c0_14 = arith.constant 0 : index
    %c0_15 = arith.constant 0 : index
    %18 = vector.load %arg6[%c0_13, %c0_14, %c0_15] : memref<1x4x256xbf16, #tpu.memory_space<vmem>>, vector<1x4x256xbf16>
    %19 = vector.shape_cast %18 : vector<1x4x256xbf16> to vector<4x256xbf16>
    %20 = vector.shape_cast %17 : vector<4x256xbf16> to vector<1x4x256xbf16>
    tpu.vector_store %arg6[%c0_13, %c0_14, %c0_15], %20 {strides = array<i32>} : memref<1x4x256xbf16, #tpu.memory_space<vmem>>, vector<1x4x256xbf16>,
    return
  }
  func.func @transform_0(%arg0: i32) -> (i32, i32, i32) {
    %c0_i32 = arith.constant 0 : i32
    %c0_i32_0 = arith.constant 0 : i32
    %c0_i32_1 = arith.constant 0 : i32
    return %arg0, %c0_i32, %c0_i32_0 : i32, i32, i32
  }
  func.func @transform_1(%arg0: i32) -> (i32, i32) {
    %c0_i32 = arith.constant 0 : i32
    %c0_i32_0 = arith.constant 0 : i32
    %c0_i32_1 = arith.constant 0 : i32
    return %c0_i32, %c0_i32_0 : i32, i32
  }
  func.func @transform_2(%arg0: i32) -> (i32, i32) {
    %c0_i32 = arith.constant 0 : i32
    %c0_i32_0 = arith.constant 0 : i32
    %c0_i32_1 = arith.constant 0 : i32
    return %c0_i32, %c0_i32_0 : i32, i32
  }
  func.func @transform_3(%arg0: i32) -> (i32, i32, i32) {
    %c0_i32 = arith.constant 0 : i32
    %c0_i32_0 = arith.constant 0 : i32
    %c0_i32_1 = arith.constant 0 : i32
    return %arg0, %c0_i32, %c0_i32_0 : i32, i32, i32
  }
  func.func @transform_4(%arg0: i32) -> (i32, i32, i32) {
    %c0_i32 = arith.constant 0 : i32
    %c0_i32_0 = arith.constant 0 : i32
    %c0_i32_1 = arith.constant 0 : i32
    return %arg0, %c0_i32, %c0_i32_0 : i32, i32, i32
  }
  func.func @transform_5(%arg0: i32) -> (i32, i32, i32) {
    %c0_i32 = arith.constant 0 : i32
    %c0_i32_0 = arith.constant 0 : i32
    %c0_i32_1 = arith.constant 0 : i32
    return %arg0, %c0_i32, %c0_i32_0 : i32, i32, i32
  }
}

module attributes {stable_mosaic.version = 11 : i64} {
  func.func @_fused_mm_kernel(%arg0: i32, %arg1: memref<1x4x1152xbf16, #tpu.memory_space<vmem>>, %arg2: memref<1152x128xbf16, #tpu.memory_space<vmem>>, %arg3: memref<1x128xf32, #tpu.memory_space<vmem>>, %arg4: memref<1x4x128xbf16, #tpu.memory_space<vmem>>, %arg5: memref<1x4x128xbf16, #tpu.memory_space<vmem>>) attributes {dimension_semantics = [#tpu.dimension_semantics<parallel>], iteration_bounds = array<i64: 2>, scalar_prefetch = 0 : i64, scratch_operands = 0 : i64, tpu.core_type = #tpu.core_type<tc>, window_params = [{transform_indices = @transform_0, window_bounds = array<i64: 1, 4, 1152>}, {pipeline_mode = #tpu.pipeline_mode<synchronous>, transform_indices = @transform_1, window_bounds = array<i64: 1152, 128>}, {pipeline_mode = #tpu.pipeline_mode<synchronous>, transform_indices = @transform_2, window_bounds = array<i64: 1, 128>}, {transform_indices = @transform_3, window_bounds = array<i64: 1, 4, 128>}, {transform_indices = @transform_4, window_bounds = array<i64: 1, 4, 128>}]} {
    %c0 = arith.constant 0 : index
    %c0_0 = arith.constant 0 : index
    %c0_1 = arith.constant 0 : index
    %0 = vector.load %arg1[%c0, %c0_0, %c0_1] : memref<1x4x1152xbf16, #tpu.memory_space<vmem>>, vector<1x4x1152xbf16>
    %1 = vector.shape_cast %0 : vector<1x4x1152xbf16> to vector<4x1152xbf16>
    %c0_2 = arith.constant 0 : index
    %c0_3 = arith.constant 0 : index
    %2 = vector.load %arg2[%c0_2, %c0_3] : memref<1152x128xbf16, #tpu.memory_space<vmem>>, vector<1152x128xbf16>
    %cst = arith.constant dense<0.000000e+00> : vector<4x128xf32>
    %3 = tpu.matmul %1, %2, %cst {dimension_numbers = #tpu.dot_dimension_numbers<[1], [0], [0], [1], [0, 0, 1, 1], [], []>} : vector<4x1152xbf16>, vector<1152x128xbf16>, vector<4x128xf32> -> vector<4x128xf32>
    %c0_4 = arith.constant 0 : index
    %c0_5 = arith.constant 0 : index
    %4 = vector.load %arg3[%c0_4, %c0_5] : memref<1x128xf32, #tpu.memory_space<vmem>>, vector<1x128xf32>
    %5 = vector.broadcast %4 : vector<1x128xf32> to vector<4x128xf32>
    %6 = arith.addf %3, %5 : vector<4x128xf32>
    %c0_6 = arith.constant 0 : index
    %c0_7 = arith.constant 0 : index
    %c0_8 = arith.constant 0 : index
    %7 = vector.load %arg4[%c0_6, %c0_7, %c0_8] : memref<1x4x128xbf16, #tpu.memory_space<vmem>>, vector<1x4x128xbf16>
    %8 = vector.shape_cast %7 : vector<1x4x128xbf16> to vector<4x128xbf16>
    %9 = arith.extf %8 : vector<4x128xbf16> to vector<4x128xf32>
    %10 = arith.addf %6, %9 : vector<4x128xf32>
    %cst_9 = arith.constant 0.000000e+00 : f32
    %11 = vector.broadcast %cst_9 : f32 to vector<4x128xf32>
    %12 = arith.maximumf %10, %11 : vector<4x128xf32>
    %13 = arith.truncf %12 : vector<4x128xf32> to vector<4x128xbf16>
    %c0_10 = arith.constant 0 : index
    %c0_11 = arith.constant 0 : index
    %c0_12 = arith.constant 0 : index
    %14 = vector.load %arg5[%c0_10, %c0_11, %c0_12] : memref<1x4x128xbf16, #tpu.memory_space<vmem>>, vector<1x4x128xbf16>
    %15 = vector.shape_cast %14 : vector<1x4x128xbf16> to vector<4x128xbf16>
    %16 = vector.shape_cast %13 : vector<4x128xbf16> to vector<1x4x128xbf16>
    tpu.vector_store %arg5[%c0_10, %c0_11, %c0_12], %16 {strides = array<i32>} : memref<1x4x128xbf16, #tpu.memory_space<vmem>>, vector<1x4x128xbf16>,
    return
  }
  func.func @transform_0(%arg0: i32) -> (i32, i32, i32) {
    %c0_i32 = arith.constant 0 : i32
    %c0_i32_0 = arith.constant 0 : i32
    %c0_i32_1 = arith.constant 0 : i32
    return %arg0, %c0_i32, %c0_i32_0 : i32, i32, i32
  }
  func.func @transform_1(%arg0: i32) -> (i32, i32) {
    %c0_i32 = arith.constant 0 : i32
    %c0_i32_0 = arith.constant 0 : i32
    %c0_i32_1 = arith.constant 0 : i32
    return %c0_i32, %c0_i32_0 : i32, i32
  }
  func.func @transform_2(%arg0: i32) -> (i32, i32) {
    %c0_i32 = arith.constant 0 : i32
    %c0_i32_0 = arith.constant 0 : i32
    %c0_i32_1 = arith.constant 0 : i32
    return %c0_i32, %c0_i32_0 : i32, i32
  }
  func.func @transform_3(%arg0: i32) -> (i32, i32, i32) {
    %c0_i32 = arith.constant 0 : i32
    %c0_i32_0 = arith.constant 0 : i32
    %c0_i32_1 = arith.constant 0 : i32
    return %arg0, %c0_i32, %c0_i32_0 : i32, i32, i32
  }
  func.func @transform_4(%arg0: i32) -> (i32, i32, i32) {
    %c0_i32 = arith.constant 0 : i32
    %c0_i32_0 = arith.constant 0 : i32
    %c0_i32_1 = arith.constant 0 : i32
    return %arg0, %c0_i32, %c0_i32_0 : i32, i32, i32
  }
}

module attributes {stable_mosaic.version = 11 : i64} {
  func.func @_fused_mm_kernel(%arg0: i32, %arg1: memref<1x4x256xbf16, #tpu.memory_space<vmem>>, %arg2: memref<256x128xbf16, #tpu.memory_space<vmem>>, %arg3: memref<1x128xf32, #tpu.memory_space<vmem>>, %arg4: memref<1x4x128xbf16, #tpu.memory_space<vmem>>) attributes {dimension_semantics = [#tpu.dimension_semantics<parallel>], iteration_bounds = array<i64: 2>, scalar_prefetch = 0 : i64, scratch_operands = 0 : i64, tpu.core_type = #tpu.core_type<tc>, window_params = [{transform_indices = @transform_0, window_bounds = array<i64: 1, 4, 256>}, {pipeline_mode = #tpu.pipeline_mode<synchronous>, transform_indices = @transform_1, window_bounds = array<i64: 256, 128>}, {pipeline_mode = #tpu.pipeline_mode<synchronous>, transform_indices = @transform_2, window_bounds = array<i64: 1, 128>}, {transform_indices = @transform_3, window_bounds = array<i64: 1, 4, 128>}]} {
    %c0 = arith.constant 0 : index
    %c0_0 = arith.constant 0 : index
    %c0_1 = arith.constant 0 : index
    %0 = vector.load %arg1[%c0, %c0_0, %c0_1] : memref<1x4x256xbf16, #tpu.memory_space<vmem>>, vector<1x4x256xbf16>
    %1 = vector.shape_cast %0 : vector<1x4x256xbf16> to vector<4x256xbf16>
    %c0_2 = arith.constant 0 : index
    %c0_3 = arith.constant 0 : index
    %2 = vector.load %arg2[%c0_2, %c0_3] : memref<256x128xbf16, #tpu.memory_space<vmem>>, vector<256x128xbf16>
    %cst = arith.constant dense<0.000000e+00> : vector<4x128xf32>
    %3 = tpu.matmul %1, %2, %cst {dimension_numbers = #tpu.dot_dimension_numbers<[1], [0], [0], [1], [0, 0, 1, 1], [], []>} : vector<4x256xbf16>, vector<256x128xbf16>, vector<4x128xf32> -> vector<4x128xf32>
    %c0_4 = arith.constant 0 : index
    %c0_5 = arith.constant 0 : index
    %4 = vector.load %arg3[%c0_4, %c0_5] : memref<1x128xf32, #tpu.memory_space<vmem>>, vector<1x128xf32>
    %5 = vector.broadcast %4 : vector<1x128xf32> to vector<4x128xf32>
    %6 = arith.addf %3, %5 : vector<4x128xf32>
    %7 = arith.truncf %6 : vector<4x128xf32> to vector<4x128xbf16>
    %c0_6 = arith.constant 0 : index
    %c0_7 = arith.constant 0 : index
    %c0_8 = arith.constant 0 : index
    %8 = vector.load %arg4[%c0_6, %c0_7, %c0_8] : memref<1x4x128xbf16, #tpu.memory_space<vmem>>, vector<1x4x128xbf16>
    %9 = vector.shape_cast %8 : vector<1x4x128xbf16> to vector<4x128xbf16>
    %10 = vector.shape_cast %7 : vector<4x128xbf16> to vector<1x4x128xbf16>
    tpu.vector_store %arg4[%c0_6, %c0_7, %c0_8], %10 {strides = array<i32>} : memref<1x4x128xbf16, #tpu.memory_space<vmem>>, vector<1x4x128xbf16>,
    return
  }
  func.func @transform_0(%arg0: i32) -> (i32, i32, i32) {
    %c0_i32 = arith.constant 0 : i32
    %c0_i32_0 = arith.constant 0 : i32
    %c0_i32_1 = arith.constant 0 : i32
    return %arg0, %c0_i32, %c0_i32_0 : i32, i32, i32
  }
  func.func @transform_1(%arg0: i32) -> (i32, i32) {
    %c0_i32 = arith.constant 0 : i32
    %c0_i32_0 = arith.constant 0 : i32
    %c0_i32_1 = arith.constant 0 : i32
    return %c0_i32, %c0_i32_0 : i32, i32
  }
  func.func @transform_2(%arg0: i32) -> (i32, i32) {
    %c0_i32 = arith.constant 0 : i32
    %c0_i32_0 = arith.constant 0 : i32
    %c0_i32_1 = arith.constant 0 : i32
    return %c0_i32, %c0_i32_0 : i32, i32
  }
  func.func @transform_3(%arg0: i32) -> (i32, i32, i32) {
    %c0_i32 = arith.constant 0 : i32
    %c0_i32_0 = arith.constant 0 : i32
    %c0_i32_1 = arith.constant 0 : i32
    return %arg0, %c0_i32, %c0_i32_0 : i32, i32, i32
  }
}

</mosaic_0001>

<bundles_post_ra>
// kernel: encoder_forward.13
= control target key start
LH: loop header
LB: loop body
LE: loop exit
PB: predicated region body
PF: predicated region fallthrough
CT: control target
= control target key end

     0   :  { %8 = vsyncpa [#allocation3], 0  ;;  %s789_s0 = inlined_call_operand.vmem [shape: bf16[2,64,27], index: 0, kind: input, shape index: {}]   ;;  %s790_s1 = inlined_call_operand.hbm [shape: bf16[27,128], index: 1, kind: input, shape index: {}]   ;;  %s791_s2 = inlined_call_operand.hbm [shape: f32[1,128], index: 2, kind: input, shape index: {}]   ;;  %s792_s3 = inlined_call_operand.vmem [shape: bf16[2,64,128], index: 3, kind: output, shape index: {}]  }
   0x1   :  { %9 = vsyncpa [#allocation5], 0  ;;  %s684_s12 = smov 0  }
   0x2 LB: > { %s690_s13 = sadd.s32 4294967295, %s657_s12   ;;  %p462_p0 = scmp.ge.s32.totalorder %s657_s12, 1  ;;  %s657_s12 = sphi %s684_s12, %s15_s12  }
   0x3   : > { %p114_p1 = scmp.lt.s32.totalorder %s657_s12, 3  ;;  %s659_s14 = smov [#allocation2]  }
   0x4   : > { %s126_s15 = sshll.u32 %s659_s14, 4  ;;  %p793_p3 = scmp.eq.s32.totalorder %s690_s13, 0  ;;  %s127_s15 = int_to_ptr.vmem [resolvable:$true] %s126_s15 }
   0x5   : > { %p694_p2 = pnand %p462_p0, %p114_p1  ;;  %s660_s17 = smov [#allocation4]  }
   0x6   : > { %s140_s18 = sshll.u32 %s660_s17, 4  ;;  %s587_s22 = scalar_lea.hbm %s790_s1, 256  ;;  %s707_s18 = int_to_ptr.vmem [resolvable:$true] %s140_s18 }
   0x7   : > { %s795_s16 = scalar_select %p694_p2, 1, 0 }
   0x8   : > { %p557_p4 = pneg %p694_p2  ;;  %p588_p6 = scmp.ne.s32.totalorder %s790_s1, %s587_s22 }
   0x9   : > { %p594_p10 = scmp.lt.u32.totalorder %s587_s22, %s790_s1 }
   0xa   : > { %p703_p5 = pnand %p793_p3, %p557_p4 }
   0xc   : > { %p589_p7 = pneg %p703_p5 }
   0xe   : > { %p590_p8 = pnand %p589_p7, %p588_p6 }
  0x10   : > { %p591_p9 = pneg %p590_p8 }
  0x12   : > { %p596_p11 = pnand %p594_p10, %p591_p9 }
  0x14   : > { %599 = shalt.err (!%p596_p11)
}
  0x15   : > { %s600_s27 = scalar_lea.vmem %s127_s15, 256  ;;  %p608_p1 = scmp.lt.s32.totalorder %s127_s15, %s127_s15 }
  0x16   : > { %p601_p12 = scmp.ne.s32.totalorder %s127_s15, %s600_s27  ;;  %p609_p4 = scmp.lt.s32.totalorder %s600_s27, %s600_s27 }
  0x18   : > { %p603_p13 = pnand %p601_p12, %p589_p7  ;;  %p610_p3 = por %p609_p4, %p608_p1 }
  0x1a   : > { %p604_p0 = pneg %p603_p13 }
  0x1c   : > { %p611_p2 = pnand %p610_p3, %p604_p0 }
  0x1e   : > { %614 = shalt.err (!%p611_p2)
}
  0x1f   : > { %s661_s28 = smov 64   ;;  %s662_s29 = smov 4  }
  0x20   : > { %560 = dma.hbm_to_vmem [thread:$0]  (!%p703_p5), %s790_s1, 256, %s127_s15, [#allocation3], %s661_s28, %s661_s28, %s662_s29  }
  0x21   : > { %s615_s7 = scalar_lea.hbm %s791_s2, 16 }
  0x22   : > { %p616_p6 = scmp.ne.s32.totalorder %s791_s2, %s615_s7  ;;  %p622_p8 = scmp.lt.u32.totalorder %s615_s7, %s791_s2 }
  0x24   : > { %p618_p2 = pnand %p616_p6, %p589_p7 }
  0x26   : > { %p619_p3 = pneg %p618_p2 }
  0x28   : > { %p624_p9 = pnand %p622_p8, %p619_p3 }
  0x2a   : > { %627 = shalt.err (!%p624_p9)
}
  0x2b   : > { %s628_s14 = scalar_lea.vmem %s707_s18, 16  ;;  %s635_s15 = scalar_lea.vmem %s707_s18, 32 }
  0x2c   : > { %p629_p10 = scmp.ne.s32.totalorder %s707_s18, %s628_s14  ;;  %p636_p13 = scmp.lt.s32.totalorder %s707_s18, %s707_s18 }
  0x2d   : > { %p637_p0 = scmp.lt.s32.totalorder %s635_s15, %s628_s14 }
  0x2e   : > { %p631_p11 = pnand %p629_p10, %p589_p7 }
  0x2f   : > { %p638_p1 = por %p637_p0, %p636_p13 }
  0x30   : > { %p632_p12 = pneg %p631_p11 }
  0x32   : > { %p639_p4 = pnand %p638_p1, %p632_p12 }
  0x34   : > { %642 = shalt.err (!%p639_p4)
}
  0x35   : > { %563 = dma.hbm_to_vmem [thread:$0]  (!%p703_p5), %s791_s2, 16, %s707_s18, [#allocation5]  }
  0x36   : > { %p797_p6 = scmp.ne.s32.totalorder %s795_s16, 0 }
  0x37   : > { %p798_p7 = scmp.eq.s32.totalorder (!%p797_p6), %s690_s13, 0 }
  0x38   : > { %161 = sbr.rel (%p797_p6) target bundleno = 300 (0x12c), region = 32 }
  0x3f   : > { %648 = dma.done.wait (%p798_p7), [#allocation3], 256   ;;  %p799_p2 = pmov %p798_p7 }
  0x41   : > { %650 = vsyncadd (%p799_p2), [#allocation3], 4294967040  ;;  %p800_p3 = pmov %p799_p2 }
  0x42   : > { %p801_p8 = pmov %p799_p2 }
  0x43   : > { %652 = dma.done.wait (%p800_p3), [#allocation5], 16  }
  0x44   : > { %654 = vsyncadd (%p801_p8), [#allocation5], 4294967280  ;;  %p189_p9 = scmp.lt.s32.totalorder %s690_s13, 1  ;;  %vm263_vm0 = vcmask 1044480   ;;  %vm264_vm1 = vcmask 1045504   ;;  %v663_v0 = vmov 65535  }
  0x45   : > { %v265_v1 = vsel %vm263_vm0, 4294967295, %v663_v0  ;;  %vm250_vm2 = vcmask 220160   ;;  %v581_v2 = vld [vmem:[#allocation2] sm:$0xff]   ;;  %v582_v4 = vld [vmem:[#allocation2 + $0x8] sm:$0x3f]  }
  0x46   : > { %s803_s13 = smov (!%p189_p9, %s690_s13), 1  ;;  %v266_v3 = vsel %vm264_vm1, %v265_v1, 0  ;;  %533 = vmatprep.subr.bf16.mxu0 %v581_v2  ;;  %545 = vmatprep.subr.bf16.mxu1 %v581_v2  ;;  %v473_v10 = vld [vmem:[#allocation4] ss:$0 sm:$0xff] }
  0x47   : > { %s494_s16 = sshll.u32 %s803_s13, 5  ;;  %534 = vmatpush3.bf16.msra.mxu0 %v581_v2  ;;  %547 = vmatpush3.bf16.msra.mxu1 %v581_v2  ;;  %v268_v6 = vand.u32 %v582_v4, %v266_v3 }
  0x48   : > { %s193_s21 = scalar_lea.vmem %s789_s0, %s494_s16  ;;  %s198_s24 = scalar_lea.vmem %s792_s3, %s494_s16 }
  0x49   : > { %v583_v5 = vld [vmem:[%s193_s21] sm:$0xff]   ;;  %v584_v7 = vld [vmem:[%s193_s21 + $0x10] sm:$0xff]   ;;  %535 = vmatprep.subr.bf16.mxu0 %v268_v6  ;;  %546 = vmatprep.subr.bf16.mxu1 %v268_v6  ;;  %v585_v8 = vld [vmem:[%s193_s21 + $0x8] sm:$0xff]  }
  0x4a   : > { %537 = vmatprep.mubr.msk.bf16.mxu0 %vm250_vm2, %v583_v5  ;;  %541 = vmatprep.mubr.msk.bf16.mxu1 %vm250_vm2, %v584_v7  ;;  %v586_v9 = vld [vmem:[%s193_s21 + $0x18] sm:$0xff]  }
  0x4b   : > { %536 = vmatpush3.bf16.msra.mxu0 %v268_v6  ;;  %548 = vmatpush3.bf16.msra.mxu1 %v268_v6 }
  0x4e   : > { %538 = vmatmul.mubr.msk.bf16.vlgmr.msra.gmra.mrb[0].mxu0 %vm250_vm2, %v585_v8  ;;  %542 = vmatmul.mubr.msk.bf16.vlgmr.msra.gmra.mrb[0].mxu1 %vm250_vm2, %v586_v9 }
 0x121   : > { %v539_v11 = vpop.f32.mrb[0].mxu0  ;;  %v543_v12 = vpop.f32.mrb[0].mxu1 }
 0x122   : > { %v313_v13 = vadd.f32 %v539_v11, %v473_v10  ;;  %v329_v14 = vadd.f32 %v543_v12, %v473_v10  ;;  %v304_v15 = vpop.f32.mrb[1].mxu0  ;;  %v320_v16 = vpop.f32.mrb[1].mxu1 }
 0x123   : > { %v305_v17 = vadd.f32 %v473_v10, %v304_v15  ;;  %v321_v18 = vadd.f32 %v473_v10, %v320_v16  ;;  %v540_v19 = vpop.f32.mrb[2].mxu0  ;;  %v544_v20 = vpop.f32.mrb[2].mxu1 }
 0x124   : > { %v316_v21 = vadd.f32 %v540_v19, %v473_v10  ;;  %v332_v22 = vadd.f32 %v544_v20, %v473_v10  ;;  %v307_v23 = vpop.f32.mrb[3].mxu0  ;;  %v323_v24 = vpop.f32.mrb[3].mxu1  ;;  %v337_v27 = vmax.f32 %v313_v13, 0.0  ;;  %v341_v28 = vmax.f32 %v329_v14, 0.0 }
 0x125   : > { %v308_v25 = vadd.f32 %v473_v10, %v307_v23  ;;  %v324_v26 = vadd.f32 %v473_v10, %v323_v24  ;;  %v335_v31 = vmax.f32 %v305_v17, 0.0  ;;  %v339_v32 = vmax.f32 %v321_v18, 0.0 }
 0x126   : > { %v338_v29 = vmax.f32 %v316_v21, 0.0  ;;  %v342_v30 = vmax.f32 %v332_v22, 0.0 }
 0x127   : > { %v336_v33 = vmax.f32 %v308_v25, 0.0  ;;  %v340_v34 = vmax.f32 %v324_v26, 0.0 }
 0x128   : > { %v512_v35 = vpack.c.bf16 %v338_v29, %v337_v27  ;;  %v522_v36 = vpack.c.bf16 %v342_v30, %v341_v28 }
 0x129   : > { %v507_v37 = vpack.c.bf16 %v336_v33, %v335_v31  ;;  %v517_v38 = vpack.c.bf16 %v340_v34, %v339_v32 }
 0x12a   : > { %524 = vst [vmem:[%s198_s24 + $0x8] sm:$0xff] %v512_v35   ;;  %526 = vst [vmem:[%s198_s24 + $0x18] sm:$0xff] %v522_v36  }
 0x12b   : > { %508 = vst [vmem:[%s198_s24] sm:$0xff] %v507_v37   ;;  %525 = vst [vmem:[%s198_s24 + $0x10] sm:$0xff] %v517_v38  }
 0x12c PF: > { %s15_s12 = sadd.s32 1, %s657_s12  }
 0x12d   : > { %p12_p5 = scmp.ge.s32.totalorder %s15_s12, 4  }
 0x12f   :  { %14 = sbr.rel (!%p12_p5) target bundleno = 2 (0x2), region = 71 }
 0x136   :  { %404 = vsyncpa [#allocation3], 1 }
 0x137   :  { %406 = vsyncpa [#allocation3 + $0x1], 1 }
 0x138   :  { %407 = vsyncpa [#allocation5], 1 }

// kernel: encoder_forward.12
= control target key start
LH: loop header
LB: loop body
LE: loop exit
PB: predicated region body
PF: predicated region fallthrough
CT: control target
= control target key end

     0   :  { %s508_s12 = smov 0   ;;  %s534_s0 = inlined_call_operand.vmem [shape: bf16[2,64,3], index: 0, kind: input, shape index: {}]   ;;  %s535_s1 = inlined_call_operand.vmem [shape: bf16[3,128], index: 1, kind: input, shape index: {}]   ;;  %s536_s2 = inlined_call_operand.vmem [shape: f32[1,128], index: 2, kind: input, shape index: {}]   ;;  %s537_s3 = inlined_call_operand.vmem [shape: bf16[2,64,128], index: 3, kind: output, shape index: {}]  }
   0x1 LB: > { %s388_s13 = sadd.s32 4294967295, %s485_s12   ;;  %p392_p0 = scmp.ge.s32.totalorder %s485_s12, 1  ;;  %s485_s12 = sphi %s508_s12, %s13_s12  }
   0x2   : > { %p137_p1 = scmp.lt.s32.totalorder %s485_s12, 3 }
   0x4   : > { %p138_p2 = pnand %p392_p0, %p137_p1 }
   0x5   : > { %v180_v0 = vld [vmem:[%s535_s1] sm:$0x3] (!%p138_p2)  ;;  %vm221_vm0 = vcmask (!%p138_p2), 1040384   ;;  %vm222_vm1 = vcmask (!%p138_p2), 1041408   ;;  %p161_p3 = scmp.lt.s32.totalorder (!%p138_p2), %s388_s13, 1  ;;  %v487_v1 = vmov (!%p138_p2), 65535  }
   0x6   : > { %141 = sbr.rel (%p138_p2) target bundleno = 238 (0xee), region = 32  ;;  %v223_v2 = vsel (!%p138_p2), %vm221_vm0, 4294967295, %v487_v1  ;;  %vm208_vm2 = vcmask (!%p138_p2), 23552   ;;  %v397_v10 = vld [vmem:[%s536_s2] ss:$0 sm:$0xff] (!%p138_p2) }
   0x7   : > { %v224_v3 = vsel (!%p138_p2), %vm222_vm1, %v223_v2, 0 }
   0x8   : > { %v226_v4 = vand.u32 (!%p138_p2), %v224_v3, %v180_v0 }
   0xa   : > { %454 = vmatprep.subr.bf16.mxu0 (!%p138_p2), %v226_v4  ;;  %464 = vmatprep.subr.bf16.mxu1 (!%p138_p2), %v226_v4 }
   0xb   : > { %455 = vmatpush3.bf16.msra.mxu0 (!%p138_p2), %v226_v4  ;;  %465 = vmatpush3.bf16.msra.mxu1 (!%p138_p2), %v226_v4 }
   0xd   : > { %s539_s13 = smov (!%p161_p3, %s388_s13), 1 }
   0xe   : > { %s416_s16 = sshll.u32 %s539_s13, 5 }
   0xf   : > { %s165_s19 = scalar_lea.vmem %s534_s0, %s416_s16  ;;  %s170_s24 = scalar_lea.vmem %s537_s3, %s416_s16 }
  0x10   : > { %v475_v5 = vld [vmem:[%s165_s19] sm:$0xff]   ;;  %v476_v6 = vld [vmem:[%s165_s19 + $0x10] sm:$0xff]   ;;  %v477_v7 = vld [vmem:[%s165_s19 + $0x8] sm:$0xff]  }
  0x11   : > { %456 = vmatprep.mubr.msk.bf16.mxu0 %vm208_vm2, %v475_v5  ;;  %460 = vmatprep.mubr.msk.bf16.mxu1 %vm208_vm2, %v476_v6  ;;  %v478_v8 = vld [vmem:[%s165_s19 + $0x18] sm:$0xff]  }
  0x12   : > { %457 = vmatmul.mubr.msk.bf16.vlgmr.msra.gmra.mrb[0].mxu0 %vm208_vm2, %v477_v7  ;;  %461 = vmatmul.mubr.msk.bf16.vlgmr.msra.gmra.mrb[0].mxu1 %vm208_vm2, %v478_v8 }
  0xe5   : > { %v458_v9 = vpop.f32.mrb[0].mxu0  ;;  %v462_v11 = vpop.f32.mrb[0].mxu1 }
  0xe6   : > { %v262_v12 = vpop.f32.mrb[1].mxu0  ;;  %v278_v13 = vpop.f32.mrb[1].mxu1  ;;  %v271_v15 = vadd.f32 %v458_v9, %v397_v10  ;;  %v287_v19 = vadd.f32 %v462_v11, %v397_v10 }
  0xe7   : > { %v459_v14 = vpop.f32.mrb[2].mxu0  ;;  %v463_v17 = vpop.f32.mrb[2].mxu1  ;;  %v263_v20 = vadd.f32 %v397_v10, %v262_v12  ;;  %v279_v24 = vadd.f32 %v397_v10, %v278_v13 }
  0xe8   : > { %v274_v16 = vadd.f32 %v459_v14, %v397_v10  ;;  %v265_v18 = vpop.f32.mrb[3].mxu0  ;;  %v290_v21 = vadd.f32 %v463_v17, %v397_v10  ;;  %v281_v23 = vpop.f32.mrb[3].mxu1 }
  0xe9   : > { %v266_v22 = vadd.f32 %v397_v10, %v265_v18  ;;  %v282_v26 = vadd.f32 %v397_v10, %v281_v23 }
  0xea   : > { %v434_v25 = vpack.c.bf16 %v274_v16, %v271_v15  ;;  %v444_v27 = vpack.c.bf16 %v290_v21, %v287_v19 }
  0xeb   : > { %v429_v28 = vpack.c.bf16 %v266_v22, %v263_v20  ;;  %v439_v29 = vpack.c.bf16 %v282_v26, %v279_v24 }
  0xec   : > { %446 = vst [vmem:[%s170_s24 + $0x8] sm:$0xff] %v434_v25   ;;  %448 = vst [vmem:[%s170_s24 + $0x18] sm:$0xff] %v444_v27  }
  0xed   : > { %430 = vst [vmem:[%s170_s24] sm:$0xff] %v429_v28   ;;  %447 = vst [vmem:[%s170_s24 + $0x10] sm:$0xff] %v439_v29  }
  0xee PF: > { %s13_s12 = sadd.s32 1, %s485_s12  }
  0xef   : > { %p10_p4 = scmp.ge.s32.totalorder %s13_s12, 4  }
  0xf1   :  { %12 = sbr.rel (!%p10_p4) target bundleno = 1 (0x1), region = 62 }

// kernel: encoder_forward.14
= control target key start
LH: loop header
LB: loop body
LE: loop exit
PB: predicated region body
PF: predicated region fallthrough
CT: control target
= control target key end

     0   :  { %s2120_s18 = smov 0   ;;  %s2422_s0 = inlined_call_operand.vmem [shape: bf16[2,64,1152], index: 0, kind: input, shape index: {}]   ;;  %s2423_s1 = inlined_call_operand.vmem [shape: bf16[1152,128], index: 1, kind: input, shape index: {}]   ;;  %s2424_s2 = inlined_call_operand.vmem [shape: f32[1,128], index: 2, kind: input, shape index: {}]   ;;  %s2425_s3 = inlined_call_operand.vmem [shape: bf16[2,64,128], index: 3, kind: input, shape index: {}]   ;;  %s2426_s4 = inlined_call_operand.vmem [shape: f32[2,1,128], index: 4, kind: input, shape index: {}]   ;;  %s2427_s5 = inlined_call_operand.vmem [shape: bf16[2,64,128], index: 5, kind: output, shape index: {}]  }
   0x1 LB: > { %s1555_s19 = sadd.s32 4294967295, %s2088_s18   ;;  %p1559_p0 = scmp.ge.s32.totalorder %s2088_s18, 1  ;;  %s2088_s18 = sphi %s2120_s18, %s15_s18  }
   0x2   : > { %p205_p1 = scmp.lt.s32.totalorder %s2088_s18, 3 }
   0x4   : > { %p206_p2 = pnand %p1559_p0, %p205_p1 }
   0x5   : > { %v1958_v0 = vld [vmem:[%s2423_s1 + $0x40] sm:$0xff] (!%p206_p2)   ;;  %v1962_v4 = vld [vmem:[%s2423_s1 + $0x48] sm:$0xff] (!%p206_p2)   ;;  %v1966_v8 = vld [vmem:[%s2423_s1 + $0x50] sm:$0xff] (!%p206_p2)   ;;  %p241_p3 = scmp.lt.s32.totalorder (!%p206_p2), %s1555_s19, 1 }
   0x6   : > { %209 = sbr.rel (%p206_p2) target bundleno = 331 (0x14b), region = 40  ;;  %v1959_v1 = vld [vmem:[%s2423_s1 + $0xc0] sm:$0xff] (!%p206_p2)   ;;  %1737 = vmatprep.subr.bf16.mxu0 (!%p206_p2), %v1958_v0  ;;  %v1963_v5 = vld [vmem:[%s2423_s1 + $0xc8] sm:$0xff] (!%p206_p2)   ;;  %v1967_v9 = vld [vmem:[%s2423_s1 + $0xd0] sm:$0xff] (!%p206_p2)  }
   0x7   : > { %v1960_v2 = vld [vmem:[%s2423_s1] sm:$0xff] (!%p206_p2)   ;;  %1777 = vmatprep.subr.bf16.mxu1 (!%p206_p2), %v1959_v1  ;;  %v1964_v6 = vld [vmem:[%s2423_s1 + $0x8] sm:$0xff] (!%p206_p2)   ;;  %v1968_v10 = vld [vmem:[%s2423_s1 + $0x10] sm:$0xff] (!%p206_p2)  }
   0x8   : > { %v1961_v3 = vld [vmem:[%s2423_s1 + $0x80] sm:$0xff] (!%p206_p2)   ;;  %1738 = vmatpush3.bf16.msra.mxu0 (!%p206_p2), %v1960_v2  ;;  %v1965_v7 = vld [vmem:[%s2423_s1 + $0x88] sm:$0xff] (!%p206_p2)   ;;  %v1969_v11 = vld [vmem:[%s2423_s1 + $0x90] sm:$0xff] (!%p206_p2)  }
   0x9   : > { %1778 = vmatpush3.bf16.msra.mxu1 (!%p206_p2), %v1961_v3  ;;  %1739 = vmatprep.subr.bf16.mxu0 (!%p206_p2), %v1962_v4  ;;  %v1970_v12 = vld [vmem:[%s2423_s1 + $0x58] sm:$0xff] (!%p206_p2)   ;;  %v1974_v16 = vld [vmem:[%s2423_s1 + $0x60] sm:$0xff] (!%p206_p2)   ;;  %v1978_v20 = vld [vmem:[%s2423_s1 + $0x68] sm:$0xff] (!%p206_p2)  }
   0xa   : > { %1779 = vmatprep.subr.bf16.mxu1 (!%p206_p2), %v1963_v5  ;;  %v1971_v13 = vld [vmem:[%s2423_s1 + $0xd8] sm:$0xff] (!%p206_p2)   ;;  %v1975_v17 = vld [vmem:[%s2423_s1 + $0xe0] sm:$0xff] (!%p206_p2)   ;;  %v1979_v21 = vld [vmem:[%s2423_s1 + $0xe8] sm:$0xff] (!%p206_p2)  }
   0xb   : > { %v1972_v14 = vld [vmem:[%s2423_s1 + $0x18] sm:$0xff] (!%p206_p2)   ;;  %v1976_v18 = vld [vmem:[%s2423_s1 + $0x20] sm:$0xff] (!%p206_p2)   ;;  %v1980_v22 = vld [vmem:[%s2423_s1 + $0x28] sm:$0xff] (!%p206_p2)  }
   0xc   : > { %1740 = vmatpush3.bf16.msra.mxu0 (!%p206_p2), %v1964_v6  ;;  %v1973_v15 = vld [vmem:[%s2423_s1 + $0x98] sm:$0xff] (!%p206_p2)   ;;  %v1977_v19 = vld [vmem:[%s2423_s1 + $0xa0] sm:$0xff] (!%p206_p2)   ;;  %v1981_v23 = vld [vmem:[%s2423_s1 + $0xa8] sm:$0xff] (!%p206_p2)  }
   0xd   : > { %1780 = vmatpush3.bf16.msra.mxu1 %v1965_v7  ;;  %1741 = vmatprep.subr.bf16.mxu0 %v1966_v8  ;;  %s2429_s19 = smov (!%p241_p3, %s1555_s19), 1  ;;  %v1982_v24 = vld [vmem:[%s2423_s1 + $0x70] sm:$0xff]   ;;  %v1986_v28 = vld [vmem:[%s2423_s1 + $0x78] sm:$0xff]   ;;  %v1996_v36 = vld [vmem:[%s2423_s1 + $0x140] sm:$0xff]  }
   0xe   : > { %1781 = vmatprep.subr.bf16.mxu1 %v1967_v9  ;;  %v1983_v25 = vld [vmem:[%s2423_s1 + $0xf0] sm:$0xff]   ;;  %s1949_s26 = smul.u32 288, %s2429_s19  ;;  %v1987_v29 = vld [vmem:[%s2423_s1 + $0xf8] sm:$0xff]   ;;  %v1997_v37 = vld [vmem:[%s2423_s1 + $0x1c0] sm:$0xff]   ;;  %s253_s16 = scalar_lea.vmem %s2426_s4, %s2429_s19 }
   0xf   : > { %v1984_v26 = vld [vmem:[%s2423_s1 + $0x30] sm:$0xff]   ;;  %v1988_v30 = vld [vmem:[%s2423_s1 + $0x38] sm:$0xff]   ;;  %v1998_v38 = vld [vmem:[%s2423_s1 + $0x100] sm:$0xff]  }
  0x10   : > { %1742 = vmatpush3.bf16.msra.mxu0 %v1968_v10  ;;  %v1985_v27 = vld [vmem:[%s2423_s1 + $0xb0] sm:$0xff]   ;;  %s2228_s12 = scalar_lea.vmem %s2422_s0, %s1949_s26  ;;  %v1989_v31 = vld [vmem:[%s2423_s1 + $0xb8] sm:$0xff]   ;;  %v1999_v39 = vld [vmem:[%s2423_s1 + $0x180] sm:$0xff]  }
  0x11   : > { %1782 = vmatpush3.bf16.msra.mxu1 %v1969_v11  ;;  %1743 = vmatprep.subr.bf16.mxu0 %v1970_v12  ;;  %v1990_v32 = vld [vmem:[%s2228_s12] ss:$36 sps:$4 sm:$0xff]   ;;  %v1993_v34 = vld [vmem:[%s2228_s12 + $0x8] ss:$36 sps:$4 sm:$0xff]   ;;  %v2006_v45 = vld [vmem:[%s2228_s12 + $0x54] ss:$36 sps:$4 sm:$0xff]  }
  0x12   : > { %1783 = vmatprep.subr.bf16.mxu1 %v1971_v13  ;;  %v1992_v33 = vld [vmem:[%s2228_s12 + $0x4] ss:$36 sps:$4 sm:$0xff]   ;;  %v1995_v35 = vld [vmem:[%s2228_s12 + $0xc] ss:$36 sps:$4 sm:$0xff]   ;;  %v2014_v52 = vld [vmem:[%s2423_s1 + $0x158] sm:$0xff]  }
  0x13   : > { %1099 = vmatprep.mubr.bf16.mxu0 %v1992_v33  ;;  %1164 = vmatprep.mubr.bf16.mxu1 %v1995_v35  ;;  %v2000_v40 = vld [vmem:[%s2423_s1 + $0x148] sm:$0xff]   ;;  %v2009_v47 = vld [vmem:[%s2228_s12 + $0x50] ss:$36 sps:$4 sm:$0xff]   ;;  %v2015_v53 = vld [vmem:[%s2423_s1 + $0x1d8] sm:$0xff]  }
  0x14   : > { %1744 = vmatpush3.bf16.msra.mxu0 %v1972_v14  ;;  %v2001_v41 = vld [vmem:[%s2423_s1 + $0x1c8] sm:$0xff]   ;;  %v2010_v48 = vld [vmem:[%s2423_s1 + $0x150] sm:$0xff]   ;;  %v2016_v54 = vld [vmem:[%s2423_s1 + $0x118] sm:$0xff]  }
  0x15   : > { %1784 = vmatpush3.bf16.msra.mxu1 %v1973_v15  ;;  %1745 = vmatprep.subr.bf16.mxu0 %v1974_v16  ;;  %v2002_v42 = vld [vmem:[%s2423_s1 + $0x108] sm:$0xff]   ;;  %v2011_v49 = vld [vmem:[%s2423_s1 + $0x1d0] sm:$0xff]   ;;  %v2017_v55 = vld [vmem:[%s2423_s1 + $0x198] sm:$0xff]  }
  0x16   : > { %1785 = vmatprep.subr.bf16.mxu1 %v1975_v17  ;;  %v2003_v43 = vld [vmem:[%s2423_s1 + $0x188] sm:$0xff]   ;;  %v2012_v50 = vld [vmem:[%s2423_s1 + $0x110] sm:$0xff]   ;;  %v2020_v57 = vld [vmem:[%s2228_s12 + $0x9c] ss:$36 sps:$4 sm:$0xff]  }
  0x17   : > { %v2004_v44 = vld [vmem:[%s2228_s12 + $0x4c] ss:$36 sps:$4 sm:$0xff]   ;;  %v2018_v56 = vld [vmem:[%s2228_s12 + $0x94] ss:$36 sps:$4 sm:$0xff]   ;;  %v2024_v60 = vld [vmem:[%s2423_s1 + $0x160] sm:$0xff]  }
  0x18   : > { %1746 = vmatpush3.bf16.msra.mxu0 %v1976_v18  ;;  %v2008_v46 = vld [vmem:[%s2228_s12 + $0x48] ss:$36 sps:$4 sm:$0xff]   ;;  %v2013_v51 = vld [vmem:[%s2423_s1 + $0x190] sm:$0xff]   ;;  %v2023_v59 = vld [vmem:[%s2228_s12 + $0x98] ss:$36 sps:$4 sm:$0xff]  }
  0x19   : > { %1786 = vmatpush3.bf16.msra.mxu1 %v1977_v19  ;;  %1747 = vmatprep.subr.bf16.mxu0 %v1978_v20  ;;  %v2022_v58 = vld [vmem:[%s2228_s12 + $0x90] ss:$36 sps:$4 sm:$0xff]   ;;  %v2025_v61 = vld [vmem:[%s2423_s1 + $0x1e0] sm:$0xff]   ;;  %v2028_v0 = vld [vmem:[%s2423_s1 + $0x168] sm:$0xff]  }
  0x1a   : > { %1787 = vmatprep.subr.bf16.mxu1 %v1979_v21  ;;  %v2026_v62 = vld [vmem:[%s2423_s1 + $0x120] sm:$0xff]   ;;  %v2029_v1 = vld [vmem:[%s2423_s1 + $0x1e8] sm:$0xff]   ;;  %v2036_v6 = vld [vmem:[%s2228_s12 + $0xd8] ss:$36 sps:$4 sm:$0xff]  }
  0x1b   : > { %v2027_v63 = vld [vmem:[%s2423_s1 + $0x1a0] sm:$0xff]   ;;  %v2030_v2 = vld [vmem:[%s2423_s1 + $0x128] sm:$0xff]   ;;  %v2038_v8 = vld [vmem:[%s2423_s1 + $0x170] sm:$0xff]  }
  0x1c   : > { %1748 = vmatpush3.bf16.msra.mxu0 %v1980_v22  ;;  %v2031_v3 = vld [vmem:[%s2423_s1 + $0x1a8] sm:$0xff]   ;;  %v2032_v4 = vld [vmem:[%s2228_s12 + $0xdc] ss:$36 sps:$4 sm:$0xff]   ;;  %v2039_v9 = vld [vmem:[%s2423_s1 + $0x1f0] sm:$0xff]  }
  0x1d   : > { %1788 = vmatpush3.bf16.msra.mxu1 %v1981_v23  ;;  %1749 = vmatprep.subr.bf16.mxu0 %v1982_v24  ;;  %v2034_v5 = vld [vmem:[%s2228_s12 + $0xe4] ss:$36 sps:$4 sm:$0xff]   ;;  %v2040_v10 = vld [vmem:[%s2423_s1 + $0x130] sm:$0xff]   ;;  %v2042_v12 = vld [vmem:[%s2423_s1 + $0x178] sm:$0xff]  }
  0x1e   : > { %1789 = vmatprep.subr.bf16.mxu1 %v1983_v25  ;;  %v2037_v7 = vld [vmem:[%s2228_s12 + $0xe0] ss:$36 sps:$4 sm:$0xff]   ;;  %v2041_v11 = vld [vmem:[%s2423_s1 + $0x1b0] sm:$0xff]   ;;  %v2043_v13 = vld [vmem:[%s2423_s1 + $0x1f8] sm:$0xff]  }
  0x1f   : > { %v2044_v14 = vld [vmem:[%s2423_s1 + $0x138] sm:$0xff]   ;;  %v2046_v16 = vld [vmem:[%s2228_s12 + $0x10] ss:$36 sps:$4 sm:$0xff]   ;;  %v2052_v20 = vld [vmem:[%s2423_s1 + $0x200] sm:$0xff]  }
  0x20   : > { %1750 = vmatpush3.bf16.msra.mxu0 %v1984_v26  ;;  %v2045_v15 = vld [vmem:[%s2423_s1 + $0x1b8] sm:$0xff]   ;;  %v2053_v21 = vld [vmem:[%s2423_s1 + $0x208] sm:$0xff]   ;;  %v2059_v25 = vld [vmem:[%s2228_s12 + $0x60] ss:$36 sps:$4 sm:$0xff]  }
  0x21   : > { %1790 = vmatpush3.bf16.msra.mxu1 %v1985_v27  ;;  %1751 = vmatprep.subr.bf16.mxu0 %v1986_v28  ;;  %v2048_v17 = vld [vmem:[%s2228_s12 + $0x14] ss:$36 sps:$4 sm:$0xff]   ;;  %v2051_v19 = vld [vmem:[%s2228_s12 + $0x1c] ss:$36 sps:$4 sm:$0xff]   ;;  %v2056_v23 = vld [vmem:[%s2228_s12 + $0x64] ss:$36 sps:$4 sm:$0xff]  }
  0x22   : > { %1791 = vmatprep.subr.bf16.mxu1 %v1987_v29  ;;  %v2049_v18 = vld [vmem:[%s2228_s12 + $0x18] ss:$36 sps:$4 sm:$0xff]   ;;  %v2060_v26 = vld [vmem:[%s2423_s1 + $0x210] sm:$0xff]   ;;  %v2062_v27 = vld [vmem:[%s2228_s12 + $0xa4] ss:$36 sps:$4 sm:$0xff]  }
  0x23   : > { %v2054_v22 = vld [vmem:[%s2228_s12 + $0x5c] ss:$36 sps:$4 sm:$0xff]   ;;  %v2064_v28 = vld [vmem:[%s2228_s12 + $0xac] ss:$36 sps:$4 sm:$0xff]  }
  0x24   : > { %1752 = vmatpush3.bf16.msra.mxu0 %v1988_v30  ;;  %v2058_v24 = vld [vmem:[%s2228_s12 + $0x58] ss:$36 sps:$4 sm:$0xff]   ;;  %v2066_v30 = vld [vmem:[%s2228_s12 + $0xa0] ss:$36 sps:$4 sm:$0xff]   ;;  %v2070_v33 = vld [vmem:[%s2228_s12 + $0xec] ss:$36 sps:$4 sm:$0xff]  }
  0x25   : > { %1792 = vmatpush3.bf16.msra.mxu1 %v1989_v31  ;;  %1817 = vmatprep.subr.bf16.mxu0 %v1996_v36  ;;  %v2061_v29 = vld [vmem:[%s2423_s1 + $0x218] sm:$0xff]   ;;  %v2067_v31 = vld [vmem:[%s2228_s12 + $0xa8] ss:$36 sps:$4 sm:$0xff]  }
  0x26   : > { %1857 = vmatprep.subr.bf16.mxu1 %v1997_v37  ;;  %v2069_v35 = vld [vmem:[%s2423_s1 + $0x228] sm:$0xff]   ;;  %v2076_v37 = vld [vmem:[%s2423_s1 + $0x230] sm:$0xff]  }
  0x27   : > { %1100 = vmatmul.mubr.bf16.vlgmr.msra.gmra.mrb[0].mxu0 %v1990_v32  ;;  %v2068_v32 = vld [vmem:[%s2423_s1 + $0x220] sm:$0xff]   ;;  %v2074_v36 = vld [vmem:[%s2228_s12 + $0xe8] ss:$36 sps:$4 sm:$0xff]  }
  0x28   : > { %1165 = vmatmul.mubr.bf16.vlgmr.msra.gmra.mrb[0].mxu1 %v1993_v34  ;;  %1818 = vmatpush3.bf16.msra.mxu0 %v1998_v38  ;;  %v2072_v34 = vld [vmem:[%s2228_s12 + $0xf4] ss:$36 sps:$4 sm:$0xff]  }
  0x29   : > { %1858 = vmatpush3.bf16.msra.mxu1 %v1999_v39  ;;  %1819 = vmatprep.subr.bf16.mxu0 %v2000_v40  ;;  %v2075_v38 = vld [vmem:[%s2228_s12 + $0xf0] ss:$36 sps:$4 sm:$0xff]   ;;  %v2078_v39 = vld [vmem:[%s2228_s12 + $0x20] ss:$36 sps:$4 sm:$0xff]  }
  0x2a   : > { %1859 = vmatprep.subr.bf16.mxu1 %v2001_v41  ;;  %1107 = vmatprep.mubr.bf16.mxu0 %v2004_v44  ;;  %v2079_v40 = vld [vmem:[%s2228_s12 + $0xb0] ss:$36 sps:$4 sm:$0xff]   ;;  %v2077_v41 = vld [vmem:[%s2423_s1 + $0x238] sm:$0xff]  }
  0x2b   : > { %1172 = vmatprep.mubr.bf16.mxu1 %v2006_v45 }
  0x2c   : > { %1820 = vmatpush3.bf16.msra.mxu0 %v2002_v42  ;;  %v2080_v42 = vld [vmem:[%s2228_s12 + $0x68] ss:$36 sps:$4 sm:$0xff]  }
  0x2d   : > { %1860 = vmatpush3.bf16.msra.mxu1 %v2003_v43  ;;  %1821 = vmatprep.subr.bf16.mxu0 %v2010_v48  ;;  %v2081_v43 = vld [vmem:[%s2228_s12 + $0xf8] ss:$36 sps:$4 sm:$0xff]   ;;  %s1685_s12 = sshll.u32 %s2429_s19, 5 }
  0x2e   : > { %1861 = vmatprep.subr.bf16.mxu1 %v2011_v49  ;;  %s250_s13 = scalar_lea.vmem %s2425_s3, %s1685_s12  ;;  %s258_s21 = scalar_lea.vmem %s2427_s5, %s1685_s12 }
  0x2f   : > { %1108 = vmatmul.mubr.bf16.gmra.mrb[4].mxu0 %v2008_v46  ;;  %v1565_v46 = vld [vmem:[%s2424_s2] ss:$0 sm:$0xff] }
  0x30   : > { %1173 = vmatmul.mubr.bf16.gmra.mrb[4].mxu1 %v2009_v47  ;;  %1822 = vmatpush3.bf16.msra.mxu0 %v2012_v50 }
  0x31   : > { %1862 = vmatpush3.bf16.msra.mxu1 %v2013_v51  ;;  %1823 = vmatprep.subr.bf16.mxu0 %v2014_v52 }
  0x32   : > { %1863 = vmatprep.subr.bf16.mxu1 %v2015_v53  ;;  %1115 = vmatprep.mubr.bf16.mxu0 %v2018_v56 }
  0x33   : > { %1180 = vmatprep.mubr.bf16.mxu1 %v2020_v57 }
  0x34   : > { %1824 = vmatpush3.bf16.msra.mxu0 %v2016_v54 }
  0x35   : > { %1864 = vmatpush3.bf16.msra.mxu1 %v2017_v55  ;;  %1825 = vmatprep.subr.bf16.mxu0 %v2024_v60 }
  0x36   : > { %1865 = vmatprep.subr.bf16.mxu1 %v2025_v61 }
  0x37   : > { %1116 = vmatmul.mubr.bf16.gmra.mrb[8].mxu0 %v2022_v58 }
  0x38   : > { %1181 = vmatmul.mubr.bf16.gmra.mrb[8].mxu1 %v2023_v59  ;;  %1826 = vmatpush3.bf16.msra.mxu0 %v2026_v62 }
  0x39   : > { %1866 = vmatpush3.bf16.msra.mxu1 %v2027_v63  ;;  %1827 = vmatprep.subr.bf16.mxu0 %v2028_v0 }
  0x3a   : > { %1867 = vmatprep.subr.bf16.mxu1 %v2029_v1  ;;  %1123 = vmatprep.mubr.bf16.mxu0 %v2032_v4 }
  0x3b   : > { %1188 = vmatprep.mubr.bf16.mxu1 %v2034_v5 }
  0x3c   : > { %1828 = vmatpush3.bf16.msra.mxu0 %v2030_v2 }
  0x3d   : > { %1868 = vmatpush3.bf16.msra.mxu1 %v2031_v3  ;;  %1829 = vmatprep.subr.bf16.mxu0 %v2038_v8 }
  0x3e   : > { %1869 = vmatprep.subr.bf16.mxu1 %v2039_v9 }
  0x3f   : > { %1124 = vmatmul.mubr.bf16.gmra.mrb[12].mxu0 %v2036_v6 }
  0x40   : > { %1189 = vmatmul.mubr.bf16.gmra.mrb[12].mxu1 %v2037_v7  ;;  %1830 = vmatpush3.bf16.msra.mxu0 %v2040_v10 }
  0x41   : > { %1870 = vmatpush3.bf16.msra.mxu1 %v2041_v11  ;;  %1831 = vmatprep.subr.bf16.mxu0 %v2042_v12 }
  0x42   : > { %1871 = vmatprep.subr.bf16.mxu1 %v2043_v13  ;;  %1229 = vmatprep.mubr.bf16.mxu0 %v2048_v17 }
  0x43   : > { %1294 = vmatprep.mubr.bf16.mxu1 %v2051_v19 }
  0x44   : > { %1832 = vmatpush3.bf16.msra.mxu0 %v2044_v14 }
  0x45   : > { %1872 = vmatpush3.bf16.msra.mxu1 %v2045_v15  ;;  %1909 = vmatprep.subr.bf16.mxu0 %v2052_v20 }
  0x46   : > { %1933 = vmatprep.subr.bf16.mxu1 %v2052_v20 }
  0x47   : > { %1230 = vmatmul.mubr.bf16.vlgmr.msra.gmra.mrb[16].mxu0 %v2046_v16 }
  0x48   : > { %1295 = vmatmul.mubr.bf16.vlgmr.msra.gmra.mrb[16].mxu1 %v2049_v18  ;;  %1910 = vmatpush3.bf16.msra.mxu0 %v2052_v20 }
  0x49   : > { %1941 = vmatpush3.bf16.msra.mxu1 %v2052_v20  ;;  %1911 = vmatprep.subr.bf16.mxu0 %v2053_v21 }
  0x4a   : > { %1934 = vmatprep.subr.bf16.mxu1 %v2053_v21  ;;  %1237 = vmatprep.mubr.bf16.mxu0 %v2054_v22 }
  0x4b   : > { %1302 = vmatprep.mubr.bf16.mxu1 %v2056_v23 }
  0x4c   : > { %1912 = vmatpush3.bf16.msra.mxu0 %v2053_v21 }
  0x4d   : > { %1942 = vmatpush3.bf16.msra.mxu1 %v2053_v21  ;;  %1913 = vmatprep.subr.bf16.mxu0 %v2060_v26 }
  0x4e   : > { %1935 = vmatprep.subr.bf16.mxu1 %v2060_v26 }
  0x4f   : > { %1238 = vmatmul.mubr.bf16.gmra.mrb[20].mxu0 %v2058_v24 }
  0x50   : > { %1303 = vmatmul.mubr.bf16.gmra.mrb[20].mxu1 %v2059_v25  ;;  %1245 = vmatprep.mubr.bf16.mxu0 %v2062_v27 }
  0x51   : > { %1914 = vmatpush3.bf16.msra.mxu0 %v2060_v26  ;;  %1310 = vmatprep.mubr.bf16.mxu1 %v2064_v28 }
  0x52   : > { %1943 = vmatpush3.bf16.msra.mxu1 %v2060_v26  ;;  %1915 = vmatprep.subr.bf16.mxu0 %v2061_v29 }
  0x53   : > { %1936 = vmatprep.subr.bf16.mxu1 %v2061_v29 }
  0x55   : > { %1916 = vmatpush3.bf16.msra.mxu0 %v2061_v29 }
  0x56   : > { %1944 = vmatpush3.bf16.msra.mxu1 %v2061_v29  ;;  %1917 = vmatprep.subr.bf16.mxu0 %v2068_v32 }
  0x57   : > { %1246 = vmatmul.mubr.bf16.gmra.mrb[24].mxu0 %v2066_v30  ;;  %1937 = vmatprep.subr.bf16.mxu1 %v2068_v32 }
  0x58   : > { %1311 = vmatmul.mubr.bf16.gmra.mrb[24].mxu1 %v2067_v31  ;;  %1253 = vmatprep.mubr.bf16.mxu0 %v2070_v33 }
  0x59   : > { %1918 = vmatpush3.bf16.msra.mxu0 %v2068_v32  ;;  %1318 = vmatprep.mubr.bf16.mxu1 %v2072_v34 }
  0x5a   : > { %1945 = vmatpush3.bf16.msra.mxu1 %v2068_v32  ;;  %1919 = vmatprep.subr.bf16.mxu0 %v2069_v35 }
  0x5b   : > { %1938 = vmatprep.subr.bf16.mxu1 %v2069_v35 }
  0x5d   : > { %1920 = vmatpush3.bf16.msra.mxu0 %v2069_v35 }
  0x5e   : > { %1946 = vmatpush3.bf16.msra.mxu1 %v2069_v35  ;;  %1921 = vmatprep.subr.bf16.mxu0 %v2076_v37 }
  0x5f   : > { %1254 = vmatmul.mubr.bf16.gmra.mrb[28].mxu0 %v2074_v36  ;;  %1939 = vmatprep.subr.bf16.mxu1 %v2076_v37 }
  0x60   : > { %1319 = vmatmul.mubr.bf16.gmra.mrb[28].mxu1 %v2075_v38  ;;  %1925 = vmatprep.mubr.bf16.mxu0 %v2078_v39 }
  0x61   : > { %1922 = vmatpush3.bf16.msra.mxu0 %v2076_v37  ;;  %1929 = vmatprep.mubr.bf16.mxu1 %v2079_v40 }
  0x62   : > { %1947 = vmatpush3.bf16.msra.mxu1 %v2076_v37  ;;  %1923 = vmatprep.subr.bf16.mxu0 %v2077_v41 }
  0x63   : > { %1940 = vmatprep.subr.bf16.mxu1 %v2077_v41 }
  0x65   : > { %1924 = vmatpush3.bf16.msra.mxu0 %v2077_v41 }
  0x66   : > { %1948 = vmatpush3.bf16.msra.mxu1 %v2077_v41 }
  0x68   : > { %1926 = vmatmul.mubr.bf16.vlgmr.msra.gmra.mrb[32].mxu0 %v2080_v42 }
  0x69   : > { %1930 = vmatmul.mubr.bf16.vlgmr.msra.gmra.mrb[32].mxu1 %v2081_v43 }
  0xfa   : > { %v1753_v44 = vpop.f32.mrb[0].mxu0 }
  0xfb   : > { %v1793_v45 = vpop.f32.mrb[0].mxu1  ;;  %v1754_v47 = vpop.f32.mrb[1].mxu0 }
  0xfc   : > { %v1755_v48 = vadd.f32 %v1754_v47, %v1753_v44  ;;  %v1794_v49 = vpop.f32.mrb[1].mxu1  ;;  %v1756_v50 = vpop.f32.mrb[2].mxu0 }
  0xfd   : > { %v1795_v51 = vadd.f32 %v1794_v49, %v1793_v45  ;;  %v1796_v52 = vpop.f32.mrb[2].mxu1  ;;  %v1757_v53 = vpop.f32.mrb[3].mxu0 }
  0xfe   : > { %v1102_v54 = vadd.f32 %v1755_v48, %v1565_v46  ;;  %v1758_v55 = vadd.f32 %v1757_v53, %v1756_v50  ;;  %v1797_v56 = vpop.f32.mrb[3].mxu1 }
  0xff   : > { %v1798_v57 = vadd.f32 %v1797_v56, %v1796_v52 }
 0x100   : > { %v1167_v58 = vadd.f32 %v1795_v51, %v1102_v54  ;;  %v1105_v59 = vadd.f32 %v1758_v55, %v1565_v46 }
 0x102   : > { %v1170_v60 = vadd.f32 %v1798_v57, %v1105_v59  ;;  %v1759_v61 = vpop.f32.mrb[4].mxu0 }
 0x103   : > { %v1799_v62 = vpop.f32.mrb[4].mxu1  ;;  %v1760_v63 = vpop.f32.mrb[5].mxu0 }
 0x104   : > { %v1761_v0 = vadd.f32 %v1760_v63, %v1759_v61  ;;  %v1800_v1 = vpop.f32.mrb[5].mxu1  ;;  %v1762_v2 = vpop.f32.mrb[6].mxu0 }
 0x105   : > { %v1801_v3 = vadd.f32 %v1800_v1, %v1799_v62  ;;  %v1802_v4 = vpop.f32.mrb[6].mxu1  ;;  %v1763_v5 = vpop.f32.mrb[7].mxu0 }
 0x106   : > { %v1110_v6 = vadd.f32 %v1761_v0, %v1565_v46  ;;  %v1764_v7 = vadd.f32 %v1763_v5, %v1762_v2  ;;  %v1803_v8 = vpop.f32.mrb[7].mxu1 }
 0x107   : > { %v1804_v9 = vadd.f32 %v1803_v8, %v1802_v4 }
 0x108   : > { %v1175_v10 = vadd.f32 %v1801_v3, %v1110_v6  ;;  %v1113_v11 = vadd.f32 %v1764_v7, %v1565_v46 }
 0x10a   : > { %v1178_v12 = vadd.f32 %v1804_v9, %v1113_v11  ;;  %v1765_v13 = vpop.f32.mrb[8].mxu0 }
 0x10b   : > { %v1805_v14 = vpop.f32.mrb[8].mxu1  ;;  %v1766_v15 = vpop.f32.mrb[9].mxu0 }
 0x10c   : > { %v1767_v16 = vadd.f32 %v1766_v15, %v1765_v13  ;;  %v1806_v17 = vpop.f32.mrb[9].mxu1  ;;  %v1768_v18 = vpop.f32.mrb[10].mxu0 }
 0x10d   : > { %v1807_v19 = vadd.f32 %v1806_v17, %v1805_v14  ;;  %v1808_v20 = vpop.f32.mrb[10].mxu1  ;;  %v1769_v21 = vpop.f32.mrb[11].mxu0 }
 0x10e   : > { %v1118_v22 = vadd.f32 %v1767_v16, %v1565_v46  ;;  %v1770_v23 = vadd.f32 %v1769_v21, %v1768_v18  ;;  %v1809_v24 = vpop.f32.mrb[11].mxu1 }
 0x10f   : > { %v1810_v25 = vadd.f32 %v1809_v24, %v1808_v20 }
 0x110   : > { %v1183_v26 = vadd.f32 %v1807_v19, %v1118_v22  ;;  %v1121_v27 = vadd.f32 %v1770_v23, %v1565_v46 }
 0x112   : > { %v1186_v28 = vadd.f32 %v1810_v25, %v1121_v27  ;;  %v1771_v29 = vpop.f32.mrb[12].mxu0 }
 0x113   : > { %v1811_v30 = vpop.f32.mrb[12].mxu1  ;;  %v1772_v31 = vpop.f32.mrb[13].mxu0 }
 0x114   : > { %v1812_v32 = vpop.f32.mrb[13].mxu1  ;;  %v1773_v33 = vadd.f32 %v1772_v31, %v1771_v29  ;;  %v1774_v35 = vpop.f32.mrb[14].mxu0 }
 0x115   : > { %v1813_v34 = vadd.f32 %v1812_v32, %v1811_v30  ;;  %v1814_v36 = vpop.f32.mrb[14].mxu1  ;;  %v1775_v37 = vpop.f32.mrb[15].mxu0 }
 0x116   : > { %v1815_v38 = vpop.f32.mrb[15].mxu1  ;;  %v1126_v39 = vadd.f32 %v1773_v33, %v1565_v46  ;;  %v1776_v40 = vadd.f32 %v1775_v37, %v1774_v35 }
 0x117   : > { %v1816_v41 = vadd.f32 %v1815_v38, %v1814_v36 }
 0x118   : > { %v1191_v42 = vadd.f32 %v1813_v34, %v1126_v39  ;;  %v1129_v43 = vadd.f32 %v1776_v40, %v1565_v46 }
 0x11a   : > { %v2395_v44 = vadd.f32 %v1816_v41, %v1129_v43  ;;  %v1833_v45 = vpop.f32.mrb[16].mxu0 }
 0x11b   : > { %v1834_v47 = vpop.f32.mrb[17].mxu0  ;;  %v1873_v48 = vpop.f32.mrb[16].mxu1 }
 0x11c   : > { %v1835_v49 = vadd.f32 %v1834_v47, %v1833_v45  ;;  %v1836_v50 = vpop.f32.mrb[18].mxu0  ;;  %v1874_v51 = vpop.f32.mrb[17].mxu1  ;;  %v1731_v45 = vld [vmem:[%s250_s13 + $0x8] sm:$0xff]  }
 0x11d   : > { %v1837_v52 = vpop.f32.mrb[19].mxu0  ;;  %v1875_v54 = vadd.f32 %v1874_v51, %v1873_v48  ;;  %v1876_v55 = vpop.f32.mrb[18].mxu1  ;;  %v1733_v48 = vld [vmem:[%s250_s13 + $0x18] sm:$0xff]  }
 0x11e   : > { %v1232_v53 = vadd.f32 %v1835_v49, %v1167_v58  ;;  %v1838_v56 = vadd.f32 %v1837_v52, %v1836_v50  ;;  %v1877_v57 = vpop.f32.mrb[19].mxu1  ;;  %v1696_v49 = vld [vmem:[%s250_s13] sm:$0xff]   ;;  %v1732_v50 = vld [vmem:[%s250_s13 + $0x10] sm:$0xff]   ;;  %v1701_v52 = vunpack.c.l.bf16 %v1731_v45 }
 0x11f   : > { %v1878_v61 = vadd.f32 %v1877_v57, %v1876_v55  ;;  %v1697_v55 = vunpack.c.l.bf16 %v1696_v49 }
 0x120   : > { %v1235_v59 = vadd.f32 %v1838_v56, %v1170_v60  ;;  %v2397_v62 = vadd.f32 %v1875_v54, %v1232_v53  ;;  %v1709_v54 = vunpack.c.l.bf16 %v1733_v48 }
 0x122   : > { %v1839_v63 = vpop.f32.mrb[20].mxu0  ;;  %v2399_v46 = vadd.f32 %v1878_v61, %v1235_v59  ;;  %v1705_v59 = vunpack.c.l.bf16 %v1732_v50  ;;  %v1702_v61 = vunpack.c.h.bf16 %v1731_v45 }
 0x123   : > { %v1840_v0 = vpop.f32.mrb[21].mxu0  ;;  %v1879_v1 = vpop.f32.mrb[20].mxu1 }
 0x124   : > { %v1841_v2 = vadd.f32 %v1840_v0, %v1839_v63  ;;  %v1842_v3 = vpop.f32.mrb[22].mxu0  ;;  %v1880_v4 = vpop.f32.mrb[21].mxu1 }
 0x125   : > { %v1843_v5 = vpop.f32.mrb[23].mxu0  ;;  %v1881_v7 = vadd.f32 %v1880_v4, %v1879_v1  ;;  %v1882_v58 = vpop.f32.mrb[22].mxu1 }
 0x126   : > { %v1240_v6 = vadd.f32 %v1841_v2, %v1175_v10  ;;  %v1844_v8 = vadd.f32 %v1843_v5, %v1842_v3  ;;  %v1883_v9 = vpop.f32.mrb[23].mxu1  ;;  %v1710_v2 = vunpack.c.h.bf16 %v1733_v48  ;;  %v1698_v3 = vunpack.c.h.bf16 %v1696_v49 }
 0x127   : > { %v1884_v13 = vadd.f32 %v1883_v9, %v1882_v58 }
 0x128   : > { %v1243_v11 = vadd.f32 %v1844_v8, %v1178_v12  ;;  %v1305_v60 = vadd.f32 %v1881_v7, %v1240_v6  ;;  %v1706_v8 = vunpack.c.h.bf16 %v1732_v50 }
 0x12a   : > { %v1845_v14 = vpop.f32.mrb[24].mxu0  ;;  %v1308_v15 = vadd.f32 %v1884_v13, %v1243_v11 }
 0x12b   : > { %v1846_v16 = vpop.f32.mrb[25].mxu0  ;;  %v1885_v17 = vpop.f32.mrb[24].mxu1 }
 0x12c   : > { %v1847_v18 = vadd.f32 %v1846_v16, %v1845_v14  ;;  %v1848_v19 = vpop.f32.mrb[26].mxu0  ;;  %v1886_v20 = vpop.f32.mrb[25].mxu1 }
 0x12d   : > { %v1849_v21 = vpop.f32.mrb[27].mxu0  ;;  %v1887_v23 = vadd.f32 %v1886_v20, %v1885_v17  ;;  %v1888_v10 = vpop.f32.mrb[26].mxu1 }
 0x12e   : > { %v1248_v22 = vadd.f32 %v1847_v18, %v1183_v26  ;;  %v1850_v24 = vadd.f32 %v1849_v21, %v1848_v19  ;;  %v1889_v25 = vpop.f32.mrb[27].mxu1  ;;  %v1674_v19 = vld [vmem:[%s253_s16] ss:$0 sm:$0xff] }
 0x12f   : > { %v1890_v29 = vadd.f32 %v1889_v25, %v1888_v10 }
 0x130   : > { %v1251_v27 = vadd.f32 %v1850_v24, %v1186_v28  ;;  %v1313_v12 = vadd.f32 %v1887_v23, %v1248_v22 }
 0x132   : > { %v1851_v30 = vpop.f32.mrb[28].mxu0  ;;  %v1316_v31 = vadd.f32 %v1890_v29, %v1251_v27 }
 0x133   : > { %v1852_v32 = vpop.f32.mrb[29].mxu0  ;;  %v1891_v33 = vpop.f32.mrb[28].mxu1 }
 0x134   : > { %v1853_v34 = vadd.f32 %v1852_v32, %v1851_v30  ;;  %v1854_v35 = vpop.f32.mrb[30].mxu0  ;;  %v1892_v36 = vpop.f32.mrb[29].mxu1 }
 0x135   : > { %v1855_v37 = vpop.f32.mrb[31].mxu0  ;;  %v1893_v38 = vadd.f32 %v1892_v36, %v1891_v33  ;;  %v1894_v39 = vpop.f32.mrb[30].mxu1 }
 0x136   : > { %v1256_v26 = vadd.f32 %v1853_v34, %v1191_v42  ;;  %v1856_v28 = vadd.f32 %v1855_v37, %v1854_v35  ;;  %v1895_v40 = vpop.f32.mrb[31].mxu1 }
 0x137   : > { %v1896_v43 = vadd.f32 %v1895_v40, %v1894_v39 }
 0x138   : > { %v1259_v41 = vadd.f32 %v1856_v28, %v2395_v44  ;;  %v1321_v47 = vadd.f32 %v1893_v38, %v1256_v26 }
 0x13a   : > { %v1324_v51 = vadd.f32 %v1896_v43, %v1259_v41 }
 0x13b   : > { %v1927_v53 = vpop.f32.mrb[32].mxu0 }
 0x13c   : > { %v1370_v56 = vadd.f32 %v1927_v53, %v1305_v60  ;;  %v1931_v42 = vpop.f32.mrb[32].mxu1  ;;  %v1361_v57 = vpop.f32.mrb[33].mxu0 }
 0x13d   : > { %v1386_v63 = vadd.f32 %v1931_v42, %v1321_v47  ;;  %v1362_v44 = vadd.f32 %v1361_v57, %v2397_v62  ;;  %v1377_v0 = vpop.f32.mrb[33].mxu1  ;;  %v1928_v1 = vpop.f32.mrb[34].mxu0 }
 0x13e   : > { %v1410_v4 = vadd.f32 %v1701_v52, %v1370_v56  ;;  %v1378_v5 = vadd.f32 %v1377_v0, %v1313_v12  ;;  %v1373_v6 = vadd.f32 %v1928_v1, %v1308_v15  ;;  %v1932_v7 = vpop.f32.mrb[34].mxu1  ;;  %v1364_v58 = vpop.f32.mrb[35].mxu0 }
 0x13f   : > { %v1414_v9 = vadd.f32 %v1709_v54, %v1386_v63  ;;  %v1408_v11 = vadd.f32 %v1697_v55, %v1362_v44  ;;  %v1389_v13 = vadd.f32 %v1932_v7, %v1324_v51  ;;  %v1365_v60 = vadd.f32 %v1364_v58, %v2399_v46  ;;  %v1380_v62 = vpop.f32.mrb[35].mxu1 }
 0x140   : > { %v1418_v14 = vmax.f32 %v1410_v4, 0.0  ;;  %v1412_v16 = vadd.f32 %v1705_v59, %v1378_v5  ;;  %v1411_v17 = vadd.f32 %v1702_v61, %v1373_v6  ;;  %v1381_v18 = vadd.f32 %v1380_v62, %v1316_v31 }
 0x141   : > { %v1422_v20 = vmax.f32 %v1414_v9, 0.0  ;;  %v1416_v21 = vmax.f32 %v1408_v11, 0.0  ;;  %v1415_v22 = vadd.f32 %v1710_v2, %v1389_v13  ;;  %v1409_v23 = vadd.f32 %v1698_v3, %v1365_v60 }
 0x142   : > { %v1420_v15 = vmax.f32 %v1412_v16, 0.0  ;;  %v1419_v10 = vmax.f32 %v1411_v17, 0.0  ;;  %v1413_v24 = vadd.f32 %v1706_v8, %v1381_v18  ;;  %v1433_v29 = vmul.f32 %v1674_v19, %v1418_v14 }
 0x143   : > { %v1423_v25 = vmax.f32 %v1415_v22, 0.0  ;;  %v1417_v27 = vmax.f32 %v1409_v23, 0.0  ;;  %v1437_v46 = vmul.f32 %v1674_v19, %v1422_v20  ;;  %v1431_v31 = vmul.f32 %v1674_v19, %v1416_v21 }
 0x144   : > { %v1434_v12 = vmul.f32 %v1674_v19, %v1419_v10  ;;  %v1421_v30 = vmax.f32 %v1413_v24, 0.0  ;;  %v1435_v34 = vmul.f32 %v1674_v19, %v1420_v15 }
 0x145   : > { %v1438_v32 = vmul.f32 %v1674_v19, %v1423_v25  ;;  %v1432_v33 = vmul.f32 %v1674_v19, %v1417_v27 }
 0x146   : > { %v1719_v35 = vpack.c.bf16 %v1434_v12, %v1433_v29  ;;  %v1436_v36 = vmul.f32 %v1674_v19, %v1421_v30 }
 0x147   : > { %v1729_v37 = vpack.c.bf16 %v1438_v32, %v1437_v46  ;;  %v1714_v26 = vpack.c.bf16 %v1432_v33, %v1431_v31 }
 0x148   : > { %1734 = vst [vmem:[%s258_s21 + $0x8] sm:$0xff] %v1719_v35   ;;  %v1724_v38 = vpack.c.bf16 %v1436_v36, %v1435_v34 }
 0x149   : > { %1736 = vst [vmem:[%s258_s21 + $0x18] sm:$0xff] %v1729_v37   ;;  %1715 = vst [vmem:[%s258_s21] sm:$0xff] %v1714_v26  }
 0x14a   : > { %1735 = vst [vmem:[%s258_s21 + $0x10] sm:$0xff] %v1724_v38  }
 0x14b PF: > { %s15_s18 = sadd.s32 1, %s2088_s18  }
 0x14c   : > { %p12_p4 = scmp.ge.s32.totalorder %s15_s18, 4  }
 0x14e   :  { %14 = sbr.rel (!%p12_p4) target bundleno = 1 (0x1), region = 76 }

// kernel: encoder_forward.16
= control target key start
LH: loop header
LB: loop body
LE: loop exit
PB: predicated region body
PF: predicated region fallthrough
CT: control target
= control target key end

     0   :  { %s1848_s12 = smov 0   ;;  %s2319_s0 = inlined_call_operand.vmem [shape: bf16[2,16,1152], index: 0, kind: input, shape index: {}]   ;;  %s2320_s1 = inlined_call_operand.vmem [shape: bf16[1152,256], index: 1, kind: input, shape index: {}]   ;;  %s2321_s2 = inlined_call_operand.vmem [shape: f32[1,256], index: 2, kind: input, shape index: {}]   ;;  %s2322_s3 = inlined_call_operand.vmem [shape: bf16[2,16,256], index: 3, kind: output, shape index: {}]  }
   0x1 LB: > { %s1392_s13 = sadd.s32 4294967295, %s1825_s12   ;;  %p1396_p0 = scmp.ge.s32.totalorder %s1825_s12, 1  ;;  %s1825_s12 = sphi %s1848_s12, %s13_s12  }
   0x2   : > { %p137_p1 = scmp.lt.s32.totalorder %s1825_s12, 3 }
   0x4   : > { %p138_p2 = pnand %p1396_p0, %p137_p1 }
   0x5   : > { %v1590_v0 = vld [vmem:[%s2320_s1 + $0x4] ss:$8 sps:$4 sm:$0xff] (!%p138_p2)   ;;  %v1594_v2 = vld [vmem:[%s2320_s1] ss:$8 sps:$4 sm:$0xff] (!%p138_p2)   ;;  %v1596_v4 = vld [vmem:[%s2320_s1 + $0x14] ss:$8 sps:$4 sm:$0xff] (!%p138_p2)  }
   0x6   : > { %141 = sbr.rel (%p138_p2) target bundleno = 389 (0x185), region = 32  ;;  %v1592_v1 = vld [vmem:[%s2320_s1 + $0x204] ss:$8 sps:$4 sm:$0xff] (!%p138_p2)   ;;  %1104 = vmatprep.subr.bf16.mxu1 (!%p138_p2), %v1590_v0  ;;  %v1595_v3 = vld [vmem:[%s2320_s1 + $0x200] ss:$8 sps:$4 sm:$0xff] (!%p138_p2)   ;;  %p161_p3 = scmp.lt.s32.totalorder (!%p138_p2), %s1392_s13, 1 }
   0x7   : > { %1190 = vmatprep.subr.bf16.mxu0 (!%p138_p2), %v1592_v1  ;;  %1105 = vmatpush1.bf16.msra.mxu1 (!%p138_p2), %v1594_v2  ;;  %v1598_v5 = vld [vmem:[%s2320_s1 + $0x214] ss:$8 sps:$4 sm:$0xff] (!%p138_p2)   ;;  %v1600_v6 = vld [vmem:[%s2320_s1 + $0x10] ss:$8 sps:$4 sm:$0xff] (!%p138_p2)   ;;  %v1602_v8 = vld [vmem:[%s2320_s1 + $0x24] ss:$8 sps:$4 sm:$0xff] (!%p138_p2)  }
   0x8   : > { %1191 = vmatpush1.bf16.msra.mxu0 (!%p138_p2), %v1595_v3  ;;  %1106 = vmatprep.subr.bf16.mxu1 (!%p138_p2), %v1596_v4  ;;  %v1601_v7 = vld [vmem:[%s2320_s1 + $0x210] ss:$8 sps:$4 sm:$0xff] (!%p138_p2)   ;;  %v1604_v9 = vld [vmem:[%s2320_s1 + $0x224] ss:$8 sps:$4 sm:$0xff] (!%p138_p2)   ;;  %v1606_v10 = vld [vmem:[%s2320_s1 + $0x20] ss:$8 sps:$4 sm:$0xff] (!%p138_p2)  }
   0x9   : > { %1192 = vmatprep.subr.bf16.mxu0 (!%p138_p2), %v1598_v5  ;;  %v1607_v11 = vld [vmem:[%s2320_s1 + $0x220] ss:$8 sps:$4 sm:$0xff] (!%p138_p2)   ;;  %v1608_v12 = vld [vmem:[%s2320_s1 + $0x34] ss:$8 sps:$4 sm:$0xff] (!%p138_p2)   ;;  %v1612_v14 = vld [vmem:[%s2320_s1 + $0x30] ss:$8 sps:$4 sm:$0xff] (!%p138_p2)  }
   0xa   : > { %v1610_v13 = vld [vmem:[%s2320_s1 + $0x234] ss:$8 sps:$4 sm:$0xff] (!%p138_p2)   ;;  %v1613_v15 = vld [vmem:[%s2320_s1 + $0x230] ss:$8 sps:$4 sm:$0xff] (!%p138_p2)   ;;  %v1614_v16 = vld [vmem:[%s2320_s1 + $0x44] ss:$8 sps:$4 sm:$0xff] (!%p138_p2)  }
   0xb   : > { %1107 = vmatpush1.bf16.msra.mxu1 (!%p138_p2), %v1600_v6  ;;  %v1616_v17 = vld [vmem:[%s2320_s1 + $0x244] ss:$8 sps:$4 sm:$0xff] (!%p138_p2)   ;;  %v1618_v18 = vld [vmem:[%s2320_s1 + $0x40] ss:$8 sps:$4 sm:$0xff] (!%p138_p2)   ;;  %v1620_v20 = vld [vmem:[%s2320_s1 + $0x54] ss:$8 sps:$4 sm:$0xff] (!%p138_p2)  }
   0xc   : > { %1193 = vmatpush1.bf16.msra.mxu0 (!%p138_p2), %v1601_v7  ;;  %1108 = vmatprep.subr.bf16.mxu1 (!%p138_p2), %v1602_v8  ;;  %v1619_v19 = vld [vmem:[%s2320_s1 + $0x240] ss:$8 sps:$4 sm:$0xff] (!%p138_p2)   ;;  %v1622_v21 = vld [vmem:[%s2320_s1 + $0x254] ss:$8 sps:$4 sm:$0xff] (!%p138_p2)   ;;  %v1624_v22 = vld [vmem:[%s2320_s1 + $0x50] ss:$8 sps:$4 sm:$0xff] (!%p138_p2)  }
   0xd   : > { %1194 = vmatprep.subr.bf16.mxu0 %v1604_v9  ;;  %v1625_v23 = vld [vmem:[%s2320_s1 + $0x250] ss:$8 sps:$4 sm:$0xff]   ;;  %v1626_v24 = vld [vmem:[%s2320_s1 + $0x64] ss:$8 sps:$4 sm:$0xff]   ;;  %v1630_v26 = vld [vmem:[%s2320_s1 + $0x60] ss:$8 sps:$4 sm:$0xff]  }
   0xe   : > { %v1628_v25 = vld [vmem:[%s2320_s1 + $0x264] ss:$8 sps:$4 sm:$0xff]   ;;  %v1631_v27 = vld [vmem:[%s2320_s1 + $0x260] ss:$8 sps:$4 sm:$0xff]   ;;  %v1632_v28 = vld [vmem:[%s2320_s1 + $0x74] ss:$8 sps:$4 sm:$0xff]  }
   0xf   : > { %1109 = vmatpush1.bf16.msra.mxu1 %v1606_v10  ;;  %v1634_v29 = vld [vmem:[%s2320_s1 + $0x274] ss:$8 sps:$4 sm:$0xff]   ;;  %v1636_v30 = vld [vmem:[%s2320_s1 + $0x70] ss:$8 sps:$4 sm:$0xff]   ;;  %v1638_v32 = vld [vmem:[%s2320_s1 + $0x84] ss:$8 sps:$4 sm:$0xff]  }
  0x10   : > { %1195 = vmatpush1.bf16.msra.mxu0 %v1607_v11  ;;  %1110 = vmatprep.subr.bf16.mxu1 %v1608_v12  ;;  %v1637_v31 = vld [vmem:[%s2320_s1 + $0x270] ss:$8 sps:$4 sm:$0xff]   ;;  %v1640_v33 = vld [vmem:[%s2320_s1 + $0x284] ss:$8 sps:$4 sm:$0xff]   ;;  %v1642_v34 = vld [vmem:[%s2320_s1 + $0x80] ss:$8 sps:$4 sm:$0xff]  }
  0x11   : > { %1196 = vmatprep.subr.bf16.mxu0 %v1610_v13  ;;  %v1643_v35 = vld [vmem:[%s2320_s1 + $0x280] ss:$8 sps:$4 sm:$0xff]   ;;  %v1644_v36 = vld [vmem:[%s2320_s1 + $0x94] ss:$8 sps:$4 sm:$0xff]   ;;  %s2324_s13 = smov (!%p161_p3, %s1392_s13), 1 }
  0x12   : > { %v1646_v37 = vld [vmem:[%s2320_s1 + $0x294] ss:$8 sps:$4 sm:$0xff]   ;;  %v1648_v38 = vld [vmem:[%s2320_s1 + $0x90] ss:$8 sps:$4 sm:$0xff]   ;;  %v1650_v40 = vld [vmem:[%s2320_s1 + $0xa4] ss:$8 sps:$4 sm:$0xff]  }
  0x13   : > { %1111 = vmatpush1.bf16.msra.mxu1 %v1612_v14  ;;  %v1649_v39 = vld [vmem:[%s2320_s1 + $0x290] ss:$8 sps:$4 sm:$0xff]   ;;  %s1580_s21 = smul.u32 72, %s2324_s13  ;;  %v1652_v41 = vld [vmem:[%s2320_s1 + $0x2a4] ss:$8 sps:$4 sm:$0xff]  }
  0x14   : > { %1197 = vmatpush1.bf16.msra.mxu0 %v1613_v15  ;;  %1112 = vmatprep.subr.bf16.mxu1 %v1614_v16  ;;  %v1654_v42 = vld [vmem:[%s2320_s1 + $0xa0] ss:$8 sps:$4 sm:$0xff]   ;;  %v1656_v44 = vld [vmem:[%s2320_s1 + $0xb4] ss:$8 sps:$4 sm:$0xff]   ;;  %v1660_v46 = vld [vmem:[%s2320_s1 + $0xb0] ss:$8 sps:$4 sm:$0xff]  }
  0x15   : > { %1198 = vmatprep.subr.bf16.mxu0 %v1616_v17  ;;  %v1655_v43 = vld [vmem:[%s2320_s1 + $0x2a0] ss:$8 sps:$4 sm:$0xff]   ;;  %s2001_s5 = scalar_lea.vmem %s2319_s0, %s1580_s21  ;;  %v1658_v45 = vld [vmem:[%s2320_s1 + $0x2b4] ss:$8 sps:$4 sm:$0xff]   ;;  %v1661_v47 = vld [vmem:[%s2320_s1 + $0x2b0] ss:$8 sps:$4 sm:$0xff]  }
  0x16   : > { %v1688_v48 = vld [vmem:[%s2001_s5 + $0x4] ss:$36 sps:$4 sm:$0xff]   ;;  %v1694_v51 = vld [vmem:[%s2001_s5 + $0x14] ss:$36 sps:$4 sm:$0xff]  }
  0x17   : > { %1113 = vmatpush1.bf16.msra.mxu1 %v1618_v18  ;;  %v1662_v49 = vld [vmem:[%s2320_s1 + $0xc4] ss:$8 sps:$4 sm:$0xff]   ;;  %1136 = vmatprep.mubr.bf16.mxu1 %v1688_v48  ;;  %v1666_v52 = vld [vmem:[%s2320_s1 + $0xc0] ss:$8 sps:$4 sm:$0xff]   ;;  %v1668_v54 = vld [vmem:[%s2320_s1 + $0xd4] ss:$8 sps:$4 sm:$0xff]  }
  0x18   : > { %1199 = vmatpush1.bf16.msra.mxu0 %v1619_v19  ;;  %1114 = vmatprep.subr.bf16.mxu1 %v1620_v20  ;;  %v1664_v50 = vld [vmem:[%s2320_s1 + $0x2c4] ss:$8 sps:$4 sm:$0xff]   ;;  %v1667_v53 = vld [vmem:[%s2320_s1 + $0x2c0] ss:$8 sps:$4 sm:$0xff]   ;;  %v1670_v55 = vld [vmem:[%s2320_s1 + $0x2d4] ss:$8 sps:$4 sm:$0xff]  }
  0x19   : > { %1200 = vmatprep.subr.bf16.mxu0 %v1622_v21  ;;  %1222 = vmatprep.mubr.bf16.mxu0 %v1694_v51  ;;  %v1672_v56 = vld [vmem:[%s2320_s1 + $0xd0] ss:$8 sps:$4 sm:$0xff]   ;;  %v1674_v58 = vld [vmem:[%s2320_s1 + $0xe4] ss:$8 sps:$4 sm:$0xff]   ;;  %v1678_v60 = vld [vmem:[%s2320_s1 + $0xe0] ss:$8 sps:$4 sm:$0xff]  }
  0x1a   : > { %v1673_v57 = vld [vmem:[%s2320_s1 + $0x2d0] ss:$8 sps:$4 sm:$0xff]   ;;  %v1676_v59 = vld [vmem:[%s2320_s1 + $0x2e4] ss:$8 sps:$4 sm:$0xff]   ;;  %v1679_v61 = vld [vmem:[%s2320_s1 + $0x2e0] ss:$8 sps:$4 sm:$0xff]  }
  0x1b   : > { %1115 = vmatpush1.bf16.msra.mxu1 %v1624_v22  ;;  %v1680_v62 = vld [vmem:[%s2320_s1 + $0xf4] ss:$8 sps:$4 sm:$0xff]   ;;  %v1684_v0 = vld [vmem:[%s2320_s1 + $0xf0] ss:$8 sps:$4 sm:$0xff]   ;;  %v1691_v2 = vld [vmem:[%s2320_s1 + $0x104] ss:$8 sps:$4 sm:$0xff]  }
  0x1c   : > { %1201 = vmatpush1.bf16.msra.mxu0 %v1625_v23  ;;  %1116 = vmatprep.subr.bf16.mxu1 %v1626_v24  ;;  %v1682_v63 = vld [vmem:[%s2320_s1 + $0x2f4] ss:$8 sps:$4 sm:$0xff]   ;;  %v1685_v1 = vld [vmem:[%s2320_s1 + $0x2f0] ss:$8 sps:$4 sm:$0xff]   ;;  %v1697_v3 = vld [vmem:[%s2320_s1 + $0x304] ss:$8 sps:$4 sm:$0xff]  }
  0x1d   : > { %1202 = vmatprep.subr.bf16.mxu0 %v1628_v25  ;;  %v1686_v4 = vld [vmem:[%s2001_s5] ss:$36 sps:$4 sm:$0xff]   ;;  %v1692_v6 = vld [vmem:[%s2001_s5 + $0x10] ss:$36 sps:$4 sm:$0xff]  }
  0x1e   : > { %v1689_v5 = vld [vmem:[%s2320_s1 + $0x100] ss:$8 sps:$4 sm:$0xff]   ;;  %v1700_v8 = vld [vmem:[%s2320_s1 + $0x114] ss:$8 sps:$4 sm:$0xff]   ;;  %v1698_v10 = vld [vmem:[%s2320_s1 + $0x110] ss:$8 sps:$4 sm:$0xff]  }
  0x1f   : > { %1117 = vmatpush1.bf16.msra.mxu1 %v1630_v26  ;;  %v1695_v7 = vld [vmem:[%s2320_s1 + $0x300] ss:$8 sps:$4 sm:$0xff]   ;;  %v1703_v9 = vld [vmem:[%s2320_s1 + $0x314] ss:$8 sps:$4 sm:$0xff]   ;;  %v1701_v11 = vld [vmem:[%s2320_s1 + $0x310] ss:$8 sps:$4 sm:$0xff]  }
  0x20   : > { %1203 = vmatpush1.bf16.msra.mxu0 %v1631_v27  ;;  %1118 = vmatprep.subr.bf16.mxu1 %v1632_v28  ;;  %v1706_v12 = vld [vmem:[%s2320_s1 + $0x124] ss:$8 sps:$4 sm:$0xff]   ;;  %v1704_v14 = vld [vmem:[%s2320_s1 + $0x120] ss:$8 sps:$4 sm:$0xff]   ;;  %v1712_v16 = vld [vmem:[%s2320_s1 + $0x134] ss:$8 sps:$4 sm:$0xff]  }
  0x21   : > { %1204 = vmatprep.subr.bf16.mxu0 %v1634_v29  ;;  %v1709_v13 = vld [vmem:[%s2320_s1 + $0x324] ss:$8 sps:$4 sm:$0xff]   ;;  %v1707_v15 = vld [vmem:[%s2320_s1 + $0x320] ss:$8 sps:$4 sm:$0xff]   ;;  %v1715_v17 = vld [vmem:[%s2320_s1 + $0x334] ss:$8 sps:$4 sm:$0xff]  }
  0x22   : > { %v1710_v18 = vld [vmem:[%s2320_s1 + $0x130] ss:$8 sps:$4 sm:$0xff]   ;;  %v1718_v20 = vld [vmem:[%s2320_s1 + $0x144] ss:$8 sps:$4 sm:$0xff]   ;;  %v1716_v22 = vld [vmem:[%s2320_s1 + $0x140] ss:$8 sps:$4 sm:$0xff]  }
  0x23   : > { %1119 = vmatpush1.bf16.msra.mxu1 %v1636_v30  ;;  %v1713_v19 = vld [vmem:[%s2320_s1 + $0x330] ss:$8 sps:$4 sm:$0xff]   ;;  %v1721_v21 = vld [vmem:[%s2320_s1 + $0x344] ss:$8 sps:$4 sm:$0xff]   ;;  %v1719_v23 = vld [vmem:[%s2320_s1 + $0x340] ss:$8 sps:$4 sm:$0xff]  }
  0x24   : > { %1205 = vmatpush1.bf16.msra.mxu0 %v1637_v31  ;;  %1120 = vmatprep.subr.bf16.mxu1 %v1638_v32  ;;  %v1724_v24 = vld [vmem:[%s2320_s1 + $0x154] ss:$8 sps:$4 sm:$0xff]   ;;  %v1722_v26 = vld [vmem:[%s2320_s1 + $0x150] ss:$8 sps:$4 sm:$0xff]   ;;  %v1730_v28 = vld [vmem:[%s2320_s1 + $0x164] ss:$8 sps:$4 sm:$0xff]  }
  0x25   : > { %1206 = vmatprep.subr.bf16.mxu0 %v1640_v33  ;;  %v1727_v25 = vld [vmem:[%s2320_s1 + $0x354] ss:$8 sps:$4 sm:$0xff]   ;;  %v1725_v27 = vld [vmem:[%s2320_s1 + $0x350] ss:$8 sps:$4 sm:$0xff]   ;;  %v1733_v29 = vld [vmem:[%s2320_s1 + $0x364] ss:$8 sps:$4 sm:$0xff]  }
  0x26   : > { %v1728_v30 = vld [vmem:[%s2320_s1 + $0x160] ss:$8 sps:$4 sm:$0xff]   ;;  %v1736_v32 = vld [vmem:[%s2320_s1 + $0x174] ss:$8 sps:$4 sm:$0xff]  }
  0x27   : > { %1121 = vmatpush1.bf16.msra.mxu1 %v1642_v34  ;;  %v1731_v31 = vld [vmem:[%s2320_s1 + $0x360] ss:$8 sps:$4 sm:$0xff]   ;;  %v1739_v33 = vld [vmem:[%s2320_s1 + $0x374] ss:$8 sps:$4 sm:$0xff]   ;;  %v1790_v34 = vld [vmem:[%s2001_s5 + $0xc] ss:$36 sps:$4 sm:$0xff]  }
  0x28   : > { %1207 = vmatpush1.bf16.msra.mxu0 %v1643_v35  ;;  %1122 = vmatprep.subr.bf16.mxu1 %v1644_v36  ;;  %v1793_v35 = vld [vmem:[%s2001_s5 + $0x1c] ss:$36 sps:$4 sm:$0xff]   ;;  %v1734_v36 = vld [vmem:[%s2320_s1 + $0x170] ss:$8 sps:$4 sm:$0xff]  }
  0x29   : > { %1208 = vmatprep.subr.bf16.mxu0 %v1646_v37  ;;  %v1737_v37 = vld [vmem:[%s2320_s1 + $0x370] ss:$8 sps:$4 sm:$0xff]   ;;  %v1752_v48 = vld [vmem:[%s2320_s1 + $0x1a0] ss:$8 sps:$4 sm:$0xff]   ;;  %v1763_v51 = vld [vmem:[%s2320_s1 + $0x3b4] ss:$8 sps:$4 sm:$0xff]  }
  0x2b   : > { %1123 = vmatpush1.bf16.msra.mxu1 %v1648_v38  ;;  %v1742_v38 = vld [vmem:[%s2320_s1 + $0x184] ss:$8 sps:$4 sm:$0xff]  }
  0x2c   : > { %1209 = vmatpush1.bf16.msra.mxu0 %v1649_v39  ;;  %1124 = vmatprep.subr.bf16.mxu1 %v1650_v40  ;;  %v1745_v39 = vld [vmem:[%s2320_s1 + $0x384] ss:$8 sps:$4 sm:$0xff]   ;;  %v1740_v40 = vld [vmem:[%s2320_s1 + $0x180] ss:$8 sps:$4 sm:$0xff]  }
  0x2d   : > { %1210 = vmatprep.subr.bf16.mxu0 %v1652_v41  ;;  %v1743_v41 = vld [vmem:[%s2320_s1 + $0x380] ss:$8 sps:$4 sm:$0xff]  }
  0x2f   : > { %1125 = vmatpush1.bf16.msra.mxu1 %v1654_v42  ;;  %v1748_v42 = vld [vmem:[%s2320_s1 + $0x194] ss:$8 sps:$4 sm:$0xff]  }
  0x30   : > { %1211 = vmatpush1.bf16.msra.mxu0 %v1655_v43  ;;  %1126 = vmatprep.subr.bf16.mxu1 %v1656_v44  ;;  %v1751_v43 = vld [vmem:[%s2320_s1 + $0x394] ss:$8 sps:$4 sm:$0xff]   ;;  %v1746_v44 = vld [vmem:[%s2320_s1 + $0x190] ss:$8 sps:$4 sm:$0xff]  }
  0x31   : > { %1212 = vmatprep.subr.bf16.mxu0 %v1658_v45  ;;  %v1749_v45 = vld [vmem:[%s2320_s1 + $0x390] ss:$8 sps:$4 sm:$0xff]  }
  0x33   : > { %1127 = vmatpush1.bf16.msra.mxu1 %v1660_v46  ;;  %v1754_v46 = vld [vmem:[%s2320_s1 + $0x1a4] ss:$8 sps:$4 sm:$0xff]  }
  0x34   : > { %1213 = vmatpush1.bf16.msra.mxu0 %v1661_v47  ;;  %1128 = vmatprep.subr.bf16.mxu1 %v1662_v49  ;;  %v1757_v47 = vld [vmem:[%s2320_s1 + $0x3a4] ss:$8 sps:$4 sm:$0xff]   ;;  %v1755_v49 = vld [vmem:[%s2320_s1 + $0x3a0] ss:$8 sps:$4 sm:$0xff]  }
  0x35   : > { %1214 = vmatprep.subr.bf16.mxu0 %v1664_v50  ;;  %v1760_v50 = vld [vmem:[%s2320_s1 + $0x1b4] ss:$8 sps:$4 sm:$0xff]  }
  0x37   : > { %1129 = vmatpush1.bf16.msra.mxu1 %v1666_v52  ;;  %v1758_v52 = vld [vmem:[%s2320_s1 + $0x1b0] ss:$8 sps:$4 sm:$0xff]  }
  0x38   : > { %1215 = vmatpush1.bf16.msra.mxu0 %v1667_v53  ;;  %1130 = vmatprep.subr.bf16.mxu1 %v1668_v54  ;;  %v1761_v53 = vld [vmem:[%s2320_s1 + $0x3b0] ss:$8 sps:$4 sm:$0xff]   ;;  %v1766_v54 = vld [vmem:[%s2320_s1 + $0x1c4] ss:$8 sps:$4 sm:$0xff]  }
  0x39   : > { %1216 = vmatprep.subr.bf16.mxu0 %v1670_v55  ;;  %v1769_v55 = vld [vmem:[%s2320_s1 + $0x3c4] ss:$8 sps:$4 sm:$0xff]  }
  0x3b   : > { %1131 = vmatpush1.bf16.msra.mxu1 %v1672_v56  ;;  %v1764_v56 = vld [vmem:[%s2320_s1 + $0x1c0] ss:$8 sps:$4 sm:$0xff]  }
  0x3c   : > { %1217 = vmatpush1.bf16.msra.mxu0 %v1673_v57  ;;  %1132 = vmatprep.subr.bf16.mxu1 %v1674_v58  ;;  %v1767_v57 = vld [vmem:[%s2320_s1 + $0x3c0] ss:$8 sps:$4 sm:$0xff]   ;;  %v1772_v58 = vld [vmem:[%s2320_s1 + $0x1d4] ss:$8 sps:$4 sm:$0xff]  }
  0x3d   : > { %1218 = vmatprep.subr.bf16.mxu0 %v1676_v59  ;;  %v1775_v59 = vld [vmem:[%s2320_s1 + $0x3d4] ss:$8 sps:$4 sm:$0xff]  }
  0x3f   : > { %1133 = vmatpush1.bf16.msra.mxu1 %v1678_v60  ;;  %v1770_v60 = vld [vmem:[%s2320_s1 + $0x1d0] ss:$8 sps:$4 sm:$0xff]  }
  0x40   : > { %1219 = vmatpush1.bf16.msra.mxu0 %v1679_v61  ;;  %1134 = vmatprep.subr.bf16.mxu1 %v1680_v62  ;;  %v1773_v61 = vld [vmem:[%s2320_s1 + $0x3d0] ss:$8 sps:$4 sm:$0xff]   ;;  %v1778_v62 = vld [vmem:[%s2320_s1 + $0x1e4] ss:$8 sps:$4 sm:$0xff]  }
  0x41   : > { %1220 = vmatprep.subr.bf16.mxu0 %v1682_v63  ;;  %v1781_v63 = vld [vmem:[%s2320_s1 + $0x3e4] ss:$8 sps:$4 sm:$0xff]  }
  0x43   : > { %1135 = vmatpush1.bf16.msra.mxu1 %v1684_v0  ;;  %v1776_v0 = vld [vmem:[%s2320_s1 + $0x1e0] ss:$8 sps:$4 sm:$0xff]  }
  0x44   : > { %1221 = vmatpush1.bf16.msra.mxu0 %v1685_v1  ;;  %1147 = vmatprep.subr.bf16.mxu1 %v1691_v2  ;;  %v1779_v1 = vld [vmem:[%s2320_s1 + $0x3e0] ss:$8 sps:$4 sm:$0xff]   ;;  %v1784_v2 = vld [vmem:[%s2320_s1 + $0x1f4] ss:$8 sps:$4 sm:$0xff]  }
  0x45   : > { %1233 = vmatprep.subr.bf16.mxu0 %v1697_v3  ;;  %v1787_v3 = vld [vmem:[%s2320_s1 + $0x3f4] ss:$8 sps:$4 sm:$0xff]  }
  0x46   : > { %1137 = vmatmul.mubr.bf16.vlgmr.msra.gmra.mrb[0].mxu1 %v1686_v4  ;;  %v1782_v4 = vld [vmem:[%s2320_s1 + $0x1f0] ss:$8 sps:$4 sm:$0xff]  }
  0x47   : > { %1223 = vmatmul.mubr.bf16.vlgmr.msra.gmra.mrb[0].mxu0 %v1692_v6  ;;  %1148 = vmatpush1.bf16.msra.mxu1 %v1689_v5  ;;  %v1785_v5 = vld [vmem:[%s2320_s1 + $0x3f0] ss:$8 sps:$4 sm:$0xff]   ;;  %v1796_v6 = vld [vmem:[%s2320_s1 + $0x404] ss:$8 sps:$4 sm:$0xff]  }
  0x48   : > { %1234 = vmatpush1.bf16.msra.mxu0 %v1695_v7  ;;  %1149 = vmatprep.subr.bf16.mxu1 %v1700_v8  ;;  %v1788_v7 = vld [vmem:[%s2001_s5 + $0x8] ss:$36 sps:$4 sm:$0xff]   ;;  %v1791_v8 = vld [vmem:[%s2001_s5 + $0x18] ss:$36 sps:$4 sm:$0xff]  }
  0x49   : > { %1235 = vmatprep.subr.bf16.mxu0 %v1703_v9  ;;  %1179 = vmatprep.mubr.bf16.mxu1 %v1790_v34  ;;  %v1794_v9 = vld [vmem:[%s2320_s1 + $0x400] ss:$8 sps:$4 sm:$0xff]  }
  0x4a   : > { %1265 = vmatprep.mubr.bf16.mxu0 %v1793_v35 }
  0x4b   : > { %1150 = vmatpush1.bf16.msra.mxu1 %v1698_v10  ;;  %v1799_v10 = vld [vmem:[%s2320_s1 + $0x414] ss:$8 sps:$4 sm:$0xff]  }
  0x4c   : > { %1236 = vmatpush1.bf16.msra.mxu0 %v1701_v11  ;;  %1151 = vmatprep.subr.bf16.mxu1 %v1706_v12  ;;  %v1797_v11 = vld [vmem:[%s2320_s1 + $0x410] ss:$8 sps:$4 sm:$0xff]   ;;  %v1827_v12 = vmov 0  }
  0x4d   : > { %1237 = vmatprep.subr.bf16.mxu0 %v1709_v13  ;;  %v1802_v13 = vld [vmem:[%s2320_s1 + $0x424] ss:$8 sps:$4 sm:$0xff]  }
  0x4f   : > { %1152 = vmatpush1.bf16.msra.mxu1 %v1704_v14  ;;  %v1800_v14 = vld [vmem:[%s2320_s1 + $0x420] ss:$8 sps:$4 sm:$0xff]  }
  0x50   : > { %1238 = vmatpush1.bf16.msra.mxu0 %v1707_v15  ;;  %1153 = vmatprep.subr.bf16.mxu1 %v1712_v16  ;;  %v1805_v15 = vld [vmem:[%s2320_s1 + $0x434] ss:$8 sps:$4 sm:$0xff]   ;;  %v1803_v16 = vld [vmem:[%s2320_s1 + $0x430] ss:$8 sps:$4 sm:$0xff]  }
  0x51   : > { %1239 = vmatprep.subr.bf16.mxu0 %v1715_v17  ;;  %v1808_v17 = vld [vmem:[%s2320_s1 + $0x444] ss:$8 sps:$4 sm:$0xff]  }
  0x53   : > { %1154 = vmatpush1.bf16.msra.mxu1 %v1710_v18  ;;  %v1806_v18 = vld [vmem:[%s2320_s1 + $0x440] ss:$8 sps:$4 sm:$0xff]  }
  0x54   : > { %1240 = vmatpush1.bf16.msra.mxu0 %v1713_v19  ;;  %1155 = vmatprep.subr.bf16.mxu1 %v1718_v20  ;;  %v1811_v19 = vld [vmem:[%s2320_s1 + $0x454] ss:$8 sps:$4 sm:$0xff]   ;;  %v1809_v20 = vld [vmem:[%s2320_s1 + $0x450] ss:$8 sps:$4 sm:$0xff]  }
  0x55   : > { %1241 = vmatprep.subr.bf16.mxu0 %v1721_v21  ;;  %v1814_v21 = vld [vmem:[%s2320_s1 + $0x464] ss:$8 sps:$4 sm:$0xff]  }
  0x57   : > { %1156 = vmatpush1.bf16.msra.mxu1 %v1716_v22  ;;  %v1812_v22 = vld [vmem:[%s2320_s1 + $0x460] ss:$8 sps:$4 sm:$0xff]  }
  0x58   : > { %1242 = vmatpush1.bf16.msra.mxu0 %v1719_v23  ;;  %1157 = vmatprep.subr.bf16.mxu1 %v1724_v24  ;;  %v1817_v23 = vld [vmem:[%s2320_s1 + $0x474] ss:$8 sps:$4 sm:$0xff]   ;;  %v1815_v24 = vld [vmem:[%s2320_s1 + $0x470] ss:$8 sps:$4 sm:$0xff]  }
  0x59   : > { %1243 = vmatprep.subr.bf16.mxu0 %v1727_v25  ;;  %v1818_v25 = vld [vmem:[%s2001_s5 + $0x20] ss:$36 sps:$4 sm:$0xff]   ;;  %s1557_s5 = sshll.u32 %s2324_s13, 4 }
  0x5a   : > { %s170_s18 = scalar_lea.vmem %s2322_s3, %s1557_s5 }
  0x5b   : > { %1158 = vmatpush1.bf16.msra.mxu1 %v1722_v26 }
  0x5c   : > { %1244 = vmatpush1.bf16.msra.mxu0 %v1725_v27  ;;  %1159 = vmatprep.subr.bf16.mxu1 %v1730_v28 }
  0x5d   : > { %1245 = vmatprep.subr.bf16.mxu0 %v1733_v29 }
  0x5f   : > { %1160 = vmatpush1.bf16.msra.mxu1 %v1728_v30  ;;  %v328_v30 = vlaneseq }
  0x60   : > { %1246 = vmatpush1.bf16.msra.mxu0 %v1731_v31  ;;  %1161 = vmatprep.subr.bf16.mxu1 %v1736_v32 }
  0x61   : > { %1247 = vmatprep.subr.bf16.mxu0 %v1739_v33  ;;  %v329_v31 = vshrl.u32 %v328_v30, 7  ;;  %v326_v33 = vld [vmem:[%s2321_s2] sm:$0x3] }
  0x63   : > { %1162 = vmatpush1.bf16.msra.mxu1 %v1734_v36  ;;  %v330_v32 = vsub.s32 0, %v329_v31  ;;  %v334_v34 = vsub.s32 1, %v329_v31 }
  0x64   : > { %1248 = vmatpush1.bf16.msra.mxu0 %v1737_v37  ;;  %1163 = vmatprep.subr.bf16.mxu1 %v1742_v38 }
  0x65   : > { %1249 = vmatprep.subr.bf16.mxu0 %v1745_v39  ;;  %v331_v35 = vrot.slane %v326_v33, %v330_v32  ;;  %v335_v36 = vrot.slane %v326_v33, %v334_v34 }
  0x67   : > { %1164 = vmatpush1.bf16.msra.mxu1 %v1740_v40 }
  0x68   : > { %1250 = vmatpush1.bf16.msra.mxu0 %v1743_v41  ;;  %1165 = vmatprep.subr.bf16.mxu1 %v1748_v42 }
  0x69   : > { %1251 = vmatprep.subr.bf16.mxu0 %v1751_v43 }
  0x6b   : > { %1166 = vmatpush1.bf16.msra.mxu1 %v1746_v44 }
  0x6c   : > { %1252 = vmatpush1.bf16.msra.mxu0 %v1749_v45  ;;  %1167 = vmatprep.subr.bf16.mxu1 %v1754_v46 }
  0x6d   : > { %1253 = vmatprep.subr.bf16.mxu0 %v1757_v47 }
  0x6f   : > { %1168 = vmatpush1.bf16.msra.mxu1 %v1752_v48 }
  0x70   : > { %1254 = vmatpush1.bf16.msra.mxu0 %v1755_v49  ;;  %1169 = vmatprep.subr.bf16.mxu1 %v1760_v50 }
  0x71   : > { %1255 = vmatprep.subr.bf16.mxu0 %v1763_v51 }
  0x73   : > { %1170 = vmatpush1.bf16.msra.mxu1 %v1758_v52 }
  0x74   : > { %1256 = vmatpush1.bf16.msra.mxu0 %v1761_v53  ;;  %1171 = vmatprep.subr.bf16.mxu1 %v1766_v54 }
  0x75   : > { %1257 = vmatprep.subr.bf16.mxu0 %v1769_v55 }
  0x77   : > { %1172 = vmatpush1.bf16.msra.mxu1 %v1764_v56 }
  0x78   : > { %1258 = vmatpush1.bf16.msra.mxu0 %v1767_v57  ;;  %1173 = vmatprep.subr.bf16.mxu1 %v1772_v58 }
  0x79   : > { %1259 = vmatprep.subr.bf16.mxu0 %v1775_v59 }
  0x7b   : > { %1174 = vmatpush1.bf16.msra.mxu1 %v1770_v60 }
  0x7c   : > { %1260 = vmatpush1.bf16.msra.mxu0 %v1773_v61  ;;  %1175 = vmatprep.subr.bf16.mxu1 %v1778_v62 }
  0x7d   : > { %1261 = vmatprep.subr.bf16.mxu0 %v1781_v63 }
  0x7f   : > { %1176 = vmatpush1.bf16.msra.mxu1 %v1776_v0 }
  0x80   : > { %1262 = vmatpush1.bf16.msra.mxu0 %v1779_v1  ;;  %1177 = vmatprep.subr.bf16.mxu1 %v1784_v2 }
  0x81   : > { %1263 = vmatprep.subr.bf16.mxu0 %v1787_v3 }
  0x83   : > { %1178 = vmatpush1.bf16.msra.mxu1 %v1782_v4 }
  0x84   : > { %1264 = vmatpush1.bf16.msra.mxu0 %v1785_v5 }
  0x85   : > { %1276 = vmatprep.subr.bf16.mxu0 %v1796_v6 }
  0x86   : > { %1180 = vmatmul.mubr.bf16.vlgmr.msra.gmra.mrb[0].mxu1 %v1788_v7 }
  0x87   : > { %1266 = vmatmul.mubr.bf16.vlgmr.msra.gmra.mrb[0].mxu0 %v1791_v8 }
  0x88   : > { %1277 = vmatpush1.bf16.msra.mxu0 %v1794_v9  ;;  %1308 = vmatprep.mubr.bf16.mxu0 %v1827_v12 }
  0x89   : > { %1278 = vmatprep.subr.bf16.mxu0 %v1799_v10 }
  0x8c   : > { %1279 = vmatpush1.bf16.msra.mxu0 %v1797_v11 }
  0x8d   : > { %1280 = vmatprep.subr.bf16.mxu0 %v1802_v13 }
  0x90   : > { %1281 = vmatpush1.bf16.msra.mxu0 %v1800_v14 }
  0x91   : > { %1282 = vmatprep.subr.bf16.mxu0 %v1805_v15 }
  0x94   : > { %1283 = vmatpush1.bf16.msra.mxu0 %v1803_v16 }
  0x95   : > { %1284 = vmatprep.subr.bf16.mxu0 %v1808_v17 }
  0x98   : > { %1285 = vmatpush1.bf16.msra.mxu0 %v1806_v18 }
  0x99   : > { %1286 = vmatprep.subr.bf16.mxu0 %v1811_v19 }
  0x9c   : > { %1287 = vmatpush1.bf16.msra.mxu0 %v1809_v20 }
  0x9d   : > { %1288 = vmatprep.subr.bf16.mxu0 %v1814_v21 }
  0xa0   : > { %1289 = vmatpush1.bf16.msra.mxu0 %v1812_v22 }
  0xa1   : > { %1290 = vmatprep.subr.bf16.mxu0 %v1817_v23 }
  0xa4   : > { %1291 = vmatpush1.bf16.msra.mxu0 %v1815_v24 }
  0xa7   : > { %1309 = vmatmul.mubr.bf16.vlgmr.msra.gmra.mrb[0].mxu0 %v1818_v25 }
 0x159   : > { %v1181_v26 = vpop.f32.mrb[0].mxu1 }
 0x15a   : > { %v1183_v27 = vpop.f32.mrb[1].mxu1  ;;  %v1560_v37 = vadd.f32 %v1181_v26, %v331_v35 }
 0x15b   : > { %v1185_v28 = vpop.f32.mrb[2].mxu1  ;;  %v1562_v38 = vadd.f32 %v1183_v27, %v335_v36 }
 0x15c   : > { %v1187_v29 = vpop.f32.mrb[3].mxu1  ;;  %v1564_v40 = vadd.f32 %v1185_v28, %v331_v35 }
 0x15d   : > { %v1566_v43 = vadd.f32 %v1187_v29, %v335_v36 }
 0x17a   : > { %v1310_v39 = vpop.f32.mrb[0].mxu0 }
 0x17b   : > { %v1561_v41 = vadd.f32 %v1560_v37, %v1310_v39  ;;  %v1312_v42 = vpop.f32.mrb[1].mxu0 }
 0x17c   : > { %v1563_v44 = vadd.f32 %v1562_v38, %v1312_v42  ;;  %v1314_v45 = vpop.f32.mrb[2].mxu0 }
 0x17d   : > { %v1319_v46 = vmax.f32 %v1561_v41, 0.0  ;;  %v1565_v47 = vadd.f32 %v1564_v40, %v1314_v45  ;;  %v1316_v48 = vpop.f32.mrb[3].mxu0 }
 0x17e   : > { %v1320_v49 = vmax.f32 %v1563_v44, 0.0  ;;  %v1567_v50 = vadd.f32 %v1566_v43, %v1316_v48 }
 0x17f   : > { %v1321_v51 = vmax.f32 %v1565_v47, 0.0 }
 0x180   : > { %v1558_v52 = vpack.c.bf16 %v1320_v49, %v1319_v46  ;;  %v1322_v53 = vmax.f32 %v1567_v50, 0.0 }
 0x182   : > { %1335 = vst [vmem:[%s170_s18] sm:$0xff] %v1558_v52  ;;  %v1559_v54 = vpack.c.bf16 %v1322_v53, %v1321_v51 }
 0x184   : > { %1336 = vst [vmem:[%s170_s18 + $0x8] sm:$0xff] %v1559_v54 }
 0x185 PF: > { %s13_s12 = sadd.s32 1, %s1825_s12  }
 0x186   : > { %p10_p4 = scmp.ge.s32.totalorder %s13_s12, 4  }
 0x188   :  { %12 = sbr.rel (!%p10_p4) target bundleno = 1 (0x1), region = 62 }

// kernel: encoder_forward.15
= control target key start
LH: loop header
LB: loop body
LE: loop exit
PB: predicated region body
PF: predicated region fallthrough
CT: control target
= control target key end

     0   :  { %s497_s12 = smov 0   ;;  %s569_s0 = inlined_call_operand.vmem [shape: bf16[2,16,128], index: 0, kind: input, shape index: {}]   ;;  %s570_s1 = inlined_call_operand.vmem [shape: bf16[128,256], index: 1, kind: input, shape index: {}]   ;;  %s571_s2 = inlined_call_operand.vmem [shape: f32[1,256], index: 2, kind: input, shape index: {}]   ;;  %s572_s3 = inlined_call_operand.vmem [shape: bf16[2,16,256], index: 3, kind: output, shape index: {}]  }
   0x1 LB: > { %s400_s13 = sadd.s32 4294967295, %s474_s12   ;;  %p404_p0 = scmp.ge.s32.totalorder %s474_s12, 1  ;;  %s474_s12 = sphi %s497_s12, %s13_s12  }
   0x2   : > { %p137_p1 = scmp.lt.s32.totalorder %s474_s12, 3 }
   0x4   : > { %p138_p2 = pnand %p404_p0, %p137_p1 }
   0x5   : > { %v443_v0 = vld [vmem:[%s570_s1 + $0x4] ss:$8 sps:$4 sm:$0xff] (!%p138_p2)   ;;  %p161_p3 = scmp.lt.s32.totalorder (!%p138_p2), %s400_s13, 1  ;;  %v445_v1 = vld [vmem:[%s570_s1] ss:$8 sps:$4 sm:$0xff] (!%p138_p2)   ;;  %v476_v2 = vmov (!%p138_p2), 0   ;;  %v192_v18 = vlaneseq (!%p138_p2) }
   0x6   : > { %141 = sbr.rel (%p138_p2) target bundleno = 258 (0x102), region = 32  ;;  %320 = vmatprep.mubr.bf16.mxu0 (!%p138_p2), %v476_v2  ;;  %288 = vmatprep.subr.bf16.mxu0 (!%p138_p2), %v443_v0  ;;  %v446_v3 = vld [vmem:[%s570_s1 + $0x14] ss:$8 sps:$4 sm:$0xff] (!%p138_p2)   ;;  %v448_v4 = vld [vmem:[%s570_s1 + $0x10] ss:$8 sps:$4 sm:$0xff] (!%p138_p2)  }
   0x7   : > { %289 = vmatpush1.bf16.msra.mxu0 (!%p138_p2), %v445_v1  ;;  %v449_v5 = vld [vmem:[%s570_s1 + $0x24] ss:$8 sps:$4 sm:$0xff] (!%p138_p2)   ;;  %v451_v6 = vld [vmem:[%s570_s1 + $0x20] ss:$8 sps:$4 sm:$0xff] (!%p138_p2)   ;;  %v452_v7 = vld [vmem:[%s570_s1 + $0x34] ss:$8 sps:$4 sm:$0xff] (!%p138_p2)  }
   0x8   : > { %290 = vmatprep.subr.bf16.mxu0 (!%p138_p2), %v446_v3  ;;  %v454_v8 = vld [vmem:[%s570_s1 + $0x30] ss:$8 sps:$4 sm:$0xff] (!%p138_p2)   ;;  %v455_v9 = vld [vmem:[%s570_s1 + $0x44] ss:$8 sps:$4 sm:$0xff] (!%p138_p2)   ;;  %v457_v10 = vld [vmem:[%s570_s1 + $0x40] ss:$8 sps:$4 sm:$0xff] (!%p138_p2)  }
   0x9   : > { %v458_v11 = vld [vmem:[%s570_s1 + $0x54] ss:$8 sps:$4 sm:$0xff] (!%p138_p2)   ;;  %v460_v12 = vld [vmem:[%s570_s1 + $0x50] ss:$8 sps:$4 sm:$0xff] (!%p138_p2)   ;;  %v461_v13 = vld [vmem:[%s570_s1 + $0x64] ss:$8 sps:$4 sm:$0xff] (!%p138_p2)  }
   0xa   : > { %v463_v14 = vld [vmem:[%s570_s1 + $0x60] ss:$8 sps:$4 sm:$0xff] (!%p138_p2)   ;;  %v464_v15 = vld [vmem:[%s570_s1 + $0x74] ss:$8 sps:$4 sm:$0xff] (!%p138_p2)   ;;  %v466_v16 = vld [vmem:[%s570_s1 + $0x70] ss:$8 sps:$4 sm:$0xff] (!%p138_p2)  }
   0xb   : > { %291 = vmatpush1.bf16.msra.mxu0 (!%p138_p2), %v448_v4  ;;  %v193_v19 = vshrl.u32 (!%p138_p2), %v192_v18, 7  ;;  %v190_v21 = vld [vmem:[%s571_s2] sm:$0x3] (!%p138_p2) }
   0xc   : > { %292 = vmatprep.subr.bf16.mxu0 (!%p138_p2), %v449_v5 }
   0xd   : > { %s574_s13 = smov (!%p161_p3, %s400_s13), 1  ;;  %v194_v20 = vsub.s32 0, %v193_v19  ;;  %v198_v22 = vsub.s32 1, %v193_v19 }
   0xe   : > { %s430_s24 = sshll.u32 %s574_s13, 3  ;;  %s431_s27 = sshll.u32 %s574_s13, 4 }
   0xf   : > { %s165_s4 = scalar_lea.vmem %s569_s0, %s430_s24  ;;  %293 = vmatpush1.bf16.msra.mxu0 %v451_v6  ;;  %v195_v23 = vrot.slane %v190_v21, %v194_v20  ;;  %v199_v24 = vrot.slane %v190_v21, %v198_v22  ;;  %s170_s30 = scalar_lea.vmem %s572_s3, %s431_s27 }
  0x10   : > { %294 = vmatprep.subr.bf16.mxu0 %v452_v7  ;;  %v467_v17 = vld [vmem:[%s165_s4] sm:$0xff]  }
  0x13   : > { %295 = vmatpush1.bf16.msra.mxu0 %v454_v8 }
  0x14   : > { %296 = vmatprep.subr.bf16.mxu0 %v455_v9 }
  0x17   : > { %297 = vmatpush1.bf16.msra.mxu0 %v457_v10 }
  0x18   : > { %298 = vmatprep.subr.bf16.mxu0 %v458_v11 }
  0x1b   : > { %299 = vmatpush1.bf16.msra.mxu0 %v460_v12 }
  0x1c   : > { %300 = vmatprep.subr.bf16.mxu0 %v461_v13 }
  0x1f   : > { %301 = vmatpush1.bf16.msra.mxu0 %v463_v14 }
  0x20   : > { %302 = vmatprep.subr.bf16.mxu0 %v464_v15 }
  0x23   : > { %303 = vmatpush1.bf16.msra.mxu0 %v466_v16 }
  0x26   : > { %321 = vmatmul.mubr.bf16.vlgmr.msra.gmra.mrb[0].mxu0 %v467_v17 }
  0xf9   : > { %v322_v25 = vpop.f32.mrb[0].mxu0 }
  0xfa   : > { %v323_v26 = vadd.f32 %v322_v25, %v195_v23  ;;  %v324_v27 = vpop.f32.mrb[1].mxu0 }
  0xfb   : > { %v325_v28 = vadd.f32 %v324_v27, %v199_v24  ;;  %v326_v29 = vpop.f32.mrb[2].mxu0 }
  0xfc   : > { %v327_v30 = vadd.f32 %v326_v29, %v195_v23  ;;  %v328_v31 = vpop.f32.mrb[3].mxu0 }
  0xfd   : > { %v432_v32 = vpack.c.bf16 %v325_v28, %v323_v26  ;;  %v329_v33 = vadd.f32 %v328_v31, %v199_v24 }
  0xff   : > { %343 = vst [vmem:[%s170_s30] sm:$0xff] %v432_v32  ;;  %v433_v34 = vpack.c.bf16 %v329_v33, %v327_v30 }
 0x101   : > { %344 = vst [vmem:[%s170_s30 + $0x8] sm:$0xff] %v433_v34 }
 0x102 PF: > { %s13_s12 = sadd.s32 1, %s474_s12  }
 0x103   : > { %p10_p4 = scmp.ge.s32.totalorder %s13_s12, 4  }
 0x105   :  { %12 = sbr.rel (!%p10_p4) target bundleno = 1 (0x1), region = 62 }

// kernel: encoder_forward.17
= control target key start
LH: loop header
LB: loop body
LE: loop exit
PB: predicated region body
PF: predicated region fallthrough
CT: control target
= control target key end

     0   :  { %s3487_s18 = smov 0   ;;  %s4410_s0 = inlined_call_operand.vmem [shape: bf16[2,16,2304], index: 0, kind: input, shape index: {}]   ;;  %s4411_s1 = inlined_call_operand.vmem [shape: bf16[2304,256], index: 1, kind: input, shape index: {}]   ;;  %s4412_s2 = inlined_call_operand.vmem [shape: f32[1,256], index: 2, kind: input, shape index: {}]   ;;  %s4413_s3 = inlined_call_operand.vmem [shape: bf16[2,16,256], index: 3, kind: input, shape index: {}]   ;;  %s4414_s4 = inlined_call_operand.vmem [shape: f32[2,1,256], index: 4, kind: input, shape index: {}]   ;;  %s4415_s5 = inlined_call_operand.vmem [shape: bf16[2,16,256], index: 5, kind: output, shape index: {}]  }
   0x1 LB: > { %s2620_s19 = sadd.s32 4294967295, %s3455_s18   ;;  %p2624_p0 = scmp.ge.s32.totalorder %s3455_s18, 1  ;;  %s3455_s18 = sphi %s3487_s18, %s15_s18  }
   0x2   : > { %p206_p1 = scmp.lt.s32.totalorder %s3455_s18, 3 }
   0x4   : > { %p207_p2 = pnand %p2624_p0, %p206_p1 }
   0x5   : > { %v2990_v0 = vld [vmem:[%s4411_s1 + $0x4] ss:$8 sps:$4 sm:$0xff] (!%p207_p2)   ;;  %v2994_v2 = vld [vmem:[%s4411_s1] ss:$8 sps:$4 sm:$0xff] (!%p207_p2)   ;;  %v2996_v4 = vld [vmem:[%s4411_s1 + $0x14] ss:$8 sps:$4 sm:$0xff] (!%p207_p2)  }
   0x6   : > { %210 = sbr.rel (%p207_p2) target bundleno = 553 (0x229), region = 40  ;;  %v2992_v1 = vld [vmem:[%s4411_s1 + $0x404] ss:$8 sps:$4 sm:$0xff] (!%p207_p2)   ;;  %2110 = vmatprep.subr.bf16.mxu1 (!%p207_p2), %v2990_v0  ;;  %v2995_v3 = vld [vmem:[%s4411_s1 + $0x400] ss:$8 sps:$4 sm:$0xff] (!%p207_p2)   ;;  %p243_p3 = scmp.lt.s32.totalorder (!%p207_p2), %s2620_s19, 1 }
   0x7   : > { %2282 = vmatprep.subr.bf16.mxu0 (!%p207_p2), %v2992_v1  ;;  %2111 = vmatpush1.bf16.msra.mxu1 (!%p207_p2), %v2994_v2  ;;  %v2998_v5 = vld [vmem:[%s4411_s1 + $0x414] ss:$8 sps:$4 sm:$0xff] (!%p207_p2)   ;;  %v3000_v6 = vld [vmem:[%s4411_s1 + $0x10] ss:$8 sps:$4 sm:$0xff] (!%p207_p2)   ;;  %v3002_v8 = vld [vmem:[%s4411_s1 + $0x24] ss:$8 sps:$4 sm:$0xff] (!%p207_p2)  }
   0x8   : > { %2283 = vmatpush1.bf16.msra.mxu0 (!%p207_p2), %v2995_v3  ;;  %2112 = vmatprep.subr.bf16.mxu1 (!%p207_p2), %v2996_v4  ;;  %v3001_v7 = vld [vmem:[%s4411_s1 + $0x410] ss:$8 sps:$4 sm:$0xff] (!%p207_p2)   ;;  %v3004_v9 = vld [vmem:[%s4411_s1 + $0x424] ss:$8 sps:$4 sm:$0xff] (!%p207_p2)   ;;  %v3006_v10 = vld [vmem:[%s4411_s1 + $0x20] ss:$8 sps:$4 sm:$0xff] (!%p207_p2)  }
   0x9   : > { %2284 = vmatprep.subr.bf16.mxu0 (!%p207_p2), %v2998_v5  ;;  %v3007_v11 = vld [vmem:[%s4411_s1 + $0x420] ss:$8 sps:$4 sm:$0xff] (!%p207_p2)   ;;  %v3008_v12 = vld [vmem:[%s4411_s1 + $0x34] ss:$8 sps:$4 sm:$0xff] (!%p207_p2)   ;;  %v3012_v14 = vld [vmem:[%s4411_s1 + $0x30] ss:$8 sps:$4 sm:$0xff] (!%p207_p2)  }
   0xa   : > { %v3010_v13 = vld [vmem:[%s4411_s1 + $0x434] ss:$8 sps:$4 sm:$0xff] (!%p207_p2)   ;;  %v3013_v15 = vld [vmem:[%s4411_s1 + $0x430] ss:$8 sps:$4 sm:$0xff] (!%p207_p2)   ;;  %v3014_v16 = vld [vmem:[%s4411_s1 + $0x44] ss:$8 sps:$4 sm:$0xff] (!%p207_p2)  }
   0xb   : > { %2113 = vmatpush1.bf16.msra.mxu1 (!%p207_p2), %v3000_v6  ;;  %v3016_v17 = vld [vmem:[%s4411_s1 + $0x444] ss:$8 sps:$4 sm:$0xff] (!%p207_p2)   ;;  %v3018_v18 = vld [vmem:[%s4411_s1 + $0x40] ss:$8 sps:$4 sm:$0xff] (!%p207_p2)   ;;  %v3020_v20 = vld [vmem:[%s4411_s1 + $0x54] ss:$8 sps:$4 sm:$0xff] (!%p207_p2)  }
   0xc   : > { %2285 = vmatpush1.bf16.msra.mxu0 (!%p207_p2), %v3001_v7  ;;  %2114 = vmatprep.subr.bf16.mxu1 (!%p207_p2), %v3002_v8  ;;  %v3019_v19 = vld [vmem:[%s4411_s1 + $0x440] ss:$8 sps:$4 sm:$0xff] (!%p207_p2)   ;;  %v3022_v21 = vld [vmem:[%s4411_s1 + $0x454] ss:$8 sps:$4 sm:$0xff] (!%p207_p2)   ;;  %v3024_v22 = vld [vmem:[%s4411_s1 + $0x50] ss:$8 sps:$4 sm:$0xff] (!%p207_p2)  }
   0xd   : > { %2286 = vmatprep.subr.bf16.mxu0 %v3004_v9  ;;  %v3025_v23 = vld [vmem:[%s4411_s1 + $0x450] ss:$8 sps:$4 sm:$0xff]   ;;  %v3026_v24 = vld [vmem:[%s4411_s1 + $0x64] ss:$8 sps:$4 sm:$0xff]   ;;  %v3030_v26 = vld [vmem:[%s4411_s1 + $0x60] ss:$8 sps:$4 sm:$0xff]  }
   0xe   : > { %v3028_v25 = vld [vmem:[%s4411_s1 + $0x464] ss:$8 sps:$4 sm:$0xff]   ;;  %v3031_v27 = vld [vmem:[%s4411_s1 + $0x460] ss:$8 sps:$4 sm:$0xff]   ;;  %v3032_v28 = vld [vmem:[%s4411_s1 + $0x74] ss:$8 sps:$4 sm:$0xff]  }
   0xf   : > { %2115 = vmatpush1.bf16.msra.mxu1 %v3006_v10  ;;  %v3034_v29 = vld [vmem:[%s4411_s1 + $0x474] ss:$8 sps:$4 sm:$0xff]   ;;  %v3036_v30 = vld [vmem:[%s4411_s1 + $0x70] ss:$8 sps:$4 sm:$0xff]   ;;  %v3038_v32 = vld [vmem:[%s4411_s1 + $0x84] ss:$8 sps:$4 sm:$0xff]  }
  0x10   : > { %2287 = vmatpush1.bf16.msra.mxu0 %v3007_v11  ;;  %2116 = vmatprep.subr.bf16.mxu1 %v3008_v12  ;;  %v3037_v31 = vld [vmem:[%s4411_s1 + $0x470] ss:$8 sps:$4 sm:$0xff]   ;;  %v3040_v33 = vld [vmem:[%s4411_s1 + $0x484] ss:$8 sps:$4 sm:$0xff]   ;;  %v3042_v34 = vld [vmem:[%s4411_s1 + $0x80] ss:$8 sps:$4 sm:$0xff]  }
  0x11   : > { %2288 = vmatprep.subr.bf16.mxu0 %v3010_v13  ;;  %v3043_v35 = vld [vmem:[%s4411_s1 + $0x480] ss:$8 sps:$4 sm:$0xff]   ;;  %v3044_v36 = vld [vmem:[%s4411_s1 + $0x94] ss:$8 sps:$4 sm:$0xff]   ;;  %s4417_s19 = smov (!%p243_p3, %s2620_s19), 1 }
  0x12   : > { %v3046_v37 = vld [vmem:[%s4411_s1 + $0x494] ss:$8 sps:$4 sm:$0xff]   ;;  %v3048_v38 = vld [vmem:[%s4411_s1 + $0x90] ss:$8 sps:$4 sm:$0xff]   ;;  %v3050_v40 = vld [vmem:[%s4411_s1 + $0xa4] ss:$8 sps:$4 sm:$0xff]  }
  0x13   : > { %2117 = vmatpush1.bf16.msra.mxu1 %v3012_v14  ;;  %v3049_v39 = vld [vmem:[%s4411_s1 + $0x490] ss:$8 sps:$4 sm:$0xff]   ;;  %s2981_s8 = smul.u32 144, %s4417_s19  ;;  %v3052_v41 = vld [vmem:[%s4411_s1 + $0x4a4] ss:$8 sps:$4 sm:$0xff]   ;;  %s2941_s24 = sshll.u32 %s4417_s19, 4 }
  0x14   : > { %2289 = vmatpush1.bf16.msra.mxu0 %v3013_v15  ;;  %2118 = vmatprep.subr.bf16.mxu1 %v3014_v16  ;;  %v3054_v42 = vld [vmem:[%s4411_s1 + $0xa0] ss:$8 sps:$4 sm:$0xff]   ;;  %v3056_v44 = vld [vmem:[%s4411_s1 + $0xb4] ss:$8 sps:$4 sm:$0xff]   ;;  %v3060_v46 = vld [vmem:[%s4411_s1 + $0xb0] ss:$8 sps:$4 sm:$0xff]   ;;  %s261_s10 = scalar_lea.vmem %s4415_s5, %s2941_s24 }
  0x15   : > { %2290 = vmatprep.subr.bf16.mxu0 %v3016_v17  ;;  %v3055_v43 = vld [vmem:[%s4411_s1 + $0x4a0] ss:$8 sps:$4 sm:$0xff]   ;;  %s3640_s21 = scalar_lea.vmem %s4410_s0, %s2981_s8  ;;  %v3058_v45 = vld [vmem:[%s4411_s1 + $0x4b4] ss:$8 sps:$4 sm:$0xff]   ;;  %v3061_v47 = vld [vmem:[%s4411_s1 + $0x4b0] ss:$8 sps:$4 sm:$0xff]  }
  0x16   : > { %v3088_v48 = vld [vmem:[%s3640_s21 + $0x4] ss:$72 sps:$4 sm:$0xff]   ;;  %v3066_v52 = vld [vmem:[%s4411_s1 + $0xc0] ss:$8 sps:$4 sm:$0xff]   ;;  %v3068_v54 = vld [vmem:[%s4411_s1 + $0xd4] ss:$8 sps:$4 sm:$0xff]  }
  0x17   : > { %2119 = vmatpush1.bf16.msra.mxu1 %v3018_v18  ;;  %v3062_v49 = vld [vmem:[%s4411_s1 + $0xc4] ss:$8 sps:$4 sm:$0xff]   ;;  %2142 = vmatprep.mubr.bf16.mxu1 %v3088_v48  ;;  %v3067_v53 = vld [vmem:[%s4411_s1 + $0x4c0] ss:$8 sps:$4 sm:$0xff]   ;;  %v3070_v55 = vld [vmem:[%s4411_s1 + $0x4d4] ss:$8 sps:$4 sm:$0xff]  }
  0x18   : > { %2291 = vmatpush1.bf16.msra.mxu0 %v3019_v19  ;;  %2120 = vmatprep.subr.bf16.mxu1 %v3020_v20  ;;  %v3064_v50 = vld [vmem:[%s4411_s1 + $0x4c4] ss:$8 sps:$4 sm:$0xff]   ;;  %v3072_v56 = vld [vmem:[%s4411_s1 + $0xd0] ss:$8 sps:$4 sm:$0xff]   ;;  %v3078_v60 = vld [vmem:[%s4411_s1 + $0xe0] ss:$8 sps:$4 sm:$0xff]  }
  0x19   : > { %2292 = vmatprep.subr.bf16.mxu0 %v3022_v21  ;;  %v3094_v51 = vld [vmem:[%s3640_s21 + $0x24] ss:$72 sps:$4 sm:$0xff]   ;;  %v3073_v57 = vld [vmem:[%s4411_s1 + $0x4d0] ss:$8 sps:$4 sm:$0xff]   ;;  %v3079_v61 = vld [vmem:[%s4411_s1 + $0x4e0] ss:$8 sps:$4 sm:$0xff]  }
  0x1a   : > { %2314 = vmatprep.mubr.bf16.mxu0 %v3094_v51  ;;  %v3074_v58 = vld [vmem:[%s4411_s1 + $0xe4] ss:$8 sps:$4 sm:$0xff]   ;;  %v3080_v62 = vld [vmem:[%s4411_s1 + $0xf4] ss:$8 sps:$4 sm:$0xff]   ;;  %v3084_v0 = vld [vmem:[%s4411_s1 + $0xf0] ss:$8 sps:$4 sm:$0xff]  }
  0x1b   : > { %2121 = vmatpush1.bf16.msra.mxu1 %v3024_v22  ;;  %v3076_v59 = vld [vmem:[%s4411_s1 + $0x4e4] ss:$8 sps:$4 sm:$0xff]   ;;  %v3082_v63 = vld [vmem:[%s4411_s1 + $0x4f4] ss:$8 sps:$4 sm:$0xff]   ;;  %v3085_v1 = vld [vmem:[%s4411_s1 + $0x4f0] ss:$8 sps:$4 sm:$0xff]  }
  0x1c   : > { %2293 = vmatpush1.bf16.msra.mxu0 %v3025_v23  ;;  %2122 = vmatprep.subr.bf16.mxu1 %v3026_v24  ;;  %v3091_v2 = vld [vmem:[%s4411_s1 + $0x104] ss:$8 sps:$4 sm:$0xff]   ;;  %v3086_v4 = vld [vmem:[%s3640_s21] ss:$72 sps:$4 sm:$0xff]   ;;  %v3100_v8 = vld [vmem:[%s4411_s1 + $0x114] ss:$8 sps:$4 sm:$0xff]  }
  0x1d   : > { %2294 = vmatprep.subr.bf16.mxu0 %v3028_v25  ;;  %v3097_v3 = vld [vmem:[%s4411_s1 + $0x504] ss:$8 sps:$4 sm:$0xff]   ;;  %v3089_v5 = vld [vmem:[%s4411_s1 + $0x100] ss:$8 sps:$4 sm:$0xff]   ;;  %v3103_v9 = vld [vmem:[%s4411_s1 + $0x514] ss:$8 sps:$4 sm:$0xff]  }
  0x1e   : > { %v3092_v6 = vld [vmem:[%s3640_s21 + $0x20] ss:$72 sps:$4 sm:$0xff]   ;;  %v3098_v10 = vld [vmem:[%s4411_s1 + $0x110] ss:$8 sps:$4 sm:$0xff]   ;;  %v3106_v12 = vld [vmem:[%s4411_s1 + $0x124] ss:$8 sps:$4 sm:$0xff]  }
  0x1f   : > { %2123 = vmatpush1.bf16.msra.mxu1 %v3030_v26  ;;  %v3095_v7 = vld [vmem:[%s4411_s1 + $0x500] ss:$8 sps:$4 sm:$0xff]   ;;  %v3101_v11 = vld [vmem:[%s4411_s1 + $0x510] ss:$8 sps:$4 sm:$0xff]   ;;  %v3109_v13 = vld [vmem:[%s4411_s1 + $0x524] ss:$8 sps:$4 sm:$0xff]  }
  0x20   : > { %2295 = vmatpush1.bf16.msra.mxu0 %v3031_v27  ;;  %2124 = vmatprep.subr.bf16.mxu1 %v3032_v28  ;;  %v3104_v14 = vld [vmem:[%s4411_s1 + $0x120] ss:$8 sps:$4 sm:$0xff]   ;;  %v3112_v16 = vld [vmem:[%s4411_s1 + $0x134] ss:$8 sps:$4 sm:$0xff]   ;;  %v3110_v18 = vld [vmem:[%s4411_s1 + $0x130] ss:$8 sps:$4 sm:$0xff]  }
  0x21   : > { %2296 = vmatprep.subr.bf16.mxu0 %v3034_v29  ;;  %v3107_v15 = vld [vmem:[%s4411_s1 + $0x520] ss:$8 sps:$4 sm:$0xff]   ;;  %v3115_v17 = vld [vmem:[%s4411_s1 + $0x534] ss:$8 sps:$4 sm:$0xff]   ;;  %v3113_v19 = vld [vmem:[%s4411_s1 + $0x530] ss:$8 sps:$4 sm:$0xff]  }
  0x22   : > { %v3118_v20 = vld [vmem:[%s4411_s1 + $0x144] ss:$8 sps:$4 sm:$0xff]   ;;  %v3116_v22 = vld [vmem:[%s4411_s1 + $0x140] ss:$8 sps:$4 sm:$0xff]   ;;  %v3124_v24 = vld [vmem:[%s4411_s1 + $0x154] ss:$8 sps:$4 sm:$0xff]  }
  0x23   : > { %2125 = vmatpush1.bf16.msra.mxu1 %v3036_v30  ;;  %v3121_v21 = vld [vmem:[%s4411_s1 + $0x544] ss:$8 sps:$4 sm:$0xff]   ;;  %v3119_v23 = vld [vmem:[%s4411_s1 + $0x540] ss:$8 sps:$4 sm:$0xff]   ;;  %v3127_v25 = vld [vmem:[%s4411_s1 + $0x554] ss:$8 sps:$4 sm:$0xff]  }
  0x24   : > { %2297 = vmatpush1.bf16.msra.mxu0 %v3037_v31  ;;  %2126 = vmatprep.subr.bf16.mxu1 %v3038_v32  ;;  %v3122_v26 = vld [vmem:[%s4411_s1 + $0x150] ss:$8 sps:$4 sm:$0xff]   ;;  %v3130_v28 = vld [vmem:[%s4411_s1 + $0x164] ss:$8 sps:$4 sm:$0xff]   ;;  %v3128_v30 = vld [vmem:[%s4411_s1 + $0x160] ss:$8 sps:$4 sm:$0xff]  }
  0x25   : > { %2298 = vmatprep.subr.bf16.mxu0 %v3040_v33  ;;  %v3125_v27 = vld [vmem:[%s4411_s1 + $0x550] ss:$8 sps:$4 sm:$0xff]   ;;  %v3133_v29 = vld [vmem:[%s4411_s1 + $0x564] ss:$8 sps:$4 sm:$0xff]   ;;  %v3131_v31 = vld [vmem:[%s4411_s1 + $0x560] ss:$8 sps:$4 sm:$0xff]  }
  0x26   : > { %v3136_v32 = vld [vmem:[%s4411_s1 + $0x174] ss:$8 sps:$4 sm:$0xff]   ;;  %v3152_v48 = vld [vmem:[%s4411_s1 + $0x1a0] ss:$8 sps:$4 sm:$0xff]   ;;  %s2628_s29 = sshll.u32 %s4417_s19, 1 }
  0x27   : > { %2127 = vmatpush1.bf16.msra.mxu1 %v3042_v34  ;;  %v3139_v33 = vld [vmem:[%s4411_s1 + $0x574] ss:$8 sps:$4 sm:$0xff]   ;;  %s256_s7 = scalar_lea.vmem %s4414_s4, %s2628_s29 }
  0x28   : > { %2299 = vmatpush1.bf16.msra.mxu0 %v3043_v35  ;;  %2128 = vmatprep.subr.bf16.mxu1 %v3044_v36  ;;  %v3190_v34 = vld [vmem:[%s3640_s21 + $0xc] ss:$72 sps:$4 sm:$0xff]   ;;  %v3134_v35 = vld [vmem:[%s4411_s1 + $0x170] ss:$8 sps:$4 sm:$0xff]  }
  0x29   : > { %2300 = vmatprep.subr.bf16.mxu0 %v3046_v37  ;;  %v3137_v36 = vld [vmem:[%s4411_s1 + $0x570] ss:$8 sps:$4 sm:$0xff]   ;;  %v3196_v37 = vld [vmem:[%s3640_s21 + $0x2c] ss:$72 sps:$4 sm:$0xff]  }
  0x2a   : > { %v3163_v51 = vld [vmem:[%s4411_s1 + $0x5b4] ss:$8 sps:$4 sm:$0xff]  }
  0x2b   : > { %2129 = vmatpush1.bf16.msra.mxu1 %v3048_v38  ;;  %v3142_v38 = vld [vmem:[%s4411_s1 + $0x184] ss:$8 sps:$4 sm:$0xff]  }
  0x2c   : > { %2301 = vmatpush1.bf16.msra.mxu0 %v3049_v39  ;;  %2130 = vmatprep.subr.bf16.mxu1 %v3050_v40  ;;  %v3145_v39 = vld [vmem:[%s4411_s1 + $0x584] ss:$8 sps:$4 sm:$0xff]   ;;  %v3140_v40 = vld [vmem:[%s4411_s1 + $0x180] ss:$8 sps:$4 sm:$0xff]  }
  0x2d   : > { %2302 = vmatprep.subr.bf16.mxu0 %v3052_v41  ;;  %v3143_v41 = vld [vmem:[%s4411_s1 + $0x580] ss:$8 sps:$4 sm:$0xff]  }
  0x2f   : > { %2131 = vmatpush1.bf16.msra.mxu1 %v3054_v42  ;;  %v3148_v42 = vld [vmem:[%s4411_s1 + $0x194] ss:$8 sps:$4 sm:$0xff]  }
  0x30   : > { %2303 = vmatpush1.bf16.msra.mxu0 %v3055_v43  ;;  %2132 = vmatprep.subr.bf16.mxu1 %v3056_v44  ;;  %v3151_v43 = vld [vmem:[%s4411_s1 + $0x594] ss:$8 sps:$4 sm:$0xff]   ;;  %v3146_v44 = vld [vmem:[%s4411_s1 + $0x190] ss:$8 sps:$4 sm:$0xff]  }
  0x31   : > { %2304 = vmatprep.subr.bf16.mxu0 %v3058_v45  ;;  %v3149_v45 = vld [vmem:[%s4411_s1 + $0x590] ss:$8 sps:$4 sm:$0xff]  }
  0x33   : > { %2133 = vmatpush1.bf16.msra.mxu1 %v3060_v46  ;;  %v3154_v46 = vld [vmem:[%s4411_s1 + $0x1a4] ss:$8 sps:$4 sm:$0xff]  }
  0x34   : > { %2305 = vmatpush1.bf16.msra.mxu0 %v3061_v47  ;;  %2134 = vmatprep.subr.bf16.mxu1 %v3062_v49  ;;  %v3157_v47 = vld [vmem:[%s4411_s1 + $0x5a4] ss:$8 sps:$4 sm:$0xff]   ;;  %v3155_v49 = vld [vmem:[%s4411_s1 + $0x5a0] ss:$8 sps:$4 sm:$0xff]  }
  0x35   : > { %2306 = vmatprep.subr.bf16.mxu0 %v3064_v50  ;;  %v3160_v50 = vld [vmem:[%s4411_s1 + $0x1b4] ss:$8 sps:$4 sm:$0xff]  }
  0x37   : > { %2135 = vmatpush1.bf16.msra.mxu1 %v3066_v52  ;;  %v3158_v52 = vld [vmem:[%s4411_s1 + $0x1b0] ss:$8 sps:$4 sm:$0xff]  }
  0x38   : > { %2307 = vmatpush1.bf16.msra.mxu0 %v3067_v53  ;;  %2136 = vmatprep.subr.bf16.mxu1 %v3068_v54  ;;  %v3161_v53 = vld [vmem:[%s4411_s1 + $0x5b0] ss:$8 sps:$4 sm:$0xff]   ;;  %v3166_v54 = vld [vmem:[%s4411_s1 + $0x1c4] ss:$8 sps:$4 sm:$0xff]  }
  0x39   : > { %2308 = vmatprep.subr.bf16.mxu0 %v3070_v55  ;;  %v3169_v55 = vld [vmem:[%s4411_s1 + $0x5c4] ss:$8 sps:$4 sm:$0xff]  }
  0x3b   : > { %2137 = vmatpush1.bf16.msra.mxu1 %v3072_v56  ;;  %v3164_v56 = vld [vmem:[%s4411_s1 + $0x1c0] ss:$8 sps:$4 sm:$0xff]  }
  0x3c   : > { %2309 = vmatpush1.bf16.msra.mxu0 %v3073_v57  ;;  %2138 = vmatprep.subr.bf16.mxu1 %v3074_v58  ;;  %v3167_v57 = vld [vmem:[%s4411_s1 + $0x5c0] ss:$8 sps:$4 sm:$0xff]   ;;  %v3172_v58 = vld [vmem:[%s4411_s1 + $0x1d4] ss:$8 sps:$4 sm:$0xff]  }
  0x3d   : > { %2310 = vmatprep.subr.bf16.mxu0 %v3076_v59  ;;  %v3175_v59 = vld [vmem:[%s4411_s1 + $0x5d4] ss:$8 sps:$4 sm:$0xff]  }
  0x3f   : > { %2139 = vmatpush1.bf16.msra.mxu1 %v3078_v60  ;;  %v3170_v60 = vld [vmem:[%s4411_s1 + $0x1d0] ss:$8 sps:$4 sm:$0xff]  }
  0x40   : > { %2311 = vmatpush1.bf16.msra.mxu0 %v3079_v61  ;;  %2140 = vmatprep.subr.bf16.mxu1 %v3080_v62  ;;  %v3173_v61 = vld [vmem:[%s4411_s1 + $0x5d0] ss:$8 sps:$4 sm:$0xff]   ;;  %v3178_v62 = vld [vmem:[%s4411_s1 + $0x1e4] ss:$8 sps:$4 sm:$0xff]  }
  0x41   : > { %2312 = vmatprep.subr.bf16.mxu0 %v3082_v63  ;;  %v3181_v63 = vld [vmem:[%s4411_s1 + $0x5e4] ss:$8 sps:$4 sm:$0xff]  }
  0x43   : > { %2141 = vmatpush1.bf16.msra.mxu1 %v3084_v0  ;;  %v3176_v0 = vld [vmem:[%s4411_s1 + $0x1e0] ss:$8 sps:$4 sm:$0xff]  }
  0x44   : > { %2313 = vmatpush1.bf16.msra.mxu0 %v3085_v1  ;;  %2153 = vmatprep.subr.bf16.mxu1 %v3091_v2  ;;  %v3179_v1 = vld [vmem:[%s4411_s1 + $0x5e0] ss:$8 sps:$4 sm:$0xff]   ;;  %v3184_v2 = vld [vmem:[%s4411_s1 + $0x1f4] ss:$8 sps:$4 sm:$0xff]  }
  0x45   : > { %2325 = vmatprep.subr.bf16.mxu0 %v3097_v3  ;;  %v3187_v3 = vld [vmem:[%s4411_s1 + $0x5f4] ss:$8 sps:$4 sm:$0xff]  }
  0x46   : > { %2143 = vmatmul.mubr.bf16.vlgmr.msra.gmra.mrb[0].mxu1 %v3086_v4  ;;  %v3182_v4 = vld [vmem:[%s4411_s1 + $0x1f0] ss:$8 sps:$4 sm:$0xff]  }
  0x47   : > { %2315 = vmatmul.mubr.bf16.vlgmr.msra.gmra.mrb[0].mxu0 %v3092_v6  ;;  %2154 = vmatpush1.bf16.msra.mxu1 %v3089_v5  ;;  %v3185_v5 = vld [vmem:[%s4411_s1 + $0x5f0] ss:$8 sps:$4 sm:$0xff]   ;;  %v3193_v6 = vld [vmem:[%s4411_s1 + $0x204] ss:$8 sps:$4 sm:$0xff]  }
  0x48   : > { %2326 = vmatpush1.bf16.msra.mxu0 %v3095_v7  ;;  %2155 = vmatprep.subr.bf16.mxu1 %v3100_v8  ;;  %v3199_v7 = vld [vmem:[%s4411_s1 + $0x604] ss:$8 sps:$4 sm:$0xff]   ;;  %v3188_v8 = vld [vmem:[%s3640_s21 + $0x8] ss:$72 sps:$4 sm:$0xff]  }
  0x49   : > { %2327 = vmatprep.subr.bf16.mxu0 %v3103_v9  ;;  %2185 = vmatprep.mubr.bf16.mxu1 %v3190_v34  ;;  %v3191_v9 = vld [vmem:[%s4411_s1 + $0x200] ss:$8 sps:$4 sm:$0xff]   ;;  %v3232_v34 = vld [vmem:[%s4411_s1 + $0x264] ss:$8 sps:$4 sm:$0xff]  }
  0x4a   : > { %2357 = vmatprep.mubr.bf16.mxu0 %v3196_v37  ;;  %v3233_v37 = vld [vmem:[%s4411_s1 + $0x660] ss:$8 sps:$4 sm:$0xff]  }
  0x4b   : > { %2156 = vmatpush1.bf16.msra.mxu1 %v3098_v10  ;;  %v3194_v10 = vld [vmem:[%s3640_s21 + $0x28] ss:$72 sps:$4 sm:$0xff]  }
  0x4c   : > { %2328 = vmatpush1.bf16.msra.mxu0 %v3101_v11  ;;  %2157 = vmatprep.subr.bf16.mxu1 %v3106_v12  ;;  %v3197_v11 = vld [vmem:[%s4411_s1 + $0x600] ss:$8 sps:$4 sm:$0xff]   ;;  %v3202_v12 = vld [vmem:[%s4411_s1 + $0x214] ss:$8 sps:$4 sm:$0xff]  }
  0x4d   : > { %2329 = vmatprep.subr.bf16.mxu0 %v3109_v13  ;;  %v3205_v13 = vld [vmem:[%s4411_s1 + $0x614] ss:$8 sps:$4 sm:$0xff]  }
  0x4f   : > { %2158 = vmatpush1.bf16.msra.mxu1 %v3104_v14  ;;  %v3200_v14 = vld [vmem:[%s4411_s1 + $0x210] ss:$8 sps:$4 sm:$0xff]  }
  0x50   : > { %2330 = vmatpush1.bf16.msra.mxu0 %v3107_v15  ;;  %2159 = vmatprep.subr.bf16.mxu1 %v3112_v16  ;;  %v3203_v15 = vld [vmem:[%s4411_s1 + $0x610] ss:$8 sps:$4 sm:$0xff]   ;;  %v3208_v16 = vld [vmem:[%s4411_s1 + $0x224] ss:$8 sps:$4 sm:$0xff]  }
  0x51   : > { %2331 = vmatprep.subr.bf16.mxu0 %v3115_v17  ;;  %v3211_v17 = vld [vmem:[%s4411_s1 + $0x624] ss:$8 sps:$4 sm:$0xff]  }
  0x53   : > { %2160 = vmatpush1.bf16.msra.mxu1 %v3110_v18  ;;  %v3206_v18 = vld [vmem:[%s4411_s1 + $0x220] ss:$8 sps:$4 sm:$0xff]  }
  0x54   : > { %2332 = vmatpush1.bf16.msra.mxu0 %v3113_v19  ;;  %2161 = vmatprep.subr.bf16.mxu1 %v3118_v20  ;;  %v3292_v19 = vld [vmem:[%s3640_s21 + $0x14] ss:$72 sps:$4 sm:$0xff]   ;;  %v3209_v20 = vld [vmem:[%s4411_s1 + $0x620] ss:$8 sps:$4 sm:$0xff]  }
  0x55   : > { %2333 = vmatprep.subr.bf16.mxu0 %v3121_v21  ;;  %v3214_v21 = vld [vmem:[%s4411_s1 + $0x234] ss:$8 sps:$4 sm:$0xff]  }
  0x57   : > { %2162 = vmatpush1.bf16.msra.mxu1 %v3116_v22  ;;  %v3217_v22 = vld [vmem:[%s4411_s1 + $0x634] ss:$8 sps:$4 sm:$0xff]  }
  0x58   : > { %2334 = vmatpush1.bf16.msra.mxu0 %v3119_v23  ;;  %2163 = vmatprep.subr.bf16.mxu1 %v3124_v24  ;;  %v3298_v23 = vld [vmem:[%s3640_s21 + $0x34] ss:$72 sps:$4 sm:$0xff]   ;;  %v3212_v24 = vld [vmem:[%s4411_s1 + $0x230] ss:$8 sps:$4 sm:$0xff]  }
  0x59   : > { %2335 = vmatprep.subr.bf16.mxu0 %v3127_v25  ;;  %v3215_v25 = vld [vmem:[%s4411_s1 + $0x630] ss:$8 sps:$4 sm:$0xff]  }
  0x5b   : > { %2164 = vmatpush1.bf16.msra.mxu1 %v3122_v26  ;;  %v3220_v26 = vld [vmem:[%s4411_s1 + $0x244] ss:$8 sps:$4 sm:$0xff]  }
  0x5c   : > { %2336 = vmatpush1.bf16.msra.mxu0 %v3125_v27  ;;  %2165 = vmatprep.subr.bf16.mxu1 %v3130_v28  ;;  %v3223_v27 = vld [vmem:[%s4411_s1 + $0x644] ss:$8 sps:$4 sm:$0xff]   ;;  %v3218_v28 = vld [vmem:[%s4411_s1 + $0x240] ss:$8 sps:$4 sm:$0xff]  }
  0x5d   : > { %2337 = vmatprep.subr.bf16.mxu0 %v3133_v29  ;;  %v3221_v29 = vld [vmem:[%s4411_s1 + $0x640] ss:$8 sps:$4 sm:$0xff]  }
  0x5f   : > { %2166 = vmatpush1.bf16.msra.mxu1 %v3128_v30  ;;  %v3226_v30 = vld [vmem:[%s4411_s1 + $0x254] ss:$8 sps:$4 sm:$0xff]  }
  0x60   : > { %2338 = vmatpush1.bf16.msra.mxu0 %v3131_v31  ;;  %2167 = vmatprep.subr.bf16.mxu1 %v3136_v32  ;;  %v3229_v31 = vld [vmem:[%s4411_s1 + $0x654] ss:$8 sps:$4 sm:$0xff]   ;;  %v3224_v32 = vld [vmem:[%s4411_s1 + $0x250] ss:$8 sps:$4 sm:$0xff]  }
  0x61   : > { %2339 = vmatprep.subr.bf16.mxu0 %v3139_v33  ;;  %v3227_v33 = vld [vmem:[%s4411_s1 + $0x650] ss:$8 sps:$4 sm:$0xff]  }
  0x63   : > { %2168 = vmatpush1.bf16.msra.mxu1 %v3134_v35  ;;  %v3235_v35 = vld [vmem:[%s4411_s1 + $0x664] ss:$8 sps:$4 sm:$0xff]  }
  0x64   : > { %2340 = vmatpush1.bf16.msra.mxu0 %v3137_v36  ;;  %2169 = vmatprep.subr.bf16.mxu1 %v3142_v38  ;;  %v3230_v36 = vld [vmem:[%s4411_s1 + $0x260] ss:$8 sps:$4 sm:$0xff]   ;;  %v3238_v38 = vld [vmem:[%s4411_s1 + $0x274] ss:$8 sps:$4 sm:$0xff]  }
  0x65   : > { %2341 = vmatprep.subr.bf16.mxu0 %v3145_v39  ;;  %v3241_v39 = vld [vmem:[%s4411_s1 + $0x674] ss:$8 sps:$4 sm:$0xff]  }
  0x67   : > { %2170 = vmatpush1.bf16.msra.mxu1 %v3140_v40  ;;  %v3236_v40 = vld [vmem:[%s4411_s1 + $0x270] ss:$8 sps:$4 sm:$0xff]  }
  0x68   : > { %2342 = vmatpush1.bf16.msra.mxu0 %v3143_v41  ;;  %2171 = vmatprep.subr.bf16.mxu1 %v3148_v42  ;;  %v3239_v41 = vld [vmem:[%s4411_s1 + $0x670] ss:$8 sps:$4 sm:$0xff]   ;;  %v3244_v42 = vld [vmem:[%s4411_s1 + $0x284] ss:$8 sps:$4 sm:$0xff]  }
  0x69   : > { %2343 = vmatprep.subr.bf16.mxu0 %v3151_v43  ;;  %v3247_v43 = vld [vmem:[%s4411_s1 + $0x684] ss:$8 sps:$4 sm:$0xff]  }
  0x6b   : > { %2172 = vmatpush1.bf16.msra.mxu1 %v3146_v44  ;;  %v3242_v44 = vld [vmem:[%s4411_s1 + $0x280] ss:$8 sps:$4 sm:$0xff]  }
  0x6c   : > { %2344 = vmatpush1.bf16.msra.mxu0 %v3149_v45  ;;  %2173 = vmatprep.subr.bf16.mxu1 %v3154_v46  ;;  %v3245_v45 = vld [vmem:[%s4411_s1 + $0x680] ss:$8 sps:$4 sm:$0xff]   ;;  %v3250_v46 = vld [vmem:[%s4411_s1 + $0x294] ss:$8 sps:$4 sm:$0xff]  }
  0x6d   : > { %2345 = vmatprep.subr.bf16.mxu0 %v3157_v47  ;;  %v3253_v47 = vld [vmem:[%s4411_s1 + $0x694] ss:$8 sps:$4 sm:$0xff]  }
  0x6f   : > { %2174 = vmatpush1.bf16.msra.mxu1 %v3152_v48  ;;  %v3248_v48 = vld [vmem:[%s4411_s1 + $0x290] ss:$8 sps:$4 sm:$0xff]  }
  0x70   : > { %2346 = vmatpush1.bf16.msra.mxu0 %v3155_v49  ;;  %2175 = vmatprep.subr.bf16.mxu1 %v3160_v50  ;;  %v3251_v49 = vld [vmem:[%s4411_s1 + $0x690] ss:$8 sps:$4 sm:$0xff]   ;;  %v3256_v50 = vld [vmem:[%s4411_s1 + $0x2a4] ss:$8 sps:$4 sm:$0xff]  }
  0x71   : > { %2347 = vmatprep.subr.bf16.mxu0 %v3163_v51  ;;  %v3259_v51 = vld [vmem:[%s4411_s1 + $0x6a4] ss:$8 sps:$4 sm:$0xff]  }
  0x73   : > { %2176 = vmatpush1.bf16.msra.mxu1 %v3158_v52  ;;  %v3254_v52 = vld [vmem:[%s4411_s1 + $0x2a0] ss:$8 sps:$4 sm:$0xff]  }
  0x74   : > { %2348 = vmatpush1.bf16.msra.mxu0 %v3161_v53  ;;  %2177 = vmatprep.subr.bf16.mxu1 %v3166_v54  ;;  %v3257_v53 = vld [vmem:[%s4411_s1 + $0x6a0] ss:$8 sps:$4 sm:$0xff]   ;;  %v3262_v54 = vld [vmem:[%s4411_s1 + $0x2b4] ss:$8 sps:$4 sm:$0xff]  }
  0x75   : > { %2349 = vmatprep.subr.bf16.mxu0 %v3169_v55  ;;  %v3265_v55 = vld [vmem:[%s4411_s1 + $0x6b4] ss:$8 sps:$4 sm:$0xff]  }
  0x77   : > { %2178 = vmatpush1.bf16.msra.mxu1 %v3164_v56  ;;  %v3260_v56 = vld [vmem:[%s4411_s1 + $0x2b0] ss:$8 sps:$4 sm:$0xff]  }
  0x78   : > { %2350 = vmatpush1.bf16.msra.mxu0 %v3167_v57  ;;  %2179 = vmatprep.subr.bf16.mxu1 %v3172_v58  ;;  %v3263_v57 = vld [vmem:[%s4411_s1 + $0x6b0] ss:$8 sps:$4 sm:$0xff]   ;;  %v3268_v58 = vld [vmem:[%s4411_s1 + $0x2c4] ss:$8 sps:$4 sm:$0xff]  }
  0x79   : > { %2351 = vmatprep.subr.bf16.mxu0 %v3175_v59  ;;  %v3271_v59 = vld [vmem:[%s4411_s1 + $0x6c4] ss:$8 sps:$4 sm:$0xff]  }
  0x7b   : > { %2180 = vmatpush1.bf16.msra.mxu1 %v3170_v60  ;;  %v3266_v60 = vld [vmem:[%s4411_s1 + $0x2c0] ss:$8 sps:$4 sm:$0xff]  }
  0x7c   : > { %2352 = vmatpush1.bf16.msra.mxu0 %v3173_v61  ;;  %2181 = vmatprep.subr.bf16.mxu1 %v3178_v62  ;;  %v3269_v61 = vld [vmem:[%s4411_s1 + $0x6c0] ss:$8 sps:$4 sm:$0xff]   ;;  %v3274_v62 = vld [vmem:[%s4411_s1 + $0x2d4] ss:$8 sps:$4 sm:$0xff]  }
  0x7d   : > { %2353 = vmatprep.subr.bf16.mxu0 %v3181_v63  ;;  %v3277_v63 = vld [vmem:[%s4411_s1 + $0x6d4] ss:$8 sps:$4 sm:$0xff]  }
  0x7f   : > { %2182 = vmatpush1.bf16.msra.mxu1 %v3176_v0  ;;  %v3272_v0 = vld [vmem:[%s4411_s1 + $0x2d0] ss:$8 sps:$4 sm:$0xff]  }
  0x80   : > { %2354 = vmatpush1.bf16.msra.mxu0 %v3179_v1  ;;  %2183 = vmatprep.subr.bf16.mxu1 %v3184_v2  ;;  %v3275_v1 = vld [vmem:[%s4411_s1 + $0x6d0] ss:$8 sps:$4 sm:$0xff]   ;;  %v3280_v2 = vld [vmem:[%s4411_s1 + $0x2e4] ss:$8 sps:$4 sm:$0xff]  }
  0x81   : > { %2355 = vmatprep.subr.bf16.mxu0 %v3187_v3  ;;  %v3283_v3 = vld [vmem:[%s4411_s1 + $0x6e4] ss:$8 sps:$4 sm:$0xff]  }
  0x83   : > { %2184 = vmatpush1.bf16.msra.mxu1 %v3182_v4  ;;  %v3278_v4 = vld [vmem:[%s4411_s1 + $0x2e0] ss:$8 sps:$4 sm:$0xff]  }
  0x84   : > { %2356 = vmatpush1.bf16.msra.mxu0 %v3185_v5  ;;  %2196 = vmatprep.subr.bf16.mxu1 %v3193_v6  ;;  %v3281_v5 = vld [vmem:[%s4411_s1 + $0x6e0] ss:$8 sps:$4 sm:$0xff]   ;;  %v3286_v6 = vld [vmem:[%s4411_s1 + $0x2f4] ss:$8 sps:$4 sm:$0xff]  }
  0x85   : > { %2368 = vmatprep.subr.bf16.mxu0 %v3199_v7  ;;  %v3289_v7 = vld [vmem:[%s4411_s1 + $0x6f4] ss:$8 sps:$4 sm:$0xff]  }
  0x86   : > { %2186 = vmatmul.mubr.bf16.vlgmr.msra.gmra.mrb[0].mxu1 %v3188_v8  ;;  %v3284_v8 = vld [vmem:[%s4411_s1 + $0x2f0] ss:$8 sps:$4 sm:$0xff]  }
  0x87   : > { %2358 = vmatmul.mubr.bf16.vlgmr.msra.gmra.mrb[0].mxu0 %v3194_v10  ;;  %2197 = vmatpush1.bf16.msra.mxu1 %v3191_v9  ;;  %v3287_v9 = vld [vmem:[%s4411_s1 + $0x6f0] ss:$8 sps:$4 sm:$0xff]   ;;  %v3295_v10 = vld [vmem:[%s4411_s1 + $0x304] ss:$8 sps:$4 sm:$0xff]  }
  0x88   : > { %2369 = vmatpush1.bf16.msra.mxu0 %v3197_v11  ;;  %2198 = vmatprep.subr.bf16.mxu1 %v3202_v12  ;;  %v3301_v11 = vld [vmem:[%s4411_s1 + $0x704] ss:$8 sps:$4 sm:$0xff]   ;;  %v3290_v12 = vld [vmem:[%s3640_s21 + $0x10] ss:$72 sps:$4 sm:$0xff]  }
  0x89   : > { %2370 = vmatprep.subr.bf16.mxu0 %v3205_v13  ;;  %2228 = vmatprep.mubr.bf16.mxu1 %v3292_v19  ;;  %v3293_v13 = vld [vmem:[%s4411_s1 + $0x300] ss:$8 sps:$4 sm:$0xff]   ;;  %v3397_v19 = vld [vmem:[%s3640_s21 + $0x3c] ss:$72 sps:$4 sm:$0xff]  }
  0x8a   : > { %2400 = vmatprep.mubr.bf16.mxu0 %v3298_v23  ;;  %v3313_v23 = vld [vmem:[%s4411_s1 + $0x724] ss:$8 sps:$4 sm:$0xff]  }
  0x8b   : > { %2199 = vmatpush1.bf16.msra.mxu1 %v3200_v14  ;;  %v3296_v14 = vld [vmem:[%s3640_s21 + $0x30] ss:$72 sps:$4 sm:$0xff]  }
  0x8c   : > { %2371 = vmatpush1.bf16.msra.mxu0 %v3203_v15  ;;  %2200 = vmatprep.subr.bf16.mxu1 %v3208_v16  ;;  %v3299_v15 = vld [vmem:[%s4411_s1 + $0x700] ss:$8 sps:$4 sm:$0xff]   ;;  %v3304_v16 = vld [vmem:[%s4411_s1 + $0x314] ss:$8 sps:$4 sm:$0xff]  }
  0x8d   : > { %2372 = vmatprep.subr.bf16.mxu0 %v3211_v17  ;;  %v3307_v17 = vld [vmem:[%s4411_s1 + $0x714] ss:$8 sps:$4 sm:$0xff]  }
  0x8f   : > { %2201 = vmatpush1.bf16.msra.mxu1 %v3206_v18  ;;  %v3394_v18 = vld [vmem:[%s3640_s21 + $0x1c] ss:$72 sps:$4 sm:$0xff]  }
  0x90   : > { %2373 = vmatpush1.bf16.msra.mxu0 %v3209_v20  ;;  %2202 = vmatprep.subr.bf16.mxu1 %v3214_v21  ;;  %v3302_v20 = vld [vmem:[%s4411_s1 + $0x310] ss:$8 sps:$4 sm:$0xff]  }
  0x91   : > { %2374 = vmatprep.subr.bf16.mxu0 %v3217_v22  ;;  %v3305_v21 = vld [vmem:[%s4411_s1 + $0x710] ss:$8 sps:$4 sm:$0xff]   ;;  %v3310_v22 = vld [vmem:[%s4411_s1 + $0x324] ss:$8 sps:$4 sm:$0xff]  }
  0x93   : > { %2203 = vmatpush1.bf16.msra.mxu1 %v3212_v24  ;;  %v3308_v24 = vld [vmem:[%s4411_s1 + $0x320] ss:$8 sps:$4 sm:$0xff]  }
  0x94   : > { %2375 = vmatpush1.bf16.msra.mxu0 %v3215_v25  ;;  %2204 = vmatprep.subr.bf16.mxu1 %v3220_v26  ;;  %v3311_v25 = vld [vmem:[%s4411_s1 + $0x720] ss:$8 sps:$4 sm:$0xff]   ;;  %v3316_v26 = vld [vmem:[%s4411_s1 + $0x334] ss:$8 sps:$4 sm:$0xff]  }
  0x95   : > { %2376 = vmatprep.subr.bf16.mxu0 %v3223_v27  ;;  %v3319_v27 = vld [vmem:[%s4411_s1 + $0x734] ss:$8 sps:$4 sm:$0xff]  }
  0x97   : > { %2205 = vmatpush1.bf16.msra.mxu1 %v3218_v28  ;;  %v3314_v28 = vld [vmem:[%s4411_s1 + $0x330] ss:$8 sps:$4 sm:$0xff]  }
  0x98   : > { %2377 = vmatpush1.bf16.msra.mxu0 %v3221_v29  ;;  %2206 = vmatprep.subr.bf16.mxu1 %v3226_v30  ;;  %v3317_v29 = vld [vmem:[%s4411_s1 + $0x730] ss:$8 sps:$4 sm:$0xff]   ;;  %v3322_v30 = vld [vmem:[%s4411_s1 + $0x344] ss:$8 sps:$4 sm:$0xff]  }
  0x99   : > { %2378 = vmatprep.subr.bf16.mxu0 %v3229_v31  ;;  %v3325_v31 = vld [vmem:[%s4411_s1 + $0x744] ss:$8 sps:$4 sm:$0xff]  }
  0x9b   : > { %2207 = vmatpush1.bf16.msra.mxu1 %v3224_v32  ;;  %v3320_v32 = vld [vmem:[%s4411_s1 + $0x340] ss:$8 sps:$4 sm:$0xff]  }
  0x9c   : > { %2379 = vmatpush1.bf16.msra.mxu0 %v3227_v33  ;;  %2208 = vmatprep.subr.bf16.mxu1 %v3232_v34  ;;  %v3323_v33 = vld [vmem:[%s4411_s1 + $0x740] ss:$8 sps:$4 sm:$0xff]   ;;  %v3328_v34 = vld [vmem:[%s4411_s1 + $0x354] ss:$8 sps:$4 sm:$0xff]  }
  0x9d   : > { %2380 = vmatprep.subr.bf16.mxu0 %v3235_v35  ;;  %v3331_v35 = vld [vmem:[%s4411_s1 + $0x754] ss:$8 sps:$4 sm:$0xff]  }
  0x9f   : > { %2209 = vmatpush1.bf16.msra.mxu1 %v3230_v36  ;;  %v3326_v36 = vld [vmem:[%s4411_s1 + $0x350] ss:$8 sps:$4 sm:$0xff]  }
  0xa0   : > { %2381 = vmatpush1.bf16.msra.mxu0 %v3233_v37  ;;  %2210 = vmatprep.subr.bf16.mxu1 %v3238_v38  ;;  %v3329_v37 = vld [vmem:[%s4411_s1 + $0x750] ss:$8 sps:$4 sm:$0xff]   ;;  %v3334_v38 = vld [vmem:[%s4411_s1 + $0x364] ss:$8 sps:$4 sm:$0xff]  }
  0xa1   : > { %2382 = vmatprep.subr.bf16.mxu0 %v3241_v39  ;;  %v3337_v39 = vld [vmem:[%s4411_s1 + $0x764] ss:$8 sps:$4 sm:$0xff]  }
  0xa3   : > { %2211 = vmatpush1.bf16.msra.mxu1 %v3236_v40  ;;  %v3332_v40 = vld [vmem:[%s4411_s1 + $0x360] ss:$8 sps:$4 sm:$0xff]  }
  0xa4   : > { %2383 = vmatpush1.bf16.msra.mxu0 %v3239_v41  ;;  %2212 = vmatprep.subr.bf16.mxu1 %v3244_v42  ;;  %v3335_v41 = vld [vmem:[%s4411_s1 + $0x760] ss:$8 sps:$4 sm:$0xff]   ;;  %v3340_v42 = vld [vmem:[%s4411_s1 + $0x374] ss:$8 sps:$4 sm:$0xff]  }
  0xa5   : > { %2384 = vmatprep.subr.bf16.mxu0 %v3247_v43  ;;  %v3343_v43 = vld [vmem:[%s4411_s1 + $0x774] ss:$8 sps:$4 sm:$0xff]  }
  0xa7   : > { %2213 = vmatpush1.bf16.msra.mxu1 %v3242_v44  ;;  %v3338_v44 = vld [vmem:[%s4411_s1 + $0x370] ss:$8 sps:$4 sm:$0xff]  }
  0xa8   : > { %2385 = vmatpush1.bf16.msra.mxu0 %v3245_v45  ;;  %2214 = vmatprep.subr.bf16.mxu1 %v3250_v46  ;;  %v3341_v45 = vld [vmem:[%s4411_s1 + $0x770] ss:$8 sps:$4 sm:$0xff]   ;;  %v3346_v46 = vld [vmem:[%s4411_s1 + $0x384] ss:$8 sps:$4 sm:$0xff]  }
  0xa9   : > { %2386 = vmatprep.subr.bf16.mxu0 %v3253_v47  ;;  %v3349_v47 = vld [vmem:[%s4411_s1 + $0x784] ss:$8 sps:$4 sm:$0xff]  }
  0xab   : > { %2215 = vmatpush1.bf16.msra.mxu1 %v3248_v48  ;;  %v3344_v48 = vld [vmem:[%s4411_s1 + $0x380] ss:$8 sps:$4 sm:$0xff]  }
  0xac   : > { %2387 = vmatpush1.bf16.msra.mxu0 %v3251_v49  ;;  %2216 = vmatprep.subr.bf16.mxu1 %v3256_v50  ;;  %v3347_v49 = vld [vmem:[%s4411_s1 + $0x780] ss:$8 sps:$4 sm:$0xff]   ;;  %v3352_v50 = vld [vmem:[%s4411_s1 + $0x394] ss:$8 sps:$4 sm:$0xff]  }
  0xad   : > { %2388 = vmatprep.subr.bf16.mxu0 %v3259_v51  ;;  %v3355_v51 = vld [vmem:[%s4411_s1 + $0x794] ss:$8 sps:$4 sm:$0xff]  }
  0xaf   : > { %2217 = vmatpush1.bf16.msra.mxu1 %v3254_v52  ;;  %v3350_v52 = vld [vmem:[%s4411_s1 + $0x390] ss:$8 sps:$4 sm:$0xff]  }
  0xb0   : > { %2389 = vmatpush1.bf16.msra.mxu0 %v3257_v53  ;;  %2218 = vmatprep.subr.bf16.mxu1 %v3262_v54  ;;  %v3353_v53 = vld [vmem:[%s4411_s1 + $0x790] ss:$8 sps:$4 sm:$0xff]   ;;  %v3358_v54 = vld [vmem:[%s4411_s1 + $0x3a4] ss:$8 sps:$4 sm:$0xff]  }
  0xb1   : > { %2390 = vmatprep.subr.bf16.mxu0 %v3265_v55  ;;  %v3361_v55 = vld [vmem:[%s4411_s1 + $0x7a4] ss:$8 sps:$4 sm:$0xff]  }
  0xb3   : > { %2219 = vmatpush1.bf16.msra.mxu1 %v3260_v56  ;;  %v3356_v56 = vld [vmem:[%s4411_s1 + $0x3a0] ss:$8 sps:$4 sm:$0xff]  }
  0xb4   : > { %2391 = vmatpush1.bf16.msra.mxu0 %v3263_v57  ;;  %2220 = vmatprep.subr.bf16.mxu1 %v3268_v58  ;;  %v3359_v57 = vld [vmem:[%s4411_s1 + $0x7a0] ss:$8 sps:$4 sm:$0xff]   ;;  %v3364_v58 = vld [vmem:[%s4411_s1 + $0x3b4] ss:$8 sps:$4 sm:$0xff]  }
  0xb5   : > { %2392 = vmatprep.subr.bf16.mxu0 %v3271_v59  ;;  %v3367_v59 = vld [vmem:[%s4411_s1 + $0x7b4] ss:$8 sps:$4 sm:$0xff]  }
  0xb7   : > { %2221 = vmatpush1.bf16.msra.mxu1 %v3266_v60  ;;  %v3362_v60 = vld [vmem:[%s4411_s1 + $0x3b0] ss:$8 sps:$4 sm:$0xff]  }
  0xb8   : > { %2393 = vmatpush1.bf16.msra.mxu0 %v3269_v61  ;;  %2222 = vmatprep.subr.bf16.mxu1 %v3274_v62  ;;  %v3365_v61 = vld [vmem:[%s4411_s1 + $0x7b0] ss:$8 sps:$4 sm:$0xff]   ;;  %v3370_v62 = vld [vmem:[%s4411_s1 + $0x3c4] ss:$8 sps:$4 sm:$0xff]  }
  0xb9   : > { %2394 = vmatprep.subr.bf16.mxu0 %v3277_v63  ;;  %v3373_v63 = vld [vmem:[%s4411_s1 + $0x7c4] ss:$8 sps:$4 sm:$0xff]  }
  0xbb   : > { %2223 = vmatpush1.bf16.msra.mxu1 %v3272_v0  ;;  %v3368_v0 = vld [vmem:[%s4411_s1 + $0x3c0] ss:$8 sps:$4 sm:$0xff]  }
  0xbc   : > { %2395 = vmatpush1.bf16.msra.mxu0 %v3275_v1  ;;  %2224 = vmatprep.subr.bf16.mxu1 %v3280_v2  ;;  %v3371_v1 = vld [vmem:[%s4411_s1 + $0x7c0] ss:$8 sps:$4 sm:$0xff]   ;;  %v3376_v2 = vld [vmem:[%s4411_s1 + $0x3d4] ss:$8 sps:$4 sm:$0xff]  }
  0xbd   : > { %2396 = vmatprep.subr.bf16.mxu0 %v3283_v3  ;;  %v3379_v3 = vld [vmem:[%s4411_s1 + $0x7d4] ss:$8 sps:$4 sm:$0xff]  }
  0xbf   : > { %2225 = vmatpush1.bf16.msra.mxu1 %v3278_v4  ;;  %v3374_v4 = vld [vmem:[%s4411_s1 + $0x3d0] ss:$8 sps:$4 sm:$0xff]  }
  0xc0   : > { %2397 = vmatpush1.bf16.msra.mxu0 %v3281_v5  ;;  %2226 = vmatprep.subr.bf16.mxu1 %v3286_v6  ;;  %v3377_v5 = vld [vmem:[%s4411_s1 + $0x7d0] ss:$8 sps:$4 sm:$0xff]   ;;  %v3382_v6 = vld [vmem:[%s4411_s1 + $0x3e4] ss:$8 sps:$4 sm:$0xff]  }
  0xc1   : > { %2398 = vmatprep.subr.bf16.mxu0 %v3289_v7  ;;  %v3385_v7 = vld [vmem:[%s4411_s1 + $0x7e4] ss:$8 sps:$4 sm:$0xff]  }
  0xc3   : > { %2227 = vmatpush1.bf16.msra.mxu1 %v3284_v8  ;;  %v3380_v8 = vld [vmem:[%s4411_s1 + $0x3e0] ss:$8 sps:$4 sm:$0xff]  }
  0xc4   : > { %2399 = vmatpush1.bf16.msra.mxu0 %v3287_v9  ;;  %2239 = vmatprep.subr.bf16.mxu1 %v3295_v10  ;;  %v3383_v9 = vld [vmem:[%s4411_s1 + $0x7e0] ss:$8 sps:$4 sm:$0xff]   ;;  %v3388_v10 = vld [vmem:[%s4411_s1 + $0x3f4] ss:$8 sps:$4 sm:$0xff]  }
  0xc5   : > { %2411 = vmatprep.subr.bf16.mxu0 %v3301_v11  ;;  %v3391_v11 = vld [vmem:[%s4411_s1 + $0x7f4] ss:$8 sps:$4 sm:$0xff]  }
  0xc6   : > { %2229 = vmatmul.mubr.bf16.vlgmr.msra.gmra.mrb[0].mxu1 %v3290_v12  ;;  %v3386_v12 = vld [vmem:[%s4411_s1 + $0x3f0] ss:$8 sps:$4 sm:$0xff]  }
  0xc7   : > { %2401 = vmatmul.mubr.bf16.vlgmr.msra.gmra.mrb[0].mxu0 %v3296_v14  ;;  %2240 = vmatpush1.bf16.msra.mxu1 %v3293_v13  ;;  %v3389_v13 = vld [vmem:[%s4411_s1 + $0x7f0] ss:$8 sps:$4 sm:$0xff]   ;;  %v3400_v14 = vld [vmem:[%s4411_s1 + $0x804] ss:$8 sps:$4 sm:$0xff]  }
  0xc8   : > { %2412 = vmatpush1.bf16.msra.mxu0 %v3299_v15  ;;  %2241 = vmatprep.subr.bf16.mxu1 %v3304_v16  ;;  %v3392_v15 = vld [vmem:[%s3640_s21 + $0x18] ss:$72 sps:$4 sm:$0xff]  }
  0xc9   : > { %2413 = vmatprep.subr.bf16.mxu0 %v3307_v17  ;;  %2271 = vmatprep.mubr.bf16.mxu1 %v3394_v18  ;;  %v3395_v16 = vld [vmem:[%s3640_s21 + $0x38] ss:$72 sps:$4 sm:$0xff]   ;;  %v3448_v18 = vld [vmem:[%s3640_s21 + $0x44] ss:$72 sps:$4 sm:$0xff]  }
  0xca   : > { %2443 = vmatprep.mubr.bf16.mxu0 %v3397_v19  ;;  %v3398_v17 = vld [vmem:[%s4411_s1 + $0x800] ss:$8 sps:$4 sm:$0xff]   ;;  %v3403_v19 = vld [vmem:[%s4411_s1 + $0x814] ss:$8 sps:$4 sm:$0xff]  }
  0xcb   : > { %2242 = vmatpush1.bf16.msra.mxu1 %v3302_v20  ;;  %v3401_v20 = vld [vmem:[%s4411_s1 + $0x810] ss:$8 sps:$4 sm:$0xff]  }
  0xcc   : > { %2414 = vmatpush1.bf16.msra.mxu0 %v3305_v21  ;;  %2243 = vmatprep.subr.bf16.mxu1 %v3310_v22  ;;  %v3406_v21 = vld [vmem:[%s4411_s1 + $0x824] ss:$8 sps:$4 sm:$0xff]   ;;  %v3404_v22 = vld [vmem:[%s4411_s1 + $0x820] ss:$8 sps:$4 sm:$0xff]  }
  0xcd   : > { %2415 = vmatprep.subr.bf16.mxu0 %v3313_v23  ;;  %v3409_v23 = vld [vmem:[%s4411_s1 + $0x834] ss:$8 sps:$4 sm:$0xff]  }
  0xcf   : > { %2244 = vmatpush1.bf16.msra.mxu1 %v3308_v24  ;;  %v3407_v24 = vld [vmem:[%s4411_s1 + $0x830] ss:$8 sps:$4 sm:$0xff]  }
  0xd0   : > { %2416 = vmatpush1.bf16.msra.mxu0 %v3311_v25  ;;  %2245 = vmatprep.subr.bf16.mxu1 %v3316_v26  ;;  %v3412_v25 = vld [vmem:[%s4411_s1 + $0x844] ss:$8 sps:$4 sm:$0xff]   ;;  %v3410_v26 = vld [vmem:[%s4411_s1 + $0x840] ss:$8 sps:$4 sm:$0xff]  }
  0xd1   : > { %2417 = vmatprep.subr.bf16.mxu0 %v3319_v27  ;;  %v3415_v27 = vld [vmem:[%s4411_s1 + $0x854] ss:$8 sps:$4 sm:$0xff]  }
  0xd3   : > { %2246 = vmatpush1.bf16.msra.mxu1 %v3314_v28  ;;  %v3413_v28 = vld [vmem:[%s4411_s1 + $0x850] ss:$8 sps:$4 sm:$0xff]  }
  0xd4   : > { %2418 = vmatpush1.bf16.msra.mxu0 %v3317_v29  ;;  %2247 = vmatprep.subr.bf16.mxu1 %v3322_v30  ;;  %v3418_v29 = vld [vmem:[%s4411_s1 + $0x864] ss:$8 sps:$4 sm:$0xff]   ;;  %v3416_v30 = vld [vmem:[%s4411_s1 + $0x860] ss:$8 sps:$4 sm:$0xff]  }
  0xd5   : > { %2419 = vmatprep.subr.bf16.mxu0 %v3325_v31  ;;  %v3421_v31 = vld [vmem:[%s4411_s1 + $0x874] ss:$8 sps:$4 sm:$0xff]  }
  0xd7   : > { %2248 = vmatpush1.bf16.msra.mxu1 %v3320_v32  ;;  %v3419_v32 = vld [vmem:[%s4411_s1 + $0x870] ss:$8 sps:$4 sm:$0xff]  }
  0xd8   : > { %2420 = vmatpush1.bf16.msra.mxu0 %v3323_v33  ;;  %2249 = vmatprep.subr.bf16.mxu1 %v3328_v34  ;;  %v3424_v33 = vld [vmem:[%s4411_s1 + $0x884] ss:$8 sps:$4 sm:$0xff]   ;;  %v3422_v34 = vld [vmem:[%s4411_s1 + $0x880] ss:$8 sps:$4 sm:$0xff]  }
  0xd9   : > { %2421 = vmatprep.subr.bf16.mxu0 %v3331_v35  ;;  %v3427_v35 = vld [vmem:[%s4411_s1 + $0x894] ss:$8 sps:$4 sm:$0xff]  }
  0xdb   : > { %2250 = vmatpush1.bf16.msra.mxu1 %v3326_v36  ;;  %v3425_v36 = vld [vmem:[%s4411_s1 + $0x890] ss:$8 sps:$4 sm:$0xff]  }
  0xdc   : > { %2422 = vmatpush1.bf16.msra.mxu0 %v3329_v37  ;;  %2251 = vmatprep.subr.bf16.mxu1 %v3334_v38  ;;  %v3430_v37 = vld [vmem:[%s4411_s1 + $0x8a4] ss:$8 sps:$4 sm:$0xff]   ;;  %v3428_v38 = vld [vmem:[%s4411_s1 + $0x8a0] ss:$8 sps:$4 sm:$0xff]  }
  0xdd   : > { %2423 = vmatprep.subr.bf16.mxu0 %v3337_v39  ;;  %v3433_v39 = vld [vmem:[%s4411_s1 + $0x8b4] ss:$8 sps:$4 sm:$0xff]  }
  0xdf   : > { %2252 = vmatpush1.bf16.msra.mxu1 %v3332_v40  ;;  %v3431_v40 = vld [vmem:[%s4411_s1 + $0x8b0] ss:$8 sps:$4 sm:$0xff]  }
  0xe0   : > { %2424 = vmatpush1.bf16.msra.mxu0 %v3335_v41  ;;  %2253 = vmatprep.subr.bf16.mxu1 %v3340_v42  ;;  %v3436_v41 = vld [vmem:[%s4411_s1 + $0x8c4] ss:$8 sps:$4 sm:$0xff]   ;;  %v3434_v42 = vld [vmem:[%s4411_s1 + $0x8c0] ss:$8 sps:$4 sm:$0xff]  }
  0xe1   : > { %2425 = vmatprep.subr.bf16.mxu0 %v3343_v43  ;;  %v3439_v43 = vld [vmem:[%s4411_s1 + $0x8d4] ss:$8 sps:$4 sm:$0xff]  }
  0xe3   : > { %2254 = vmatpush1.bf16.msra.mxu1 %v3338_v44  ;;  %v3437_v44 = vld [vmem:[%s4411_s1 + $0x8d0] ss:$8 sps:$4 sm:$0xff]  }
  0xe4   : > { %2426 = vmatpush1.bf16.msra.mxu0 %v3341_v45  ;;  %2255 = vmatprep.subr.bf16.mxu1 %v3346_v46  ;;  %v3442_v45 = vld [vmem:[%s4411_s1 + $0x8e4] ss:$8 sps:$4 sm:$0xff]   ;;  %v3440_v46 = vld [vmem:[%s4411_s1 + $0x8e0] ss:$8 sps:$4 sm:$0xff]  }
  0xe5   : > { %2427 = vmatprep.subr.bf16.mxu0 %v3349_v47  ;;  %v3445_v47 = vld [vmem:[%s4411_s1 + $0x8f4] ss:$8 sps:$4 sm:$0xff]  }
  0xe7   : > { %2256 = vmatpush1.bf16.msra.mxu1 %v3344_v48  ;;  %v3443_v48 = vld [vmem:[%s4411_s1 + $0x8f0] ss:$8 sps:$4 sm:$0xff]  }
  0xe8   : > { %2428 = vmatpush1.bf16.msra.mxu0 %v3347_v49  ;;  %2257 = vmatprep.subr.bf16.mxu1 %v3352_v50  ;;  %v3446_v49 = vld [vmem:[%s3640_s21 + $0x40] ss:$72 sps:$4 sm:$0xff]   ;;  %s252_s21 = scalar_lea.vmem %s4413_s3, %s2941_s24 }
  0xe9   : > { %2429 = vmatprep.subr.bf16.mxu0 %v3355_v51 }
  0xeb   : > { %2258 = vmatpush1.bf16.msra.mxu1 %v3350_v52 }
  0xec   : > { %2430 = vmatpush1.bf16.msra.mxu0 %v3353_v53  ;;  %2259 = vmatprep.subr.bf16.mxu1 %v3358_v54  ;;  %v570_v54 = vlaneseq }
  0xed   : > { %2431 = vmatprep.subr.bf16.mxu0 %v3361_v55 }
  0xee   : > { %v571_v55 = vshrl.u32 %v570_v54, 7 }
  0xef   : > { %2260 = vmatpush1.bf16.msra.mxu1 %v3356_v56 }
  0xf0   : > { %2432 = vmatpush1.bf16.msra.mxu0 %v3359_v57  ;;  %2261 = vmatprep.subr.bf16.mxu1 %v3364_v58  ;;  %v572_v56 = vsub.s32 0, %v571_v55  ;;  %v568_v57 = vld [vmem:[%s4412_s2] sm:$0x3]  ;;  %v576_v58 = vsub.s32 1, %v571_v55 }
  0xf1   : > { %2433 = vmatprep.subr.bf16.mxu0 %v3367_v59 }
  0xf2   : > { %v573_v59 = vrot.slane %v568_v57, %v572_v56 }
  0xf3   : > { %2262 = vmatpush1.bf16.msra.mxu1 %v3362_v60  ;;  %v577_v60 = vrot.slane %v568_v57, %v576_v58 }
  0xf4   : > { %2434 = vmatpush1.bf16.msra.mxu0 %v3365_v61  ;;  %2263 = vmatprep.subr.bf16.mxu1 %v3370_v62  ;;  %v2497_v61 = vld [vmem:[%s252_s21] sm:$0xff]  ;;  %v2498_v62 = vld [vmem:[%s252_s21 + $0x8] sm:$0xff] }
  0xf5   : > { %2435 = vmatprep.subr.bf16.mxu0 %v3373_v63 }
  0xf7   : > { %2264 = vmatpush1.bf16.msra.mxu1 %v3368_v0  ;;  %v2499_v0 = vunpack.c.l.bf16 %v2497_v61 }
  0xf8   : > { %2436 = vmatpush1.bf16.msra.mxu0 %v3371_v1  ;;  %2265 = vmatprep.subr.bf16.mxu1 %v3376_v2  ;;  %v2511_v1 = vld [vmem:[%s256_s7] sm:$0x3] }
  0xf9   : > { %2437 = vmatprep.subr.bf16.mxu0 %v3379_v3 }
  0xfb   : > { %2266 = vmatpush1.bf16.msra.mxu1 %v3374_v4  ;;  %v2500_v4 = vunpack.c.h.bf16 %v2497_v61 }
  0xfc   : > { %2438 = vmatpush1.bf16.msra.mxu0 %v3377_v5  ;;  %2267 = vmatprep.subr.bf16.mxu1 %v3382_v6 }
  0xfd   : > { %2439 = vmatprep.subr.bf16.mxu0 %v3385_v7 }
  0xff   : > { %2268 = vmatpush1.bf16.msra.mxu1 %v3380_v8  ;;  %v2501_v8 = vunpack.c.l.bf16 %v2498_v62 }
 0x100   : > { %2440 = vmatpush1.bf16.msra.mxu0 %v3383_v9  ;;  %2269 = vmatprep.subr.bf16.mxu1 %v3388_v10 }
 0x101   : > { %2441 = vmatprep.subr.bf16.mxu0 %v3391_v11 }
 0x103   : > { %2270 = vmatpush1.bf16.msra.mxu1 %v3386_v12  ;;  %v2502_v12 = vunpack.c.h.bf16 %v2498_v62 }
 0x104   : > { %2442 = vmatpush1.bf16.msra.mxu0 %v3389_v13  ;;  %v2516_v13 = vrot.slane %v2511_v1, %v572_v56 }
 0x105   : > { %2454 = vmatprep.subr.bf16.mxu0 %v3400_v14 }
 0x106   : > { %2272 = vmatmul.mubr.bf16.vlgmr.msra.gmra.mrb[0].mxu1 %v3392_v15 }
 0x107   : > { %2444 = vmatmul.mubr.bf16.vlgmr.msra.gmra.mrb[0].mxu0 %v3395_v16 }
 0x108   : > { %2455 = vmatpush1.bf16.msra.mxu0 %v3398_v17  ;;  %2486 = vmatprep.mubr.bf16.mxu0 %v3448_v18  ;;  %v2520_v17 = vrot.slane %v2511_v1, %v576_v58 }
 0x109   : > { %2456 = vmatprep.subr.bf16.mxu0 %v3403_v19 }
 0x10c   : > { %2457 = vmatpush1.bf16.msra.mxu0 %v3401_v20 }
 0x10d   : > { %2458 = vmatprep.subr.bf16.mxu0 %v3406_v21 }
 0x110   : > { %2459 = vmatpush1.bf16.msra.mxu0 %v3404_v22 }
 0x111   : > { %2460 = vmatprep.subr.bf16.mxu0 %v3409_v23 }
 0x114   : > { %2461 = vmatpush1.bf16.msra.mxu0 %v3407_v24 }
 0x115   : > { %2462 = vmatprep.subr.bf16.mxu0 %v3412_v25 }
 0x118   : > { %2463 = vmatpush1.bf16.msra.mxu0 %v3410_v26 }
 0x119   : > { %2464 = vmatprep.subr.bf16.mxu0 %v3415_v27 }
 0x11c   : > { %2465 = vmatpush1.bf16.msra.mxu0 %v3413_v28 }
 0x11d   : > { %2466 = vmatprep.subr.bf16.mxu0 %v3418_v29 }
 0x120   : > { %2467 = vmatpush1.bf16.msra.mxu0 %v3416_v30 }
 0x121   : > { %2468 = vmatprep.subr.bf16.mxu0 %v3421_v31 }
 0x124   : > { %2469 = vmatpush1.bf16.msra.mxu0 %v3419_v32 }
 0x125   : > { %2470 = vmatprep.subr.bf16.mxu0 %v3424_v33 }
 0x128   : > { %2471 = vmatpush1.bf16.msra.mxu0 %v3422_v34 }
 0x129   : > { %2472 = vmatprep.subr.bf16.mxu0 %v3427_v35 }
 0x12c   : > { %2473 = vmatpush1.bf16.msra.mxu0 %v3425_v36 }
 0x12d   : > { %2474 = vmatprep.subr.bf16.mxu0 %v3430_v37 }
 0x130   : > { %2475 = vmatpush1.bf16.msra.mxu0 %v3428_v38 }
 0x131   : > { %2476 = vmatprep.subr.bf16.mxu0 %v3433_v39 }
 0x134   : > { %2477 = vmatpush1.bf16.msra.mxu0 %v3431_v40 }
 0x135   : > { %2478 = vmatprep.subr.bf16.mxu0 %v3436_v41 }
 0x138   : > { %2479 = vmatpush1.bf16.msra.mxu0 %v3434_v42 }
 0x139   : > { %2480 = vmatprep.subr.bf16.mxu0 %v3439_v43 }
 0x13c   : > { %2481 = vmatpush1.bf16.msra.mxu0 %v3437_v44 }
 0x13d   : > { %2482 = vmatprep.subr.bf16.mxu0 %v3442_v45 }
 0x140   : > { %2483 = vmatpush1.bf16.msra.mxu0 %v3440_v46 }
 0x141   : > { %2484 = vmatprep.subr.bf16.mxu0 %v3445_v47 }
 0x144   : > { %2485 = vmatpush1.bf16.msra.mxu0 %v3443_v48 }
 0x147   : > { %2487 = vmatmul.mubr.bf16.vlgmr.msra.gmra.mrb[0].mxu0 %v3446_v49 }
 0x1d9   : > { %v2273_v50 = vpop.f32.mrb[0].mxu1 }
 0x1da   : > { %v2275_v51 = vpop.f32.mrb[1].mxu1  ;;  %v2945_v63 = vadd.f32 %v2273_v50, %v573_v59 }
 0x1db   : > { %v2277_v52 = vpop.f32.mrb[2].mxu1  ;;  %v2947_v2 = vadd.f32 %v2275_v51, %v577_v60 }
 0x1dc   : > { %v2279_v53 = vpop.f32.mrb[3].mxu1  ;;  %v2949_v5 = vadd.f32 %v2277_v52, %v573_v59 }
 0x1dd   : > { %v2951_v9 = vadd.f32 %v2279_v53, %v577_v60 }
 0x21a   : > { %v2488_v3 = vpop.f32.mrb[0].mxu0 }
 0x21b   : > { %v2946_v6 = vadd.f32 %v2945_v63, %v2488_v3  ;;  %v2490_v7 = vpop.f32.mrb[1].mxu0 }
 0x21c   : > { %v2948_v10 = vadd.f32 %v2947_v2, %v2490_v7  ;;  %v2492_v11 = vpop.f32.mrb[2].mxu0 }
 0x21d   : > { %v2503_v14 = vadd.f32 %v2946_v6, %v2499_v0  ;;  %v2950_v15 = vadd.f32 %v2949_v5, %v2492_v11  ;;  %v2494_v16 = vpop.f32.mrb[3].mxu0 }
 0x21e   : > { %v2504_v18 = vadd.f32 %v2948_v10, %v2500_v4  ;;  %v2952_v19 = vadd.f32 %v2951_v9, %v2494_v16 }
 0x21f   : > { %v2507_v20 = vmax.f32 %v2503_v14, 0.0  ;;  %v2505_v21 = vadd.f32 %v2950_v15, %v2501_v8 }
 0x220   : > { %v2508_v22 = vmax.f32 %v2504_v18, 0.0  ;;  %v2506_v23 = vadd.f32 %v2952_v19, %v2502_v12 }
 0x221   : > { %v2523_v24 = vmul.f32 %v2516_v13, %v2507_v20  ;;  %v2509_v25 = vmax.f32 %v2505_v21, 0.0 }
 0x222   : > { %v2524_v26 = vmul.f32 %v2520_v17, %v2508_v22  ;;  %v2510_v27 = vmax.f32 %v2506_v23, 0.0 }
 0x223   : > { %v2525_v28 = vmul.f32 %v2516_v13, %v2509_v25 }
 0x224   : > { %v2943_v29 = vpack.c.bf16 %v2524_v26, %v2523_v24  ;;  %v2526_v30 = vmul.f32 %v2520_v17, %v2510_v27 }
 0x226   : > { %2539 = vst [vmem:[%s261_s10] sm:$0xff] %v2943_v29  ;;  %v2944_v31 = vpack.c.bf16 %v2526_v30, %v2525_v28 }
 0x228   : > { %2540 = vst [vmem:[%s261_s10 + $0x8] sm:$0xff] %v2944_v31 }
 0x229 PF: > { %s15_s18 = sadd.s32 1, %s3455_s18  }
 0x22a   : > { %p12_p4 = scmp.ge.s32.totalorder %s15_s18, 4  }
 0x22c   :  { %14 = sbr.rel (!%p12_p4) target bundleno = 1 (0x1), region = 76 }

// kernel: encoder_forward.18
= control target key start
LH: loop header
LB: loop body
LE: loop exit
PB: predicated region body
PF: predicated region fallthrough
CT: control target
= control target key end

     0   :  { %s629_s12 = smov 0   ;;  %s752_s0 = inlined_call_operand.vmem [shape: bf16[2,4,256], index: 0, kind: input, shape index: {}]   ;;  %s753_s1 = inlined_call_operand.vmem [shape: bf16[256,256], index: 1, kind: input, shape index: {}]   ;;  %s754_s2 = inlined_call_operand.vmem [shape: f32[1,256], index: 2, kind: input, shape index: {}]   ;;  %s755_s3 = inlined_call_operand.vmem [shape: bf16[2,4,256], index: 3, kind: output, shape index: {}]  }
   0x1 LB: > { %s497_s13 = sadd.s32 4294967295, %s607_s12   ;;  %p501_p0 = scmp.ge.s32.totalorder %s607_s12, 1  ;;  %s607_s12 = sphi %s629_s12, %s13_s12  }
   0x2   : > { %p137_p1 = scmp.lt.s32.totalorder %s607_s12, 3 }
   0x4   : > { %p138_p2 = pnand %p501_p0, %p137_p1 }
   0x5   : > { %v553_v0 = vld [vmem:[%s753_s1 + $0x4] ss:$8 sps:$4 sm:$0xff] (!%p138_p2)   ;;  %v555_v1 = vld [vmem:[%s753_s1] ss:$8 sps:$4 sm:$0xff] (!%p138_p2)   ;;  %v556_v2 = vld [vmem:[%s753_s1 + $0x14] ss:$8 sps:$4 sm:$0xff] (!%p138_p2)   ;;  %v206_v34 = vlaneseq (!%p138_p2) }
   0x6   : > { %141 = sbr.rel (%p138_p2) target bundleno = 288 (0x120), region = 32  ;;  %387 = vmatprep.subr.bf16.mxu0 (!%p138_p2), %v553_v0  ;;  %v558_v3 = vld [vmem:[%s753_s1 + $0x10] ss:$8 sps:$4 sm:$0xff] (!%p138_p2)   ;;  %v559_v4 = vld [vmem:[%s753_s1 + $0x24] ss:$8 sps:$4 sm:$0xff] (!%p138_p2)   ;;  %p161_p3 = scmp.lt.s32.totalorder (!%p138_p2), %s497_s13, 1 }
   0x7   : > { %388 = vmatpush1.bf16.msra.mxu0 (!%p138_p2), %v555_v1  ;;  %v561_v5 = vld [vmem:[%s753_s1 + $0x20] ss:$8 sps:$4 sm:$0xff] (!%p138_p2)   ;;  %v562_v6 = vld [vmem:[%s753_s1 + $0x34] ss:$8 sps:$4 sm:$0xff] (!%p138_p2)   ;;  %v564_v7 = vld [vmem:[%s753_s1 + $0x30] ss:$8 sps:$4 sm:$0xff] (!%p138_p2)  }
   0x8   : > { %389 = vmatprep.subr.bf16.mxu0 (!%p138_p2), %v556_v2  ;;  %v565_v8 = vld [vmem:[%s753_s1 + $0x44] ss:$8 sps:$4 sm:$0xff] (!%p138_p2)   ;;  %v567_v9 = vld [vmem:[%s753_s1 + $0x40] ss:$8 sps:$4 sm:$0xff] (!%p138_p2)   ;;  %v568_v10 = vld [vmem:[%s753_s1 + $0x54] ss:$8 sps:$4 sm:$0xff] (!%p138_p2)  }
   0x9   : > { %v570_v11 = vld [vmem:[%s753_s1 + $0x50] ss:$8 sps:$4 sm:$0xff] (!%p138_p2)   ;;  %v571_v12 = vld [vmem:[%s753_s1 + $0x64] ss:$8 sps:$4 sm:$0xff] (!%p138_p2)   ;;  %v573_v15 = vld [vmem:[%s753_s1 + $0x60] ss:$8 sps:$4 sm:$0xff] (!%p138_p2)  }
   0xa   : > { %v574_v16 = vld [vmem:[%s753_s1 + $0x74] ss:$8 sps:$4 sm:$0xff] (!%p138_p2)   ;;  %v576_v17 = vld [vmem:[%s753_s1 + $0x70] ss:$8 sps:$4 sm:$0xff] (!%p138_p2)   ;;  %v577_v18 = vld [vmem:[%s753_s1 + $0x84] ss:$8 sps:$4 sm:$0xff] (!%p138_p2)  }
   0xb   : > { %390 = vmatpush1.bf16.msra.mxu0 (!%p138_p2), %v558_v3  ;;  %v579_v19 = vld [vmem:[%s753_s1 + $0x80] ss:$8 sps:$4 sm:$0xff] (!%p138_p2)   ;;  %v580_v20 = vld [vmem:[%s753_s1 + $0x94] ss:$8 sps:$4 sm:$0xff] (!%p138_p2)   ;;  %v582_v21 = vld [vmem:[%s753_s1 + $0x90] ss:$8 sps:$4 sm:$0xff] (!%p138_p2)  }
   0xc   : > { %391 = vmatprep.subr.bf16.mxu0 (!%p138_p2), %v559_v4  ;;  %v583_v22 = vld [vmem:[%s753_s1 + $0xa4] ss:$8 sps:$4 sm:$0xff] (!%p138_p2)   ;;  %v585_v23 = vld [vmem:[%s753_s1 + $0xa0] ss:$8 sps:$4 sm:$0xff] (!%p138_p2)   ;;  %v586_v24 = vld [vmem:[%s753_s1 + $0xb4] ss:$8 sps:$4 sm:$0xff] (!%p138_p2)  }
   0xd   : > { %s757_s13 = smov (!%p161_p3, %s497_s13), 1  ;;  %v588_v25 = vld [vmem:[%s753_s1 + $0xb0] ss:$8 sps:$4 sm:$0xff]   ;;  %v589_v26 = vld [vmem:[%s753_s1 + $0xc4] ss:$8 sps:$4 sm:$0xff]   ;;  %v207_v35 = vshrl.u32 %v206_v34, 7 }
   0xe   : > { %s543_s7 = sshll.u32 %s757_s13, 2  ;;  %v591_v27 = vld [vmem:[%s753_s1 + $0xc0] ss:$8 sps:$4 sm:$0xff]   ;;  %v592_v28 = vld [vmem:[%s753_s1 + $0xd4] ss:$8 sps:$4 sm:$0xff]  }
   0xf   : > { %392 = vmatpush1.bf16.msra.mxu0 %v561_v5  ;;  %s165_s14 = scalar_lea.vmem %s752_s0, %s543_s7  ;;  %v594_v29 = vld [vmem:[%s753_s1 + $0xd0] ss:$8 sps:$4 sm:$0xff]   ;;  %v595_v30 = vld [vmem:[%s753_s1 + $0xe4] ss:$8 sps:$4 sm:$0xff]   ;;  %v597_v31 = vld [vmem:[%s753_s1 + $0xe0] ss:$8 sps:$4 sm:$0xff]   ;;  %s170_s11 = scalar_lea.vmem %s755_s3, %s543_s7 }
  0x10   : > { %393 = vmatprep.subr.bf16.mxu0 %v562_v6  ;;  %v506_v13 = vld.sshfl [vmem:[%s165_s14] sm:$0x33 pattern:$0x76325410]  ;;  %v598_v32 = vld [vmem:[%s753_s1 + $0xf4] ss:$8 sps:$4 sm:$0xff]  }
  0x11   : > { %v224_v14 = vcombine.high %v506_v13, %v506_v13  ;;  %v600_v33 = vld [vmem:[%s753_s1 + $0xf0] ss:$8 sps:$4 sm:$0xff]   ;;  %v208_v36 = vsub.s32 0, %v207_v35  ;;  %v204_v37 = vld [vmem:[%s754_s2] sm:$0x3]  ;;  %v212_v38 = vsub.s32 1, %v207_v35 }
  0x13   : > { %394 = vmatpush1.bf16.msra.mxu0 %v564_v7  ;;  %419 = vmatprep.mubr.bf16.mxu0 %v224_v14  ;;  %v209_v39 = vrot.slane %v204_v37, %v208_v36  ;;  %v213_v40 = vrot.slane %v204_v37, %v212_v38 }
  0x14   : > { %395 = vmatprep.subr.bf16.mxu0 %v565_v8 }
  0x17   : > { %396 = vmatpush1.bf16.msra.mxu0 %v567_v9 }
  0x18   : > { %397 = vmatprep.subr.bf16.mxu0 %v568_v10 }
  0x1b   : > { %398 = vmatpush1.bf16.msra.mxu0 %v570_v11 }
  0x1c   : > { %399 = vmatprep.subr.bf16.mxu0 %v571_v12 }
  0x1f   : > { %400 = vmatpush1.bf16.msra.mxu0 %v573_v15 }
  0x20   : > { %401 = vmatprep.subr.bf16.mxu0 %v574_v16 }
  0x23   : > { %402 = vmatpush1.bf16.msra.mxu0 %v576_v17 }
  0x24   : > { %403 = vmatprep.subr.bf16.mxu0 %v577_v18 }
  0x27   : > { %404 = vmatpush1.bf16.msra.mxu0 %v579_v19 }
  0x28   : > { %405 = vmatprep.subr.bf16.mxu0 %v580_v20 }
  0x2b   : > { %406 = vmatpush1.bf16.msra.mxu0 %v582_v21 }
  0x2c   : > { %407 = vmatprep.subr.bf16.mxu0 %v583_v22 }
  0x2f   : > { %408 = vmatpush1.bf16.msra.mxu0 %v585_v23 }
  0x30   : > { %409 = vmatprep.subr.bf16.mxu0 %v586_v24 }
  0x33   : > { %410 = vmatpush1.bf16.msra.mxu0 %v588_v25 }
  0x34   : > { %411 = vmatprep.subr.bf16.mxu0 %v589_v26 }
  0x37   : > { %412 = vmatpush1.bf16.msra.mxu0 %v591_v27 }
  0x38   : > { %413 = vmatprep.subr.bf16.mxu0 %v592_v28 }
  0x3b   : > { %414 = vmatpush1.bf16.msra.mxu0 %v594_v29 }
  0x3c   : > { %415 = vmatprep.subr.bf16.mxu0 %v595_v30 }
  0x3f   : > { %416 = vmatpush1.bf16.msra.mxu0 %v597_v31 }
  0x40   : > { %417 = vmatprep.subr.bf16.mxu0 %v598_v32 }
  0x43   : > { %418 = vmatpush1.bf16.msra.mxu0 %v600_v33 }
  0x46   : > { %420 = vmatmul.mubr.bf16.vlgmr.msra.gmra.mrb[0].mxu0 %v506_v13 }
 0x119   : > { %v421_v41 = vpop.f32.mrb[0].mxu0 }
 0x11a   : > { %v422_v42 = vadd.f32 %v421_v41, %v209_v39  ;;  %v423_v43 = vpop.f32.mrb[1].mxu0 }
 0x11b   : > { %v424_v44 = vadd.f32 %v423_v43, %v213_v40  ;;  %v425_v45 = vpop.f32.mrb[2].mxu0 }
 0x11c   : > { %v426_v46 = vpop.f32.mrb[3].mxu0 }
 0x11d   : > { %v539_v47 = vpack.c.bf16 %v424_v44, %v422_v42 }
 0x11f   : > { %540 = vst.sshfl [vmem:[%s170_s11] sm:$0x33 pattern:$0x76325410] %v539_v47 }
 0x120 PF: > { %s13_s12 = sadd.s32 1, %s607_s12  }
 0x121   : > { %p10_p4 = scmp.ge.s32.totalorder %s13_s12, 4  }
 0x123   :  { %12 = sbr.rel (!%p10_p4) target bundleno = 1 (0x1), region = 62 }

// kernel: encoder_forward.19
= control target key start
LH: loop header
LB: loop body
LE: loop exit
PB: predicated region body
PF: predicated region fallthrough
CT: control target
= control target key end

     0   :  { %s3264_s12 = smov 0   ;;  %s4223_s0 = inlined_call_operand.vmem [shape: bf16[2,4,2304], index: 0, kind: input, shape index: {}]   ;;  %s4224_s1 = inlined_call_operand.vmem [shape: bf16[2304,256], index: 1, kind: input, shape index: {}]   ;;  %s4225_s2 = inlined_call_operand.vmem [shape: f32[1,256], index: 2, kind: input, shape index: {}]   ;;  %s4226_s3 = inlined_call_operand.vmem [shape: bf16[2,4,256], index: 3, kind: output, shape index: {}]  }
   0x1 LB: > { %s2455_s13 = sadd.s32 4294967295, %s3241_s12   ;;  %p2459_p0 = scmp.ge.s32.totalorder %s3241_s12, 1  ;;  %s3241_s12 = sphi %s3264_s12, %s13_s12  }
   0x2   : > { %p137_p1 = scmp.lt.s32.totalorder %s3241_s12, 3 }
   0x4   : > { %p138_p2 = pnand %p2459_p0, %p137_p1 }
   0x5   : > { %v2799_v0 = vld [vmem:[%s4224_s1 + $0x4] ss:$8 sps:$4 sm:$0xff] (!%p138_p2)   ;;  %v2803_v2 = vld [vmem:[%s4224_s1] ss:$8 sps:$4 sm:$0xff] (!%p138_p2)   ;;  %v2805_v4 = vld [vmem:[%s4224_s1 + $0x14] ss:$8 sps:$4 sm:$0xff] (!%p138_p2)   ;;  %v466_v36 = vlaneseq (!%p138_p2) }
   0x6   : > { %141 = sbr.rel (%p138_p2) target bundleno = 547 (0x223), region = 32  ;;  %v2801_v1 = vld [vmem:[%s4224_s1 + $0x404] ss:$8 sps:$4 sm:$0xff] (!%p138_p2)   ;;  %2015 = vmatprep.subr.bf16.mxu1 (!%p138_p2), %v2799_v0  ;;  %v2804_v3 = vld [vmem:[%s4224_s1 + $0x400] ss:$8 sps:$4 sm:$0xff] (!%p138_p2)   ;;  %p161_p3 = scmp.lt.s32.totalorder (!%p138_p2), %s2455_s13, 1 }
   0x7   : > { %2179 = vmatprep.subr.bf16.mxu0 (!%p138_p2), %v2801_v1  ;;  %2016 = vmatpush1.bf16.msra.mxu1 (!%p138_p2), %v2803_v2  ;;  %v2807_v5 = vld [vmem:[%s4224_s1 + $0x414] ss:$8 sps:$4 sm:$0xff] (!%p138_p2)   ;;  %v2809_v6 = vld [vmem:[%s4224_s1 + $0x10] ss:$8 sps:$4 sm:$0xff] (!%p138_p2)   ;;  %v2811_v8 = vld [vmem:[%s4224_s1 + $0x24] ss:$8 sps:$4 sm:$0xff] (!%p138_p2)  }
   0x8   : > { %2180 = vmatpush1.bf16.msra.mxu0 (!%p138_p2), %v2804_v3  ;;  %2017 = vmatprep.subr.bf16.mxu1 (!%p138_p2), %v2805_v4  ;;  %v2810_v7 = vld [vmem:[%s4224_s1 + $0x410] ss:$8 sps:$4 sm:$0xff] (!%p138_p2)   ;;  %v2813_v9 = vld [vmem:[%s4224_s1 + $0x424] ss:$8 sps:$4 sm:$0xff] (!%p138_p2)   ;;  %v2815_v10 = vld [vmem:[%s4224_s1 + $0x20] ss:$8 sps:$4 sm:$0xff] (!%p138_p2)  }
   0x9   : > { %2181 = vmatprep.subr.bf16.mxu0 (!%p138_p2), %v2807_v5  ;;  %v2816_v11 = vld [vmem:[%s4224_s1 + $0x420] ss:$8 sps:$4 sm:$0xff] (!%p138_p2)   ;;  %v2817_v12 = vld [vmem:[%s4224_s1 + $0x34] ss:$8 sps:$4 sm:$0xff] (!%p138_p2)   ;;  %v2821_v14 = vld [vmem:[%s4224_s1 + $0x30] ss:$8 sps:$4 sm:$0xff] (!%p138_p2)  }
   0xa   : > { %v2819_v13 = vld [vmem:[%s4224_s1 + $0x434] ss:$8 sps:$4 sm:$0xff] (!%p138_p2)   ;;  %v2822_v15 = vld [vmem:[%s4224_s1 + $0x430] ss:$8 sps:$4 sm:$0xff] (!%p138_p2)   ;;  %v2823_v16 = vld [vmem:[%s4224_s1 + $0x44] ss:$8 sps:$4 sm:$0xff] (!%p138_p2)  }
   0xb   : > { %2018 = vmatpush1.bf16.msra.mxu1 (!%p138_p2), %v2809_v6  ;;  %v2825_v17 = vld [vmem:[%s4224_s1 + $0x444] ss:$8 sps:$4 sm:$0xff] (!%p138_p2)   ;;  %v2827_v18 = vld [vmem:[%s4224_s1 + $0x40] ss:$8 sps:$4 sm:$0xff] (!%p138_p2)   ;;  %v2829_v20 = vld [vmem:[%s4224_s1 + $0x54] ss:$8 sps:$4 sm:$0xff] (!%p138_p2)  }
   0xc   : > { %2182 = vmatpush1.bf16.msra.mxu0 (!%p138_p2), %v2810_v7  ;;  %2019 = vmatprep.subr.bf16.mxu1 (!%p138_p2), %v2811_v8  ;;  %v2828_v19 = vld [vmem:[%s4224_s1 + $0x440] ss:$8 sps:$4 sm:$0xff] (!%p138_p2)   ;;  %v2831_v21 = vld [vmem:[%s4224_s1 + $0x454] ss:$8 sps:$4 sm:$0xff] (!%p138_p2)   ;;  %v2833_v22 = vld [vmem:[%s4224_s1 + $0x50] ss:$8 sps:$4 sm:$0xff] (!%p138_p2)  }
   0xd   : > { %2183 = vmatprep.subr.bf16.mxu0 %v2813_v9  ;;  %v2834_v23 = vld [vmem:[%s4224_s1 + $0x450] ss:$8 sps:$4 sm:$0xff]   ;;  %v2835_v24 = vld [vmem:[%s4224_s1 + $0x64] ss:$8 sps:$4 sm:$0xff]   ;;  %v2839_v26 = vld [vmem:[%s4224_s1 + $0x60] ss:$8 sps:$4 sm:$0xff]  }
   0xe   : > { %v2837_v25 = vld [vmem:[%s4224_s1 + $0x464] ss:$8 sps:$4 sm:$0xff]   ;;  %v2840_v27 = vld [vmem:[%s4224_s1 + $0x460] ss:$8 sps:$4 sm:$0xff]   ;;  %v2841_v28 = vld [vmem:[%s4224_s1 + $0x74] ss:$8 sps:$4 sm:$0xff]  }
   0xf   : > { %2020 = vmatpush1.bf16.msra.mxu1 %v2815_v10  ;;  %v2843_v29 = vld [vmem:[%s4224_s1 + $0x474] ss:$8 sps:$4 sm:$0xff]   ;;  %v2845_v30 = vld [vmem:[%s4224_s1 + $0x70] ss:$8 sps:$4 sm:$0xff]   ;;  %v2847_v32 = vld [vmem:[%s4224_s1 + $0x84] ss:$8 sps:$4 sm:$0xff]  }
  0x10   : > { %2184 = vmatpush1.bf16.msra.mxu0 %v2816_v11  ;;  %2021 = vmatprep.subr.bf16.mxu1 %v2817_v12  ;;  %v2846_v31 = vld [vmem:[%s4224_s1 + $0x470] ss:$8 sps:$4 sm:$0xff]   ;;  %v2849_v33 = vld [vmem:[%s4224_s1 + $0x484] ss:$8 sps:$4 sm:$0xff]   ;;  %v2851_v34 = vld [vmem:[%s4224_s1 + $0x80] ss:$8 sps:$4 sm:$0xff]  }
  0x11   : > { %2185 = vmatprep.subr.bf16.mxu0 %v2819_v13  ;;  %v2852_v35 = vld [vmem:[%s4224_s1 + $0x480] ss:$8 sps:$4 sm:$0xff]   ;;  %s4228_s13 = smov (!%p161_p3, %s2455_s13), 1  ;;  %v3243_v37 = vmov 1983009808   ;;  %v3396_v42 = vshrl.u32 %v466_v36, 7 }
  0x12   : > { %v483_v38 = vunpack.c.l.s4 %v3243_v37  ;;  %v2853_v39 = vld [vmem:[%s4224_s1 + $0x94] ss:$8 sps:$4 sm:$0xff]   ;;  %v2857_v41 = vld [vmem:[%s4224_s1 + $0x90] ss:$8 sps:$4 sm:$0xff]   ;;  %s2789_s17 = smul.u32 36, %s4228_s13  ;;  %s2756_s11 = sshll.u32 %s4228_s13, 2 }
  0x13   : > { %2022 = vmatpush1.bf16.msra.mxu1 %v2821_v14  ;;  %v2855_v40 = vld [vmem:[%s4224_s1 + $0x494] ss:$8 sps:$4 sm:$0xff]   ;;  %v2858_v44 = vld [vmem:[%s4224_s1 + $0x490] ss:$8 sps:$4 sm:$0xff]   ;;  %v2859_v45 = vld [vmem:[%s4224_s1 + $0xa4] ss:$8 sps:$4 sm:$0xff]   ;;  %s170_s16 = scalar_lea.vmem %s4226_s3, %s2756_s11 }
  0x14   : > { %2186 = vmatpush1.bf16.msra.mxu0 %v2822_v15  ;;  %2023 = vmatprep.subr.bf16.mxu1 %v2823_v16  ;;  %v484_v43 = vunpack.c.0.s8 %v483_v38  ;;  %v2861_v46 = vld [vmem:[%s4224_s1 + $0x4a4] ss:$8 sps:$4 sm:$0xff]   ;;  %v2863_v47 = vld [vmem:[%s4224_s1 + $0xa0] ss:$8 sps:$4 sm:$0xff]   ;;  %s3416_s30 = scalar_lea.vmem %s4223_s0, %s2789_s17  ;;  %v2865_v50 = vld [vmem:[%s4224_s1 + $0xb4] ss:$8 sps:$4 sm:$0xff]  }
  0x15   : > { %2187 = vmatprep.subr.bf16.mxu0 %v2825_v17  ;;  %v2864_v48 = vld [vmem:[%s4224_s1 + $0x4a0] ss:$8 sps:$4 sm:$0xff]   ;;  %v2867_v51 = vld [vmem:[%s4224_s1 + $0x4b4] ss:$8 sps:$4 sm:$0xff]   ;;  %v2869_v53 = vld [vmem:[%s4224_s1 + $0xb0] ss:$8 sps:$4 sm:$0xff]  }
  0x16   : > { %v3419_v49 = vsub.s32 %v484_v43, %v3396_v42  ;;  %v171_v52 = vld [vmem:[%s3416_s30] sm:$0xff]  ;;  %v2870_v55 = vld [vmem:[%s4224_s1 + $0x4b0] ss:$8 sps:$4 sm:$0xff]   ;;  %v2877_v0 = vld [vmem:[%s4224_s1 + $0xd4] ss:$8 sps:$4 sm:$0xff]  }
  0x17   : > { %2024 = vmatpush1.bf16.msra.mxu1 %v2827_v18  ;;  %v173_v56 = vld [vmem:[%s3416_s30 + $0x10] sm:$0xff]  ;;  %v2871_v57 = vld [vmem:[%s4224_s1 + $0xc4] ss:$8 sps:$4 sm:$0xff]   ;;  %v2875_v62 = vld [vmem:[%s4224_s1 + $0xc0] ss:$8 sps:$4 sm:$0xff]   ;;  %v481_v10 = vcombine.high %v171_v52, %v171_v52 }
  0x18   : > { %2188 = vmatpush1.bf16.msra.mxu0 %v2828_v19  ;;  %2025 = vmatprep.subr.bf16.mxu1 %v2829_v20  ;;  %v488_v54 = vrot.slane %v171_v52, %v3419_v49  ;;  %v2873_v58 = vld [vmem:[%s4224_s1 + $0x4c4] ss:$8 sps:$4 sm:$0xff]   ;;  %v522_v60 = vrot.slane %v173_v56, %v3419_v49  ;;  %v2876_v63 = vld [vmem:[%s4224_s1 + $0x4c0] ss:$8 sps:$4 sm:$0xff]   ;;  %v2879_v1 = vld [vmem:[%s4224_s1 + $0x4d4] ss:$8 sps:$4 sm:$0xff]   ;;  %v515_v11 = vcombine.high %v173_v56, %v173_v56 }
  0x19   : > { %2189 = vmatprep.subr.bf16.mxu0 %v2831_v21  ;;  %v2881_v2 = vld [vmem:[%s4224_s1 + $0xd0] ss:$8 sps:$4 sm:$0xff]   ;;  %v2883_v4 = vld [vmem:[%s4224_s1 + $0xe4] ss:$8 sps:$4 sm:$0xff]   ;;  %v2887_v6 = vld [vmem:[%s4224_s1 + $0xe0] ss:$8 sps:$4 sm:$0xff]   ;;  %v3492_v16 = vrot.slane %v481_v10, %v3419_v49 }
  0x1a   : > { %v496_v59 = vcombine.high %v488_v54, %v488_v54  ;;  %v530_v61 = vcombine.high %v522_v60, %v522_v60  ;;  %v2882_v3 = vld [vmem:[%s4224_s1 + $0x4d0] ss:$8 sps:$4 sm:$0xff]   ;;  %v2885_v5 = vld [vmem:[%s4224_s1 + $0x4e4] ss:$8 sps:$4 sm:$0xff]   ;;  %v2888_v7 = vld [vmem:[%s4224_s1 + $0x4e0] ss:$8 sps:$4 sm:$0xff]   ;;  %v3495_v17 = vrot.slane %v515_v11, %v3419_v49 }
  0x1b   : > { %2026 = vmatpush1.bf16.msra.mxu1 %v2833_v22  ;;  %v2889_v8 = vld [vmem:[%s4224_s1 + $0xf4] ss:$8 sps:$4 sm:$0xff]   ;;  %v2893_v12 = vld [vmem:[%s4224_s1 + $0xf0] ss:$8 sps:$4 sm:$0xff]   ;;  %v2898_v14 = vld [vmem:[%s4224_s1 + $0x104] ss:$8 sps:$4 sm:$0xff]   ;;  %v497_v22 = vcombine.high %v3492_v16, %v3492_v16 }
  0x1c   : > { %2190 = vmatpush1.bf16.msra.mxu0 %v2834_v23  ;;  %2027 = vmatprep.subr.bf16.mxu1 %v2835_v24  ;;  %v2891_v9 = vld [vmem:[%s4224_s1 + $0x4f4] ss:$8 sps:$4 sm:$0xff]   ;;  %v2894_v13 = vld [vmem:[%s4224_s1 + $0x4f0] ss:$8 sps:$4 sm:$0xff]   ;;  %v2902_v15 = vld [vmem:[%s4224_s1 + $0x504] ss:$8 sps:$4 sm:$0xff]   ;;  %v531_v23 = vcombine.high %v3495_v17, %v3495_v17 }
  0x1d   : > { %2191 = vmatprep.subr.bf16.mxu0 %v2837_v25  ;;  %2047 = vmatprep.mubr.bf16.mxu1 %v496_v59  ;;  %v2896_v18 = vld [vmem:[%s4224_s1 + $0x100] ss:$8 sps:$4 sm:$0xff]   ;;  %v2905_v20 = vld [vmem:[%s4224_s1 + $0x114] ss:$8 sps:$4 sm:$0xff]   ;;  %v2903_v24 = vld [vmem:[%s4224_s1 + $0x110] ss:$8 sps:$4 sm:$0xff]  }
  0x1e   : > { %2211 = vmatprep.mubr.bf16.mxu0 %v530_v61  ;;  %v2900_v19 = vld [vmem:[%s4224_s1 + $0x500] ss:$8 sps:$4 sm:$0xff]   ;;  %v2908_v21 = vld [vmem:[%s4224_s1 + $0x514] ss:$8 sps:$4 sm:$0xff]   ;;  %v2906_v25 = vld [vmem:[%s4224_s1 + $0x510] ss:$8 sps:$4 sm:$0xff]  }
  0x1f   : > { %2028 = vmatpush1.bf16.msra.mxu1 %v2839_v26  ;;  %v2911_v26 = vld [vmem:[%s4224_s1 + $0x124] ss:$8 sps:$4 sm:$0xff]   ;;  %v2921_v36 = vld [vmem:[%s4224_s1 + $0x140] ss:$8 sps:$4 sm:$0xff]   ;;  %v2929_v38 = vld [vmem:[%s4224_s1 + $0x154] ss:$8 sps:$4 sm:$0xff]  }
  0x20   : > { %2192 = vmatpush1.bf16.msra.mxu0 %v2840_v27  ;;  %2029 = vmatprep.subr.bf16.mxu1 %v2841_v28  ;;  %v2914_v27 = vld [vmem:[%s4224_s1 + $0x524] ss:$8 sps:$4 sm:$0xff]   ;;  %v2909_v28 = vld [vmem:[%s4224_s1 + $0x120] ss:$8 sps:$4 sm:$0xff]   ;;  %v2953_v56 = vld [vmem:[%s4224_s1 + $0x194] ss:$8 sps:$4 sm:$0xff]  }
  0x21   : > { %2193 = vmatprep.subr.bf16.mxu0 %v2843_v29  ;;  %v2912_v29 = vld [vmem:[%s4224_s1 + $0x520] ss:$8 sps:$4 sm:$0xff]   ;;  %v2935_v43 = vld [vmem:[%s4224_s1 + $0x164] ss:$8 sps:$4 sm:$0xff]   ;;  %v2954_v59 = vld [vmem:[%s4224_s1 + $0x590] ss:$8 sps:$4 sm:$0xff]  }
  0x22   : > { %v2924_v37 = vld [vmem:[%s4224_s1 + $0x540] ss:$8 sps:$4 sm:$0xff]   ;;  %v2947_v52 = vld [vmem:[%s4224_s1 + $0x184] ss:$8 sps:$4 sm:$0xff]   ;;  %v2975_v10 = vld [vmem:[%s4224_s1 + $0x1d0] ss:$8 sps:$4 sm:$0xff]  }
  0x23   : > { %2030 = vmatpush1.bf16.msra.mxu1 %v2845_v30  ;;  %v2917_v30 = vld [vmem:[%s4224_s1 + $0x134] ss:$8 sps:$4 sm:$0xff]   ;;  %v2962_v61 = vld [vmem:[%s4224_s1 + $0x5a4] ss:$8 sps:$4 sm:$0xff]   ;;  %v2978_v11 = vld [vmem:[%s4224_s1 + $0x5d0] ss:$8 sps:$4 sm:$0xff]  }
  0x24   : > { %2194 = vmatpush1.bf16.msra.mxu0 %v2846_v31  ;;  %2031 = vmatprep.subr.bf16.mxu1 %v2847_v32  ;;  %v2920_v31 = vld [vmem:[%s4224_s1 + $0x534] ss:$8 sps:$4 sm:$0xff]   ;;  %v2915_v32 = vld [vmem:[%s4224_s1 + $0x130] ss:$8 sps:$4 sm:$0xff]  }
  0x25   : > { %2195 = vmatprep.subr.bf16.mxu0 %v2849_v33  ;;  %v2918_v33 = vld [vmem:[%s4224_s1 + $0x530] ss:$8 sps:$4 sm:$0xff]  }
  0x27   : > { %2032 = vmatpush1.bf16.msra.mxu1 %v2851_v34  ;;  %v2923_v34 = vld [vmem:[%s4224_s1 + $0x144] ss:$8 sps:$4 sm:$0xff]  }
  0x28   : > { %2196 = vmatpush1.bf16.msra.mxu0 %v2852_v35  ;;  %2033 = vmatprep.subr.bf16.mxu1 %v2853_v39  ;;  %v2926_v35 = vld [vmem:[%s4224_s1 + $0x544] ss:$8 sps:$4 sm:$0xff]   ;;  %v2932_v39 = vld [vmem:[%s4224_s1 + $0x554] ss:$8 sps:$4 sm:$0xff]  }
  0x29   : > { %2197 = vmatprep.subr.bf16.mxu0 %v2855_v40  ;;  %v2927_v40 = vld [vmem:[%s4224_s1 + $0x150] ss:$8 sps:$4 sm:$0xff]  }
  0x2b   : > { %2034 = vmatpush1.bf16.msra.mxu1 %v2857_v41  ;;  %v2930_v41 = vld [vmem:[%s4224_s1 + $0x550] ss:$8 sps:$4 sm:$0xff]  }
  0x2c   : > { %2198 = vmatpush1.bf16.msra.mxu0 %v2858_v44  ;;  %2035 = vmatprep.subr.bf16.mxu1 %v2859_v45  ;;  %v2938_v44 = vld [vmem:[%s4224_s1 + $0x564] ss:$8 sps:$4 sm:$0xff]   ;;  %v2933_v45 = vld [vmem:[%s4224_s1 + $0x160] ss:$8 sps:$4 sm:$0xff]  }
  0x2d   : > { %2199 = vmatprep.subr.bf16.mxu0 %v2861_v46  ;;  %v2936_v46 = vld [vmem:[%s4224_s1 + $0x560] ss:$8 sps:$4 sm:$0xff]  }
  0x2f   : > { %2036 = vmatpush1.bf16.msra.mxu1 %v2863_v47  ;;  %v2941_v47 = vld [vmem:[%s4224_s1 + $0x174] ss:$8 sps:$4 sm:$0xff]  }
  0x30   : > { %2200 = vmatpush1.bf16.msra.mxu0 %v2864_v48  ;;  %2037 = vmatprep.subr.bf16.mxu1 %v2865_v50  ;;  %v2944_v48 = vld [vmem:[%s4224_s1 + $0x574] ss:$8 sps:$4 sm:$0xff]   ;;  %v2939_v50 = vld [vmem:[%s4224_s1 + $0x170] ss:$8 sps:$4 sm:$0xff]  }
  0x31   : > { %2201 = vmatprep.subr.bf16.mxu0 %v2867_v51  ;;  %v2942_v51 = vld [vmem:[%s4224_s1 + $0x570] ss:$8 sps:$4 sm:$0xff]  }
  0x33   : > { %2038 = vmatpush1.bf16.msra.mxu1 %v2869_v53  ;;  %v2950_v53 = vld [vmem:[%s4224_s1 + $0x584] ss:$8 sps:$4 sm:$0xff]  }
  0x34   : > { %2202 = vmatpush1.bf16.msra.mxu0 %v2870_v55  ;;  %2039 = vmatprep.subr.bf16.mxu1 %v2871_v57  ;;  %v2948_v55 = vld [vmem:[%s4224_s1 + $0x580] ss:$8 sps:$4 sm:$0xff]   ;;  %v2956_v57 = vld [vmem:[%s4224_s1 + $0x594] ss:$8 sps:$4 sm:$0xff]  }
  0x35   : > { %2203 = vmatprep.subr.bf16.mxu0 %v2873_v58  ;;  %v2951_v58 = vld [vmem:[%s4224_s1 + $0x190] ss:$8 sps:$4 sm:$0xff]  }
  0x37   : > { %2040 = vmatpush1.bf16.msra.mxu1 %v2875_v62  ;;  %v2957_v62 = vld [vmem:[%s4224_s1 + $0x1a0] ss:$8 sps:$4 sm:$0xff]  }
  0x38   : > { %2204 = vmatpush1.bf16.msra.mxu0 %v2876_v63  ;;  %2041 = vmatprep.subr.bf16.mxu1 %v2877_v0  ;;  %v2960_v63 = vld [vmem:[%s4224_s1 + $0x5a0] ss:$8 sps:$4 sm:$0xff]   ;;  %v2965_v0 = vld [vmem:[%s4224_s1 + $0x1b4] ss:$8 sps:$4 sm:$0xff]  }
  0x39   : > { %2205 = vmatprep.subr.bf16.mxu0 %v2879_v1  ;;  %v2968_v1 = vld [vmem:[%s4224_s1 + $0x5b4] ss:$8 sps:$4 sm:$0xff]  }
  0x3b   : > { %2042 = vmatpush1.bf16.msra.mxu1 %v2881_v2  ;;  %v2963_v2 = vld [vmem:[%s4224_s1 + $0x1b0] ss:$8 sps:$4 sm:$0xff]  }
  0x3c   : > { %2206 = vmatpush1.bf16.msra.mxu0 %v2882_v3  ;;  %2043 = vmatprep.subr.bf16.mxu1 %v2883_v4  ;;  %v2966_v3 = vld [vmem:[%s4224_s1 + $0x5b0] ss:$8 sps:$4 sm:$0xff]   ;;  %v2971_v4 = vld [vmem:[%s4224_s1 + $0x1c4] ss:$8 sps:$4 sm:$0xff]  }
  0x3d   : > { %2207 = vmatprep.subr.bf16.mxu0 %v2885_v5  ;;  %v2974_v5 = vld [vmem:[%s4224_s1 + $0x5c4] ss:$8 sps:$4 sm:$0xff]  }
  0x3f   : > { %2044 = vmatpush1.bf16.msra.mxu1 %v2887_v6  ;;  %v2969_v6 = vld [vmem:[%s4224_s1 + $0x1c0] ss:$8 sps:$4 sm:$0xff]  }
  0x40   : > { %2208 = vmatpush1.bf16.msra.mxu0 %v2888_v7  ;;  %2045 = vmatprep.subr.bf16.mxu1 %v2889_v8  ;;  %v2972_v7 = vld [vmem:[%s4224_s1 + $0x5c0] ss:$8 sps:$4 sm:$0xff]   ;;  %v2977_v8 = vld [vmem:[%s4224_s1 + $0x1d4] ss:$8 sps:$4 sm:$0xff]  }
  0x41   : > { %2209 = vmatprep.subr.bf16.mxu0 %v2891_v9  ;;  %v2980_v9 = vld [vmem:[%s4224_s1 + $0x5d4] ss:$8 sps:$4 sm:$0xff]  }
  0x43   : > { %2046 = vmatpush1.bf16.msra.mxu1 %v2893_v12  ;;  %v2983_v12 = vld [vmem:[%s4224_s1 + $0x1e4] ss:$8 sps:$4 sm:$0xff]  }
  0x44   : > { %2210 = vmatpush1.bf16.msra.mxu0 %v2894_v13  ;;  %2056 = vmatprep.subr.bf16.mxu1 %v2898_v14  ;;  %v2986_v13 = vld [vmem:[%s4224_s1 + $0x5e4] ss:$8 sps:$4 sm:$0xff]   ;;  %v2981_v14 = vld [vmem:[%s4224_s1 + $0x1e0] ss:$8 sps:$4 sm:$0xff]  }
  0x45   : > { %2220 = vmatprep.subr.bf16.mxu0 %v2902_v15  ;;  %v2984_v15 = vld [vmem:[%s4224_s1 + $0x5e0] ss:$8 sps:$4 sm:$0xff]  }
  0x46   : > { %2048 = vmatmul.mubr.bf16.vlgmr.msra.gmra.mrb[0].mxu1 %v488_v54  ;;  %v2945_v54 = vld [vmem:[%s4224_s1 + $0x180] ss:$8 sps:$4 sm:$0xff]  }
  0x47   : > { %2212 = vmatmul.mubr.bf16.vlgmr.msra.gmra.mrb[0].mxu0 %v522_v60  ;;  %2057 = vmatpush1.bf16.msra.mxu1 %v2896_v18  ;;  %v2959_v60 = vld [vmem:[%s4224_s1 + $0x1a4] ss:$8 sps:$4 sm:$0xff]   ;;  %v2989_v18 = vld [vmem:[%s4224_s1 + $0x1f4] ss:$8 sps:$4 sm:$0xff]  }
  0x48   : > { %2221 = vmatpush1.bf16.msra.mxu0 %v2900_v19  ;;  %2058 = vmatprep.subr.bf16.mxu1 %v2905_v20  ;;  %v2992_v19 = vld [vmem:[%s4224_s1 + $0x5f4] ss:$8 sps:$4 sm:$0xff]   ;;  %v2987_v20 = vld [vmem:[%s4224_s1 + $0x1f0] ss:$8 sps:$4 sm:$0xff]  }
  0x49   : > { %2222 = vmatprep.subr.bf16.mxu0 %v2908_v21  ;;  %2088 = vmatprep.mubr.bf16.mxu1 %v497_v22  ;;  %v2990_v21 = vld [vmem:[%s4224_s1 + $0x5f0] ss:$8 sps:$4 sm:$0xff]   ;;  %v2995_v22 = vld [vmem:[%s4224_s1 + $0x204] ss:$8 sps:$4 sm:$0xff]  }
  0x4a   : > { %2252 = vmatprep.mubr.bf16.mxu0 %v531_v23  ;;  %v2998_v23 = vld [vmem:[%s4224_s1 + $0x604] ss:$8 sps:$4 sm:$0xff]  }
  0x4b   : > { %2059 = vmatpush1.bf16.msra.mxu1 %v2903_v24  ;;  %v2993_v24 = vld [vmem:[%s4224_s1 + $0x200] ss:$8 sps:$4 sm:$0xff]  }
  0x4c   : > { %2223 = vmatpush1.bf16.msra.mxu0 %v2906_v25  ;;  %2060 = vmatprep.subr.bf16.mxu1 %v2911_v26  ;;  %v2996_v25 = vld [vmem:[%s4224_s1 + $0x600] ss:$8 sps:$4 sm:$0xff]   ;;  %v3001_v26 = vld [vmem:[%s4224_s1 + $0x214] ss:$8 sps:$4 sm:$0xff]  }
  0x4d   : > { %2224 = vmatprep.subr.bf16.mxu0 %v2914_v27  ;;  %v3703_v27 = vld [vmem:[%s3416_s30 + $0x8] sm:$0xff] }
  0x4f   : > { %2061 = vmatpush1.bf16.msra.mxu1 %v2909_v28  ;;  %v3004_v28 = vld [vmem:[%s4224_s1 + $0x614] ss:$8 sps:$4 sm:$0xff]  }
  0x50   : > { %2225 = vmatpush1.bf16.msra.mxu0 %v2912_v29  ;;  %2062 = vmatprep.subr.bf16.mxu1 %v2917_v30  ;;  %v3710_v29 = vrot.slane %v3703_v27, %v3419_v49  ;;  %v3713_v30 = vld [vmem:[%s3416_s30 + $0x18] sm:$0xff] }
  0x51   : > { %2226 = vmatprep.subr.bf16.mxu0 %v2920_v31  ;;  %v2999_v31 = vld [vmem:[%s4224_s1 + $0x210] ss:$8 sps:$4 sm:$0xff]  }
  0x53   : > { %2063 = vmatpush1.bf16.msra.mxu1 %v2915_v32  ;;  %v3002_v32 = vld [vmem:[%s4224_s1 + $0x610] ss:$8 sps:$4 sm:$0xff]  }
  0x54   : > { %2227 = vmatpush1.bf16.msra.mxu0 %v2918_v33  ;;  %2064 = vmatprep.subr.bf16.mxu1 %v2923_v34  ;;  %v513_v33 = vcombine.high %v3710_v29, %v3710_v29  ;;  %v3727_v34 = vrot.slane %v3713_v30, %v3419_v49 }
  0x55   : > { %2228 = vmatprep.subr.bf16.mxu0 %v2926_v35 }
  0x56   : > { %v547_v35 = vcombine.high %v3727_v34, %v3727_v34 }
  0x57   : > { %2065 = vmatpush1.bf16.msra.mxu1 %v2921_v36  ;;  %v3005_v36 = vld [vmem:[%s4224_s1 + $0x220] ss:$8 sps:$4 sm:$0xff]  }
  0x58   : > { %2229 = vmatpush1.bf16.msra.mxu0 %v2924_v37  ;;  %2066 = vmatprep.subr.bf16.mxu1 %v2929_v38  ;;  %v3008_v37 = vld [vmem:[%s4224_s1 + $0x620] ss:$8 sps:$4 sm:$0xff]   ;;  %v3013_v38 = vld [vmem:[%s4224_s1 + $0x234] ss:$8 sps:$4 sm:$0xff]  }
  0x59   : > { %2230 = vmatprep.subr.bf16.mxu0 %v2932_v39  ;;  %v3016_v39 = vld [vmem:[%s4224_s1 + $0x634] ss:$8 sps:$4 sm:$0xff]  }
  0x5b   : > { %2067 = vmatpush1.bf16.msra.mxu1 %v2927_v40  ;;  %v3011_v40 = vld [vmem:[%s4224_s1 + $0x230] ss:$8 sps:$4 sm:$0xff]  }
  0x5c   : > { %2231 = vmatpush1.bf16.msra.mxu0 %v2930_v41  ;;  %2068 = vmatprep.subr.bf16.mxu1 %v2935_v43  ;;  %v3014_v41 = vld [vmem:[%s4224_s1 + $0x630] ss:$8 sps:$4 sm:$0xff]   ;;  %v3019_v43 = vld [vmem:[%s4224_s1 + $0x244] ss:$8 sps:$4 sm:$0xff]  }
  0x5d   : > { %2232 = vmatprep.subr.bf16.mxu0 %v2938_v44  ;;  %v3022_v44 = vld [vmem:[%s4224_s1 + $0x644] ss:$8 sps:$4 sm:$0xff]  }
  0x5f   : > { %2069 = vmatpush1.bf16.msra.mxu1 %v2933_v45  ;;  %v3017_v45 = vld [vmem:[%s4224_s1 + $0x240] ss:$8 sps:$4 sm:$0xff]  }
  0x60   : > { %2233 = vmatpush1.bf16.msra.mxu0 %v2936_v46  ;;  %2070 = vmatprep.subr.bf16.mxu1 %v2941_v47  ;;  %v3020_v46 = vld [vmem:[%s4224_s1 + $0x640] ss:$8 sps:$4 sm:$0xff]   ;;  %v3025_v47 = vld [vmem:[%s4224_s1 + $0x254] ss:$8 sps:$4 sm:$0xff]  }
  0x61   : > { %2234 = vmatprep.subr.bf16.mxu0 %v2944_v48  ;;  %v3028_v48 = vld [vmem:[%s4224_s1 + $0x654] ss:$8 sps:$4 sm:$0xff]  }
  0x63   : > { %2071 = vmatpush1.bf16.msra.mxu1 %v2939_v50  ;;  %v3023_v50 = vld [vmem:[%s4224_s1 + $0x250] ss:$8 sps:$4 sm:$0xff]  }
  0x64   : > { %2235 = vmatpush1.bf16.msra.mxu0 %v2942_v51  ;;  %2072 = vmatprep.subr.bf16.mxu1 %v2947_v52  ;;  %v3026_v51 = vld [vmem:[%s4224_s1 + $0x650] ss:$8 sps:$4 sm:$0xff]   ;;  %v3031_v52 = vld [vmem:[%s4224_s1 + $0x264] ss:$8 sps:$4 sm:$0xff]  }
  0x65   : > { %2236 = vmatprep.subr.bf16.mxu0 %v2950_v53  ;;  %v3034_v53 = vld [vmem:[%s4224_s1 + $0x664] ss:$8 sps:$4 sm:$0xff]  }
  0x67   : > { %2073 = vmatpush1.bf16.msra.mxu1 %v2945_v54  ;;  %v3029_v54 = vld [vmem:[%s4224_s1 + $0x260] ss:$8 sps:$4 sm:$0xff]  }
  0x68   : > { %2237 = vmatpush1.bf16.msra.mxu0 %v2948_v55  ;;  %2074 = vmatprep.subr.bf16.mxu1 %v2953_v56  ;;  %v3032_v55 = vld [vmem:[%s4224_s1 + $0x660] ss:$8 sps:$4 sm:$0xff]   ;;  %v3037_v56 = vld [vmem:[%s4224_s1 + $0x274] ss:$8 sps:$4 sm:$0xff]  }
  0x69   : > { %2238 = vmatprep.subr.bf16.mxu0 %v2956_v57  ;;  %v3040_v57 = vld [vmem:[%s4224_s1 + $0x674] ss:$8 sps:$4 sm:$0xff]  }
  0x6b   : > { %2075 = vmatpush1.bf16.msra.mxu1 %v2951_v58  ;;  %v3035_v58 = vld [vmem:[%s4224_s1 + $0x270] ss:$8 sps:$4 sm:$0xff]  }
  0x6c   : > { %2239 = vmatpush1.bf16.msra.mxu0 %v2954_v59  ;;  %2076 = vmatprep.subr.bf16.mxu1 %v2959_v60  ;;  %v3038_v59 = vld [vmem:[%s4224_s1 + $0x670] ss:$8 sps:$4 sm:$0xff]   ;;  %v3043_v60 = vld [vmem:[%s4224_s1 + $0x284] ss:$8 sps:$4 sm:$0xff]  }
  0x6d   : > { %2240 = vmatprep.subr.bf16.mxu0 %v2962_v61  ;;  %v3046_v61 = vld [vmem:[%s4224_s1 + $0x684] ss:$8 sps:$4 sm:$0xff]  }
  0x6f   : > { %2077 = vmatpush1.bf16.msra.mxu1 %v2957_v62  ;;  %v3041_v62 = vld [vmem:[%s4224_s1 + $0x280] ss:$8 sps:$4 sm:$0xff]  }
  0x70   : > { %2241 = vmatpush1.bf16.msra.mxu0 %v2960_v63  ;;  %2078 = vmatprep.subr.bf16.mxu1 %v2965_v0  ;;  %v3044_v63 = vld [vmem:[%s4224_s1 + $0x680] ss:$8 sps:$4 sm:$0xff]   ;;  %v3049_v0 = vld [vmem:[%s4224_s1 + $0x294] ss:$8 sps:$4 sm:$0xff]  }
  0x71   : > { %2242 = vmatprep.subr.bf16.mxu0 %v2968_v1  ;;  %v3052_v1 = vld [vmem:[%s4224_s1 + $0x694] ss:$8 sps:$4 sm:$0xff]  }
  0x73   : > { %2079 = vmatpush1.bf16.msra.mxu1 %v2963_v2  ;;  %v3047_v2 = vld [vmem:[%s4224_s1 + $0x290] ss:$8 sps:$4 sm:$0xff]  }
  0x74   : > { %2243 = vmatpush1.bf16.msra.mxu0 %v2966_v3  ;;  %2080 = vmatprep.subr.bf16.mxu1 %v2971_v4  ;;  %v3050_v3 = vld [vmem:[%s4224_s1 + $0x690] ss:$8 sps:$4 sm:$0xff]   ;;  %v3055_v4 = vld [vmem:[%s4224_s1 + $0x2a4] ss:$8 sps:$4 sm:$0xff]  }
  0x75   : > { %2244 = vmatprep.subr.bf16.mxu0 %v2974_v5  ;;  %v3058_v5 = vld [vmem:[%s4224_s1 + $0x6a4] ss:$8 sps:$4 sm:$0xff]  }
  0x77   : > { %2081 = vmatpush1.bf16.msra.mxu1 %v2969_v6  ;;  %v3053_v6 = vld [vmem:[%s4224_s1 + $0x2a0] ss:$8 sps:$4 sm:$0xff]  }
  0x78   : > { %2245 = vmatpush1.bf16.msra.mxu0 %v2972_v7  ;;  %2082 = vmatprep.subr.bf16.mxu1 %v2977_v8  ;;  %v3056_v7 = vld [vmem:[%s4224_s1 + $0x6a0] ss:$8 sps:$4 sm:$0xff]   ;;  %v3061_v8 = vld [vmem:[%s4224_s1 + $0x2b4] ss:$8 sps:$4 sm:$0xff]  }
  0x79   : > { %2246 = vmatprep.subr.bf16.mxu0 %v2980_v9  ;;  %v3064_v9 = vld [vmem:[%s4224_s1 + $0x6b4] ss:$8 sps:$4 sm:$0xff]  }
  0x7b   : > { %2083 = vmatpush1.bf16.msra.mxu1 %v2975_v10  ;;  %v3059_v10 = vld [vmem:[%s4224_s1 + $0x2b0] ss:$8 sps:$4 sm:$0xff]  }
  0x7c   : > { %2247 = vmatpush1.bf16.msra.mxu0 %v2978_v11  ;;  %2084 = vmatprep.subr.bf16.mxu1 %v2983_v12  ;;  %v3062_v11 = vld [vmem:[%s4224_s1 + $0x6b0] ss:$8 sps:$4 sm:$0xff]   ;;  %v3067_v12 = vld [vmem:[%s4224_s1 + $0x2c4] ss:$8 sps:$4 sm:$0xff]  }
  0x7d   : > { %2248 = vmatprep.subr.bf16.mxu0 %v2986_v13  ;;  %v3070_v13 = vld [vmem:[%s4224_s1 + $0x6c4] ss:$8 sps:$4 sm:$0xff]  }
  0x7f   : > { %2085 = vmatpush1.bf16.msra.mxu1 %v2981_v14  ;;  %v3065_v14 = vld [vmem:[%s4224_s1 + $0x2c0] ss:$8 sps:$4 sm:$0xff]  }
  0x80   : > { %2249 = vmatpush1.bf16.msra.mxu0 %v2984_v15  ;;  %2086 = vmatprep.subr.bf16.mxu1 %v2989_v18  ;;  %v3068_v15 = vld [vmem:[%s4224_s1 + $0x6c0] ss:$8 sps:$4 sm:$0xff]   ;;  %v3073_v18 = vld [vmem:[%s4224_s1 + $0x2d4] ss:$8 sps:$4 sm:$0xff]  }
  0x81   : > { %2250 = vmatprep.subr.bf16.mxu0 %v2992_v19  ;;  %v3076_v19 = vld [vmem:[%s4224_s1 + $0x6d4] ss:$8 sps:$4 sm:$0xff]  }
  0x83   : > { %2087 = vmatpush1.bf16.msra.mxu1 %v2987_v20  ;;  %v3071_v20 = vld [vmem:[%s4224_s1 + $0x2d0] ss:$8 sps:$4 sm:$0xff]  }
  0x84   : > { %2251 = vmatpush1.bf16.msra.mxu0 %v2990_v21  ;;  %2097 = vmatprep.subr.bf16.mxu1 %v2995_v22  ;;  %v3074_v21 = vld [vmem:[%s4224_s1 + $0x6d0] ss:$8 sps:$4 sm:$0xff]   ;;  %v3079_v22 = vld [vmem:[%s4224_s1 + $0x2e4] ss:$8 sps:$4 sm:$0xff]  }
  0x85   : > { %2261 = vmatprep.subr.bf16.mxu0 %v2998_v23  ;;  %v3082_v23 = vld [vmem:[%s4224_s1 + $0x6e4] ss:$8 sps:$4 sm:$0xff]  }
  0x86   : > { %2089 = vmatmul.mubr.bf16.vlgmr.msra.gmra.mrb[0].mxu1 %v3492_v16  ;;  %v3007_v16 = vld [vmem:[%s4224_s1 + $0x224] ss:$8 sps:$4 sm:$0xff]  }
  0x87   : > { %2253 = vmatmul.mubr.bf16.vlgmr.msra.gmra.mrb[0].mxu0 %v3495_v17  ;;  %2098 = vmatpush1.bf16.msra.mxu1 %v2993_v24  ;;  %v3010_v17 = vld [vmem:[%s4224_s1 + $0x624] ss:$8 sps:$4 sm:$0xff]   ;;  %v3077_v24 = vld [vmem:[%s4224_s1 + $0x2e0] ss:$8 sps:$4 sm:$0xff]  }
  0x88   : > { %2262 = vmatpush1.bf16.msra.mxu0 %v2996_v25  ;;  %2099 = vmatprep.subr.bf16.mxu1 %v3001_v26  ;;  %v3080_v25 = vld [vmem:[%s4224_s1 + $0x6e0] ss:$8 sps:$4 sm:$0xff]   ;;  %v3085_v26 = vld [vmem:[%s4224_s1 + $0x2f4] ss:$8 sps:$4 sm:$0xff]  }
  0x89   : > { %2263 = vmatprep.subr.bf16.mxu0 %v3004_v28  ;;  %2129 = vmatprep.mubr.bf16.mxu1 %v513_v33  ;;  %v3088_v28 = vld [vmem:[%s4224_s1 + $0x6f4] ss:$8 sps:$4 sm:$0xff]   ;;  %v3083_v33 = vld [vmem:[%s4224_s1 + $0x2f0] ss:$8 sps:$4 sm:$0xff]  }
  0x8a   : > { %2293 = vmatprep.mubr.bf16.mxu0 %v547_v35 }
  0x8b   : > { %2100 = vmatpush1.bf16.msra.mxu1 %v2999_v31  ;;  %v498_v31 = vcombine.high %v3703_v27, %v3703_v27  ;;  %v3094_v27 = vld [vmem:[%s4224_s1 + $0x704] ss:$8 sps:$4 sm:$0xff]  }
  0x8c   : > { %2264 = vmatpush1.bf16.msra.mxu0 %v3002_v32  ;;  %2101 = vmatprep.subr.bf16.mxu1 %v3007_v16  ;;  %v532_v32 = vcombine.high %v3713_v30, %v3713_v30  ;;  %v3086_v16 = vld [vmem:[%s4224_s1 + $0x6f0] ss:$8 sps:$4 sm:$0xff]  }
  0x8d   : > { %2265 = vmatprep.subr.bf16.mxu0 %v3010_v17  ;;  %v3091_v17 = vld [vmem:[%s4224_s1 + $0x304] ss:$8 sps:$4 sm:$0xff]   ;;  %v3910_v30 = vrot.slane %v498_v31, %v3419_v49  ;;  %v3170_v31 = vld [vmem:[%s4224_s1 + $0x7d0] ss:$8 sps:$4 sm:$0xff]  }
  0x8e   : > { %v3913_v35 = vrot.slane %v532_v32, %v3419_v49  ;;  %v3100_v49 = vld [vmem:[%s4224_s1 + $0x714] ss:$8 sps:$4 sm:$0xff]   ;;  %v3175_v32 = vld [vmem:[%s4224_s1 + $0x3e4] ss:$8 sps:$4 sm:$0xff]  }
  0x8f   : > { %2102 = vmatpush1.bf16.msra.mxu1 %v3005_v36  ;;  %v3089_v36 = vld [vmem:[%s4224_s1 + $0x300] ss:$8 sps:$4 sm:$0xff]  }
  0x90   : > { %2266 = vmatpush1.bf16.msra.mxu0 %v3008_v37  ;;  %2103 = vmatprep.subr.bf16.mxu1 %v3013_v38  ;;  %v3092_v37 = vld [vmem:[%s4224_s1 + $0x700] ss:$8 sps:$4 sm:$0xff]   ;;  %v3097_v38 = vld [vmem:[%s4224_s1 + $0x314] ss:$8 sps:$4 sm:$0xff]  }
  0x91   : > { %2267 = vmatprep.subr.bf16.mxu0 %v3016_v39  ;;  %v514_v39 = vcombine.high %v3910_v30, %v3910_v30 }
  0x93   : > { %2104 = vmatpush1.bf16.msra.mxu1 %v3011_v40  ;;  %v548_v40 = vcombine.high %v3913_v35, %v3913_v35 }
  0x94   : > { %2268 = vmatpush1.bf16.msra.mxu0 %v3014_v41  ;;  %2105 = vmatprep.subr.bf16.mxu1 %v3019_v43  ;;  %v3095_v41 = vld [vmem:[%s4224_s1 + $0x310] ss:$8 sps:$4 sm:$0xff]  }
  0x95   : > { %2269 = vmatprep.subr.bf16.mxu0 %v3022_v44  ;;  %v3098_v43 = vld [vmem:[%s4224_s1 + $0x710] ss:$8 sps:$4 sm:$0xff]   ;;  %v3103_v44 = vld [vmem:[%s4224_s1 + $0x324] ss:$8 sps:$4 sm:$0xff]  }
  0x97   : > { %2106 = vmatpush1.bf16.msra.mxu1 %v3017_v45  ;;  %v3104_v45 = vld [vmem:[%s4224_s1 + $0x720] ss:$8 sps:$4 sm:$0xff]  }
  0x98   : > { %2270 = vmatpush1.bf16.msra.mxu0 %v3020_v46  ;;  %2107 = vmatprep.subr.bf16.mxu1 %v3025_v47  ;;  %v3109_v46 = vld [vmem:[%s4224_s1 + $0x334] ss:$8 sps:$4 sm:$0xff]  }
  0x99   : > { %2271 = vmatprep.subr.bf16.mxu0 %v3028_v48  ;;  %v3112_v47 = vld [vmem:[%s4224_s1 + $0x734] ss:$8 sps:$4 sm:$0xff]   ;;  %v3107_v48 = vld [vmem:[%s4224_s1 + $0x330] ss:$8 sps:$4 sm:$0xff]  }
  0x9b   : > { %2108 = vmatpush1.bf16.msra.mxu1 %v3023_v50  ;;  %v3110_v50 = vld [vmem:[%s4224_s1 + $0x730] ss:$8 sps:$4 sm:$0xff]  }
  0x9c   : > { %2272 = vmatpush1.bf16.msra.mxu0 %v3026_v51  ;;  %2109 = vmatprep.subr.bf16.mxu1 %v3031_v52  ;;  %v3115_v51 = vld [vmem:[%s4224_s1 + $0x344] ss:$8 sps:$4 sm:$0xff]  }
  0x9d   : > { %2273 = vmatprep.subr.bf16.mxu0 %v3034_v53  ;;  %v3118_v52 = vld [vmem:[%s4224_s1 + $0x744] ss:$8 sps:$4 sm:$0xff]   ;;  %v3113_v53 = vld [vmem:[%s4224_s1 + $0x340] ss:$8 sps:$4 sm:$0xff]  }
  0x9f   : > { %2110 = vmatpush1.bf16.msra.mxu1 %v3029_v54  ;;  %v3116_v54 = vld [vmem:[%s4224_s1 + $0x740] ss:$8 sps:$4 sm:$0xff]  }
  0xa0   : > { %2274 = vmatpush1.bf16.msra.mxu0 %v3032_v55  ;;  %2111 = vmatprep.subr.bf16.mxu1 %v3037_v56  ;;  %v3121_v55 = vld [vmem:[%s4224_s1 + $0x354] ss:$8 sps:$4 sm:$0xff]  }
  0xa1   : > { %2275 = vmatprep.subr.bf16.mxu0 %v3040_v57  ;;  %v3124_v56 = vld [vmem:[%s4224_s1 + $0x754] ss:$8 sps:$4 sm:$0xff]   ;;  %v3119_v57 = vld [vmem:[%s4224_s1 + $0x350] ss:$8 sps:$4 sm:$0xff]  }
  0xa3   : > { %2112 = vmatpush1.bf16.msra.mxu1 %v3035_v58  ;;  %v3122_v58 = vld [vmem:[%s4224_s1 + $0x750] ss:$8 sps:$4 sm:$0xff]  }
  0xa4   : > { %2276 = vmatpush1.bf16.msra.mxu0 %v3038_v59  ;;  %2113 = vmatprep.subr.bf16.mxu1 %v3043_v60  ;;  %v3127_v59 = vld [vmem:[%s4224_s1 + $0x364] ss:$8 sps:$4 sm:$0xff]  }
  0xa5   : > { %2277 = vmatprep.subr.bf16.mxu0 %v3046_v61  ;;  %v3130_v60 = vld [vmem:[%s4224_s1 + $0x764] ss:$8 sps:$4 sm:$0xff]   ;;  %v3125_v61 = vld [vmem:[%s4224_s1 + $0x360] ss:$8 sps:$4 sm:$0xff]  }
  0xa7   : > { %2114 = vmatpush1.bf16.msra.mxu1 %v3041_v62  ;;  %v3128_v62 = vld [vmem:[%s4224_s1 + $0x760] ss:$8 sps:$4 sm:$0xff]  }
  0xa8   : > { %2278 = vmatpush1.bf16.msra.mxu0 %v3044_v63  ;;  %2115 = vmatprep.subr.bf16.mxu1 %v3049_v0  ;;  %v3133_v63 = vld [vmem:[%s4224_s1 + $0x374] ss:$8 sps:$4 sm:$0xff]  }
  0xa9   : > { %2279 = vmatprep.subr.bf16.mxu0 %v3052_v1  ;;  %v3136_v0 = vld [vmem:[%s4224_s1 + $0x774] ss:$8 sps:$4 sm:$0xff]   ;;  %v3131_v1 = vld [vmem:[%s4224_s1 + $0x370] ss:$8 sps:$4 sm:$0xff]  }
  0xab   : > { %2116 = vmatpush1.bf16.msra.mxu1 %v3047_v2  ;;  %v3134_v2 = vld [vmem:[%s4224_s1 + $0x770] ss:$8 sps:$4 sm:$0xff]  }
  0xac   : > { %2280 = vmatpush1.bf16.msra.mxu0 %v3050_v3  ;;  %2117 = vmatprep.subr.bf16.mxu1 %v3055_v4  ;;  %v3139_v3 = vld [vmem:[%s4224_s1 + $0x384] ss:$8 sps:$4 sm:$0xff]  }
  0xad   : > { %2281 = vmatprep.subr.bf16.mxu0 %v3058_v5  ;;  %v3142_v4 = vld [vmem:[%s4224_s1 + $0x784] ss:$8 sps:$4 sm:$0xff]   ;;  %v3137_v5 = vld [vmem:[%s4224_s1 + $0x380] ss:$8 sps:$4 sm:$0xff]  }
  0xaf   : > { %2118 = vmatpush1.bf16.msra.mxu1 %v3053_v6  ;;  %v3140_v6 = vld [vmem:[%s4224_s1 + $0x780] ss:$8 sps:$4 sm:$0xff]  }
  0xb0   : > { %2282 = vmatpush1.bf16.msra.mxu0 %v3056_v7  ;;  %2119 = vmatprep.subr.bf16.mxu1 %v3061_v8  ;;  %v3145_v7 = vld [vmem:[%s4224_s1 + $0x394] ss:$8 sps:$4 sm:$0xff]  }
  0xb1   : > { %2283 = vmatprep.subr.bf16.mxu0 %v3064_v9  ;;  %v3148_v8 = vld [vmem:[%s4224_s1 + $0x794] ss:$8 sps:$4 sm:$0xff]   ;;  %v3143_v9 = vld [vmem:[%s4224_s1 + $0x390] ss:$8 sps:$4 sm:$0xff]  }
  0xb3   : > { %2120 = vmatpush1.bf16.msra.mxu1 %v3059_v10  ;;  %v3146_v10 = vld [vmem:[%s4224_s1 + $0x790] ss:$8 sps:$4 sm:$0xff]  }
  0xb4   : > { %2284 = vmatpush1.bf16.msra.mxu0 %v3062_v11  ;;  %2121 = vmatprep.subr.bf16.mxu1 %v3067_v12  ;;  %v3151_v11 = vld [vmem:[%s4224_s1 + $0x3a4] ss:$8 sps:$4 sm:$0xff]  }
  0xb5   : > { %2285 = vmatprep.subr.bf16.mxu0 %v3070_v13  ;;  %v3154_v12 = vld [vmem:[%s4224_s1 + $0x7a4] ss:$8 sps:$4 sm:$0xff]   ;;  %v3149_v13 = vld [vmem:[%s4224_s1 + $0x3a0] ss:$8 sps:$4 sm:$0xff]  }
  0xb7   : > { %2122 = vmatpush1.bf16.msra.mxu1 %v3065_v14  ;;  %v3152_v14 = vld [vmem:[%s4224_s1 + $0x7a0] ss:$8 sps:$4 sm:$0xff]  }
  0xb8   : > { %2286 = vmatpush1.bf16.msra.mxu0 %v3068_v15  ;;  %2123 = vmatprep.subr.bf16.mxu1 %v3073_v18  ;;  %v3157_v15 = vld [vmem:[%s4224_s1 + $0x3b4] ss:$8 sps:$4 sm:$0xff]  }
  0xb9   : > { %2287 = vmatprep.subr.bf16.mxu0 %v3076_v19  ;;  %v3160_v18 = vld [vmem:[%s4224_s1 + $0x7b4] ss:$8 sps:$4 sm:$0xff]   ;;  %v3155_v19 = vld [vmem:[%s4224_s1 + $0x3b0] ss:$8 sps:$4 sm:$0xff]  }
  0xbb   : > { %2124 = vmatpush1.bf16.msra.mxu1 %v3071_v20  ;;  %v3158_v20 = vld [vmem:[%s4224_s1 + $0x7b0] ss:$8 sps:$4 sm:$0xff]  }
  0xbc   : > { %2288 = vmatpush1.bf16.msra.mxu0 %v3074_v21  ;;  %2125 = vmatprep.subr.bf16.mxu1 %v3079_v22  ;;  %v3163_v21 = vld [vmem:[%s4224_s1 + $0x3c4] ss:$8 sps:$4 sm:$0xff]  }
  0xbd   : > { %2289 = vmatprep.subr.bf16.mxu0 %v3082_v23  ;;  %v3166_v22 = vld [vmem:[%s4224_s1 + $0x7c4] ss:$8 sps:$4 sm:$0xff]   ;;  %v3161_v23 = vld [vmem:[%s4224_s1 + $0x3c0] ss:$8 sps:$4 sm:$0xff]  }
  0xbf   : > { %2126 = vmatpush1.bf16.msra.mxu1 %v3077_v24  ;;  %v3164_v24 = vld [vmem:[%s4224_s1 + $0x7c0] ss:$8 sps:$4 sm:$0xff]  }
  0xc0   : > { %2290 = vmatpush1.bf16.msra.mxu0 %v3080_v25  ;;  %2127 = vmatprep.subr.bf16.mxu1 %v3085_v26  ;;  %v3169_v25 = vld [vmem:[%s4224_s1 + $0x3d4] ss:$8 sps:$4 sm:$0xff]  }
  0xc1   : > { %2291 = vmatprep.subr.bf16.mxu0 %v3088_v28  ;;  %v3172_v26 = vld [vmem:[%s4224_s1 + $0x7d4] ss:$8 sps:$4 sm:$0xff]   ;;  %v3167_v28 = vld [vmem:[%s4224_s1 + $0x3d0] ss:$8 sps:$4 sm:$0xff]  }
  0xc3   : > { %2128 = vmatpush1.bf16.msra.mxu1 %v3083_v33  ;;  %v3178_v33 = vld [vmem:[%s4224_s1 + $0x7e4] ss:$8 sps:$4 sm:$0xff]  }
  0xc4   : > { %2292 = vmatpush1.bf16.msra.mxu0 %v3086_v16  ;;  %2138 = vmatprep.subr.bf16.mxu1 %v3091_v17  ;;  %v3173_v16 = vld [vmem:[%s4224_s1 + $0x3e0] ss:$8 sps:$4 sm:$0xff]  }
  0xc5   : > { %2302 = vmatprep.subr.bf16.mxu0 %v3094_v27  ;;  %v3176_v17 = vld [vmem:[%s4224_s1 + $0x7e0] ss:$8 sps:$4 sm:$0xff]   ;;  %v3181_v27 = vld [vmem:[%s4224_s1 + $0x3f4] ss:$8 sps:$4 sm:$0xff]  }
  0xc6   : > { %2130 = vmatmul.mubr.bf16.vlgmr.msra.gmra.mrb[0].mxu1 %v3710_v29  ;;  %v3106_v29 = vld [vmem:[%s4224_s1 + $0x724] ss:$8 sps:$4 sm:$0xff]  }
  0xc7   : > { %2294 = vmatmul.mubr.bf16.vlgmr.msra.gmra.mrb[0].mxu0 %v3727_v34  ;;  %2139 = vmatpush1.bf16.msra.mxu1 %v3089_v36  ;;  %v3101_v34 = vld [vmem:[%s4224_s1 + $0x320] ss:$8 sps:$4 sm:$0xff]   ;;  %v3184_v36 = vld [vmem:[%s4224_s1 + $0x7f4] ss:$8 sps:$4 sm:$0xff]  }
  0xc8   : > { %2303 = vmatpush1.bf16.msra.mxu0 %v3092_v37  ;;  %2140 = vmatprep.subr.bf16.mxu1 %v3097_v38  ;;  %v3179_v37 = vld [vmem:[%s4224_s1 + $0x3f0] ss:$8 sps:$4 sm:$0xff]  }
  0xc9   : > { %2304 = vmatprep.subr.bf16.mxu0 %v3100_v49  ;;  %2170 = vmatprep.mubr.bf16.mxu1 %v514_v39  ;;  %v3182_v38 = vld [vmem:[%s4224_s1 + $0x7f0] ss:$8 sps:$4 sm:$0xff]   ;;  %v3189_v49 = vld [vmem:[%s4224_s1 + $0x804] ss:$8 sps:$4 sm:$0xff]  }
  0xca   : > { %2334 = vmatprep.mubr.bf16.mxu0 %v548_v40  ;;  %v4111_v39 = vld.sshfl [vmem:[%s3416_s30 + $0x20] sm:$0x33 pattern:$0x76325410] }
  0xcb   : > { %2141 = vmatpush1.bf16.msra.mxu1 %v3095_v41  ;;  %v3187_v40 = vld [vmem:[%s4224_s1 + $0x800] ss:$8 sps:$4 sm:$0xff]   ;;  %v556_v41 = vcombine.high %v4111_v39, %v4111_v39 }
  0xcc   : > { %2305 = vmatpush1.bf16.msra.mxu0 %v3098_v43  ;;  %2142 = vmatprep.subr.bf16.mxu1 %v3103_v44  ;;  %v3192_v43 = vld [vmem:[%s4224_s1 + $0x814] ss:$8 sps:$4 sm:$0xff]   ;;  %v3190_v44 = vld [vmem:[%s4224_s1 + $0x810] ss:$8 sps:$4 sm:$0xff]  }
  0xcd   : > { %2306 = vmatprep.subr.bf16.mxu0 %v3106_v29  ;;  %v3195_v29 = vld [vmem:[%s4224_s1 + $0x824] ss:$8 sps:$4 sm:$0xff]  }
  0xcf   : > { %2143 = vmatpush1.bf16.msra.mxu1 %v3101_v34  ;;  %v3193_v34 = vld [vmem:[%s4224_s1 + $0x820] ss:$8 sps:$4 sm:$0xff]  }
  0xd0   : > { %2307 = vmatpush1.bf16.msra.mxu0 %v3104_v45  ;;  %2144 = vmatprep.subr.bf16.mxu1 %v3109_v46  ;;  %v3201_v45 = vld [vmem:[%s4224_s1 + $0x844] ss:$8 sps:$4 sm:$0xff]   ;;  %v3199_v46 = vld [vmem:[%s4224_s1 + $0x840] ss:$8 sps:$4 sm:$0xff]  }
  0xd1   : > { %2308 = vmatprep.subr.bf16.mxu0 %v3112_v47  ;;  %v3204_v47 = vld [vmem:[%s4224_s1 + $0x854] ss:$8 sps:$4 sm:$0xff]  }
  0xd3   : > { %2145 = vmatpush1.bf16.msra.mxu1 %v3107_v48  ;;  %v3202_v48 = vld [vmem:[%s4224_s1 + $0x850] ss:$8 sps:$4 sm:$0xff]  }
  0xd4   : > { %2309 = vmatpush1.bf16.msra.mxu0 %v3110_v50  ;;  %2146 = vmatprep.subr.bf16.mxu1 %v3115_v51  ;;  %v3207_v50 = vld [vmem:[%s4224_s1 + $0x864] ss:$8 sps:$4 sm:$0xff]   ;;  %v3205_v51 = vld [vmem:[%s4224_s1 + $0x860] ss:$8 sps:$4 sm:$0xff]  }
  0xd5   : > { %2310 = vmatprep.subr.bf16.mxu0 %v3118_v52  ;;  %v3210_v52 = vld [vmem:[%s4224_s1 + $0x874] ss:$8 sps:$4 sm:$0xff]  }
  0xd7   : > { %2147 = vmatpush1.bf16.msra.mxu1 %v3113_v53  ;;  %v3208_v53 = vld [vmem:[%s4224_s1 + $0x870] ss:$8 sps:$4 sm:$0xff]  }
  0xd8   : > { %2311 = vmatpush1.bf16.msra.mxu0 %v3116_v54  ;;  %2148 = vmatprep.subr.bf16.mxu1 %v3121_v55  ;;  %v3213_v54 = vld [vmem:[%s4224_s1 + $0x884] ss:$8 sps:$4 sm:$0xff]   ;;  %v3211_v55 = vld [vmem:[%s4224_s1 + $0x880] ss:$8 sps:$4 sm:$0xff]  }
  0xd9   : > { %2312 = vmatprep.subr.bf16.mxu0 %v3124_v56  ;;  %v3216_v56 = vld [vmem:[%s4224_s1 + $0x894] ss:$8 sps:$4 sm:$0xff]  }
  0xdb   : > { %2149 = vmatpush1.bf16.msra.mxu1 %v3119_v57  ;;  %v3214_v57 = vld [vmem:[%s4224_s1 + $0x890] ss:$8 sps:$4 sm:$0xff]  }
  0xdc   : > { %2313 = vmatpush1.bf16.msra.mxu0 %v3122_v58  ;;  %2150 = vmatprep.subr.bf16.mxu1 %v3127_v59  ;;  %v3219_v58 = vld [vmem:[%s4224_s1 + $0x8a4] ss:$8 sps:$4 sm:$0xff]   ;;  %v3217_v59 = vld [vmem:[%s4224_s1 + $0x8a0] ss:$8 sps:$4 sm:$0xff]  }
  0xdd   : > { %2314 = vmatprep.subr.bf16.mxu0 %v3130_v60  ;;  %v3222_v60 = vld [vmem:[%s4224_s1 + $0x8b4] ss:$8 sps:$4 sm:$0xff]  }
  0xdf   : > { %2151 = vmatpush1.bf16.msra.mxu1 %v3125_v61  ;;  %v3220_v61 = vld [vmem:[%s4224_s1 + $0x8b0] ss:$8 sps:$4 sm:$0xff]  }
  0xe0   : > { %2315 = vmatpush1.bf16.msra.mxu0 %v3128_v62  ;;  %2152 = vmatprep.subr.bf16.mxu1 %v3133_v63  ;;  %v3225_v62 = vld [vmem:[%s4224_s1 + $0x8c4] ss:$8 sps:$4 sm:$0xff]   ;;  %v3223_v63 = vld [vmem:[%s4224_s1 + $0x8c0] ss:$8 sps:$4 sm:$0xff]  }
  0xe1   : > { %2316 = vmatprep.subr.bf16.mxu0 %v3136_v0  ;;  %v3228_v0 = vld [vmem:[%s4224_s1 + $0x8d4] ss:$8 sps:$4 sm:$0xff]  }
  0xe3   : > { %2153 = vmatpush1.bf16.msra.mxu1 %v3131_v1  ;;  %v3226_v1 = vld [vmem:[%s4224_s1 + $0x8d0] ss:$8 sps:$4 sm:$0xff]  }
  0xe4   : > { %2317 = vmatpush1.bf16.msra.mxu0 %v3134_v2  ;;  %2154 = vmatprep.subr.bf16.mxu1 %v3139_v3  ;;  %v3231_v2 = vld [vmem:[%s4224_s1 + $0x8e4] ss:$8 sps:$4 sm:$0xff]   ;;  %v3229_v3 = vld [vmem:[%s4224_s1 + $0x8e0] ss:$8 sps:$4 sm:$0xff]  }
  0xe5   : > { %2318 = vmatprep.subr.bf16.mxu0 %v3142_v4  ;;  %v3234_v4 = vld [vmem:[%s4224_s1 + $0x8f4] ss:$8 sps:$4 sm:$0xff]  }
  0xe7   : > { %2155 = vmatpush1.bf16.msra.mxu1 %v3137_v5  ;;  %v3232_v5 = vld [vmem:[%s4224_s1 + $0x8f0] ss:$8 sps:$4 sm:$0xff]  }
  0xe8   : > { %2319 = vmatpush1.bf16.msra.mxu0 %v3140_v6  ;;  %2156 = vmatprep.subr.bf16.mxu1 %v3145_v7 }
  0xe9   : > { %2320 = vmatprep.subr.bf16.mxu0 %v3148_v8 }
  0xeb   : > { %2157 = vmatpush1.bf16.msra.mxu1 %v3143_v9 }
  0xec   : > { %2321 = vmatpush1.bf16.msra.mxu0 %v3146_v10  ;;  %2158 = vmatprep.subr.bf16.mxu1 %v3151_v11  ;;  %v468_v10 = vsub.s32 0, %v3396_v42  ;;  %v464_v11 = vld [vmem:[%s4225_s2] sm:$0x3] }
  0xed   : > { %2322 = vmatprep.subr.bf16.mxu0 %v3154_v12  ;;  %v472_v12 = vsub.s32 1, %v3396_v42 }
  0xef   : > { %2159 = vmatpush1.bf16.msra.mxu1 %v3149_v13  ;;  %v469_v13 = vrot.slane %v464_v11, %v468_v10 }
  0xf0   : > { %2323 = vmatpush1.bf16.msra.mxu0 %v3152_v14  ;;  %2160 = vmatprep.subr.bf16.mxu1 %v3157_v15  ;;  %v473_v14 = vrot.slane %v464_v11, %v472_v12 }
  0xf1   : > { %2324 = vmatprep.subr.bf16.mxu0 %v3160_v18 }
  0xf3   : > { %2161 = vmatpush1.bf16.msra.mxu1 %v3155_v19 }
  0xf4   : > { %2325 = vmatpush1.bf16.msra.mxu0 %v3158_v20  ;;  %2162 = vmatprep.subr.bf16.mxu1 %v3163_v21 }
  0xf5   : > { %2326 = vmatprep.subr.bf16.mxu0 %v3166_v22 }
  0xf7   : > { %2163 = vmatpush1.bf16.msra.mxu1 %v3161_v23 }
  0xf8   : > { %2327 = vmatpush1.bf16.msra.mxu0 %v3164_v24  ;;  %2164 = vmatprep.subr.bf16.mxu1 %v3169_v25 }
  0xf9   : > { %2328 = vmatprep.subr.bf16.mxu0 %v3172_v26 }
  0xfb   : > { %2165 = vmatpush1.bf16.msra.mxu1 %v3167_v28 }
  0xfc   : > { %2329 = vmatpush1.bf16.msra.mxu0 %v3170_v31  ;;  %2166 = vmatprep.subr.bf16.mxu1 %v3175_v32 }
  0xfd   : > { %2330 = vmatprep.subr.bf16.mxu0 %v3178_v33 }
  0xff   : > { %2167 = vmatpush1.bf16.msra.mxu1 %v3173_v16 }
 0x100   : > { %2331 = vmatpush1.bf16.msra.mxu0 %v3176_v17  ;;  %2168 = vmatprep.subr.bf16.mxu1 %v3181_v27 }
 0x101   : > { %2332 = vmatprep.subr.bf16.mxu0 %v3184_v36 }
 0x103   : > { %2169 = vmatpush1.bf16.msra.mxu1 %v3179_v37 }
 0x104   : > { %2333 = vmatpush1.bf16.msra.mxu0 %v3182_v38 }
 0x105   : > { %2343 = vmatprep.subr.bf16.mxu0 %v3189_v49 }
 0x106   : > { %2171 = vmatmul.mubr.bf16.vlgmr.msra.gmra.mrb[0].mxu1 %v3910_v30  ;;  %v3198_v30 = vld [vmem:[%s4224_s1 + $0x834] ss:$8 sps:$4 sm:$0xff]  }
 0x107   : > { %2335 = vmatmul.mubr.bf16.vlgmr.msra.gmra.mrb[0].mxu0 %v3913_v35  ;;  %v3196_v35 = vld [vmem:[%s4224_s1 + $0x830] ss:$8 sps:$4 sm:$0xff]  }
 0x108   : > { %2344 = vmatpush1.bf16.msra.mxu0 %v3187_v40  ;;  %2375 = vmatprep.mubr.bf16.mxu0 %v556_v41 }
 0x109   : > { %2345 = vmatprep.subr.bf16.mxu0 %v3192_v43 }
 0x10c   : > { %2346 = vmatpush1.bf16.msra.mxu0 %v3190_v44 }
 0x10d   : > { %2347 = vmatprep.subr.bf16.mxu0 %v3195_v29 }
 0x110   : > { %2348 = vmatpush1.bf16.msra.mxu0 %v3193_v34 }
 0x111   : > { %2349 = vmatprep.subr.bf16.mxu0 %v3198_v30 }
 0x114   : > { %2350 = vmatpush1.bf16.msra.mxu0 %v3196_v35 }
 0x115   : > { %2351 = vmatprep.subr.bf16.mxu0 %v3201_v45 }
 0x118   : > { %2352 = vmatpush1.bf16.msra.mxu0 %v3199_v46 }
 0x119   : > { %2353 = vmatprep.subr.bf16.mxu0 %v3204_v47 }
 0x11c   : > { %2354 = vmatpush1.bf16.msra.mxu0 %v3202_v48 }
 0x11d   : > { %2355 = vmatprep.subr.bf16.mxu0 %v3207_v50 }
 0x120   : > { %2356 = vmatpush1.bf16.msra.mxu0 %v3205_v51 }
 0x121   : > { %2357 = vmatprep.subr.bf16.mxu0 %v3210_v52 }
 0x124   : > { %2358 = vmatpush1.bf16.msra.mxu0 %v3208_v53 }
 0x125   : > { %2359 = vmatprep.subr.bf16.mxu0 %v3213_v54 }
 0x128   : > { %2360 = vmatpush1.bf16.msra.mxu0 %v3211_v55 }
 0x129   : > { %2361 = vmatprep.subr.bf16.mxu0 %v3216_v56 }
 0x12c   : > { %2362 = vmatpush1.bf16.msra.mxu0 %v3214_v57 }
 0x12d   : > { %2363 = vmatprep.subr.bf16.mxu0 %v3219_v58 }
 0x130   : > { %2364 = vmatpush1.bf16.msra.mxu0 %v3217_v59 }
 0x131   : > { %2365 = vmatprep.subr.bf16.mxu0 %v3222_v60 }
 0x134   : > { %2366 = vmatpush1.bf16.msra.mxu0 %v3220_v61 }
 0x135   : > { %2367 = vmatprep.subr.bf16.mxu0 %v3225_v62 }
 0x138   : > { %2368 = vmatpush1.bf16.msra.mxu0 %v3223_v63 }
 0x139   : > { %2369 = vmatprep.subr.bf16.mxu0 %v3228_v0 }
 0x13c   : > { %2370 = vmatpush1.bf16.msra.mxu0 %v3226_v1 }
 0x13d   : > { %2371 = vmatprep.subr.bf16.mxu0 %v3231_v2 }
 0x140   : > { %2372 = vmatpush1.bf16.msra.mxu0 %v3229_v3 }
 0x141   : > { %2373 = vmatprep.subr.bf16.mxu0 %v3234_v4 }
 0x144   : > { %2374 = vmatpush1.bf16.msra.mxu0 %v3232_v5 }
 0x147   : > { %2376 = vmatmul.mubr.bf16.vlgmr.msra.gmra.mrb[0].mxu0 %v4111_v39 }
 0x1d9   : > { %v2172_v6 = vpop.f32.mrb[0].mxu1 }
 0x1da   : > { %v2174_v7 = vpop.f32.mrb[1].mxu1  ;;  %v2757_v15 = vadd.f32 %v2172_v6, %v469_v13 }
 0x1db   : > { %v2176_v8 = vpop.f32.mrb[2].mxu1  ;;  %v2759_v18 = vadd.f32 %v2174_v7, %v473_v14 }
 0x1dc   : > { %v2177_v9 = vpop.f32.mrb[3].mxu1 }
 0x21a   : > { %v2377_v19 = vpop.f32.mrb[0].mxu0 }
 0x21b   : > { %v2758_v20 = vadd.f32 %v2757_v15, %v2377_v19  ;;  %v2379_v21 = vpop.f32.mrb[1].mxu0 }
 0x21c   : > { %v2760_v22 = vadd.f32 %v2759_v18, %v2379_v21  ;;  %v2381_v23 = vpop.f32.mrb[2].mxu0 }
 0x21d   : > { %v2384_v24 = vmax.f32 %v2758_v20, 0.0  ;;  %v2382_v25 = vpop.f32.mrb[3].mxu0 }
 0x21e   : > { %v2385_v26 = vmax.f32 %v2760_v22, 0.0 }
 0x220   : > { %v2752_v28 = vpack.c.bf16 %v2385_v26, %v2384_v24 }
 0x222   : > { %2753 = vst.sshfl [vmem:[%s170_s16] sm:$0x33 pattern:$0x76325410] %v2752_v28 }
 0x223 PF: > { %s13_s12 = sadd.s32 1, %s3241_s12  }
 0x224   : > { %p10_p4 = scmp.ge.s32.totalorder %s13_s12, 4  }
 0x226   :  { %12 = sbr.rel (!%p10_p4) target bundleno = 1 (0x1), region = 62 }

// kernel: encoder_forward.22
= control target key start
LH: loop header
LB: loop body
LE: loop exit
PB: predicated region body
PF: predicated region fallthrough
CT: control target
= control target key end

     0   :  { %s2389_s12 = smov 0   ;;  %s2866_s0 = inlined_call_operand.vmem [shape: bf16[2,4,2304], index: 0, kind: input, shape index: {}]   ;;  %s2867_s1 = inlined_call_operand.vmem [shape: bf16[2304,128], index: 1, kind: input, shape index: {}]   ;;  %s2868_s2 = inlined_call_operand.vmem [shape: f32[1,128], index: 2, kind: input, shape index: {}]   ;;  %s2869_s3 = inlined_call_operand.vmem [shape: bf16[2,4,128], index: 3, kind: output, shape index: {}]  }
   0x1 LB: > { %s1849_s13 = sadd.s32 4294967295, %s2366_s12   ;;  %p1853_p0 = scmp.ge.s32.totalorder %s2366_s12, 1  ;;  %s2366_s12 = sphi %s2389_s12, %s13_s12  }
   0x2   : > { %p137_p1 = scmp.lt.s32.totalorder %s2366_s12, 3 }
   0x4   : > { %p138_p2 = pnand %p1853_p0, %p137_p1 }
   0x5   : > { %v2212_v0 = vld [vmem:[%s2867_s1 + $0x40] sm:$0xff] (!%p138_p2)   ;;  %v2216_v4 = vld [vmem:[%s2867_s1 + $0x48] sm:$0xff] (!%p138_p2)   ;;  %v2220_v8 = vld [vmem:[%s2867_s1 + $0x50] sm:$0xff] (!%p138_p2)   ;;  %p160_p3 = scmp.lt.s32.totalorder (!%p138_p2), %s1849_s13, 1  ;;  %v479_v27 = vlaneseq (!%p138_p2)  ;;  %v2368_v35 = vmov (!%p138_p2), 1983009808  }
   0x6   : > { %141 = sbr.rel (%p138_p2) target bundleno = 388 (0x184), region = 32  ;;  %v2213_v1 = vld [vmem:[%s2867_s1] sm:$0xff] (!%p138_p2)   ;;  %2004 = vmatprep.subr.bf16.mxu0 (!%p138_p2), %v2212_v0  ;;  %v2217_v5 = vld [vmem:[%s2867_s1 + $0x8] sm:$0xff] (!%p138_p2)   ;;  %v2221_v9 = vld [vmem:[%s2867_s1 + $0x10] sm:$0xff] (!%p138_p2)   ;;  %v477_v36 = vunpack.c.l.s4 (!%p138_p2), %v2368_v35 }
   0x7   : > { %v2214_v2 = vld [vmem:[%s2867_s1 + $0xc0] sm:$0xff] (!%p138_p2)   ;;  %2005 = vmatpush3.bf16.msra.mxu0 (!%p138_p2), %v2213_v1  ;;  %v2218_v6 = vld [vmem:[%s2867_s1 + $0xc8] sm:$0xff] (!%p138_p2)   ;;  %v2222_v10 = vld [vmem:[%s2867_s1 + $0xd0] sm:$0xff] (!%p138_p2)   ;;  %v480_v32 = vshrl.u32 (!%p138_p2), %v479_v27, 7 }
   0x8   : > { %v2215_v3 = vld [vmem:[%s2867_s1 + $0x80] sm:$0xff] (!%p138_p2)   ;;  %2026 = vmatprep.subr.bf16.mxu1 (!%p138_p2), %v2214_v2  ;;  %2006 = vmatprep.subr.bf16.mxu0 (!%p138_p2), %v2216_v4  ;;  %v2219_v7 = vld [vmem:[%s2867_s1 + $0x88] sm:$0xff] (!%p138_p2)   ;;  %v2223_v11 = vld [vmem:[%s2867_s1 + $0x90] sm:$0xff] (!%p138_p2)   ;;  %v478_v38 = vunpack.c.0.s8 (!%p138_p2), %v477_v36 }
   0x9   : > { %2027 = vmatpush3.bf16.msra.mxu1 (!%p138_p2), %v2215_v3  ;;  %v2224_v12 = vld [vmem:[%s2867_s1 + $0x58] sm:$0xff] (!%p138_p2)   ;;  %v2228_v16 = vld [vmem:[%s2867_s1 + $0x60] sm:$0xff] (!%p138_p2)   ;;  %v2232_v20 = vld [vmem:[%s2867_s1 + $0x68] sm:$0xff] (!%p138_p2)  }
   0xa   : > { %2028 = vmatprep.subr.bf16.mxu1 (!%p138_p2), %v2218_v6  ;;  %v2225_v13 = vld [vmem:[%s2867_s1 + $0x18] sm:$0xff] (!%p138_p2)   ;;  %v2229_v17 = vld [vmem:[%s2867_s1 + $0x20] sm:$0xff] (!%p138_p2)   ;;  %v2233_v21 = vld [vmem:[%s2867_s1 + $0x28] sm:$0xff] (!%p138_p2)   ;;  %v2512_v41 = vsub.s32 (!%p138_p2), %v478_v38, %v480_v32 }
   0xb   : > { %2007 = vmatpush3.bf16.msra.mxu0 (!%p138_p2), %v2217_v5  ;;  %v2226_v14 = vld [vmem:[%s2867_s1 + $0xd8] sm:$0xff] (!%p138_p2)   ;;  %v2230_v18 = vld [vmem:[%s2867_s1 + $0xe0] sm:$0xff] (!%p138_p2)   ;;  %v2234_v22 = vld [vmem:[%s2867_s1 + $0xe8] sm:$0xff] (!%p138_p2)  }
   0xc   : > { %2008 = vmatprep.subr.bf16.mxu0 (!%p138_p2), %v2220_v8  ;;  %v2227_v15 = vld [vmem:[%s2867_s1 + $0x98] sm:$0xff] (!%p138_p2)   ;;  %v2231_v19 = vld [vmem:[%s2867_s1 + $0xa0] sm:$0xff] (!%p138_p2)   ;;  %v2235_v23 = vld [vmem:[%s2867_s1 + $0xa8] sm:$0xff] (!%p138_p2)  }
   0xd   : > { %2029 = vmatpush3.bf16.msra.mxu1 %v2219_v7  ;;  %s2871_s13 = smov (!%p160_p3, %s1849_s13), 1  ;;  %v2236_v24 = vld [vmem:[%s2867_s1 + $0x70] sm:$0xff]   ;;  %v2240_v29 = vld [vmem:[%s2867_s1 + $0x78] sm:$0xff]   ;;  %v2244_v37 = vld [vmem:[%s2867_s1 + $0x140] sm:$0xff]  }
   0xe   : > { %2030 = vmatprep.subr.bf16.mxu1 %v2222_v10  ;;  %s2202_s14 = smul.u32 36, %s2871_s13  ;;  %v2237_v25 = vld [vmem:[%s2867_s1 + $0x30] sm:$0xff]   ;;  %v2241_v30 = vld [vmem:[%s2867_s1 + $0x38] sm:$0xff]   ;;  %v2247_v40 = vld [vmem:[%s2867_s1 + $0x1c0] sm:$0xff]   ;;  %s1855_s16 = sshll.u32 %s2871_s13, 1 }
   0xf   : > { %2009 = vmatpush3.bf16.msra.mxu0 %v2221_v9  ;;  %v2238_v26 = vld [vmem:[%s2867_s1 + $0xf0] sm:$0xff]   ;;  %v2242_v31 = vld [vmem:[%s2867_s1 + $0xf8] sm:$0xff]   ;;  %v2246_v44 = vld [vmem:[%s2867_s1 + $0x100] sm:$0xff]   ;;  %s168_s19 = scalar_lea.vmem %s2869_s3, %s1855_s16 }
  0x10   : > { %2010 = vmatprep.subr.bf16.mxu0 %v2224_v12  ;;  %v2239_v28 = vld [vmem:[%s2867_s1 + $0xb0] sm:$0xff]   ;;  %s2494_s25 = scalar_lea.vmem %s2866_s0, %s2202_s14  ;;  %v2243_v34 = vld [vmem:[%s2867_s1 + $0xb8] sm:$0xff]   ;;  %v2248_v45 = vld [vmem:[%s2867_s1 + $0x180] sm:$0xff]  }
  0x11   : > { %2031 = vmatpush3.bf16.msra.mxu1 %v2223_v11  ;;  %v170_v33 = vld [vmem:[%s2494_s25] sm:$0xff]  ;;  %v2249_v48 = vld [vmem:[%s2867_s1 + $0x148] sm:$0xff]   ;;  %v2253_v52 = vld [vmem:[%s2867_s1 + $0x150] sm:$0xff]  }
  0x12   : > { %2032 = vmatprep.subr.bf16.mxu1 %v2226_v14  ;;  %v475_v39 = vcombine.high %v170_v33, %v170_v33  ;;  %v482_v42 = vrot.slane %v170_v33, %v2512_v41  ;;  %v2251_v49 = vld [vmem:[%s2867_s1 + $0x1c8] sm:$0xff]   ;;  %v2255_v53 = vld [vmem:[%s2867_s1 + $0x1d0] sm:$0xff]   ;;  %v2257_v56 = vld [vmem:[%s2867_s1 + $0x158] sm:$0xff]  }
  0x13   : > { %2011 = vmatpush3.bf16.msra.mxu0 %v2225_v13  ;;  %v2250_v50 = vld [vmem:[%s2867_s1 + $0x108] sm:$0xff]   ;;  %v2254_v54 = vld [vmem:[%s2867_s1 + $0x110] sm:$0xff]   ;;  %v2259_v57 = vld [vmem:[%s2867_s1 + $0x1d8] sm:$0xff]  }
  0x14   : > { %2012 = vmatprep.subr.bf16.mxu0 %v2228_v16  ;;  %v489_v43 = vrot.slane %v475_v39, %v2512_v41  ;;  %v490_v46 = vcombine.high %v482_v42, %v482_v42  ;;  %v2252_v51 = vld [vmem:[%s2867_s1 + $0x188] sm:$0xff]   ;;  %v2256_v55 = vld [vmem:[%s2867_s1 + $0x190] sm:$0xff]   ;;  %v2258_v58 = vld [vmem:[%s2867_s1 + $0x118] sm:$0xff]  }
  0x15   : > { %2033 = vmatpush3.bf16.msra.mxu1 %v2227_v15  ;;  %v2260_v59 = vld [vmem:[%s2867_s1 + $0x198] sm:$0xff]   ;;  %v2261_v60 = vld [vmem:[%s2867_s1 + $0x160] sm:$0xff]   ;;  %v2265_v0 = vld [vmem:[%s2867_s1 + $0x168] sm:$0xff]  }
  0x16   : > { %2034 = vmatprep.subr.bf16.mxu1 %v2230_v18  ;;  %v491_v47 = vcombine.high %v489_v43, %v489_v43  ;;  %1465 = vmatprep.mubr.bf16.mxu0 %v490_v46  ;;  %v2263_v61 = vld [vmem:[%s2867_s1 + $0x1e0] sm:$0xff]   ;;  %v2267_v1 = vld [vmem:[%s2867_s1 + $0x1e8] sm:$0xff]   ;;  %v2269_v4 = vld [vmem:[%s2867_s1 + $0x170] sm:$0xff]  }
  0x17   : > { %2013 = vmatpush3.bf16.msra.mxu0 %v2229_v17  ;;  %v2262_v62 = vld [vmem:[%s2867_s1 + $0x120] sm:$0xff]   ;;  %v2266_v2 = vld [vmem:[%s2867_s1 + $0x128] sm:$0xff]   ;;  %v2271_v5 = vld [vmem:[%s2867_s1 + $0x1f0] sm:$0xff]  }
  0x18   : > { %2014 = vmatprep.subr.bf16.mxu0 %v2232_v20  ;;  %1505 = vmatprep.mubr.bf16.mxu1 %v491_v47  ;;  %v2264_v63 = vld [vmem:[%s2867_s1 + $0x1a0] sm:$0xff]   ;;  %v2268_v3 = vld [vmem:[%s2867_s1 + $0x1a8] sm:$0xff]   ;;  %v2270_v6 = vld [vmem:[%s2867_s1 + $0x130] sm:$0xff]  }
  0x19   : > { %2035 = vmatpush3.bf16.msra.mxu1 %v2231_v19  ;;  %v2272_v7 = vld [vmem:[%s2867_s1 + $0x1b0] sm:$0xff]   ;;  %v171_v8 = vld [vmem:[%s2494_s25 + $0x8] sm:$0xff]  ;;  %v2273_v9 = vld [vmem:[%s2867_s1 + $0x178] sm:$0xff]  }
  0x1a   : > { %2036 = vmatprep.subr.bf16.mxu1 %v2234_v22  ;;  %v499_v10 = vrot.slane %v171_v8, %v2512_v41  ;;  %v492_v11 = vcombine.high %v171_v8, %v171_v8  ;;  %v2275_v12 = vld [vmem:[%s2867_s1 + $0x1f8] sm:$0xff]   ;;  %v2277_v17 = vld [vmem:[%s2867_s1 + $0x240] sm:$0xff]   ;;  %v2282_v22 = vld [vmem:[%s2867_s1 + $0x248] sm:$0xff]  }
  0x1b   : > { %2015 = vmatpush3.bf16.msra.mxu0 %v2233_v21  ;;  %v2274_v13 = vld [vmem:[%s2867_s1 + $0x138] sm:$0xff]   ;;  %v2280_v19 = vld [vmem:[%s2867_s1 + $0x2c0] sm:$0xff]   ;;  %v2288_v27 = vld [vmem:[%s2867_s1 + $0x2d0] sm:$0xff]  }
  0x1c   : > { %2016 = vmatprep.subr.bf16.mxu0 %v2236_v24  ;;  %v507_v14 = vcombine.high %v499_v10, %v499_v10  ;;  %v506_v15 = vrot.slane %v492_v11, %v2512_v41  ;;  %v2276_v16 = vld [vmem:[%s2867_s1 + $0x1b8] sm:$0xff]   ;;  %v2279_v20 = vld [vmem:[%s2867_s1 + $0x200] sm:$0xff]   ;;  %v2283_v24 = vld [vmem:[%s2867_s1 + $0x208] sm:$0xff]  }
  0x1d   : > { %2037 = vmatpush3.bf16.msra.mxu1 %v2235_v23  ;;  %v2281_v21 = vld [vmem:[%s2867_s1 + $0x280] sm:$0xff]   ;;  %v2284_v23 = vld [vmem:[%s2867_s1 + $0x2c8] sm:$0xff]   ;;  %v2291_v32 = vld [vmem:[%s2867_s1 + $0x218] sm:$0xff]  }
  0x1e   : > { %2038 = vmatprep.subr.bf16.mxu1 %v2238_v26  ;;  %v508_v18 = vcombine.high %v506_v15, %v506_v15  ;;  %v2286_v26 = vld [vmem:[%s2867_s1 + $0x250] sm:$0xff]   ;;  %v2293_v33 = vld [vmem:[%s2867_s1 + $0x298] sm:$0xff]   ;;  %v2296_v35 = vld [vmem:[%s2867_s1 + $0x2e0] sm:$0xff]  }
  0x1f   : > { %2017 = vmatpush3.bf16.msra.mxu0 %v2237_v25  ;;  %v2285_v25 = vld [vmem:[%s2867_s1 + $0x288] sm:$0xff]   ;;  %v2295_v36 = vld [vmem:[%s2867_s1 + $0x220] sm:$0xff]   ;;  %v2305_v46 = vld [vmem:[%s2867_s1 + $0x2b0] sm:$0xff]  }
  0x20   : > { %2018 = vmatprep.subr.bf16.mxu0 %v2240_v29  ;;  %v2289_v29 = vld [vmem:[%s2867_s1 + $0x290] sm:$0xff]   ;;  %v2298_v38 = vld [vmem:[%s2867_s1 + $0x268] sm:$0xff]   ;;  %v2326_v8 = vld [vmem:[%s2867_s1 + $0x398] sm:$0xff]  }
  0x21   : > { %2039 = vmatpush3.bf16.msra.mxu1 %v2239_v28  ;;  %v2287_v28 = vld [vmem:[%s2867_s1 + $0x210] sm:$0xff]   ;;  %v2300_v39 = vld [vmem:[%s2867_s1 + $0x2e8] sm:$0xff]   ;;  %v2328_v11 = vld [vmem:[%s2867_s1 + $0x320] sm:$0xff]  }
  0x22   : > { %2040 = vmatprep.subr.bf16.mxu1 %v2242_v31  ;;  %v2292_v31 = vld [vmem:[%s2867_s1 + $0x2d8] sm:$0xff]   ;;  %v172_v47 = vld [vmem:[%s2494_s25 + $0x10] sm:$0xff] }
  0x23   : > { %2019 = vmatpush3.bf16.msra.mxu0 %v2241_v30  ;;  %v2290_v30 = vld [vmem:[%s2867_s1 + $0x258] sm:$0xff]  }
  0x24   : > { %2048 = vmatprep.subr.bf16.mxu0 %v2244_v37  ;;  %v2297_v37 = vld [vmem:[%s2867_s1 + $0x2a0] sm:$0xff]  }
  0x25   : > { %2041 = vmatpush3.bf16.msra.mxu1 %v2243_v34  ;;  %v2294_v34 = vld [vmem:[%s2867_s1 + $0x260] sm:$0xff]  }
  0x26   : > { %2070 = vmatprep.subr.bf16.mxu1 %v2247_v40  ;;  %1466 = vmatmul.mubr.bf16.vlgmr.msra.gmra.mrb[0].mxu0 %v482_v42  ;;  %v2299_v40 = vld [vmem:[%s2867_s1 + $0x228] sm:$0xff]  }
  0x27   : > { %2049 = vmatpush3.bf16.msra.mxu0 %v2246_v44  ;;  %1545 = vmatprep.mubr.bf16.mxu0 %v507_v14  ;;  %v2301_v42 = vld [vmem:[%s2867_s1 + $0x2a8] sm:$0xff]   ;;  %v2304_v44 = vld [vmem:[%s2867_s1 + $0x2f0] sm:$0xff]  }
  0x28   : > { %1506 = vmatmul.mubr.bf16.vlgmr.msra.gmra.mrb[0].mxu1 %v489_v43  ;;  %2050 = vmatprep.subr.bf16.mxu0 %v2249_v48  ;;  %v2302_v43 = vld [vmem:[%s2867_s1 + $0x270] sm:$0xff]   ;;  %v2306_v48 = vld [vmem:[%s2867_s1 + $0x278] sm:$0xff]   ;;  %v2333_v14 = vld [vmem:[%s2867_s1 + $0x3e8] sm:$0xff]  }
  0x29   : > { %2071 = vmatpush3.bf16.msra.mxu1 %v2248_v45  ;;  %1585 = vmatprep.mubr.bf16.mxu1 %v508_v18  ;;  %v2303_v45 = vld [vmem:[%s2867_s1 + $0x230] sm:$0xff]  }
  0x2a   : > { %2072 = vmatprep.subr.bf16.mxu1 %v2251_v49  ;;  %v516_v49 = vrot.slane %v172_v47, %v2512_v41  ;;  %v2337_v18 = vld [vmem:[%s2867_s1 + $0x3f0] sm:$0xff]  }
  0x2b   : > { %2051 = vmatpush3.bf16.msra.mxu0 %v2250_v50  ;;  %v509_v50 = vcombine.high %v172_v47, %v172_v47  ;;  %v2358_v47 = vld [vmem:[%s2867_s1 + $0x478] sm:$0xff]  }
  0x2c   : > { %2052 = vmatprep.subr.bf16.mxu0 %v2253_v52  ;;  %v2307_v52 = vld [vmem:[%s2867_s1 + $0x238] sm:$0xff]  }
  0x2d   : > { %2073 = vmatpush3.bf16.msra.mxu1 %v2252_v51  ;;  %v2308_v51 = vld [vmem:[%s2867_s1 + $0x2f8] sm:$0xff]  }
  0x2e   : > { %2074 = vmatprep.subr.bf16.mxu1 %v2255_v53  ;;  %v524_v53 = vcombine.high %v516_v49, %v516_v49 }
  0x2f   : > { %2053 = vmatpush3.bf16.msra.mxu0 %v2254_v54  ;;  %v523_v54 = vrot.slane %v509_v50, %v2512_v41 }
  0x30   : > { %2054 = vmatprep.subr.bf16.mxu0 %v2257_v56  ;;  %v2310_v56 = vld [vmem:[%s2867_s1 + $0x340] sm:$0xff]  }
  0x31   : > { %2075 = vmatpush3.bf16.msra.mxu1 %v2256_v55  ;;  %v2309_v55 = vld [vmem:[%s2867_s1 + $0x2b8] sm:$0xff]  }
  0x32   : > { %2076 = vmatprep.subr.bf16.mxu1 %v2259_v57  ;;  %v525_v57 = vcombine.high %v523_v54, %v523_v54 }
  0x33   : > { %2055 = vmatpush3.bf16.msra.mxu0 %v2258_v58  ;;  %v2313_v58 = vld [vmem:[%s2867_s1 + $0x3c0] sm:$0xff]  }
  0x34   : > { %2056 = vmatprep.subr.bf16.mxu0 %v2261_v60  ;;  %v2314_v60 = vld [vmem:[%s2867_s1 + $0x380] sm:$0xff]  }
  0x35   : > { %2077 = vmatpush3.bf16.msra.mxu1 %v2260_v59  ;;  %v2312_v59 = vld [vmem:[%s2867_s1 + $0x300] sm:$0xff]  }
  0x36   : > { %2078 = vmatprep.subr.bf16.mxu1 %v2263_v61  ;;  %v2315_v61 = vld [vmem:[%s2867_s1 + $0x348] sm:$0xff]  }
  0x37   : > { %2057 = vmatpush3.bf16.msra.mxu0 %v2262_v62  ;;  %v2317_v62 = vld [vmem:[%s2867_s1 + $0x3c8] sm:$0xff]  }
  0x38   : > { %2058 = vmatprep.subr.bf16.mxu0 %v2265_v0  ;;  %v2318_v0 = vld [vmem:[%s2867_s1 + $0x388] sm:$0xff]  }
  0x39   : > { %2079 = vmatpush3.bf16.msra.mxu1 %v2264_v63  ;;  %v2316_v63 = vld [vmem:[%s2867_s1 + $0x308] sm:$0xff]  }
  0x3a   : > { %2080 = vmatprep.subr.bf16.mxu1 %v2267_v1  ;;  %v2319_v1 = vld [vmem:[%s2867_s1 + $0x350] sm:$0xff]  }
  0x3b   : > { %2059 = vmatpush3.bf16.msra.mxu0 %v2266_v2  ;;  %v2321_v2 = vld [vmem:[%s2867_s1 + $0x3d0] sm:$0xff]  }
  0x3c   : > { %2060 = vmatprep.subr.bf16.mxu0 %v2269_v4  ;;  %v2322_v4 = vld [vmem:[%s2867_s1 + $0x390] sm:$0xff]  }
  0x3d   : > { %2081 = vmatpush3.bf16.msra.mxu1 %v2268_v3  ;;  %v2320_v3 = vld [vmem:[%s2867_s1 + $0x310] sm:$0xff]  }
  0x3e   : > { %2082 = vmatprep.subr.bf16.mxu1 %v2271_v5  ;;  %v2323_v5 = vld [vmem:[%s2867_s1 + $0x358] sm:$0xff]  }
  0x3f   : > { %2061 = vmatpush3.bf16.msra.mxu0 %v2270_v6  ;;  %v2325_v6 = vld [vmem:[%s2867_s1 + $0x3d8] sm:$0xff]  }
  0x40   : > { %2062 = vmatprep.subr.bf16.mxu0 %v2273_v9  ;;  %v2327_v9 = vld [vmem:[%s2867_s1 + $0x360] sm:$0xff]  }
  0x41   : > { %2083 = vmatpush3.bf16.msra.mxu1 %v2272_v7  ;;  %v2324_v7 = vld [vmem:[%s2867_s1 + $0x318] sm:$0xff]  }
  0x42   : > { %2084 = vmatprep.subr.bf16.mxu1 %v2275_v12  ;;  %v2330_v12 = vld [vmem:[%s2867_s1 + $0x3a0] sm:$0xff]  }
  0x43   : > { %2063 = vmatpush3.bf16.msra.mxu0 %v2274_v13  ;;  %v2331_v13 = vld [vmem:[%s2867_s1 + $0x368] sm:$0xff]  }
  0x44   : > { %2092 = vmatprep.subr.bf16.mxu0 %v2277_v17  ;;  %v2335_v17 = vld [vmem:[%s2867_s1 + $0x370] sm:$0xff]  }
  0x45   : > { %2085 = vmatpush3.bf16.msra.mxu1 %v2276_v16  ;;  %v2334_v16 = vld [vmem:[%s2867_s1 + $0x3a8] sm:$0xff]  }
  0x46   : > { %2114 = vmatprep.subr.bf16.mxu1 %v2280_v19  ;;  %1546 = vmatmul.mubr.bf16.vlgmr.msra.gmra.mrb[4].mxu0 %v499_v10  ;;  %v2329_v10 = vld [vmem:[%s2867_s1 + $0x3e0] sm:$0xff]   ;;  %v2336_v19 = vld [vmem:[%s2867_s1 + $0x330] sm:$0xff]  }
  0x47   : > { %2093 = vmatpush3.bf16.msra.mxu0 %v2279_v20  ;;  %1625 = vmatprep.mubr.bf16.mxu0 %v524_v53  ;;  %v2338_v20 = vld [vmem:[%s2867_s1 + $0x3b0] sm:$0xff]  }
  0x48   : > { %1586 = vmatmul.mubr.bf16.vlgmr.msra.gmra.mrb[4].mxu1 %v506_v15  ;;  %2094 = vmatprep.subr.bf16.mxu0 %v2282_v22  ;;  %v2332_v15 = vld [vmem:[%s2867_s1 + $0x328] sm:$0xff]   ;;  %v173_v22 = vld [vmem:[%s2494_s25 + $0x18] sm:$0xff] }
  0x49   : > { %2115 = vmatpush3.bf16.msra.mxu1 %v2281_v21  ;;  %1665 = vmatprep.mubr.bf16.mxu1 %v525_v57  ;;  %v2339_v21 = vld [vmem:[%s2867_s1 + $0x378] sm:$0xff]  }
  0x4a   : > { %2116 = vmatprep.subr.bf16.mxu1 %v2284_v23  ;;  %v2341_v23 = vld [vmem:[%s2867_s1 + $0x3f8] sm:$0xff]  }
  0x4b   : > { %2095 = vmatpush3.bf16.msra.mxu0 %v2283_v24  ;;  %v533_v24 = vrot.slane %v173_v22, %v2512_v41 }
  0x4c   : > { %2096 = vmatprep.subr.bf16.mxu0 %v2286_v26  ;;  %v2340_v26 = vld [vmem:[%s2867_s1 + $0x338] sm:$0xff]  }
  0x4d   : > { %2117 = vmatpush3.bf16.msra.mxu1 %v2285_v25  ;;  %v526_v25 = vcombine.high %v173_v22, %v173_v22 }
  0x4e   : > { %2118 = vmatprep.subr.bf16.mxu1 %v2288_v27  ;;  %v541_v27 = vcombine.high %v533_v24, %v533_v24 }
  0x4f   : > { %2097 = vmatpush3.bf16.msra.mxu0 %v2287_v28  ;;  %v540_v28 = vrot.slane %v526_v25, %v2512_v41  ;;  %v2345_v41 = vld [vmem:[%s2867_s1 + $0x400] sm:$0xff]  }
  0x50   : > { %2098 = vmatprep.subr.bf16.mxu0 %v2290_v30  ;;  %v2343_v30 = vld [vmem:[%s2867_s1 + $0x440] sm:$0xff]  }
  0x51   : > { %2119 = vmatpush3.bf16.msra.mxu1 %v2289_v29  ;;  %v2342_v29 = vld [vmem:[%s2867_s1 + $0x3b8] sm:$0xff]  }
  0x52   : > { %2120 = vmatprep.subr.bf16.mxu1 %v2292_v31  ;;  %v542_v31 = vcombine.high %v540_v28, %v540_v28 }
  0x53   : > { %2099 = vmatpush3.bf16.msra.mxu0 %v2291_v32  ;;  %v2346_v32 = vld [vmem:[%s2867_s1 + $0x448] sm:$0xff]  }
  0x54   : > { %2100 = vmatprep.subr.bf16.mxu0 %v2294_v34  ;;  %v2348_v34 = vld [vmem:[%s2867_s1 + $0x450] sm:$0xff]  }
  0x55   : > { %2121 = vmatpush3.bf16.msra.mxu1 %v2293_v33  ;;  %v2347_v33 = vld [vmem:[%s2867_s1 + $0x408] sm:$0xff]  }
  0x56   : > { %2122 = vmatprep.subr.bf16.mxu1 %v2296_v35  ;;  %v2349_v35 = vld [vmem:[%s2867_s1 + $0x410] sm:$0xff]  }
  0x57   : > { %2101 = vmatpush3.bf16.msra.mxu0 %v2295_v36  ;;  %v2350_v36 = vld [vmem:[%s2867_s1 + $0x458] sm:$0xff]  }
  0x58   : > { %2102 = vmatprep.subr.bf16.mxu0 %v2298_v38 }
  0x59   : > { %2123 = vmatpush3.bf16.msra.mxu1 %v2297_v37  ;;  %v1857_v37 = vld.sshfl [vmem:[%s2494_s25 + $0x20] sm:$0x33 pattern:$0x76325410] }
  0x5a   : > { %2124 = vmatprep.subr.bf16.mxu1 %v2300_v39  ;;  %v550_v38 = vcombine.high %v1857_v37, %v1857_v37  ;;  %v2351_v39 = vld [vmem:[%s2867_s1 + $0x418] sm:$0xff]  }
  0x5b   : > { %2103 = vmatpush3.bf16.msra.mxu0 %v2299_v40  ;;  %v2352_v40 = vld [vmem:[%s2867_s1 + $0x460] sm:$0xff]  }
  0x5c   : > { %2104 = vmatprep.subr.bf16.mxu0 %v2302_v43  ;;  %v2354_v43 = vld [vmem:[%s2867_s1 + $0x468] sm:$0xff]  }
  0x5d   : > { %2125 = vmatpush3.bf16.msra.mxu1 %v2301_v42  ;;  %v2353_v42 = vld [vmem:[%s2867_s1 + $0x420] sm:$0xff]  }
  0x5e   : > { %2126 = vmatprep.subr.bf16.mxu1 %v2304_v44  ;;  %v2355_v44 = vld [vmem:[%s2867_s1 + $0x428] sm:$0xff]  }
  0x5f   : > { %2105 = vmatpush3.bf16.msra.mxu0 %v2303_v45  ;;  %v2356_v45 = vld [vmem:[%s2867_s1 + $0x470] sm:$0xff]  }
  0x60   : > { %2106 = vmatprep.subr.bf16.mxu0 %v2306_v48  ;;  %v2359_v48 = vld [vmem:[%s2867_s1 + $0x438] sm:$0xff]  }
  0x61   : > { %2127 = vmatpush3.bf16.msra.mxu1 %v2305_v46  ;;  %v2357_v46 = vld [vmem:[%s2867_s1 + $0x430] sm:$0xff]  }
  0x62   : > { %2128 = vmatprep.subr.bf16.mxu1 %v2308_v51  ;;  %v1856_v51 = vld [vmem:[%s2868_s2] ss:$0 sm:$0xff] }
  0x63   : > { %2107 = vmatpush3.bf16.msra.mxu0 %v2307_v52 }
  0x64   : > { %2136 = vmatprep.subr.bf16.mxu0 %v2310_v56 }
  0x65   : > { %2129 = vmatpush3.bf16.msra.mxu1 %v2309_v55 }
  0x66   : > { %2158 = vmatprep.subr.bf16.mxu1 %v2313_v58  ;;  %1626 = vmatmul.mubr.bf16.vlgmr.msra.gmra.mrb[8].mxu0 %v516_v49 }
  0x67   : > { %2137 = vmatpush3.bf16.msra.mxu0 %v2312_v59  ;;  %1705 = vmatprep.mubr.bf16.mxu0 %v541_v27 }
  0x68   : > { %1666 = vmatmul.mubr.bf16.vlgmr.msra.gmra.mrb[8].mxu1 %v523_v54  ;;  %2138 = vmatprep.subr.bf16.mxu0 %v2315_v61 }
  0x69   : > { %2159 = vmatpush3.bf16.msra.mxu1 %v2314_v60  ;;  %1745 = vmatprep.mubr.bf16.mxu1 %v542_v31 }
  0x6a   : > { %2160 = vmatprep.subr.bf16.mxu1 %v2317_v62 }
  0x6b   : > { %2139 = vmatpush3.bf16.msra.mxu0 %v2316_v63 }
  0x6c   : > { %2140 = vmatprep.subr.bf16.mxu0 %v2319_v1 }
  0x6d   : > { %2161 = vmatpush3.bf16.msra.mxu1 %v2318_v0 }
  0x6e   : > { %2162 = vmatprep.subr.bf16.mxu1 %v2321_v2 }
  0x6f   : > { %2141 = vmatpush3.bf16.msra.mxu0 %v2320_v3 }
  0x70   : > { %2142 = vmatprep.subr.bf16.mxu0 %v2323_v5 }
  0x71   : > { %2163 = vmatpush3.bf16.msra.mxu1 %v2322_v4 }
  0x72   : > { %2164 = vmatprep.subr.bf16.mxu1 %v2325_v6 }
  0x73   : > { %2143 = vmatpush3.bf16.msra.mxu0 %v2324_v7 }
  0x74   : > { %2144 = vmatprep.subr.bf16.mxu0 %v2327_v9 }
  0x75   : > { %2165 = vmatpush3.bf16.msra.mxu1 %v2326_v8 }
  0x76   : > { %2166 = vmatprep.subr.bf16.mxu1 %v2329_v10 }
  0x77   : > { %2145 = vmatpush3.bf16.msra.mxu0 %v2328_v11 }
  0x78   : > { %2146 = vmatprep.subr.bf16.mxu0 %v2331_v13 }
  0x79   : > { %2167 = vmatpush3.bf16.msra.mxu1 %v2330_v12 }
  0x7a   : > { %2168 = vmatprep.subr.bf16.mxu1 %v2333_v14 }
  0x7b   : > { %2147 = vmatpush3.bf16.msra.mxu0 %v2332_v15 }
  0x7c   : > { %2148 = vmatprep.subr.bf16.mxu0 %v2335_v17 }
  0x7d   : > { %2169 = vmatpush3.bf16.msra.mxu1 %v2334_v16 }
  0x7e   : > { %2170 = vmatprep.subr.bf16.mxu1 %v2337_v18 }
  0x7f   : > { %2149 = vmatpush3.bf16.msra.mxu0 %v2336_v19 }
  0x80   : > { %2150 = vmatprep.subr.bf16.mxu0 %v2339_v21 }
  0x81   : > { %2171 = vmatpush3.bf16.msra.mxu1 %v2338_v20 }
  0x82   : > { %2172 = vmatprep.subr.bf16.mxu1 %v2341_v23 }
  0x83   : > { %2151 = vmatpush3.bf16.msra.mxu0 %v2340_v26 }
  0x84   : > { %2180 = vmatprep.subr.bf16.mxu0 %v2343_v30 }
  0x85   : > { %2173 = vmatpush3.bf16.msra.mxu1 %v2342_v29 }
  0x86   : > { %1706 = vmatmul.mubr.bf16.vlgmr.msra.gmra.mrb[12].mxu0 %v533_v24 }
  0x87   : > { %2181 = vmatpush3.bf16.msra.mxu0 %v2345_v41  ;;  %1785 = vmatprep.mubr.bf16.mxu0 %v550_v38 }
  0x88   : > { %1746 = vmatmul.mubr.bf16.vlgmr.msra.gmra.mrb[12].mxu1 %v540_v28  ;;  %2182 = vmatprep.subr.bf16.mxu0 %v2346_v32 }
  0x8b   : > { %2183 = vmatpush3.bf16.msra.mxu0 %v2347_v33 }
  0x8c   : > { %2184 = vmatprep.subr.bf16.mxu0 %v2348_v34 }
  0x8f   : > { %2185 = vmatpush3.bf16.msra.mxu0 %v2349_v35 }
  0x90   : > { %2186 = vmatprep.subr.bf16.mxu0 %v2350_v36 }
  0x93   : > { %2187 = vmatpush3.bf16.msra.mxu0 %v2351_v39 }
  0x94   : > { %2188 = vmatprep.subr.bf16.mxu0 %v2352_v40 }
  0x97   : > { %2189 = vmatpush3.bf16.msra.mxu0 %v2353_v42 }
  0x98   : > { %2190 = vmatprep.subr.bf16.mxu0 %v2354_v43 }
  0x9b   : > { %2191 = vmatpush3.bf16.msra.mxu0 %v2355_v44 }
  0x9c   : > { %2192 = vmatprep.subr.bf16.mxu0 %v2356_v45 }
  0x9f   : > { %2193 = vmatpush3.bf16.msra.mxu0 %v2357_v46 }
  0xa0   : > { %2194 = vmatprep.subr.bf16.mxu0 %v2358_v47 }
  0xa3   : > { %2195 = vmatpush3.bf16.msra.mxu0 %v2359_v48 }
  0xa6   : > { %1786 = vmatmul.mubr.bf16.vlgmr.msra.gmra.mrb[16].mxu0 %v1857_v37 }
  0xf9   : > { %v2020_v49 = vpop.f32.mrb[0].mxu0 }
  0xfa   : > { %v2021_v52 = vpop.f32.mrb[1].mxu0 }
  0xfb   : > { %v2042_v50 = vpop.f32.mrb[0].mxu1  ;;  %v2022_v54 = vadd.f32 %v2021_v52, %v2020_v49  ;;  %v2023_v55 = vpop.f32.mrb[2].mxu0 }
  0xfc   : > { %v2043_v53 = vpop.f32.mrb[1].mxu1  ;;  %v2024_v58 = vpop.f32.mrb[3].mxu0 }
  0xfd   : > { %v2044_v56 = vadd.f32 %v2043_v53, %v2042_v50  ;;  %v2045_v57 = vpop.f32.mrb[2].mxu1  ;;  %v1468_v60 = vadd.f32 %v2022_v54, %v1856_v51 }
  0xfe   : > { %v2046_v59 = vpop.f32.mrb[3].mxu1 }
  0xff   : > { %v1508_v61 = vadd.f32 %v2044_v56, %v1468_v60 }
 0x119   : > { %v2064_v62 = vpop.f32.mrb[4].mxu0 }
 0x11a   : > { %v2065_v0 = vpop.f32.mrb[5].mxu0 }
 0x11b   : > { %v2086_v63 = vpop.f32.mrb[4].mxu1  ;;  %v2066_v2 = vadd.f32 %v2065_v0, %v2064_v62  ;;  %v2067_v3 = vpop.f32.mrb[6].mxu0 }
 0x11c   : > { %v2087_v1 = vpop.f32.mrb[5].mxu1  ;;  %v2068_v6 = vpop.f32.mrb[7].mxu0 }
 0x11d   : > { %v2088_v4 = vadd.f32 %v2087_v1, %v2086_v63  ;;  %v2089_v5 = vpop.f32.mrb[6].mxu1  ;;  %v1548_v8 = vadd.f32 %v2066_v2, %v1508_v61 }
 0x11e   : > { %v2090_v7 = vpop.f32.mrb[7].mxu1 }
 0x11f   : > { %v1588_v9 = vadd.f32 %v2088_v4, %v1548_v8 }
 0x139   : > { %v2108_v10 = vpop.f32.mrb[8].mxu0 }
 0x13a   : > { %v2109_v12 = vpop.f32.mrb[9].mxu0 }
 0x13b   : > { %v2130_v11 = vpop.f32.mrb[8].mxu1  ;;  %v2110_v14 = vadd.f32 %v2109_v12, %v2108_v10  ;;  %v2111_v15 = vpop.f32.mrb[10].mxu0 }
 0x13c   : > { %v2131_v13 = vpop.f32.mrb[9].mxu1  ;;  %v2112_v18 = vpop.f32.mrb[11].mxu0 }
 0x13d   : > { %v2132_v16 = vadd.f32 %v2131_v13, %v2130_v11  ;;  %v2133_v17 = vpop.f32.mrb[10].mxu1  ;;  %v1628_v20 = vadd.f32 %v2110_v14, %v1588_v9 }
 0x13e   : > { %v2134_v19 = vpop.f32.mrb[11].mxu1 }
 0x13f   : > { %v1668_v21 = vadd.f32 %v2132_v16, %v1628_v20 }
 0x159   : > { %v2152_v22 = vpop.f32.mrb[12].mxu0 }
 0x15a   : > { %v2153_v24 = vpop.f32.mrb[13].mxu0 }
 0x15b   : > { %v2174_v23 = vpop.f32.mrb[12].mxu1  ;;  %v2154_v26 = vadd.f32 %v2153_v24, %v2152_v22  ;;  %v2155_v27 = vpop.f32.mrb[14].mxu0 }
 0x15c   : > { %v2175_v25 = vpop.f32.mrb[13].mxu1  ;;  %v2156_v30 = vpop.f32.mrb[15].mxu0 }
 0x15d   : > { %v2176_v28 = vadd.f32 %v2175_v25, %v2174_v23  ;;  %v2177_v29 = vpop.f32.mrb[14].mxu1  ;;  %v1708_v41 = vadd.f32 %v2154_v26, %v1668_v21 }
 0x15e   : > { %v2178_v31 = vpop.f32.mrb[15].mxu1 }
 0x15f   : > { %v1748_v32 = vadd.f32 %v2176_v28, %v1708_v41 }
 0x179   : > { %v2196_v33 = vpop.f32.mrb[16].mxu0 }
 0x17a   : > { %v2197_v34 = vpop.f32.mrb[17].mxu0 }
 0x17b   : > { %v2198_v35 = vadd.f32 %v2197_v34, %v2196_v33  ;;  %v2199_v36 = vpop.f32.mrb[18].mxu0 }
 0x17c   : > { %v2200_v37 = vpop.f32.mrb[19].mxu0 }
 0x17d   : > { %v1788_v38 = vadd.f32 %v2198_v35, %v1748_v32 }
 0x17f   : > { %v1793_v39 = vmax.f32 %v1788_v38, 0.0 }
 0x181   : > { %v1794_v40 = vpack.c.bf16 %v1793_v39, %v1793_v39 }
 0x183   : > { %1795 = vst [vmem:[%s168_s19] sm:$0x3] %v1794_v40 }
 0x184 PF: > { %s13_s12 = sadd.s32 1, %s2366_s12  }
 0x185   : > { %p10_p4 = scmp.ge.s32.totalorder %s13_s12, 4  }
 0x187   :  { %12 = sbr.rel (!%p10_p4) target bundleno = 1 (0x1), region = 62 }

// kernel: encoder_forward.21
= control target key start
LH: loop header
LB: loop body
LE: loop exit
PB: predicated region body
PF: predicated region fallthrough
CT: control target
= control target key end

     0   :  { %s515_s12 = smov 0   ;;  %s587_s0 = inlined_call_operand.vmem [shape: bf16[2,4,256], index: 0, kind: input, shape index: {}]   ;;  %s588_s1 = inlined_call_operand.vmem [shape: bf16[256,128], index: 1, kind: input, shape index: {}]   ;;  %s589_s2 = inlined_call_operand.vmem [shape: f32[1,128], index: 2, kind: input, shape index: {}]   ;;  %s590_s3 = inlined_call_operand.vmem [shape: bf16[2,4,128], index: 3, kind: output, shape index: {}]  }
   0x1 LB: > { %s412_s13 = sadd.s32 4294967295, %s493_s12   ;;  %p416_p0 = scmp.ge.s32.totalorder %s493_s12, 1  ;;  %s493_s12 = sphi %s515_s12, %s13_s12  }
   0x2   : > { %p137_p1 = scmp.lt.s32.totalorder %s493_s12, 3 }
   0x4   : > { %p138_p2 = pnand %p416_p0, %p137_p1 }
   0x5   : > { %v471_v0 = vld [vmem:[%s588_s1 + $0x40] sm:$0xff] (!%p138_p2)   ;;  %v473_v2 = vld [vmem:[%s588_s1 + $0x48] sm:$0xff] (!%p138_p2)   ;;  %p160_p3 = scmp.lt.s32.totalorder (!%p138_p2), %s412_s13, 1  ;;  %v475_v4 = vld [vmem:[%s588_s1 + $0x50] sm:$0xff] (!%p138_p2)  }
   0x6   : > { %141 = sbr.rel (%p138_p2) target bundleno = 258 (0x102), region = 32  ;;  %v472_v1 = vld [vmem:[%s588_s1] sm:$0xff] (!%p138_p2)   ;;  %441 = vmatprep.subr.bf16.mxu0 (!%p138_p2), %v471_v0  ;;  %v474_v3 = vld [vmem:[%s588_s1 + $0x8] sm:$0xff] (!%p138_p2)   ;;  %v476_v5 = vld [vmem:[%s588_s1 + $0x10] sm:$0xff] (!%p138_p2)  }
   0x7   : > { %442 = vmatpush3.bf16.msra.mxu0 (!%p138_p2), %v472_v1  ;;  %v477_v6 = vld [vmem:[%s588_s1 + $0x58] sm:$0xff] (!%p138_p2)   ;;  %v479_v8 = vld [vmem:[%s588_s1 + $0x60] sm:$0xff] (!%p138_p2)   ;;  %v481_v10 = vld [vmem:[%s588_s1 + $0x68] sm:$0xff] (!%p138_p2)  }
   0x8   : > { %443 = vmatprep.subr.bf16.mxu0 (!%p138_p2), %v473_v2  ;;  %v478_v7 = vld [vmem:[%s588_s1 + $0x18] sm:$0xff] (!%p138_p2)   ;;  %v480_v9 = vld [vmem:[%s588_s1 + $0x20] sm:$0xff] (!%p138_p2)   ;;  %v482_v13 = vld [vmem:[%s588_s1 + $0x28] sm:$0xff] (!%p138_p2)  }
   0x9   : > { %v483_v14 = vld [vmem:[%s588_s1 + $0x70] sm:$0xff] (!%p138_p2)   ;;  %v485_v16 = vld [vmem:[%s588_s1 + $0x78] sm:$0xff] (!%p138_p2)   ;;  %v420_v19 = vld [vmem:[%s589_s2] ss:$0 sm:$0xff] (!%p138_p2) }
   0xa   : > { %v484_v15 = vld [vmem:[%s588_s1 + $0x30] sm:$0xff] (!%p138_p2)   ;;  %v486_v17 = vld [vmem:[%s588_s1 + $0x38] sm:$0xff] (!%p138_p2)  }
   0xb   : > { %444 = vmatpush3.bf16.msra.mxu0 (!%p138_p2), %v474_v3 }
   0xc   : > { %445 = vmatprep.subr.bf16.mxu0 (!%p138_p2), %v475_v4 }
   0xd   : > { %s592_s13 = smov (!%p160_p3, %s412_s13), 1 }
   0xe   : > { %s440_s28 = sshll.u32 %s592_s13, 2  ;;  %s419_s27 = sshll.u32 %s592_s13, 1 }
   0xf   : > { %446 = vmatpush3.bf16.msra.mxu0 %v476_v5  ;;  %s164_s8 = scalar_lea.vmem %s587_s0, %s440_s28  ;;  %s168_s30 = scalar_lea.vmem %s590_s3, %s419_s27 }
  0x10   : > { %447 = vmatprep.subr.bf16.mxu0 %v477_v6  ;;  %v421_v11 = vld.sshfl [vmem:[%s164_s8] sm:$0x33 pattern:$0x76325410] }
  0x11   : > { %v218_v12 = vcombine.high %v421_v11, %v421_v11 }
  0x13   : > { %448 = vmatpush3.bf16.msra.mxu0 %v478_v7  ;;  %349 = vmatprep.mubr.bf16.mxu0 %v218_v12 }
  0x14   : > { %449 = vmatprep.subr.bf16.mxu0 %v479_v8 }
  0x17   : > { %450 = vmatpush3.bf16.msra.mxu0 %v480_v9 }
  0x18   : > { %451 = vmatprep.subr.bf16.mxu0 %v481_v10 }
  0x1b   : > { %452 = vmatpush3.bf16.msra.mxu0 %v482_v13 }
  0x1c   : > { %453 = vmatprep.subr.bf16.mxu0 %v483_v14 }
  0x1f   : > { %454 = vmatpush3.bf16.msra.mxu0 %v484_v15 }
  0x20   : > { %455 = vmatprep.subr.bf16.mxu0 %v485_v16 }
  0x23   : > { %456 = vmatpush3.bf16.msra.mxu0 %v486_v17 }
  0x26   : > { %350 = vmatmul.mubr.bf16.vlgmr.msra.gmra.mrb[0].mxu0 %v421_v11 }
  0xf9   : > { %v457_v18 = vpop.f32.mrb[0].mxu0 }
  0xfa   : > { %v458_v20 = vpop.f32.mrb[1].mxu0 }
  0xfb   : > { %v459_v21 = vadd.f32 %v458_v20, %v457_v18  ;;  %v460_v22 = vpop.f32.mrb[2].mxu0 }
  0xfc   : > { %v461_v23 = vpop.f32.mrb[3].mxu0 }
  0xfd   : > { %v352_v24 = vadd.f32 %v459_v21, %v420_v19 }
  0xff   : > { %v357_v25 = vpack.c.bf16 %v352_v24, %v352_v24 }
 0x101   : > { %358 = vst [vmem:[%s168_s30] sm:$0x3] %v357_v25 }
 0x102 PF: > { %s13_s12 = sadd.s32 1, %s493_s12  }
 0x103   : > { %p10_p4 = scmp.ge.s32.totalorder %s13_s12, 4  }
 0x105   :  { %12 = sbr.rel (!%p10_p4) target bundleno = 1 (0x1), region = 62 }

// kernel: encoder_forward.20
= control target key start
LH: loop header
LB: loop body
LE: loop exit
PB: predicated region body
PF: predicated region fallthrough
CT: control target
= control target key end

     0   :  { %s3382_s18 = smov 0   ;;  %s4346_s0 = inlined_call_operand.vmem [shape: bf16[2,4,2304], index: 0, kind: input, shape index: {}]   ;;  %s4347_s1 = inlined_call_operand.vmem [shape: bf16[2304,256], index: 1, kind: input, shape index: {}]   ;;  %s4348_s2 = inlined_call_operand.vmem [shape: f32[1,256], index: 2, kind: input, shape index: {}]   ;;  %s4349_s3 = inlined_call_operand.vmem [shape: bf16[2,4,256], index: 3, kind: input, shape index: {}]   ;;  %s4350_s4 = inlined_call_operand.vmem [shape: f32[2,1,256], index: 4, kind: input, shape index: {}]   ;;  %s4351_s5 = inlined_call_operand.vmem [shape: bf16[2,4,256], index: 5, kind: output, shape index: {}]  }
   0x1 LB: > { %s2591_s19 = sadd.s32 4294967295, %s3349_s18   ;;  %p2595_p0 = scmp.ge.s32.totalorder %s3349_s18, 1  ;;  %s3349_s18 = sphi %s3382_s18, %s15_s18  }
   0x2   : > { %p206_p1 = scmp.lt.s32.totalorder %s3349_s18, 3 }
   0x4   : > { %p207_p2 = pnand %p2595_p0, %p206_p1 }
   0x5   : > { %v2907_v0 = vld [vmem:[%s4347_s1 + $0x4] ss:$8 sps:$4 sm:$0xff] (!%p207_p2)   ;;  %v2909_v1 = vld [vmem:[%s4347_s1] ss:$8 sps:$4 sm:$0xff] (!%p207_p2)   ;;  %v2913_v4 = vld [vmem:[%s4347_s1 + $0x14] ss:$8 sps:$4 sm:$0xff] (!%p207_p2)   ;;  %v557_v35 = vlaneseq (!%p207_p2) }
   0x6   : > { %210 = sbr.rel (%p207_p2) target bundleno = 550 (0x226), region = 40  ;;  %2106 = vmatprep.subr.bf16.mxu0 (!%p207_p2), %v2907_v0  ;;  %v2910_v2 = vld [vmem:[%s4347_s1 + $0x104] ss:$8 sps:$4 sm:$0xff] (!%p207_p2)   ;;  %v2912_v3 = vld [vmem:[%s4347_s1 + $0x100] ss:$8 sps:$4 sm:$0xff] (!%p207_p2)   ;;  %p243_p3 = scmp.lt.s32.totalorder (!%p207_p2), %s2591_s19, 1 }
   0x7   : > { %2107 = vmatpush1.bf16.msra.mxu0 (!%p207_p2), %v2909_v1  ;;  %v2915_v5 = vld [vmem:[%s4347_s1 + $0x10] ss:$8 sps:$4 sm:$0xff] (!%p207_p2)   ;;  %2147 = vmatprep.subr.bf16.mxu1 (!%p207_p2), %v2910_v2  ;;  %v2916_v6 = vld [vmem:[%s4347_s1 + $0x114] ss:$8 sps:$4 sm:$0xff] (!%p207_p2)   ;;  %v2919_v8 = vld [vmem:[%s4347_s1 + $0x24] ss:$8 sps:$4 sm:$0xff] (!%p207_p2)  }
   0x8   : > { %2148 = vmatpush1.bf16.msra.mxu1 (!%p207_p2), %v2912_v3  ;;  %2108 = vmatprep.subr.bf16.mxu0 (!%p207_p2), %v2913_v4  ;;  %v2918_v7 = vld [vmem:[%s4347_s1 + $0x110] ss:$8 sps:$4 sm:$0xff] (!%p207_p2)   ;;  %v2921_v9 = vld [vmem:[%s4347_s1 + $0x20] ss:$8 sps:$4 sm:$0xff] (!%p207_p2)   ;;  %v2922_v10 = vld [vmem:[%s4347_s1 + $0x124] ss:$8 sps:$4 sm:$0xff] (!%p207_p2)  }
   0x9   : > { %2149 = vmatprep.subr.bf16.mxu1 (!%p207_p2), %v2916_v6  ;;  %v2925_v11 = vld [vmem:[%s4347_s1 + $0x34] ss:$8 sps:$4 sm:$0xff] (!%p207_p2)   ;;  %v2924_v12 = vld [vmem:[%s4347_s1 + $0x120] ss:$8 sps:$4 sm:$0xff] (!%p207_p2)   ;;  %v2927_v14 = vld [vmem:[%s4347_s1 + $0x30] ss:$8 sps:$4 sm:$0xff] (!%p207_p2)  }
   0xa   : > { %v2928_v13 = vld [vmem:[%s4347_s1 + $0x134] ss:$8 sps:$4 sm:$0xff] (!%p207_p2)   ;;  %v2931_v15 = vld [vmem:[%s4347_s1 + $0x44] ss:$8 sps:$4 sm:$0xff] (!%p207_p2)   ;;  %v2930_v16 = vld [vmem:[%s4347_s1 + $0x130] ss:$8 sps:$4 sm:$0xff] (!%p207_p2)  }
   0xb   : > { %2109 = vmatpush1.bf16.msra.mxu0 (!%p207_p2), %v2915_v5  ;;  %v2934_v17 = vld [vmem:[%s4347_s1 + $0x144] ss:$8 sps:$4 sm:$0xff] (!%p207_p2)   ;;  %v2933_v18 = vld [vmem:[%s4347_s1 + $0x40] ss:$8 sps:$4 sm:$0xff] (!%p207_p2)   ;;  %v2937_v19 = vld [vmem:[%s4347_s1 + $0x54] ss:$8 sps:$4 sm:$0xff] (!%p207_p2)  }
   0xc   : > { %2110 = vmatprep.subr.bf16.mxu0 (!%p207_p2), %v2919_v8  ;;  %2150 = vmatpush1.bf16.msra.mxu1 (!%p207_p2), %v2918_v7  ;;  %v2936_v20 = vld [vmem:[%s4347_s1 + $0x140] ss:$8 sps:$4 sm:$0xff] (!%p207_p2)   ;;  %v2940_v21 = vld [vmem:[%s4347_s1 + $0x154] ss:$8 sps:$4 sm:$0xff] (!%p207_p2)   ;;  %v2939_v22 = vld [vmem:[%s4347_s1 + $0x50] ss:$8 sps:$4 sm:$0xff] (!%p207_p2)  }
   0xd   : > { %2151 = vmatprep.subr.bf16.mxu1 %v2922_v10  ;;  %v2943_v23 = vld [vmem:[%s4347_s1 + $0x64] ss:$8 sps:$4 sm:$0xff]   ;;  %v2942_v24 = vld [vmem:[%s4347_s1 + $0x150] ss:$8 sps:$4 sm:$0xff]   ;;  %v2945_v26 = vld [vmem:[%s4347_s1 + $0x60] ss:$8 sps:$4 sm:$0xff]  }
   0xe   : > { %v2946_v25 = vld [vmem:[%s4347_s1 + $0x164] ss:$8 sps:$4 sm:$0xff]   ;;  %v2949_v27 = vld [vmem:[%s4347_s1 + $0x74] ss:$8 sps:$4 sm:$0xff]   ;;  %v2948_v28 = vld [vmem:[%s4347_s1 + $0x160] ss:$8 sps:$4 sm:$0xff]  }
   0xf   : > { %2111 = vmatpush1.bf16.msra.mxu0 %v2921_v9  ;;  %v2952_v29 = vld [vmem:[%s4347_s1 + $0x174] ss:$8 sps:$4 sm:$0xff]   ;;  %v2951_v30 = vld [vmem:[%s4347_s1 + $0x70] ss:$8 sps:$4 sm:$0xff]   ;;  %v2955_v31 = vld [vmem:[%s4347_s1 + $0x84] ss:$8 sps:$4 sm:$0xff]  }
  0x10   : > { %2112 = vmatprep.subr.bf16.mxu0 %v2925_v11  ;;  %2152 = vmatpush1.bf16.msra.mxu1 %v2924_v12  ;;  %v2954_v32 = vld [vmem:[%s4347_s1 + $0x170] ss:$8 sps:$4 sm:$0xff]   ;;  %v2958_v33 = vld [vmem:[%s4347_s1 + $0x184] ss:$8 sps:$4 sm:$0xff]   ;;  %v2957_v34 = vld [vmem:[%s4347_s1 + $0x80] ss:$8 sps:$4 sm:$0xff]  }
  0x11   : > { %2153 = vmatprep.subr.bf16.mxu1 %v2928_v13  ;;  %s4353_s19 = smov (!%p243_p3, %s2591_s19), 1  ;;  %v3351_v36 = vmov 1983009808   ;;  %v2961_v38 = vld [vmem:[%s4347_s1 + $0x94] ss:$8 sps:$4 sm:$0xff]   ;;  %v3514_v42 = vshrl.u32 %v557_v35, 7 }
  0x12   : > { %v574_v37 = vunpack.c.l.s4 %v3351_v36  ;;  %v2960_v39 = vld [vmem:[%s4347_s1 + $0x180] ss:$8 sps:$4 sm:$0xff]   ;;  %v2964_v40 = vld [vmem:[%s4347_s1 + $0x194] ss:$8 sps:$4 sm:$0xff]   ;;  %v2963_v41 = vld [vmem:[%s4347_s1 + $0x90] ss:$8 sps:$4 sm:$0xff]  }
  0x13   : > { %2113 = vmatpush1.bf16.msra.mxu0 %v2927_v14  ;;  %s2897_s29 = smul.u32 36, %s4353_s19  ;;  %v2967_v44 = vld [vmem:[%s4347_s1 + $0xa4] ss:$8 sps:$4 sm:$0xff]   ;;  %v2966_v45 = vld [vmem:[%s4347_s1 + $0x190] ss:$8 sps:$4 sm:$0xff]   ;;  %s2895_s23 = sshll.u32 %s4353_s19, 2 }
  0x14   : > { %2114 = vmatprep.subr.bf16.mxu0 %v2931_v15  ;;  %2154 = vmatpush1.bf16.msra.mxu1 %v2930_v16  ;;  %v575_v43 = vunpack.c.0.s8 %v574_v37  ;;  %v2970_v46 = vld [vmem:[%s4347_s1 + $0x1a4] ss:$8 sps:$4 sm:$0xff]   ;;  %v2969_v47 = vld [vmem:[%s4347_s1 + $0xa0] ss:$8 sps:$4 sm:$0xff]   ;;  %v2973_v49 = vld [vmem:[%s4347_s1 + $0xb4] ss:$8 sps:$4 sm:$0xff]   ;;  %s252_s26 = scalar_lea.vmem %s4349_s3, %s2895_s23 }
  0x15   : > { %2155 = vmatprep.subr.bf16.mxu1 %v2934_v17  ;;  %s3531_s15 = scalar_lea.vmem %s4346_s0, %s2897_s29  ;;  %v2972_v50 = vld [vmem:[%s4347_s1 + $0x1a0] ss:$8 sps:$4 sm:$0xff]   ;;  %v2976_v51 = vld [vmem:[%s4347_s1 + $0x1b4] ss:$8 sps:$4 sm:$0xff]   ;;  %v2975_v53 = vld [vmem:[%s4347_s1 + $0xb0] ss:$8 sps:$4 sm:$0xff]  }
  0x16   : > { %v3534_v48 = vsub.s32 %v575_v43, %v3514_v42  ;;  %v262_v52 = vld [vmem:[%s3531_s15] sm:$0xff]  ;;  %v2978_v57 = vld [vmem:[%s4347_s1 + $0x1b0] ss:$8 sps:$4 sm:$0xff]   ;;  %v2985_v63 = vld [vmem:[%s4347_s1 + $0xd4] ss:$8 sps:$4 sm:$0xff]   ;;  %s2599_s27 = sshll.u32 %s4353_s19, 1 }
  0x17   : > { %2115 = vmatpush1.bf16.msra.mxu0 %v2933_v18  ;;  %v572_v55 = vcombine.high %v262_v52, %v262_v52  ;;  %v2979_v56 = vld [vmem:[%s4347_s1 + $0xc4] ss:$8 sps:$4 sm:$0xff]   ;;  %v2981_v61 = vld [vmem:[%s4347_s1 + $0xc0] ss:$8 sps:$4 sm:$0xff]   ;;  %v2988_v1 = vld [vmem:[%s4347_s1 + $0x1d4] ss:$8 sps:$4 sm:$0xff]   ;;  %s256_s30 = scalar_lea.vmem %s4350_s4, %s2599_s27 }
  0x18   : > { %2116 = vmatprep.subr.bf16.mxu0 %v2937_v19  ;;  %2156 = vmatpush1.bf16.msra.mxu1 %v2936_v20  ;;  %v579_v54 = vrot.slane %v262_v52, %v3534_v48  ;;  %v2982_v60 = vld [vmem:[%s4347_s1 + $0x1c4] ss:$8 sps:$4 sm:$0xff]   ;;  %v2984_v0 = vld [vmem:[%s4347_s1 + $0x1c0] ss:$8 sps:$4 sm:$0xff]   ;;  %v2987_v2 = vld [vmem:[%s4347_s1 + $0xd0] ss:$8 sps:$4 sm:$0xff]  }
  0x19   : > { %2157 = vmatprep.subr.bf16.mxu1 %v2940_v21  ;;  %v586_v59 = vrot.slane %v572_v55, %v3534_v48  ;;  %v2991_v3 = vld [vmem:[%s4347_s1 + $0xe4] ss:$8 sps:$4 sm:$0xff]   ;;  %v2990_v4 = vld [vmem:[%s4347_s1 + $0x1d0] ss:$8 sps:$4 sm:$0xff]   ;;  %v2993_v6 = vld [vmem:[%s4347_s1 + $0xe0] ss:$8 sps:$4 sm:$0xff]  }
  0x1a   : > { %v587_v58 = vcombine.high %v579_v54, %v579_v54  ;;  %v2994_v5 = vld [vmem:[%s4347_s1 + $0x1e4] ss:$8 sps:$4 sm:$0xff]   ;;  %v2997_v7 = vld [vmem:[%s4347_s1 + $0xf4] ss:$8 sps:$4 sm:$0xff]   ;;  %v2996_v8 = vld [vmem:[%s4347_s1 + $0x1e0] ss:$8 sps:$4 sm:$0xff]  }
  0x1b   : > { %2117 = vmatpush1.bf16.msra.mxu0 %v2939_v22  ;;  %v588_v62 = vcombine.high %v586_v59, %v586_v59  ;;  %v3000_v9 = vld [vmem:[%s4347_s1 + $0x1f4] ss:$8 sps:$4 sm:$0xff]   ;;  %v2999_v10 = vld [vmem:[%s4347_s1 + $0xf0] ss:$8 sps:$4 sm:$0xff]   ;;  %v3005_v11 = vld [vmem:[%s4347_s1 + $0x204] ss:$8 sps:$4 sm:$0xff]  }
  0x1c   : > { %2118 = vmatprep.subr.bf16.mxu0 %v2943_v23  ;;  %2158 = vmatpush1.bf16.msra.mxu1 %v2942_v24  ;;  %v3002_v12 = vld [vmem:[%s4347_s1 + $0x1f0] ss:$8 sps:$4 sm:$0xff]   ;;  %v3009_v13 = vld [vmem:[%s4347_s1 + $0x304] ss:$8 sps:$4 sm:$0xff]   ;;  %v3003_v14 = vld [vmem:[%s4347_s1 + $0x200] ss:$8 sps:$4 sm:$0xff]  }
  0x1d   : > { %2159 = vmatprep.subr.bf16.mxu1 %v2946_v25  ;;  %2138 = vmatprep.mubr.bf16.mxu0 %v587_v58  ;;  %v3012_v15 = vld [vmem:[%s4347_s1 + $0x214] ss:$8 sps:$4 sm:$0xff]   ;;  %v3007_v16 = vld [vmem:[%s4347_s1 + $0x300] ss:$8 sps:$4 sm:$0xff]   ;;  %v3010_v18 = vld [vmem:[%s4347_s1 + $0x210] ss:$8 sps:$4 sm:$0xff]  }
  0x1e   : > { %2179 = vmatprep.mubr.bf16.mxu1 %v588_v62  ;;  %v3015_v17 = vld [vmem:[%s4347_s1 + $0x314] ss:$8 sps:$4 sm:$0xff]   ;;  %v3018_v19 = vld [vmem:[%s4347_s1 + $0x224] ss:$8 sps:$4 sm:$0xff]   ;;  %v3013_v20 = vld [vmem:[%s4347_s1 + $0x310] ss:$8 sps:$4 sm:$0xff]  }
  0x1f   : > { %2119 = vmatpush1.bf16.msra.mxu0 %v2945_v26  ;;  %v3021_v21 = vld [vmem:[%s4347_s1 + $0x324] ss:$8 sps:$4 sm:$0xff]   ;;  %v3016_v22 = vld [vmem:[%s4347_s1 + $0x220] ss:$8 sps:$4 sm:$0xff]   ;;  %v3024_v23 = vld [vmem:[%s4347_s1 + $0x234] ss:$8 sps:$4 sm:$0xff]  }
  0x20   : > { %2120 = vmatprep.subr.bf16.mxu0 %v2949_v27  ;;  %2160 = vmatpush1.bf16.msra.mxu1 %v2948_v28  ;;  %v3019_v24 = vld [vmem:[%s4347_s1 + $0x320] ss:$8 sps:$4 sm:$0xff]   ;;  %v3027_v25 = vld [vmem:[%s4347_s1 + $0x334] ss:$8 sps:$4 sm:$0xff]   ;;  %v3022_v26 = vld [vmem:[%s4347_s1 + $0x230] ss:$8 sps:$4 sm:$0xff]  }
  0x21   : > { %2161 = vmatprep.subr.bf16.mxu1 %v2952_v29  ;;  %v3030_v27 = vld [vmem:[%s4347_s1 + $0x244] ss:$8 sps:$4 sm:$0xff]   ;;  %v3025_v28 = vld [vmem:[%s4347_s1 + $0x330] ss:$8 sps:$4 sm:$0xff]   ;;  %v3048_v43 = vld [vmem:[%s4347_s1 + $0x274] ss:$8 sps:$4 sm:$0xff]  }
  0x22   : > { %v3033_v29 = vld [vmem:[%s4347_s1 + $0x344] ss:$8 sps:$4 sm:$0xff]   ;;  %v3037_v36 = vld [vmem:[%s4347_s1 + $0x350] ss:$8 sps:$4 sm:$0xff]   ;;  %v3060_v55 = vld [vmem:[%s4347_s1 + $0x294] ss:$8 sps:$4 sm:$0xff]  }
  0x23   : > { %2121 = vmatpush1.bf16.msra.mxu0 %v2951_v30  ;;  %v3028_v30 = vld [vmem:[%s4347_s1 + $0x240] ss:$8 sps:$4 sm:$0xff]   ;;  %v3042_v35 = vld [vmem:[%s4347_s1 + $0x264] ss:$8 sps:$4 sm:$0xff]   ;;  %v3049_v52 = vld [vmem:[%s4347_s1 + $0x370] ss:$8 sps:$4 sm:$0xff]  }
  0x24   : > { %2122 = vmatprep.subr.bf16.mxu0 %v2955_v31  ;;  %2162 = vmatpush1.bf16.msra.mxu1 %v2954_v32  ;;  %v3036_v31 = vld [vmem:[%s4347_s1 + $0x254] ss:$8 sps:$4 sm:$0xff]   ;;  %v3031_v32 = vld [vmem:[%s4347_s1 + $0x340] ss:$8 sps:$4 sm:$0xff]   ;;  %v3058_v58 = vld [vmem:[%s4347_s1 + $0x290] ss:$8 sps:$4 sm:$0xff]  }
  0x25   : > { %2163 = vmatprep.subr.bf16.mxu1 %v2958_v33  ;;  %v3039_v33 = vld [vmem:[%s4347_s1 + $0x354] ss:$8 sps:$4 sm:$0xff]   ;;  %v263_v37 = vld [vmem:[%s3531_s15 + $0x8] sm:$0xff] }
  0x26   : > { %v3064_v62 = vld [vmem:[%s4347_s1 + $0x2a0] ss:$8 sps:$4 sm:$0xff]  }
  0x27   : > { %2123 = vmatpush1.bf16.msra.mxu0 %v2957_v34  ;;  %v3034_v34 = vld [vmem:[%s4347_s1 + $0x250] ss:$8 sps:$4 sm:$0xff]  }
  0x28   : > { %2124 = vmatprep.subr.bf16.mxu0 %v2961_v38  ;;  %2164 = vmatpush1.bf16.msra.mxu1 %v2960_v39  ;;  %v3045_v38 = vld [vmem:[%s4347_s1 + $0x364] ss:$8 sps:$4 sm:$0xff]   ;;  %v3682_v39 = vrot.slane %v263_v37, %v3534_v48 }
  0x29   : > { %2165 = vmatprep.subr.bf16.mxu1 %v2964_v40  ;;  %v589_v40 = vcombine.high %v263_v37, %v263_v37  ;;  %v3121_v37 = vld [vmem:[%s4347_s1 + $0x434] ss:$8 sps:$4 sm:$0xff]  }
  0x2b   : > { %2125 = vmatpush1.bf16.msra.mxu0 %v2963_v41  ;;  %v3040_v41 = vld [vmem:[%s4347_s1 + $0x260] ss:$8 sps:$4 sm:$0xff]  }
  0x2c   : > { %2126 = vmatprep.subr.bf16.mxu0 %v2967_v44  ;;  %2166 = vmatpush1.bf16.msra.mxu1 %v2966_v45  ;;  %v604_v44 = vcombine.high %v3682_v39, %v3682_v39  ;;  %v3693_v45 = vrot.slane %v589_v40, %v3534_v48  ;;  %v3119_v40 = vld [vmem:[%s4347_s1 + $0x430] ss:$8 sps:$4 sm:$0xff]  }
  0x2d   : > { %2167 = vmatprep.subr.bf16.mxu1 %v2970_v46  ;;  %v3043_v46 = vld [vmem:[%s4347_s1 + $0x360] ss:$8 sps:$4 sm:$0xff]  }
  0x2f   : > { %2127 = vmatpush1.bf16.msra.mxu0 %v2969_v47  ;;  %v3051_v47 = vld [vmem:[%s4347_s1 + $0x374] ss:$8 sps:$4 sm:$0xff]  }
  0x30   : > { %2128 = vmatprep.subr.bf16.mxu0 %v2973_v49  ;;  %2168 = vmatpush1.bf16.msra.mxu1 %v2972_v50  ;;  %v605_v49 = vcombine.high %v3693_v45, %v3693_v45  ;;  %v3046_v50 = vld [vmem:[%s4347_s1 + $0x270] ss:$8 sps:$4 sm:$0xff]  }
  0x31   : > { %2169 = vmatprep.subr.bf16.mxu1 %v2976_v51  ;;  %v3054_v51 = vld [vmem:[%s4347_s1 + $0x284] ss:$8 sps:$4 sm:$0xff]  }
  0x33   : > { %2129 = vmatpush1.bf16.msra.mxu0 %v2975_v53  ;;  %v3057_v53 = vld [vmem:[%s4347_s1 + $0x384] ss:$8 sps:$4 sm:$0xff]  }
  0x34   : > { %2130 = vmatprep.subr.bf16.mxu0 %v2979_v56  ;;  %2170 = vmatpush1.bf16.msra.mxu1 %v2978_v57  ;;  %v3055_v56 = vld [vmem:[%s4347_s1 + $0x380] ss:$8 sps:$4 sm:$0xff]   ;;  %v3063_v57 = vld [vmem:[%s4347_s1 + $0x394] ss:$8 sps:$4 sm:$0xff]  }
  0x35   : > { %2171 = vmatprep.subr.bf16.mxu1 %v2982_v60  ;;  %v3061_v60 = vld [vmem:[%s4347_s1 + $0x390] ss:$8 sps:$4 sm:$0xff]  }
  0x37   : > { %2131 = vmatpush1.bf16.msra.mxu0 %v2981_v61  ;;  %v3069_v61 = vld [vmem:[%s4347_s1 + $0x3a4] ss:$8 sps:$4 sm:$0xff]  }
  0x38   : > { %2132 = vmatprep.subr.bf16.mxu0 %v2985_v63  ;;  %2172 = vmatpush1.bf16.msra.mxu1 %v2984_v0  ;;  %v3072_v63 = vld [vmem:[%s4347_s1 + $0x2b4] ss:$8 sps:$4 sm:$0xff]   ;;  %v3067_v0 = vld [vmem:[%s4347_s1 + $0x3a0] ss:$8 sps:$4 sm:$0xff]  }
  0x39   : > { %2173 = vmatprep.subr.bf16.mxu1 %v2988_v1  ;;  %v3075_v1 = vld [vmem:[%s4347_s1 + $0x3b4] ss:$8 sps:$4 sm:$0xff]  }
  0x3b   : > { %2133 = vmatpush1.bf16.msra.mxu0 %v2987_v2  ;;  %v3070_v2 = vld [vmem:[%s4347_s1 + $0x2b0] ss:$8 sps:$4 sm:$0xff]  }
  0x3c   : > { %2134 = vmatprep.subr.bf16.mxu0 %v2991_v3  ;;  %2174 = vmatpush1.bf16.msra.mxu1 %v2990_v4  ;;  %v3078_v3 = vld [vmem:[%s4347_s1 + $0x2c4] ss:$8 sps:$4 sm:$0xff]   ;;  %v3073_v4 = vld [vmem:[%s4347_s1 + $0x3b0] ss:$8 sps:$4 sm:$0xff]  }
  0x3d   : > { %2175 = vmatprep.subr.bf16.mxu1 %v2994_v5  ;;  %v3081_v5 = vld [vmem:[%s4347_s1 + $0x3c4] ss:$8 sps:$4 sm:$0xff]  }
  0x3f   : > { %2135 = vmatpush1.bf16.msra.mxu0 %v2993_v6  ;;  %v3076_v6 = vld [vmem:[%s4347_s1 + $0x2c0] ss:$8 sps:$4 sm:$0xff]  }
  0x40   : > { %2136 = vmatprep.subr.bf16.mxu0 %v2997_v7  ;;  %2176 = vmatpush1.bf16.msra.mxu1 %v2996_v8  ;;  %v3084_v7 = vld [vmem:[%s4347_s1 + $0x2d4] ss:$8 sps:$4 sm:$0xff]   ;;  %v3079_v8 = vld [vmem:[%s4347_s1 + $0x3c0] ss:$8 sps:$4 sm:$0xff]  }
  0x41   : > { %2177 = vmatprep.subr.bf16.mxu1 %v3000_v9  ;;  %v3087_v9 = vld [vmem:[%s4347_s1 + $0x3d4] ss:$8 sps:$4 sm:$0xff]  }
  0x43   : > { %2137 = vmatpush1.bf16.msra.mxu0 %v2999_v10  ;;  %v3082_v10 = vld [vmem:[%s4347_s1 + $0x2d0] ss:$8 sps:$4 sm:$0xff]  }
  0x44   : > { %2188 = vmatprep.subr.bf16.mxu0 %v3005_v11  ;;  %2178 = vmatpush1.bf16.msra.mxu1 %v3002_v12  ;;  %v3090_v11 = vld [vmem:[%s4347_s1 + $0x2e4] ss:$8 sps:$4 sm:$0xff]   ;;  %v3085_v12 = vld [vmem:[%s4347_s1 + $0x3d0] ss:$8 sps:$4 sm:$0xff]  }
  0x45   : > { %2229 = vmatprep.subr.bf16.mxu1 %v3009_v13  ;;  %v3093_v13 = vld [vmem:[%s4347_s1 + $0x3e4] ss:$8 sps:$4 sm:$0xff]  }
  0x46   : > { %2139 = vmatmul.mubr.bf16.vlgmr.msra.gmra.mrb[0].mxu0 %v579_v54  ;;  %v3052_v54 = vld [vmem:[%s4347_s1 + $0x280] ss:$8 sps:$4 sm:$0xff]  }
  0x47   : > { %2189 = vmatpush1.bf16.msra.mxu0 %v3003_v14  ;;  %2180 = vmatmul.mubr.bf16.vlgmr.msra.gmra.mrb[0].mxu1 %v586_v59  ;;  %v3066_v59 = vld [vmem:[%s4347_s1 + $0x2a4] ss:$8 sps:$4 sm:$0xff]   ;;  %v3088_v14 = vld [vmem:[%s4347_s1 + $0x2e0] ss:$8 sps:$4 sm:$0xff]  }
  0x48   : > { %2190 = vmatprep.subr.bf16.mxu0 %v3012_v15  ;;  %2230 = vmatpush1.bf16.msra.mxu1 %v3007_v16  ;;  %v3096_v15 = vld [vmem:[%s4347_s1 + $0x2f4] ss:$8 sps:$4 sm:$0xff]   ;;  %v3091_v16 = vld [vmem:[%s4347_s1 + $0x3e0] ss:$8 sps:$4 sm:$0xff]  }
  0x49   : > { %2231 = vmatprep.subr.bf16.mxu1 %v3015_v17  ;;  %2220 = vmatprep.mubr.bf16.mxu0 %v604_v44  ;;  %v3099_v17 = vld [vmem:[%s4347_s1 + $0x3f4] ss:$8 sps:$4 sm:$0xff]   ;;  %v3130_v44 = vld [vmem:[%s4347_s1 + $0x544] ss:$8 sps:$4 sm:$0xff]  }
  0x4a   : > { %2261 = vmatprep.mubr.bf16.mxu1 %v605_v49  ;;  %v3136_v49 = vld [vmem:[%s4347_s1 + $0x554] ss:$8 sps:$4 sm:$0xff]  }
  0x4b   : > { %2191 = vmatpush1.bf16.msra.mxu0 %v3010_v18  ;;  %v3094_v18 = vld [vmem:[%s4347_s1 + $0x2f0] ss:$8 sps:$4 sm:$0xff]  }
  0x4c   : > { %2192 = vmatprep.subr.bf16.mxu0 %v3018_v19  ;;  %2232 = vmatpush1.bf16.msra.mxu1 %v3013_v20  ;;  %v3102_v19 = vld [vmem:[%s4347_s1 + $0x404] ss:$8 sps:$4 sm:$0xff]   ;;  %v3097_v20 = vld [vmem:[%s4347_s1 + $0x3f0] ss:$8 sps:$4 sm:$0xff]  }
  0x4d   : > { %2233 = vmatprep.subr.bf16.mxu1 %v3021_v21  ;;  %v3106_v21 = vld [vmem:[%s4347_s1 + $0x504] ss:$8 sps:$4 sm:$0xff]  }
  0x4f   : > { %2193 = vmatpush1.bf16.msra.mxu0 %v3016_v22  ;;  %v3100_v22 = vld [vmem:[%s4347_s1 + $0x400] ss:$8 sps:$4 sm:$0xff]  }
  0x50   : > { %2194 = vmatprep.subr.bf16.mxu0 %v3024_v23  ;;  %2234 = vmatpush1.bf16.msra.mxu1 %v3019_v24  ;;  %v3109_v23 = vld [vmem:[%s4347_s1 + $0x414] ss:$8 sps:$4 sm:$0xff]  }
  0x51   : > { %2235 = vmatprep.subr.bf16.mxu1 %v3027_v25  ;;  %v264_v24 = vld [vmem:[%s3531_s15 + $0x10] sm:$0xff]  ;;  %v3104_v25 = vld [vmem:[%s4347_s1 + $0x500] ss:$8 sps:$4 sm:$0xff]  }
  0x53   : > { %2195 = vmatpush1.bf16.msra.mxu0 %v3022_v26  ;;  %v3822_v26 = vrot.slane %v264_v24, %v3534_v48 }
  0x54   : > { %2196 = vmatprep.subr.bf16.mxu0 %v3030_v27  ;;  %2236 = vmatpush1.bf16.msra.mxu1 %v3025_v28  ;;  %v606_v27 = vcombine.high %v264_v24, %v264_v24  ;;  %v3112_v28 = vld [vmem:[%s4347_s1 + $0x514] ss:$8 sps:$4 sm:$0xff]  }
  0x55   : > { %2237 = vmatprep.subr.bf16.mxu1 %v3033_v29  ;;  %v3107_v29 = vld [vmem:[%s4347_s1 + $0x410] ss:$8 sps:$4 sm:$0xff]   ;;  %v3193_v24 = vld [vmem:[%s4347_s1 + $0x4f4] ss:$8 sps:$4 sm:$0xff]  }
  0x57   : > { %2197 = vmatpush1.bf16.msra.mxu0 %v3028_v30  ;;  %v621_v30 = vcombine.high %v3822_v26, %v3822_v26 }
  0x58   : > { %2198 = vmatprep.subr.bf16.mxu0 %v3036_v31  ;;  %2238 = vmatpush1.bf16.msra.mxu1 %v3031_v32  ;;  %v3834_v31 = vrot.slane %v606_v27, %v3534_v48  ;;  %v3115_v32 = vld [vmem:[%s4347_s1 + $0x424] ss:$8 sps:$4 sm:$0xff]  }
  0x59   : > { %2239 = vmatprep.subr.bf16.mxu1 %v3039_v33  ;;  %v3110_v33 = vld [vmem:[%s4347_s1 + $0x510] ss:$8 sps:$4 sm:$0xff]  }
  0x5b   : > { %2199 = vmatpush1.bf16.msra.mxu0 %v3034_v34  ;;  %v622_v34 = vcombine.high %v3834_v31, %v3834_v31 }
  0x5c   : > { %2200 = vmatprep.subr.bf16.mxu0 %v3042_v35  ;;  %2240 = vmatpush1.bf16.msra.mxu1 %v3037_v36  ;;  %v3118_v35 = vld [vmem:[%s4347_s1 + $0x524] ss:$8 sps:$4 sm:$0xff]   ;;  %v3113_v36 = vld [vmem:[%s4347_s1 + $0x420] ss:$8 sps:$4 sm:$0xff]  }
  0x5d   : > { %2241 = vmatprep.subr.bf16.mxu1 %v3045_v38  ;;  %v3116_v38 = vld [vmem:[%s4347_s1 + $0x520] ss:$8 sps:$4 sm:$0xff]  }
  0x5f   : > { %2201 = vmatpush1.bf16.msra.mxu0 %v3040_v41  ;;  %v3127_v41 = vld [vmem:[%s4347_s1 + $0x444] ss:$8 sps:$4 sm:$0xff]  }
  0x60   : > { %2202 = vmatprep.subr.bf16.mxu0 %v3048_v43  ;;  %2242 = vmatpush1.bf16.msra.mxu1 %v3043_v46  ;;  %v3122_v43 = vld [vmem:[%s4347_s1 + $0x530] ss:$8 sps:$4 sm:$0xff]   ;;  %v3133_v46 = vld [vmem:[%s4347_s1 + $0x454] ss:$8 sps:$4 sm:$0xff]  }
  0x61   : > { %2243 = vmatprep.subr.bf16.mxu1 %v3051_v47  ;;  %v3128_v47 = vld [vmem:[%s4347_s1 + $0x540] ss:$8 sps:$4 sm:$0xff]  }
  0x63   : > { %2203 = vmatpush1.bf16.msra.mxu0 %v3046_v50  ;;  %v3131_v50 = vld [vmem:[%s4347_s1 + $0x450] ss:$8 sps:$4 sm:$0xff]  }
  0x64   : > { %2204 = vmatprep.subr.bf16.mxu0 %v3054_v51  ;;  %2244 = vmatpush1.bf16.msra.mxu1 %v3049_v52  ;;  %v3139_v51 = vld [vmem:[%s4347_s1 + $0x464] ss:$8 sps:$4 sm:$0xff]   ;;  %v3134_v52 = vld [vmem:[%s4347_s1 + $0x550] ss:$8 sps:$4 sm:$0xff]  }
  0x65   : > { %2245 = vmatprep.subr.bf16.mxu1 %v3057_v53  ;;  %v3142_v53 = vld [vmem:[%s4347_s1 + $0x564] ss:$8 sps:$4 sm:$0xff]  }
  0x67   : > { %2205 = vmatpush1.bf16.msra.mxu0 %v3052_v54  ;;  %v3137_v54 = vld [vmem:[%s4347_s1 + $0x460] ss:$8 sps:$4 sm:$0xff]  }
  0x68   : > { %2206 = vmatprep.subr.bf16.mxu0 %v3060_v55  ;;  %2246 = vmatpush1.bf16.msra.mxu1 %v3055_v56  ;;  %v3145_v55 = vld [vmem:[%s4347_s1 + $0x474] ss:$8 sps:$4 sm:$0xff]   ;;  %v3140_v56 = vld [vmem:[%s4347_s1 + $0x560] ss:$8 sps:$4 sm:$0xff]  }
  0x69   : > { %2247 = vmatprep.subr.bf16.mxu1 %v3063_v57  ;;  %v3148_v57 = vld [vmem:[%s4347_s1 + $0x574] ss:$8 sps:$4 sm:$0xff]  }
  0x6b   : > { %2207 = vmatpush1.bf16.msra.mxu0 %v3058_v58  ;;  %v3143_v58 = vld [vmem:[%s4347_s1 + $0x470] ss:$8 sps:$4 sm:$0xff]  }
  0x6c   : > { %2208 = vmatprep.subr.bf16.mxu0 %v3066_v59  ;;  %2248 = vmatpush1.bf16.msra.mxu1 %v3061_v60  ;;  %v3151_v59 = vld [vmem:[%s4347_s1 + $0x484] ss:$8 sps:$4 sm:$0xff]   ;;  %v3146_v60 = vld [vmem:[%s4347_s1 + $0x570] ss:$8 sps:$4 sm:$0xff]  }
  0x6d   : > { %2249 = vmatprep.subr.bf16.mxu1 %v3069_v61  ;;  %v3154_v61 = vld [vmem:[%s4347_s1 + $0x584] ss:$8 sps:$4 sm:$0xff]  }
  0x6f   : > { %2209 = vmatpush1.bf16.msra.mxu0 %v3064_v62  ;;  %v3149_v62 = vld [vmem:[%s4347_s1 + $0x480] ss:$8 sps:$4 sm:$0xff]  }
  0x70   : > { %2210 = vmatprep.subr.bf16.mxu0 %v3072_v63  ;;  %2250 = vmatpush1.bf16.msra.mxu1 %v3067_v0  ;;  %v3157_v63 = vld [vmem:[%s4347_s1 + $0x494] ss:$8 sps:$4 sm:$0xff]   ;;  %v3152_v0 = vld [vmem:[%s4347_s1 + $0x580] ss:$8 sps:$4 sm:$0xff]  }
  0x71   : > { %2251 = vmatprep.subr.bf16.mxu1 %v3075_v1  ;;  %v3160_v1 = vld [vmem:[%s4347_s1 + $0x594] ss:$8 sps:$4 sm:$0xff]  }
  0x73   : > { %2211 = vmatpush1.bf16.msra.mxu0 %v3070_v2  ;;  %v3155_v2 = vld [vmem:[%s4347_s1 + $0x490] ss:$8 sps:$4 sm:$0xff]  }
  0x74   : > { %2212 = vmatprep.subr.bf16.mxu0 %v3078_v3  ;;  %2252 = vmatpush1.bf16.msra.mxu1 %v3073_v4  ;;  %v3163_v3 = vld [vmem:[%s4347_s1 + $0x4a4] ss:$8 sps:$4 sm:$0xff]   ;;  %v3158_v4 = vld [vmem:[%s4347_s1 + $0x590] ss:$8 sps:$4 sm:$0xff]  }
  0x75   : > { %2253 = vmatprep.subr.bf16.mxu1 %v3081_v5  ;;  %v3166_v5 = vld [vmem:[%s4347_s1 + $0x5a4] ss:$8 sps:$4 sm:$0xff]  }
  0x77   : > { %2213 = vmatpush1.bf16.msra.mxu0 %v3076_v6  ;;  %v3161_v6 = vld [vmem:[%s4347_s1 + $0x4a0] ss:$8 sps:$4 sm:$0xff]  }
  0x78   : > { %2214 = vmatprep.subr.bf16.mxu0 %v3084_v7  ;;  %2254 = vmatpush1.bf16.msra.mxu1 %v3079_v8  ;;  %v3169_v7 = vld [vmem:[%s4347_s1 + $0x4b4] ss:$8 sps:$4 sm:$0xff]   ;;  %v3164_v8 = vld [vmem:[%s4347_s1 + $0x5a0] ss:$8 sps:$4 sm:$0xff]  }
  0x79   : > { %2255 = vmatprep.subr.bf16.mxu1 %v3087_v9  ;;  %v3172_v9 = vld [vmem:[%s4347_s1 + $0x5b4] ss:$8 sps:$4 sm:$0xff]  }
  0x7b   : > { %2215 = vmatpush1.bf16.msra.mxu0 %v3082_v10  ;;  %v3167_v10 = vld [vmem:[%s4347_s1 + $0x4b0] ss:$8 sps:$4 sm:$0xff]  }
  0x7c   : > { %2216 = vmatprep.subr.bf16.mxu0 %v3090_v11  ;;  %2256 = vmatpush1.bf16.msra.mxu1 %v3085_v12  ;;  %v3175_v11 = vld [vmem:[%s4347_s1 + $0x4c4] ss:$8 sps:$4 sm:$0xff]   ;;  %v3170_v12 = vld [vmem:[%s4347_s1 + $0x5b0] ss:$8 sps:$4 sm:$0xff]  }
  0x7d   : > { %2257 = vmatprep.subr.bf16.mxu1 %v3093_v13  ;;  %v3178_v13 = vld [vmem:[%s4347_s1 + $0x5c4] ss:$8 sps:$4 sm:$0xff]  }
  0x7f   : > { %2217 = vmatpush1.bf16.msra.mxu0 %v3088_v14  ;;  %v3173_v14 = vld [vmem:[%s4347_s1 + $0x4c0] ss:$8 sps:$4 sm:$0xff]  }
  0x80   : > { %2218 = vmatprep.subr.bf16.mxu0 %v3096_v15  ;;  %2258 = vmatpush1.bf16.msra.mxu1 %v3091_v16  ;;  %v3181_v15 = vld [vmem:[%s4347_s1 + $0x4d4] ss:$8 sps:$4 sm:$0xff]   ;;  %v3176_v16 = vld [vmem:[%s4347_s1 + $0x5c0] ss:$8 sps:$4 sm:$0xff]  }
  0x81   : > { %2259 = vmatprep.subr.bf16.mxu1 %v3099_v17  ;;  %v3184_v17 = vld [vmem:[%s4347_s1 + $0x5d4] ss:$8 sps:$4 sm:$0xff]  }
  0x83   : > { %2219 = vmatpush1.bf16.msra.mxu0 %v3094_v18  ;;  %v3179_v18 = vld [vmem:[%s4347_s1 + $0x4d0] ss:$8 sps:$4 sm:$0xff]  }
  0x84   : > { %2270 = vmatprep.subr.bf16.mxu0 %v3102_v19  ;;  %2260 = vmatpush1.bf16.msra.mxu1 %v3097_v20  ;;  %v3187_v19 = vld [vmem:[%s4347_s1 + $0x4e4] ss:$8 sps:$4 sm:$0xff]   ;;  %v3182_v20 = vld [vmem:[%s4347_s1 + $0x5d0] ss:$8 sps:$4 sm:$0xff]  }
  0x85   : > { %2311 = vmatprep.subr.bf16.mxu1 %v3106_v21  ;;  %v3190_v21 = vld [vmem:[%s4347_s1 + $0x5e4] ss:$8 sps:$4 sm:$0xff]  }
  0x86   : > { %2221 = vmatmul.mubr.bf16.vlgmr.msra.gmra.mrb[4].mxu0 %v3682_v39  ;;  %v3124_v39 = vld [vmem:[%s4347_s1 + $0x534] ss:$8 sps:$4 sm:$0xff]  }
  0x87   : > { %2271 = vmatpush1.bf16.msra.mxu0 %v3100_v22  ;;  %2262 = vmatmul.mubr.bf16.vlgmr.msra.gmra.mrb[4].mxu1 %v3693_v45  ;;  %v3125_v45 = vld [vmem:[%s4347_s1 + $0x440] ss:$8 sps:$4 sm:$0xff]   ;;  %v265_v22 = vld [vmem:[%s3531_s15 + $0x18] sm:$0xff] }
  0x88   : > { %2272 = vmatprep.subr.bf16.mxu0 %v3109_v23  ;;  %2312 = vmatpush1.bf16.msra.mxu1 %v3104_v25  ;;  %v3185_v23 = vld [vmem:[%s4347_s1 + $0x4e0] ss:$8 sps:$4 sm:$0xff]   ;;  %v623_v27 = vcombine.high %v265_v22, %v265_v22 }
  0x89   : > { %2302 = vmatprep.mubr.bf16.mxu0 %v621_v30  ;;  %2313 = vmatprep.subr.bf16.mxu1 %v3112_v28  ;;  %v3188_v25 = vld [vmem:[%s4347_s1 + $0x5e0] ss:$8 sps:$4 sm:$0xff]   ;;  %v3196_v28 = vld [vmem:[%s4347_s1 + $0x5f4] ss:$8 sps:$4 sm:$0xff]   ;;  %v4009_v30 = vrot.slane %v265_v22, %v3534_v48 }
  0x8a   : > { %2343 = vmatprep.mubr.bf16.mxu1 %v622_v34  ;;  %v4018_v34 = vrot.slane %v623_v27, %v3534_v48  ;;  %v3201_v48 = vld [vmem:[%s4347_s1 + $0x700] ss:$8 sps:$4 sm:$0xff]   ;;  %v3278_v22 = vld [vmem:[%s4347_s1 + $0x6d4] ss:$8 sps:$4 sm:$0xff]   ;;  %v3284_v27 = vld [vmem:[%s4347_s1 + $0x6e4] ss:$8 sps:$4 sm:$0xff]  }
  0x8b   : > { %2273 = vmatpush1.bf16.msra.mxu0 %v3107_v29  ;;  %v3191_v29 = vld [vmem:[%s4347_s1 + $0x4f0] ss:$8 sps:$4 sm:$0xff]  }
  0x8c   : > { %2274 = vmatprep.subr.bf16.mxu0 %v3115_v32  ;;  %2314 = vmatpush1.bf16.msra.mxu1 %v3110_v33  ;;  %v3199_v32 = vld [vmem:[%s4347_s1 + $0x604] ss:$8 sps:$4 sm:$0xff]   ;;  %v3194_v33 = vld [vmem:[%s4347_s1 + $0x5f0] ss:$8 sps:$4 sm:$0xff]  }
  0x8d   : > { %2315 = vmatprep.subr.bf16.mxu1 %v3118_v35  ;;  %v3203_v35 = vld [vmem:[%s4347_s1 + $0x704] ss:$8 sps:$4 sm:$0xff]  }
  0x8f   : > { %2275 = vmatpush1.bf16.msra.mxu0 %v3113_v36  ;;  %v3197_v36 = vld [vmem:[%s4347_s1 + $0x600] ss:$8 sps:$4 sm:$0xff]  }
  0x90   : > { %2276 = vmatprep.subr.bf16.mxu0 %v3121_v37  ;;  %2316 = vmatpush1.bf16.msra.mxu1 %v3116_v38  ;;  %v638_v37 = vcombine.high %v4009_v30, %v4009_v30  ;;  %v3206_v38 = vld [vmem:[%s4347_s1 + $0x614] ss:$8 sps:$4 sm:$0xff]  }
  0x91   : > { %2317 = vmatprep.subr.bf16.mxu1 %v3124_v39  ;;  %v639_v39 = vcombine.high %v4018_v34, %v4018_v34 }
  0x93   : > { %2277 = vmatpush1.bf16.msra.mxu0 %v3119_v40  ;;  %v3209_v40 = vld [vmem:[%s4347_s1 + $0x714] ss:$8 sps:$4 sm:$0xff]  }
  0x94   : > { %2278 = vmatprep.subr.bf16.mxu0 %v3127_v41  ;;  %2318 = vmatpush1.bf16.msra.mxu1 %v3122_v43  ;;  %v3204_v41 = vld [vmem:[%s4347_s1 + $0x610] ss:$8 sps:$4 sm:$0xff]   ;;  %v3212_v43 = vld [vmem:[%s4347_s1 + $0x624] ss:$8 sps:$4 sm:$0xff]  }
  0x95   : > { %2319 = vmatprep.subr.bf16.mxu1 %v3130_v44  ;;  %v3215_v44 = vld [vmem:[%s4347_s1 + $0x724] ss:$8 sps:$4 sm:$0xff]  }
  0x97   : > { %2279 = vmatpush1.bf16.msra.mxu0 %v3125_v45  ;;  %v3218_v45 = vld [vmem:[%s4347_s1 + $0x634] ss:$8 sps:$4 sm:$0xff]  }
  0x98   : > { %2280 = vmatprep.subr.bf16.mxu0 %v3133_v46  ;;  %2320 = vmatpush1.bf16.msra.mxu1 %v3128_v47  ;;  %v3213_v46 = vld [vmem:[%s4347_s1 + $0x720] ss:$8 sps:$4 sm:$0xff]   ;;  %v3221_v47 = vld [vmem:[%s4347_s1 + $0x734] ss:$8 sps:$4 sm:$0xff]  }
  0x99   : > { %2321 = vmatprep.subr.bf16.mxu1 %v3136_v49  ;;  %v3216_v49 = vld [vmem:[%s4347_s1 + $0x630] ss:$8 sps:$4 sm:$0xff]  }
  0x9b   : > { %2281 = vmatpush1.bf16.msra.mxu0 %v3131_v50  ;;  %v3224_v50 = vld [vmem:[%s4347_s1 + $0x644] ss:$8 sps:$4 sm:$0xff]  }
  0x9c   : > { %2282 = vmatprep.subr.bf16.mxu0 %v3139_v51  ;;  %2322 = vmatpush1.bf16.msra.mxu1 %v3134_v52  ;;  %v3219_v51 = vld [vmem:[%s4347_s1 + $0x730] ss:$8 sps:$4 sm:$0xff]   ;;  %v3227_v52 = vld [vmem:[%s4347_s1 + $0x744] ss:$8 sps:$4 sm:$0xff]  }
  0x9d   : > { %2323 = vmatprep.subr.bf16.mxu1 %v3142_v53  ;;  %v3222_v53 = vld [vmem:[%s4347_s1 + $0x640] ss:$8 sps:$4 sm:$0xff]  }
  0x9f   : > { %2283 = vmatpush1.bf16.msra.mxu0 %v3137_v54  ;;  %v3230_v54 = vld [vmem:[%s4347_s1 + $0x654] ss:$8 sps:$4 sm:$0xff]  }
  0xa0   : > { %2284 = vmatprep.subr.bf16.mxu0 %v3145_v55  ;;  %2324 = vmatpush1.bf16.msra.mxu1 %v3140_v56  ;;  %v3225_v55 = vld [vmem:[%s4347_s1 + $0x740] ss:$8 sps:$4 sm:$0xff]   ;;  %v3233_v56 = vld [vmem:[%s4347_s1 + $0x754] ss:$8 sps:$4 sm:$0xff]  }
  0xa1   : > { %2325 = vmatprep.subr.bf16.mxu1 %v3148_v57  ;;  %v3228_v57 = vld [vmem:[%s4347_s1 + $0x650] ss:$8 sps:$4 sm:$0xff]  }
  0xa3   : > { %2285 = vmatpush1.bf16.msra.mxu0 %v3143_v58  ;;  %v3236_v58 = vld [vmem:[%s4347_s1 + $0x664] ss:$8 sps:$4 sm:$0xff]  }
  0xa4   : > { %2286 = vmatprep.subr.bf16.mxu0 %v3151_v59  ;;  %2326 = vmatpush1.bf16.msra.mxu1 %v3146_v60  ;;  %v3231_v59 = vld [vmem:[%s4347_s1 + $0x750] ss:$8 sps:$4 sm:$0xff]   ;;  %v3239_v60 = vld [vmem:[%s4347_s1 + $0x764] ss:$8 sps:$4 sm:$0xff]  }
  0xa5   : > { %2327 = vmatprep.subr.bf16.mxu1 %v3154_v61  ;;  %v3234_v61 = vld [vmem:[%s4347_s1 + $0x660] ss:$8 sps:$4 sm:$0xff]  }
  0xa7   : > { %2287 = vmatpush1.bf16.msra.mxu0 %v3149_v62  ;;  %v3242_v62 = vld [vmem:[%s4347_s1 + $0x674] ss:$8 sps:$4 sm:$0xff]  }
  0xa8   : > { %2288 = vmatprep.subr.bf16.mxu0 %v3157_v63  ;;  %2328 = vmatpush1.bf16.msra.mxu1 %v3152_v0  ;;  %v3237_v63 = vld [vmem:[%s4347_s1 + $0x760] ss:$8 sps:$4 sm:$0xff]   ;;  %v3245_v0 = vld [vmem:[%s4347_s1 + $0x774] ss:$8 sps:$4 sm:$0xff]  }
  0xa9   : > { %2329 = vmatprep.subr.bf16.mxu1 %v3160_v1  ;;  %v3240_v1 = vld [vmem:[%s4347_s1 + $0x670] ss:$8 sps:$4 sm:$0xff]  }
  0xab   : > { %2289 = vmatpush1.bf16.msra.mxu0 %v3155_v2  ;;  %v3248_v2 = vld [vmem:[%s4347_s1 + $0x684] ss:$8 sps:$4 sm:$0xff]  }
  0xac   : > { %2290 = vmatprep.subr.bf16.mxu0 %v3163_v3  ;;  %2330 = vmatpush1.bf16.msra.mxu1 %v3158_v4  ;;  %v3243_v3 = vld [vmem:[%s4347_s1 + $0x770] ss:$8 sps:$4 sm:$0xff]   ;;  %v3251_v4 = vld [vmem:[%s4347_s1 + $0x784] ss:$8 sps:$4 sm:$0xff]  }
  0xad   : > { %2331 = vmatprep.subr.bf16.mxu1 %v3166_v5  ;;  %v3246_v5 = vld [vmem:[%s4347_s1 + $0x680] ss:$8 sps:$4 sm:$0xff]  }
  0xaf   : > { %2291 = vmatpush1.bf16.msra.mxu0 %v3161_v6  ;;  %v3254_v6 = vld [vmem:[%s4347_s1 + $0x694] ss:$8 sps:$4 sm:$0xff]  }
  0xb0   : > { %2292 = vmatprep.subr.bf16.mxu0 %v3169_v7  ;;  %2332 = vmatpush1.bf16.msra.mxu1 %v3164_v8  ;;  %v3249_v7 = vld [vmem:[%s4347_s1 + $0x780] ss:$8 sps:$4 sm:$0xff]   ;;  %v3257_v8 = vld [vmem:[%s4347_s1 + $0x794] ss:$8 sps:$4 sm:$0xff]  }
  0xb1   : > { %2333 = vmatprep.subr.bf16.mxu1 %v3172_v9  ;;  %v3252_v9 = vld [vmem:[%s4347_s1 + $0x690] ss:$8 sps:$4 sm:$0xff]  }
  0xb3   : > { %2293 = vmatpush1.bf16.msra.mxu0 %v3167_v10  ;;  %v3260_v10 = vld [vmem:[%s4347_s1 + $0x6a4] ss:$8 sps:$4 sm:$0xff]  }
  0xb4   : > { %2294 = vmatprep.subr.bf16.mxu0 %v3175_v11  ;;  %2334 = vmatpush1.bf16.msra.mxu1 %v3170_v12  ;;  %v3255_v11 = vld [vmem:[%s4347_s1 + $0x790] ss:$8 sps:$4 sm:$0xff]   ;;  %v3263_v12 = vld [vmem:[%s4347_s1 + $0x7a4] ss:$8 sps:$4 sm:$0xff]  }
  0xb5   : > { %2335 = vmatprep.subr.bf16.mxu1 %v3178_v13  ;;  %v3258_v13 = vld [vmem:[%s4347_s1 + $0x6a0] ss:$8 sps:$4 sm:$0xff]  }
  0xb7   : > { %2295 = vmatpush1.bf16.msra.mxu0 %v3173_v14  ;;  %v3266_v14 = vld [vmem:[%s4347_s1 + $0x6b4] ss:$8 sps:$4 sm:$0xff]  }
  0xb8   : > { %2296 = vmatprep.subr.bf16.mxu0 %v3181_v15  ;;  %2336 = vmatpush1.bf16.msra.mxu1 %v3176_v16  ;;  %v3261_v15 = vld [vmem:[%s4347_s1 + $0x7a0] ss:$8 sps:$4 sm:$0xff]   ;;  %v3269_v16 = vld [vmem:[%s4347_s1 + $0x7b4] ss:$8 sps:$4 sm:$0xff]  }
  0xb9   : > { %2337 = vmatprep.subr.bf16.mxu1 %v3184_v17  ;;  %v3264_v17 = vld [vmem:[%s4347_s1 + $0x6b0] ss:$8 sps:$4 sm:$0xff]  }
  0xbb   : > { %2297 = vmatpush1.bf16.msra.mxu0 %v3179_v18  ;;  %v3272_v18 = vld [vmem:[%s4347_s1 + $0x6c4] ss:$8 sps:$4 sm:$0xff]  }
  0xbc   : > { %2298 = vmatprep.subr.bf16.mxu0 %v3187_v19  ;;  %2338 = vmatpush1.bf16.msra.mxu1 %v3182_v20  ;;  %v3267_v19 = vld [vmem:[%s4347_s1 + $0x7b0] ss:$8 sps:$4 sm:$0xff]   ;;  %v3275_v20 = vld [vmem:[%s4347_s1 + $0x7c4] ss:$8 sps:$4 sm:$0xff]  }
  0xbd   : > { %2339 = vmatprep.subr.bf16.mxu1 %v3190_v21  ;;  %v3270_v21 = vld [vmem:[%s4347_s1 + $0x6c0] ss:$8 sps:$4 sm:$0xff]  }
  0xbf   : > { %2299 = vmatpush1.bf16.msra.mxu0 %v3185_v23  ;;  %v3273_v23 = vld [vmem:[%s4347_s1 + $0x7c0] ss:$8 sps:$4 sm:$0xff]  }
  0xc0   : > { %2300 = vmatprep.subr.bf16.mxu0 %v3193_v24  ;;  %2340 = vmatpush1.bf16.msra.mxu1 %v3188_v25  ;;  %v3281_v24 = vld [vmem:[%s4347_s1 + $0x7d4] ss:$8 sps:$4 sm:$0xff]   ;;  %v3276_v25 = vld [vmem:[%s4347_s1 + $0x6d0] ss:$8 sps:$4 sm:$0xff]  }
  0xc1   : > { %2341 = vmatprep.subr.bf16.mxu1 %v3196_v28  ;;  %v3279_v28 = vld [vmem:[%s4347_s1 + $0x7d0] ss:$8 sps:$4 sm:$0xff]  }
  0xc3   : > { %2301 = vmatpush1.bf16.msra.mxu0 %v3191_v29  ;;  %v3287_v29 = vld [vmem:[%s4347_s1 + $0x7e4] ss:$8 sps:$4 sm:$0xff]  }
  0xc4   : > { %2352 = vmatprep.subr.bf16.mxu0 %v3199_v32  ;;  %2342 = vmatpush1.bf16.msra.mxu1 %v3194_v33  ;;  %v3282_v32 = vld [vmem:[%s4347_s1 + $0x6e0] ss:$8 sps:$4 sm:$0xff]   ;;  %v3290_v33 = vld [vmem:[%s4347_s1 + $0x6f4] ss:$8 sps:$4 sm:$0xff]  }
  0xc5   : > { %2393 = vmatprep.subr.bf16.mxu1 %v3203_v35  ;;  %v3285_v35 = vld [vmem:[%s4347_s1 + $0x7e0] ss:$8 sps:$4 sm:$0xff]  }
  0xc6   : > { %2303 = vmatmul.mubr.bf16.vlgmr.msra.gmra.mrb[8].mxu0 %v3822_v26  ;;  %v3207_v26 = vld [vmem:[%s4347_s1 + $0x710] ss:$8 sps:$4 sm:$0xff]  }
  0xc7   : > { %2353 = vmatpush1.bf16.msra.mxu0 %v3197_v36  ;;  %2384 = vmatprep.mubr.bf16.mxu0 %v638_v37  ;;  %v3293_v36 = vld [vmem:[%s4347_s1 + $0x7f4] ss:$8 sps:$4 sm:$0xff]   ;;  %v3288_v37 = vld [vmem:[%s4347_s1 + $0x6f0] ss:$8 sps:$4 sm:$0xff]  }
  0xc8   : > { %2344 = vmatmul.mubr.bf16.vlgmr.msra.gmra.mrb[8].mxu1 %v3834_v31  ;;  %2354 = vmatprep.subr.bf16.mxu0 %v3206_v38  ;;  %v3210_v31 = vld [vmem:[%s4347_s1 + $0x620] ss:$8 sps:$4 sm:$0xff]   ;;  %v3296_v38 = vld [vmem:[%s4347_s1 + $0x804] ss:$8 sps:$4 sm:$0xff]  }
  0xc9   : > { %2394 = vmatpush1.bf16.msra.mxu1 %v3201_v48  ;;  %2425 = vmatprep.mubr.bf16.mxu1 %v639_v39  ;;  %v4216_v48 = vld.sshfl [vmem:[%s3531_s15 + $0x20] sm:$0x33 pattern:$0x76325410]  ;;  %v3291_v39 = vld [vmem:[%s4347_s1 + $0x7f0] ss:$8 sps:$4 sm:$0xff]   ;;  %s261_s15 = scalar_lea.vmem %s4351_s5, %s2895_s23 }
  0xca   : > { %2395 = vmatprep.subr.bf16.mxu1 %v3209_v40  ;;  %v3294_v40 = vld [vmem:[%s4347_s1 + $0x800] ss:$8 sps:$4 sm:$0xff]  }
  0xcb   : > { %2355 = vmatpush1.bf16.msra.mxu0 %v3204_v41  ;;  %v647_v41 = vcombine.high %v4216_v48, %v4216_v48 }
  0xcc   : > { %2356 = vmatprep.subr.bf16.mxu0 %v3212_v43  ;;  %v3300_v43 = vld [vmem:[%s4347_s1 + $0x814] ss:$8 sps:$4 sm:$0xff]  }
  0xcd   : > { %2396 = vmatpush1.bf16.msra.mxu1 %v3207_v26  ;;  %v3298_v26 = vld [vmem:[%s4347_s1 + $0x810] ss:$8 sps:$4 sm:$0xff]  }
  0xce   : > { %2397 = vmatprep.subr.bf16.mxu1 %v3215_v44  ;;  %v3303_v44 = vld [vmem:[%s4347_s1 + $0x824] ss:$8 sps:$4 sm:$0xff]  }
  0xcf   : > { %2357 = vmatpush1.bf16.msra.mxu0 %v3210_v31  ;;  %v3301_v31 = vld [vmem:[%s4347_s1 + $0x820] ss:$8 sps:$4 sm:$0xff]  }
  0xd0   : > { %2358 = vmatprep.subr.bf16.mxu0 %v3218_v45  ;;  %v3309_v45 = vld [vmem:[%s4347_s1 + $0x844] ss:$8 sps:$4 sm:$0xff]  }
  0xd1   : > { %2398 = vmatpush1.bf16.msra.mxu1 %v3213_v46  ;;  %v559_v46 = vsub.s32 0, %v3514_v42 }
  0xd2   : > { %2399 = vmatprep.subr.bf16.mxu1 %v3221_v47  ;;  %v3307_v47 = vld [vmem:[%s4347_s1 + $0x840] ss:$8 sps:$4 sm:$0xff]  }
  0xd3   : > { %2359 = vmatpush1.bf16.msra.mxu0 %v3216_v49  ;;  %v555_v49 = vld [vmem:[%s4348_s2] sm:$0x3] }
  0xd4   : > { %2360 = vmatprep.subr.bf16.mxu0 %v3224_v50  ;;  %v563_v50 = vsub.s32 1, %v3514_v42 }
  0xd5   : > { %2400 = vmatpush1.bf16.msra.mxu1 %v3219_v51  ;;  %v3312_v51 = vld [vmem:[%s4347_s1 + $0x854] ss:$8 sps:$4 sm:$0xff]  }
  0xd6   : > { %2401 = vmatprep.subr.bf16.mxu1 %v3227_v52  ;;  %v560_v52 = vrot.slane %v555_v49, %v559_v46 }
  0xd7   : > { %2361 = vmatpush1.bf16.msra.mxu0 %v3222_v53  ;;  %v564_v53 = vrot.slane %v555_v49, %v563_v50 }
  0xd8   : > { %2362 = vmatprep.subr.bf16.mxu0 %v3230_v54  ;;  %v3310_v54 = vld [vmem:[%s4347_s1 + $0x850] ss:$8 sps:$4 sm:$0xff]  }
  0xd9   : > { %2402 = vmatpush1.bf16.msra.mxu1 %v3225_v55  ;;  %v3315_v55 = vld [vmem:[%s4347_s1 + $0x864] ss:$8 sps:$4 sm:$0xff]  }
  0xda   : > { %2403 = vmatprep.subr.bf16.mxu1 %v3233_v56 }
  0xdb   : > { %2363 = vmatpush1.bf16.msra.mxu0 %v3228_v57 }
  0xdc   : > { %2364 = vmatprep.subr.bf16.mxu0 %v3236_v58 }
  0xdd   : > { %2404 = vmatpush1.bf16.msra.mxu1 %v3231_v59 }
  0xde   : > { %2405 = vmatprep.subr.bf16.mxu1 %v3239_v60 }
  0xdf   : > { %2365 = vmatpush1.bf16.msra.mxu0 %v3234_v61 }
  0xe0   : > { %2366 = vmatprep.subr.bf16.mxu0 %v3242_v62  ;;  %v3313_v62 = vld [vmem:[%s4347_s1 + $0x860] ss:$8 sps:$4 sm:$0xff]  }
  0xe1   : > { %2406 = vmatpush1.bf16.msra.mxu1 %v3237_v63 }
  0xe2   : > { %2407 = vmatprep.subr.bf16.mxu1 %v3245_v0 }
  0xe3   : > { %2367 = vmatpush1.bf16.msra.mxu0 %v3240_v1 }
  0xe4   : > { %2368 = vmatprep.subr.bf16.mxu0 %v3248_v2  ;;  %v3318_v2 = vld [vmem:[%s4347_s1 + $0x874] ss:$8 sps:$4 sm:$0xff]  }
  0xe5   : > { %2408 = vmatpush1.bf16.msra.mxu1 %v3243_v3 }
  0xe6   : > { %2409 = vmatprep.subr.bf16.mxu1 %v3251_v4 }
  0xe7   : > { %2369 = vmatpush1.bf16.msra.mxu0 %v3246_v5 }
  0xe8   : > { %2370 = vmatprep.subr.bf16.mxu0 %v3254_v6  ;;  %v3316_v6 = vld [vmem:[%s4347_s1 + $0x870] ss:$8 sps:$4 sm:$0xff]  }
  0xe9   : > { %2410 = vmatpush1.bf16.msra.mxu1 %v3249_v7  ;;  %v3321_v7 = vld [vmem:[%s4347_s1 + $0x884] ss:$8 sps:$4 sm:$0xff]  }
  0xea   : > { %2411 = vmatprep.subr.bf16.mxu1 %v3257_v8  ;;  %v3319_v8 = vld [vmem:[%s4347_s1 + $0x880] ss:$8 sps:$4 sm:$0xff]  }
  0xeb   : > { %2371 = vmatpush1.bf16.msra.mxu0 %v3252_v9  ;;  %v3324_v9 = vld [vmem:[%s4347_s1 + $0x894] ss:$8 sps:$4 sm:$0xff]  }
  0xec   : > { %2372 = vmatprep.subr.bf16.mxu0 %v3260_v10  ;;  %v3322_v10 = vld [vmem:[%s4347_s1 + $0x890] ss:$8 sps:$4 sm:$0xff]  }
  0xed   : > { %2412 = vmatpush1.bf16.msra.mxu1 %v3255_v11  ;;  %v3327_v11 = vld [vmem:[%s4347_s1 + $0x8a4] ss:$8 sps:$4 sm:$0xff]  }
  0xee   : > { %2413 = vmatprep.subr.bf16.mxu1 %v3263_v12  ;;  %v3325_v12 = vld [vmem:[%s4347_s1 + $0x8a0] ss:$8 sps:$4 sm:$0xff]  }
  0xef   : > { %2373 = vmatpush1.bf16.msra.mxu0 %v3258_v13  ;;  %v3330_v13 = vld [vmem:[%s4347_s1 + $0x8b4] ss:$8 sps:$4 sm:$0xff]  }
  0xf0   : > { %2374 = vmatprep.subr.bf16.mxu0 %v3266_v14  ;;  %v3328_v14 = vld [vmem:[%s4347_s1 + $0x8b0] ss:$8 sps:$4 sm:$0xff]  }
  0xf1   : > { %2414 = vmatpush1.bf16.msra.mxu1 %v3261_v15  ;;  %v3333_v15 = vld [vmem:[%s4347_s1 + $0x8c4] ss:$8 sps:$4 sm:$0xff]  }
  0xf2   : > { %2415 = vmatprep.subr.bf16.mxu1 %v3269_v16  ;;  %v3331_v16 = vld [vmem:[%s4347_s1 + $0x8c0] ss:$8 sps:$4 sm:$0xff]  }
  0xf3   : > { %2375 = vmatpush1.bf16.msra.mxu0 %v3264_v17  ;;  %v3336_v17 = vld [vmem:[%s4347_s1 + $0x8d4] ss:$8 sps:$4 sm:$0xff]  }
  0xf4   : > { %2376 = vmatprep.subr.bf16.mxu0 %v3272_v18  ;;  %v3334_v18 = vld [vmem:[%s4347_s1 + $0x8d0] ss:$8 sps:$4 sm:$0xff]  }
  0xf5   : > { %2416 = vmatpush1.bf16.msra.mxu1 %v3267_v19  ;;  %v3339_v19 = vld [vmem:[%s4347_s1 + $0x8e4] ss:$8 sps:$4 sm:$0xff]  }
  0xf6   : > { %2417 = vmatprep.subr.bf16.mxu1 %v3275_v20  ;;  %v3337_v20 = vld [vmem:[%s4347_s1 + $0x8e0] ss:$8 sps:$4 sm:$0xff]  }
  0xf7   : > { %2377 = vmatpush1.bf16.msra.mxu0 %v3270_v21  ;;  %v3342_v21 = vld [vmem:[%s4347_s1 + $0x8f4] ss:$8 sps:$4 sm:$0xff]  }
  0xf8   : > { %2378 = vmatprep.subr.bf16.mxu0 %v3278_v22  ;;  %v3340_v22 = vld [vmem:[%s4347_s1 + $0x8f0] ss:$8 sps:$4 sm:$0xff]  }
  0xf9   : > { %2418 = vmatpush1.bf16.msra.mxu1 %v3273_v23 }
  0xfa   : > { %2419 = vmatprep.subr.bf16.mxu1 %v3281_v24 }
  0xfb   : > { %2379 = vmatpush1.bf16.msra.mxu0 %v3276_v25 }
  0xfc   : > { %2380 = vmatprep.subr.bf16.mxu0 %v3284_v27 }
  0xfd   : > { %2420 = vmatpush1.bf16.msra.mxu1 %v3279_v28 }
  0xfe   : > { %2421 = vmatprep.subr.bf16.mxu1 %v3287_v29 }
  0xff   : > { %2381 = vmatpush1.bf16.msra.mxu0 %v3282_v32 }
 0x100   : > { %2382 = vmatprep.subr.bf16.mxu0 %v3290_v33 }
 0x101   : > { %2422 = vmatpush1.bf16.msra.mxu1 %v3285_v35 }
 0x102   : > { %2423 = vmatprep.subr.bf16.mxu1 %v3293_v36 }
 0x103   : > { %2383 = vmatpush1.bf16.msra.mxu0 %v3288_v37 }
 0x104   : > { %2434 = vmatprep.subr.bf16.mxu0 %v3296_v38 }
 0x105   : > { %2424 = vmatpush1.bf16.msra.mxu1 %v3291_v39 }
 0x106   : > { %2385 = vmatmul.mubr.bf16.vlgmr.msra.gmra.mrb[12].mxu0 %v4009_v30  ;;  %v3306_v30 = vld [vmem:[%s4347_s1 + $0x834] ss:$8 sps:$4 sm:$0xff]  }
 0x107   : > { %2435 = vmatpush1.bf16.msra.mxu0 %v3294_v40  ;;  %2466 = vmatprep.mubr.bf16.mxu0 %v647_v41 }
 0x108   : > { %2426 = vmatmul.mubr.bf16.vlgmr.msra.gmra.mrb[12].mxu1 %v4018_v34  ;;  %2436 = vmatprep.subr.bf16.mxu0 %v3300_v43  ;;  %v3304_v34 = vld [vmem:[%s4347_s1 + $0x830] ss:$8 sps:$4 sm:$0xff]  }
 0x10b   : > { %2437 = vmatpush1.bf16.msra.mxu0 %v3298_v26 }
 0x10c   : > { %2438 = vmatprep.subr.bf16.mxu0 %v3303_v44 }
 0x10f   : > { %2439 = vmatpush1.bf16.msra.mxu0 %v3301_v31 }
 0x110   : > { %2440 = vmatprep.subr.bf16.mxu0 %v3306_v30 }
 0x113   : > { %2441 = vmatpush1.bf16.msra.mxu0 %v3304_v34 }
 0x114   : > { %2442 = vmatprep.subr.bf16.mxu0 %v3309_v45 }
 0x117   : > { %2443 = vmatpush1.bf16.msra.mxu0 %v3307_v47 }
 0x118   : > { %2444 = vmatprep.subr.bf16.mxu0 %v3312_v51 }
 0x119   : > { %v2140_v56 = vpop.f32.mrb[0].mxu0 }
 0x11a   : > { %v2141_v57 = vadd.f32 %v2140_v56, %v560_v52  ;;  %v2142_v58 = vpop.f32.mrb[1].mxu0  ;;  %v2181_v61 = vpop.f32.mrb[0].mxu1 }
 0x11b   : > { %v2143_v59 = vadd.f32 %v2142_v58, %v564_v53  ;;  %v2144_v60 = vpop.f32.mrb[2].mxu0  ;;  %2445 = vmatpush1.bf16.msra.mxu0 %v3310_v54  ;;  %v2183_v1 = vpop.f32.mrb[1].mxu1 }
 0x11c   : > { %v2182_v63 = vadd.f32 %v2181_v61, %v2141_v57  ;;  %v2145_v0 = vpop.f32.mrb[3].mxu0  ;;  %2446 = vmatprep.subr.bf16.mxu0 %v3315_v55  ;;  %v2185_v4 = vpop.f32.mrb[2].mxu1 }
 0x11d   : > { %v2184_v3 = vadd.f32 %v2183_v1, %v2143_v59  ;;  %v2186_v5 = vpop.f32.mrb[3].mxu1  ;;  %v2484_v0 = vld [vmem:[%s256_s30] sm:$0x3] }
 0x11f   : > { %2447 = vmatpush1.bf16.msra.mxu0 %v3313_v62  ;;  %v2475_v62 = vld [vmem:[%s252_s26] sm:$0xf] }
 0x120   : > { %2448 = vmatprep.subr.bf16.mxu0 %v3318_v2 }
 0x123   : > { %2449 = vmatpush1.bf16.msra.mxu0 %v3316_v6 }
 0x124   : > { %2450 = vmatprep.subr.bf16.mxu0 %v3321_v7  ;;  %v2489_v7 = vrot.slane %v2484_v0, %v559_v46 }
 0x127   : > { %2451 = vmatpush1.bf16.msra.mxu0 %v3319_v8 }
 0x128   : > { %2452 = vmatprep.subr.bf16.mxu0 %v3324_v9 }
 0x12b   : > { %2453 = vmatpush1.bf16.msra.mxu0 %v3322_v10  ;;  %v2493_v10 = vrot.slane %v2484_v0, %v563_v50 }
 0x12c   : > { %2454 = vmatprep.subr.bf16.mxu0 %v3327_v11 }
 0x12f   : > { %2455 = vmatpush1.bf16.msra.mxu0 %v3325_v12 }
 0x130   : > { %2456 = vmatprep.subr.bf16.mxu0 %v3330_v13 }
 0x133   : > { %2457 = vmatpush1.bf16.msra.mxu0 %v3328_v14 }
 0x134   : > { %2458 = vmatprep.subr.bf16.mxu0 %v3333_v15 }
 0x137   : > { %2459 = vmatpush1.bf16.msra.mxu0 %v3331_v16 }
 0x138   : > { %2460 = vmatprep.subr.bf16.mxu0 %v3336_v17 }
 0x13b   : > { %2461 = vmatpush1.bf16.msra.mxu0 %v3334_v18 }
 0x13c   : > { %2462 = vmatprep.subr.bf16.mxu0 %v3339_v19 }
 0x13f   : > { %2463 = vmatpush1.bf16.msra.mxu0 %v3337_v20 }
 0x140   : > { %2464 = vmatprep.subr.bf16.mxu0 %v3342_v21 }
 0x143   : > { %2465 = vmatpush1.bf16.msra.mxu0 %v3340_v22 }
 0x146   : > { %2467 = vmatmul.mubr.bf16.vlgmr.msra.gmra.mrb[16].mxu0 %v4216_v48 }
 0x159   : > { %v2222_v23 = vpop.f32.mrb[4].mxu0 }
 0x15a   : > { %v2223_v24 = vadd.f32 %v2222_v23, %v2182_v63  ;;  %v2224_v25 = vpop.f32.mrb[5].mxu0  ;;  %v2263_v29 = vpop.f32.mrb[4].mxu1  ;;  %v2476_v63 = vunpack.c.l.bf16 %v2475_v62 }
 0x15b   : > { %v2225_v27 = vadd.f32 %v2224_v25, %v2184_v3  ;;  %v2226_v28 = vpop.f32.mrb[6].mxu0  ;;  %v2265_v35 = vpop.f32.mrb[5].mxu1 }
 0x15c   : > { %v2264_v32 = vadd.f32 %v2263_v29, %v2223_v24  ;;  %v2227_v33 = vpop.f32.mrb[7].mxu0  ;;  %v2267_v37 = vpop.f32.mrb[6].mxu1  ;;  %v2478_v2 = vcombine.high %v2476_v63, %v2476_v63 }
 0x15d   : > { %v2266_v36 = vadd.f32 %v2265_v35, %v2225_v27  ;;  %v2268_v38 = vpop.f32.mrb[7].mxu1 }
 0x199   : > { %v2304_v39 = vpop.f32.mrb[8].mxu0 }
 0x19a   : > { %v2305_v40 = vadd.f32 %v2304_v39, %v2264_v32  ;;  %v2306_v41 = vpop.f32.mrb[9].mxu0 }
 0x19b   : > { %v2307_v43 = vadd.f32 %v2306_v41, %v2266_v36  ;;  %v2308_v26 = vpop.f32.mrb[10].mxu0  ;;  %v2345_v44 = vpop.f32.mrb[8].mxu1 }
 0x19c   : > { %v2346_v31 = vadd.f32 %v2345_v44, %v2305_v40  ;;  %v2309_v48 = vpop.f32.mrb[11].mxu0  ;;  %v2347_v30 = vpop.f32.mrb[9].mxu1 }
 0x19d   : > { %v2348_v34 = vadd.f32 %v2347_v30, %v2307_v43  ;;  %v2349_v45 = vpop.f32.mrb[10].mxu1 }
 0x19e   : > { %v2350_v47 = vpop.f32.mrb[11].mxu1 }
 0x1d9   : > { %v2386_v49 = vpop.f32.mrb[12].mxu0 }
 0x1da   : > { %v2387_v51 = vadd.f32 %v2386_v49, %v2346_v31  ;;  %v2388_v52 = vpop.f32.mrb[13].mxu0 }
 0x1db   : > { %v2389_v53 = vadd.f32 %v2388_v52, %v2348_v34  ;;  %v2390_v54 = vpop.f32.mrb[14].mxu0  ;;  %v2427_v55 = vpop.f32.mrb[12].mxu1 }
 0x1dc   : > { %v2428_v56 = vadd.f32 %v2427_v55, %v2387_v51  ;;  %v2391_v57 = vpop.f32.mrb[15].mxu0  ;;  %v2429_v58 = vpop.f32.mrb[13].mxu1 }
 0x1dd   : > { %v2430_v59 = vadd.f32 %v2429_v58, %v2389_v53  ;;  %v2431_v60 = vpop.f32.mrb[14].mxu1 }
 0x1de   : > { %v2432_v61 = vpop.f32.mrb[15].mxu1 }
 0x219   : > { %v2468_v1 = vpop.f32.mrb[16].mxu0 }
 0x21a   : > { %v2469_v3 = vadd.f32 %v2468_v1, %v2428_v56  ;;  %v2470_v4 = vpop.f32.mrb[17].mxu0 }
 0x21b   : > { %v2471_v5 = vadd.f32 %v2470_v4, %v2430_v59  ;;  %v2472_v6 = vpop.f32.mrb[18].mxu0 }
 0x21c   : > { %v2480_v8 = vadd.f32 %v2476_v63, %v2469_v3  ;;  %v2473_v9 = vpop.f32.mrb[19].mxu0 }
 0x21d   : > { %v2481_v11 = vadd.f32 %v2478_v2, %v2471_v5 }
 0x21e   : > { %v2482_v12 = vmax.f32 %v2480_v8, 0.0 }
 0x21f   : > { %v2483_v13 = vmax.f32 %v2481_v11, 0.0 }
 0x220   : > { %v2496_v14 = vmul.f32 %v2489_v7, %v2482_v12 }
 0x221   : > { %v2497_v15 = vmul.f32 %v2493_v10, %v2483_v13 }
 0x223   : > { %v2891_v16 = vpack.c.bf16 %v2497_v15, %v2496_v14 }
 0x225   : > { %2892 = vst.sshfl [vmem:[%s261_s15] sm:$0x33 pattern:$0x76325410] %v2891_v16 }
 0x226 PF: > { %s15_s18 = sadd.s32 1, %s3349_s18  }
 0x227   : > { %p12_p4 = scmp.ge.s32.totalorder %s15_s18, 4  }
 0x229   :  { %14 = sbr.rel (!%p12_p4) target bundleno = 1 (0x1), region = 76 }

// kernel: encoder_forward.23
= control target key start
LH: loop header
LB: loop body
LE: loop exit
PB: predicated region body
PF: predicated region fallthrough
CT: control target
= control target key end

     0   :  { %s1447_s15 = smov 0   ;;  %s1705_s0 = inlined_call_operand.vmem [shape: bf16[2,4,1152], index: 0, kind: input, shape index: {}]   ;;  %s1706_s1 = inlined_call_operand.vmem [shape: bf16[1152,128], index: 1, kind: input, shape index: {}]   ;;  %s1707_s2 = inlined_call_operand.vmem [shape: f32[1,128], index: 2, kind: input, shape index: {}]   ;;  %s1708_s3 = inlined_call_operand.vmem [shape: bf16[2,4,128], index: 3, kind: input, shape index: {}]   ;;  %s1709_s4 = inlined_call_operand.vmem [shape: bf16[2,4,128], index: 4, kind: output, shape index: {}]  }
   0x1 LB: > { %s1124_s16 = sadd.s32 4294967295, %s1417_s15   ;;  %p1128_p0 = scmp.ge.s32.totalorder %s1417_s15, 1  ;;  %s1417_s15 = sphi %s1447_s15, %s14_s15  }
   0x2   : > { %p171_p1 = scmp.lt.s32.totalorder %s1417_s15, 3 }
   0x4   : > { %p172_p2 = pnand %p1128_p0, %p171_p1 }
   0x5   : > { %v1337_v0 = vld [vmem:[%s1706_s1 + $0x40] sm:$0xff] (!%p172_p2)   ;;  %v1341_v4 = vld [vmem:[%s1706_s1 + $0x48] sm:$0xff] (!%p172_p2)   ;;  %v1345_v8 = vld [vmem:[%s1706_s1 + $0x50] sm:$0xff] (!%p172_p2)   ;;  %p200_p3 = scmp.lt.s32.totalorder (!%p172_p2), %s1124_s16, 1  ;;  %v375_v27 = vlaneseq (!%p172_p2)  ;;  %v1419_v35 = vmov (!%p172_p2), 1983009808  }
   0x6   : > { %175 = sbr.rel (%p172_p2) target bundleno = 323 (0x143), region = 36  ;;  %v1338_v1 = vld [vmem:[%s1706_s1] sm:$0xff] (!%p172_p2)   ;;  %1208 = vmatprep.subr.bf16.mxu0 (!%p172_p2), %v1337_v0  ;;  %v1342_v5 = vld [vmem:[%s1706_s1 + $0x8] sm:$0xff] (!%p172_p2)   ;;  %v1346_v9 = vld [vmem:[%s1706_s1 + $0x10] sm:$0xff] (!%p172_p2)   ;;  %v373_v36 = vunpack.c.l.s4 (!%p172_p2), %v1419_v35  ;;  %vm1421_vm0 = vmmov (!%p172_p2), 0  }
   0x7   : > { %v1339_v2 = vld [vmem:[%s1706_s1 + $0xc0] sm:$0xff] (!%p172_p2)   ;;  %1209 = vmatpush3.bf16.msra.mxu0 (!%p172_p2), %v1338_v1  ;;  %v1343_v6 = vld [vmem:[%s1706_s1 + $0xc8] sm:$0xff] (!%p172_p2)   ;;  %v1347_v10 = vld [vmem:[%s1706_s1 + $0xd0] sm:$0xff] (!%p172_p2)   ;;  %v376_v32 = vshrl.u32 (!%p172_p2), %v375_v27, 7 }
   0x8   : > { %v1340_v3 = vld [vmem:[%s1706_s1 + $0x80] sm:$0xff] (!%p172_p2)   ;;  %1230 = vmatprep.subr.bf16.mxu1 (!%p172_p2), %v1339_v2  ;;  %1210 = vmatprep.subr.bf16.mxu0 (!%p172_p2), %v1341_v4  ;;  %v1344_v7 = vld [vmem:[%s1706_s1 + $0x88] sm:$0xff] (!%p172_p2)   ;;  %v1348_v11 = vld [vmem:[%s1706_s1 + $0x90] sm:$0xff] (!%p172_p2)   ;;  %v374_v38 = vunpack.c.0.s8 (!%p172_p2), %v373_v36 }
   0x9   : > { %1231 = vmatpush3.bf16.msra.mxu1 (!%p172_p2), %v1340_v3  ;;  %v1349_v12 = vld [vmem:[%s1706_s1 + $0x58] sm:$0xff] (!%p172_p2)   ;;  %v1353_v16 = vld [vmem:[%s1706_s1 + $0x60] sm:$0xff] (!%p172_p2)   ;;  %v1357_v20 = vld [vmem:[%s1706_s1 + $0x68] sm:$0xff] (!%p172_p2)  }
   0xa   : > { %1232 = vmatprep.subr.bf16.mxu1 (!%p172_p2), %v1343_v6  ;;  %v1350_v13 = vld [vmem:[%s1706_s1 + $0x18] sm:$0xff] (!%p172_p2)   ;;  %v1354_v17 = vld [vmem:[%s1706_s1 + $0x20] sm:$0xff] (!%p172_p2)   ;;  %v1358_v21 = vld [vmem:[%s1706_s1 + $0x28] sm:$0xff] (!%p172_p2)   ;;  %v1570_v41 = vsub.s32 (!%p172_p2), %v374_v38, %v376_v32 }
   0xb   : > { %1211 = vmatpush3.bf16.msra.mxu0 (!%p172_p2), %v1342_v5  ;;  %v1351_v14 = vld [vmem:[%s1706_s1 + $0xd8] sm:$0xff] (!%p172_p2)   ;;  %v1355_v18 = vld [vmem:[%s1706_s1 + $0xe0] sm:$0xff] (!%p172_p2)   ;;  %v1359_v22 = vld [vmem:[%s1706_s1 + $0xe8] sm:$0xff] (!%p172_p2)  }
   0xc   : > { %1212 = vmatprep.subr.bf16.mxu0 (!%p172_p2), %v1345_v8  ;;  %v1352_v15 = vld [vmem:[%s1706_s1 + $0x98] sm:$0xff] (!%p172_p2)   ;;  %v1356_v19 = vld [vmem:[%s1706_s1 + $0xa0] sm:$0xff] (!%p172_p2)   ;;  %v1360_v23 = vld [vmem:[%s1706_s1 + $0xa8] sm:$0xff] (!%p172_p2)  }
   0xd   : > { %1233 = vmatpush3.bf16.msra.mxu1 %v1344_v7  ;;  %s1711_s16 = smov (!%p200_p3, %s1124_s16), 1  ;;  %v1361_v24 = vld [vmem:[%s1706_s1 + $0x70] sm:$0xff]   ;;  %v1365_v29 = vld [vmem:[%s1706_s1 + $0x78] sm:$0xff]   ;;  %v1369_v37 = vld [vmem:[%s1706_s1 + $0x140] sm:$0xff]  }
   0xe   : > { %1234 = vmatprep.subr.bf16.mxu1 %v1347_v10  ;;  %s1325_s19 = smul.u32 18, %s1711_s16  ;;  %v1362_v25 = vld [vmem:[%s1706_s1 + $0x30] sm:$0xff]   ;;  %v1366_v30 = vld [vmem:[%s1706_s1 + $0x38] sm:$0xff]   ;;  %v1372_v40 = vld [vmem:[%s1706_s1 + $0x1c0] sm:$0xff]  }
   0xf   : > { %1213 = vmatpush3.bf16.msra.mxu0 %v1346_v9  ;;  %v1363_v26 = vld [vmem:[%s1706_s1 + $0xf0] sm:$0xff]   ;;  %v1367_v31 = vld [vmem:[%s1706_s1 + $0xf8] sm:$0xff]   ;;  %v1371_v44 = vld [vmem:[%s1706_s1 + $0x100] sm:$0xff]  }
  0x10   : > { %1214 = vmatprep.subr.bf16.mxu0 %v1349_v12  ;;  %v1364_v28 = vld [vmem:[%s1706_s1 + $0xb0] sm:$0xff]   ;;  %s1552_s30 = scalar_lea.vmem %s1705_s0, %s1325_s19  ;;  %v1368_v34 = vld [vmem:[%s1706_s1 + $0xb8] sm:$0xff]   ;;  %v1373_v45 = vld [vmem:[%s1706_s1 + $0x180] sm:$0xff]  }
  0x11   : > { %1235 = vmatpush3.bf16.msra.mxu1 %v1348_v11  ;;  %v214_v33 = vld [vmem:[%s1552_s30] sm:$0xff]  ;;  %v1374_v48 = vld [vmem:[%s1706_s1 + $0x148] sm:$0xff]   ;;  %v1378_v52 = vld [vmem:[%s1706_s1 + $0x150] sm:$0xff]  }
  0x12   : > { %1236 = vmatprep.subr.bf16.mxu1 %v1351_v14  ;;  %v371_v39 = vcombine.high %v214_v33, %v214_v33  ;;  %v378_v42 = vrot.slane %v214_v33, %v1570_v41  ;;  %v1376_v49 = vld [vmem:[%s1706_s1 + $0x1c8] sm:$0xff]   ;;  %v1380_v53 = vld [vmem:[%s1706_s1 + $0x1d0] sm:$0xff]   ;;  %v1382_v56 = vld [vmem:[%s1706_s1 + $0x158] sm:$0xff]  }
  0x13   : > { %1215 = vmatpush3.bf16.msra.mxu0 %v1350_v13  ;;  %v1375_v50 = vld [vmem:[%s1706_s1 + $0x108] sm:$0xff]   ;;  %v1379_v54 = vld [vmem:[%s1706_s1 + $0x110] sm:$0xff]   ;;  %v1384_v57 = vld [vmem:[%s1706_s1 + $0x1d8] sm:$0xff]  }
  0x14   : > { %1216 = vmatprep.subr.bf16.mxu0 %v1353_v16  ;;  %v385_v43 = vrot.slane %v371_v39, %v1570_v41  ;;  %v386_v46 = vcombine.high %v378_v42, %v378_v42  ;;  %v1377_v51 = vld [vmem:[%s1706_s1 + $0x188] sm:$0xff]   ;;  %v1381_v55 = vld [vmem:[%s1706_s1 + $0x190] sm:$0xff]   ;;  %v1383_v58 = vld [vmem:[%s1706_s1 + $0x118] sm:$0xff]  }
  0x15   : > { %1237 = vmatpush3.bf16.msra.mxu1 %v1352_v15  ;;  %v1385_v59 = vld [vmem:[%s1706_s1 + $0x198] sm:$0xff]   ;;  %v1386_v60 = vld [vmem:[%s1706_s1 + $0x160] sm:$0xff]   ;;  %v1390_v0 = vld [vmem:[%s1706_s1 + $0x168] sm:$0xff]  }
  0x16   : > { %1238 = vmatprep.subr.bf16.mxu1 %v1355_v18  ;;  %v387_v47 = vcombine.high %v385_v43, %v385_v43  ;;  %885 = vmatprep.mubr.bf16.mxu0 %v386_v46  ;;  %v1388_v61 = vld [vmem:[%s1706_s1 + $0x1e0] sm:$0xff]   ;;  %v1392_v1 = vld [vmem:[%s1706_s1 + $0x1e8] sm:$0xff]   ;;  %v1394_v4 = vld [vmem:[%s1706_s1 + $0x170] sm:$0xff]  }
  0x17   : > { %1217 = vmatpush3.bf16.msra.mxu0 %v1354_v17  ;;  %v1387_v62 = vld [vmem:[%s1706_s1 + $0x120] sm:$0xff]   ;;  %v1391_v2 = vld [vmem:[%s1706_s1 + $0x128] sm:$0xff]   ;;  %v1396_v5 = vld [vmem:[%s1706_s1 + $0x1f0] sm:$0xff]  }
  0x18   : > { %1218 = vmatprep.subr.bf16.mxu0 %v1357_v20  ;;  %925 = vmatprep.mubr.bf16.mxu1 %v387_v47  ;;  %v1389_v63 = vld [vmem:[%s1706_s1 + $0x1a0] sm:$0xff]   ;;  %v1393_v3 = vld [vmem:[%s1706_s1 + $0x1a8] sm:$0xff]   ;;  %v1395_v6 = vld [vmem:[%s1706_s1 + $0x130] sm:$0xff]  }
  0x19   : > { %1239 = vmatpush3.bf16.msra.mxu1 %v1356_v19  ;;  %v1397_v7 = vld [vmem:[%s1706_s1 + $0x1b0] sm:$0xff]   ;;  %v215_v8 = vld [vmem:[%s1552_s30 + $0x8] sm:$0xff]  ;;  %v1398_v9 = vld [vmem:[%s1706_s1 + $0x178] sm:$0xff]   ;;  %v1420_v19 = vmov 0.0  }
  0x1a   : > { %1240 = vmatprep.subr.bf16.mxu1 %v1359_v22  ;;  %v395_v10 = vrot.slane %v215_v8, %v1570_v41  ;;  %v388_v11 = vcombine.high %v215_v8, %v215_v8  ;;  %v1400_v12 = vld [vmem:[%s1706_s1 + $0x1f8] sm:$0xff]   ;;  %v1403_v18 = vld [vmem:[%s1706_s1 + $0x200] sm:$0xff]   ;;  %v1404_v20 = vld [vmem:[%s1706_s1 + $0x208] sm:$0xff]  }
  0x1b   : > { %1219 = vmatpush3.bf16.msra.mxu0 %v1358_v21  ;;  %v1399_v15 = vld [vmem:[%s1706_s1 + $0x138] sm:$0xff]   ;;  %v1405_v21 = vld [vmem:[%s1706_s1 + $0x210] sm:$0xff]  }
  0x1c   : > { %1220 = vmatprep.subr.bf16.mxu0 %v1361_v24  ;;  %v403_v13 = vcombine.high %v395_v10, %v395_v10  ;;  %v402_v14 = vrot.slane %v388_v11, %v1570_v41  ;;  %v1401_v16 = vld [vmem:[%s1706_s1 + $0x1b8] sm:$0xff]   ;;  %v1408_v24 = vld [vmem:[%s1706_s1 + $0x228] sm:$0xff]   ;;  %v1133_v27 = vld.sshfl [vmem:[%s1552_s30 + $0x10] sm:$0x3 pattern:$0x76325410] }
  0x1d   : > { %1241 = vmatpush3.bf16.msra.mxu1 %v1360_v23  ;;  %v1406_v22 = vld [vmem:[%s1706_s1 + $0x218] sm:$0xff]   ;;  %v1407_v23 = vld [vmem:[%s1706_s1 + $0x220] sm:$0xff]   ;;  %s1130_s30 = sshll.u32 %s1711_s16, 1 }
  0x1e   : > { %1242 = vmatprep.subr.bf16.mxu1 %v1363_v26  ;;  %v404_v17 = vcombine.high %v402_v14, %v402_v14  ;;  %v1410_v26 = vld [vmem:[%s1706_s1 + $0x238] sm:$0xff]   ;;  %s208_s28 = scalar_lea.vmem %s1708_s3, %s1130_s30  ;;  %s212_s6 = scalar_lea.vmem %s1709_s4, %s1130_s30 }
  0x1f   : > { %1221 = vmatpush3.bf16.msra.mxu0 %v1362_v25  ;;  %v1409_v25 = vld [vmem:[%s1706_s1 + $0x230] sm:$0xff]  }
  0x20   : > { %1222 = vmatprep.subr.bf16.mxu0 %v1365_v29 }
  0x21   : > { %1243 = vmatpush3.bf16.msra.mxu1 %v1364_v28 }
  0x22   : > { %1244 = vmatprep.subr.bf16.mxu1 %v1367_v31 }
  0x23   : > { %1223 = vmatpush3.bf16.msra.mxu0 %v1366_v30  ;;  %v1132_v30 = vld [vmem:[%s1707_s2] ss:$0 sm:$0xff] }
  0x24   : > { %1252 = vmatprep.subr.bf16.mxu0 %v1369_v37 }
  0x25   : > { %1245 = vmatpush3.bf16.msra.mxu1 %v1368_v34 }
  0x26   : > { %1274 = vmatprep.subr.bf16.mxu1 %v1372_v40  ;;  %886 = vmatmul.mubr.bf16.vlgmr.msra.gmra.mrb[0].mxu0 %v378_v42 }
  0x27   : > { %1253 = vmatpush3.bf16.msra.mxu0 %v1371_v44  ;;  %965 = vmatprep.mubr.bf16.mxu0 %v403_v13 }
  0x28   : > { %926 = vmatmul.mubr.bf16.vlgmr.msra.gmra.mrb[0].mxu1 %v385_v43  ;;  %1254 = vmatprep.subr.bf16.mxu0 %v1374_v48 }
  0x29   : > { %1275 = vmatpush3.bf16.msra.mxu1 %v1373_v45  ;;  %1005 = vmatprep.mubr.bf16.mxu1 %v404_v17 }
  0x2a   : > { %1276 = vmatprep.subr.bf16.mxu1 %v1376_v49 }
  0x2b   : > { %1255 = vmatpush3.bf16.msra.mxu0 %v1375_v50 }
  0x2c   : > { %1256 = vmatprep.subr.bf16.mxu0 %v1378_v52 }
  0x2d   : > { %1277 = vmatpush3.bf16.msra.mxu1 %v1377_v51 }
  0x2e   : > { %1278 = vmatprep.subr.bf16.mxu1 %v1380_v53  ;;  %v1053_v53 = vld [vmem:[%s208_s28] sm:$0x3] }
  0x2f   : > { %1257 = vmatpush3.bf16.msra.mxu0 %v1379_v54  ;;  %v1054_v54 = vunpack.c.l.bf16 %v1053_v53 }
  0x30   : > { %1258 = vmatprep.subr.bf16.mxu0 %v1382_v56 }
  0x31   : > { %1279 = vmatpush3.bf16.msra.mxu1 %v1381_v55 }
  0x32   : > { %1280 = vmatprep.subr.bf16.mxu1 %v1384_v57 }
  0x33   : > { %1259 = vmatpush3.bf16.msra.mxu0 %v1383_v58 }
  0x34   : > { %1260 = vmatprep.subr.bf16.mxu0 %v1386_v60 }
  0x35   : > { %1281 = vmatpush3.bf16.msra.mxu1 %v1385_v59 }
  0x36   : > { %1282 = vmatprep.subr.bf16.mxu1 %v1388_v61 }
  0x37   : > { %1261 = vmatpush3.bf16.msra.mxu0 %v1387_v62 }
  0x38   : > { %1262 = vmatprep.subr.bf16.mxu0 %v1390_v0 }
  0x39   : > { %1283 = vmatpush3.bf16.msra.mxu1 %v1389_v63 }
  0x3a   : > { %1284 = vmatprep.subr.bf16.mxu1 %v1392_v1 }
  0x3b   : > { %1263 = vmatpush3.bf16.msra.mxu0 %v1391_v2 }
  0x3c   : > { %1264 = vmatprep.subr.bf16.mxu0 %v1394_v4 }
  0x3d   : > { %1285 = vmatpush3.bf16.msra.mxu1 %v1393_v3 }
  0x3e   : > { %1286 = vmatprep.subr.bf16.mxu1 %v1396_v5 }
  0x3f   : > { %1265 = vmatpush3.bf16.msra.mxu0 %v1395_v6 }
  0x40   : > { %1266 = vmatprep.subr.bf16.mxu0 %v1398_v9 }
  0x41   : > { %1287 = vmatpush3.bf16.msra.mxu1 %v1397_v7 }
  0x42   : > { %1288 = vmatprep.subr.bf16.mxu1 %v1400_v12 }
  0x43   : > { %1267 = vmatpush3.bf16.msra.mxu0 %v1399_v15 }
  0x44   : > { %1305 = vmatprep.subr.bf16.mxu0 %v1420_v19 }
  0x45   : > { %1289 = vmatpush3.bf16.msra.mxu1 %v1401_v16 }
  0x46   : > { %966 = vmatmul.mubr.bf16.vlgmr.msra.gmra.mrb[4].mxu0 %v395_v10 }
  0x47   : > { %1306 = vmatpush3.bf16.msra.mxu0 %v1403_v18  ;;  %1321 = vmatprep.mubr.msk.bf16.mxu0 %vm1421_vm0, %v1420_v19 }
  0x48   : > { %1006 = vmatmul.mubr.bf16.vlgmr.msra.gmra.mrb[4].mxu1 %v402_v14  ;;  %1307 = vmatprep.subr.bf16.mxu0 %v1420_v19 }
  0x4b   : > { %1308 = vmatpush3.bf16.msra.mxu0 %v1404_v20 }
  0x4c   : > { %1309 = vmatprep.subr.bf16.mxu0 %v1420_v19 }
  0x4f   : > { %1310 = vmatpush3.bf16.msra.mxu0 %v1405_v21 }
  0x50   : > { %1311 = vmatprep.subr.bf16.mxu0 %v1420_v19 }
  0x53   : > { %1312 = vmatpush3.bf16.msra.mxu0 %v1406_v22 }
  0x54   : > { %1313 = vmatprep.subr.bf16.mxu0 %v1420_v19 }
  0x57   : > { %1314 = vmatpush3.bf16.msra.mxu0 %v1407_v23 }
  0x58   : > { %1315 = vmatprep.subr.bf16.mxu0 %v1420_v19 }
  0x5b   : > { %1316 = vmatpush3.bf16.msra.mxu0 %v1408_v24 }
  0x5c   : > { %1317 = vmatprep.subr.bf16.mxu0 %v1420_v19 }
  0x5f   : > { %1318 = vmatpush3.bf16.msra.mxu0 %v1409_v25 }
  0x60   : > { %1319 = vmatprep.subr.bf16.mxu0 %v1420_v19 }
  0x63   : > { %1320 = vmatpush3.bf16.msra.mxu0 %v1410_v26 }
  0x66   : > { %1322 = vmatmul.mubr.bf16.vlgmr.msra.gmra.mrb[8].mxu0 %v1133_v27 }
  0xf9   : > { %v1224_v28 = vpop.f32.mrb[0].mxu0 }
  0xfa   : > { %v1225_v31 = vpop.f32.mrb[1].mxu0 }
  0xfb   : > { %v1246_v29 = vpop.f32.mrb[0].mxu1  ;;  %v1226_v33 = vadd.f32 %v1225_v31, %v1224_v28  ;;  %v1227_v34 = vpop.f32.mrb[2].mxu0 }
  0xfc   : > { %v1247_v32 = vpop.f32.mrb[1].mxu1  ;;  %v1228_v37 = vpop.f32.mrb[3].mxu0 }
  0xfd   : > { %v1248_v35 = vadd.f32 %v1247_v32, %v1246_v29  ;;  %v1249_v36 = vpop.f32.mrb[2].mxu1  ;;  %v888_v39 = vadd.f32 %v1226_v33, %v1132_v30 }
  0xfe   : > { %v1250_v38 = vpop.f32.mrb[3].mxu1 }
  0xff   : > { %v928_v40 = vadd.f32 %v1248_v35, %v888_v39 }
 0x119   : > { %v1268_v41 = vpop.f32.mrb[4].mxu0 }
 0x11a   : > { %v1269_v43 = vpop.f32.mrb[5].mxu0 }
 0x11b   : > { %v1290_v42 = vpop.f32.mrb[4].mxu1  ;;  %v1270_v45 = vadd.f32 %v1269_v43, %v1268_v41  ;;  %v1271_v46 = vpop.f32.mrb[6].mxu0 }
 0x11c   : > { %v1291_v44 = vpop.f32.mrb[5].mxu1  ;;  %v1272_v49 = vpop.f32.mrb[7].mxu0 }
 0x11d   : > { %v1292_v47 = vadd.f32 %v1291_v44, %v1290_v42  ;;  %v1293_v48 = vpop.f32.mrb[6].mxu1  ;;  %v968_v51 = vadd.f32 %v1270_v45, %v928_v40 }
 0x11e   : > { %v1294_v50 = vpop.f32.mrb[7].mxu1 }
 0x11f   : > { %v1008_v52 = vadd.f32 %v1292_v47, %v968_v51 }
 0x139   : > { %v1047_v55 = vpop.f32.mrb[8].mxu0 }
 0x13a   : > { %v1048_v56 = vadd.f32 %v1047_v55, %v1008_v52  ;;  %v1323_v57 = vpop.f32.mrb[9].mxu0 }
 0x13b   : > { %v1050_v58 = vpop.f32.mrb[10].mxu0 }
 0x13c   : > { %v1055_v59 = vadd.f32 %v1054_v54, %v1048_v56  ;;  %v1324_v60 = vpop.f32.mrb[11].mxu0 }
 0x13e   : > { %v1056_v61 = vmax.f32 %v1055_v59, 0.0 }
 0x140   : > { %v1057_v62 = vpack.c.bf16 %v1056_v61, %v1056_v61 }
 0x142   : > { %1058 = vst [vmem:[%s212_s6] sm:$0x3] %v1057_v62 }
 0x143 PF: > { %s14_s15 = sadd.s32 1, %s1417_s15  }
 0x144   : > { %p11_p4 = scmp.ge.s32.totalorder %s14_s15, 4  }
 0x146   :  { %13 = sbr.rel (!%p11_p4) target bundleno = 1 (0x1), region = 69 }

</bundles_post_ra>
